<compile_context>
chip_gen: v5e
topology: v5e:2x2
jax: 0.10.0
libtpu: 0.0.40
codegen_flags: <defaults>
</compile_context>

<pallas_src>
import jax
import jax.numpy as jnp
from jax import lax
from jax.experimental import pallas as pl
from jax.experimental.pallas import tpu as pltpu


# ------------------------- plain-JAX glue (FFTs) -------------------------
# TODO(synk): centered 2-D FFTs (fastmri.fft2c / ifft2c) have no clean Pallas
# TPU equivalent; they stay in plain JAX around the Pallas kernels.
def ifft2c(x):
    x = jnp.fft.ifftshift(x, axes=(-2, -1))
    x = jnp.fft.ifft2(x, axes=(-2, -1), norm="ortho")
    return jnp.fft.fftshift(x, axes=(-2, -1))


def fft2c(x):
    x = jnp.fft.ifftshift(x, axes=(-2, -1))
    x = jnp.fft.fft2(x, axes=(-2, -1), norm="ortho")
    return jnp.fft.fftshift(x, axes=(-2, -1))


def _coil_phase(coil):
    # Deterministic per-coil phase used by the sensitivity-map stand-in.
    return 0.3 + 0.4 * jnp.arange(coil, dtype=jnp.float32)


# ------------------------- tiling / compiler helpers -------------------------
_IMG_TILE = 1024   # lanes per image-chain block (balances vreg pressure vs DMA)
_DC_TILE = 2048    # lanes per DC block (pure streaming -> bigger is better)


def _pick_tile(hw, target):
    if hw % 128 != 0:
        return hw                     # full-extent block still satisfies lane rules
    t = min(hw, target)
    while hw % t:
        t -= 128
    return t


def _compiler_params(dims):
    try:
        kind = jax.devices()[0].device_kind.lower()
    except Exception:
        kind = ""
    # v5e/v6e have 128 MiB VMEM per core; v7x (and unknown chips) get a
    # conservative cap under its 64 MiB physical VMEM.
    vmem = 96 * 1024 * 1024 if ("v5" in kind or "v6" in kind) else 48 * 1024 * 1024
    return pltpu.CompilerParams(dimension_semantics=dims, vmem_limit_bytes=vmem)


# ------------------------- pass 1: reduced-image statistics -------------------------
def _stats_kernel(x_ref, cph_ref, sph_ref, stats_ref):
    """Accumulate per-frame [sum_r, sum_i, sumsq_r, sumsq_i] of the reduced
    image over HW tiles (resident-output accumulator over 'arbitrary' axis)."""
    t = pl.program_id(1)

    @pl.when(t == 0)
    def _():
        stats_ref[...] = jnp.zeros_like(stats_ref)

    C = cph_ref.shape[0]
    x = x_ref[0]                                   # (2C, T)
    r, im = x[0:C, :], x[C:, :]
    # Sens-map stand-in folded algebraically: with s = exp(i*phi) / rss,
    #   red = sum_c x_c * conj(s_c) = inv_rss * sum_c p_c * exp(-i*phi_c),
    # where p_c = |x_c|^2 (reuses the per-coil power for both terms).
    p = r * r + im * im                            # (C, T)
    inv_rss = lax.rsqrt(jnp.sum(p, axis=0, keepdims=True))           # (1, T)
    red_r = inv_rss * jnp.sum(p * cph_ref[...], axis=0, keepdims=True)
    red_i = -inv_rss * jnp.sum(p * sph_ref[...], axis=0, keepdims=True)

    s_r = jnp.sum(red_r, axis=1, keepdims=True)                       # (1, 1)
    s_i = jnp.sum(red_i, axis=1, keepdims=True)
    ss_r = jnp.sum(red_r * red_r, axis=1, keepdims=True)
    ss_i = jnp.sum(red_i * red_i, axis=1, keepdims=True)
    partial = jnp.concatenate([s_r, s_i, ss_r, ss_i], axis=0)         # (4, 1)
    stats_ref[...] = stats_ref[...] + jnp.broadcast_to(partial[None],
                                                       stats_ref.shape)


# ------------------------- pass 2: normalize + MLP + sens_expand -------------------------
def _apply_kernel(x_ref, cph_ref, sph_ref, norm_ref, mlp_ref, out_ref):
    n = pl.program_id(0)
    C = cph_ref.shape[0]
    x = x_ref[0]                                   # (2C, T)
    r, im = x[0:C, :], x[C:, :]
    cph, sph = cph_ref[...], sph_ref[...]

    # TODO(synk): the reference SensitivityModel is an unspecified U-Net; a
    # deterministic stand-in (RSS-normalized coil images rotated by a fixed
    # per-coil phase) is used instead.
    p = r * r + im * im
    inv_rss = lax.rsqrt(jnp.sum(p, axis=0, keepdims=True))            # (1, T)
    sr = (r * cph - im * sph) * inv_rss
    si = (r * sph + im * cph) * inv_rss
    red_r = inv_rss * jnp.sum(p * cph, axis=0, keepdims=True)
    red_i = -inv_rss * jnp.sum(p * sph, axis=0, keepdims=True)

    mean_r, mean_i = norm_ref[n, 0], norm_ref[n, 1]
    std_r, std_i = norm_ref[n, 2], norm_ref[n, 3]
    istd_r, istd_i = norm_ref[n, 4], norm_ref[n, 5]
    b2_r, b2_i = norm_ref[n, 6], norm_ref[n, 7]

    xn_r = (red_r - mean_r) * istd_r
    xn_i = (red_i - mean_i) * istd_i

    # TODO(synk): the U-Net handed to NormUnet is unspecified in the reference;
    # a deterministic per-pixel 2-layer MLP stands in, accumulated over the
    # hidden dim as scalar-broadcast FMAs (no (hidden, TILE) intermediate).
    hidden = mlp_ref.shape[0]

    def mlp_body(h, carry):
        y_r, y_i = carry
        a = jnp.maximum(
            mlp_ref[h, 0] * xn_r + mlp_ref[h, 1] * xn_i + mlp_ref[h, 2], 0.0)
        return (y_r + mlp_ref[h, 3] * a, y_i + mlp_ref[h, 4] * a)

    y_r, y_i = lax.fori_loop(0, hidden, mlp_body,
                             (jnp.zeros_like(xn_r), jnp.zeros_like(xn_i)),
                             unroll=True)
    y_r = (y_r + b2_r) * std_r + mean_r
    y_i = (y_i + b2_i) * std_i + mean_i

    # sens_expand: y * s broadcast over coils; one full-block (unmasked) store.
    er = y_r * sr - y_i * si
    ei = y_r * si + y_i * sr
    out_ref[0] = jnp.concatenate([er, ei], axis=0)


# ------------------------- soft data-consistency kernel -------------------------
def _dc_kernel(x_ref, k_ref, mw_ref, out_ref):
    """out = x - (x - k) * (dc_weight * mask); mw already holds dc_weight*mask
    (2 rows: real / imag mask planes)."""
    C = x_ref.shape[1] // 2
    x, k, mw = x_ref[...], k_ref[...], mw_ref[...]
    tile = mw.shape[1]
    m = jnp.concatenate([jnp.broadcast_to(mw[0:1, :], (C, tile)),
                         jnp.broadcast_to(mw[1:2, :], (C, tile))], axis=0)
    out_ref[...] = x - (x - k) * m[None]


# ------------------------- wrappers -------------------------
def image_chain(x_img, params):
    """Sens-map stand-in -> sens_reduce -> NormUnet -> sens_expand on packed
    (N, 2C, HW) real/imag planes (two lane-tiled pallas_calls)."""
    N, C2, HW = x_img.shape
    C = C2 // 2
    hidden = params["w1"].shape[0]
    tile = _pick_tile(HW, _IMG_TILE)
    n_t = HW // tile

    phi = _coil_phase(C)
    cph = jnp.cos(phi).reshape(C, 1).astype(jnp.float32)
    sph = jnp.sin(phi).reshape(C, 1).astype(jnp.float32)

    x_spec = pl.BlockSpec((1, C2, tile), lambda n, t: (n, 0, t))
    c_spec = pl.BlockSpec((C, 1), lambda n, t: (0, 0))
    smem_spec = pl.BlockSpec(memory_space=pltpu.MemorySpace.SMEM)

    # Pass 1: per-frame sums / sums-of-squares of the reduced image.
    stats = pl.pallas_call(
        _stats_kernel,
        out_shape=jax.ShapeDtypeStruct((N, 4, 128), jnp.float32),
        grid=(N, n_t),
        in_specs=[x_spec, c_spec, c_spec],
        out_specs=pl.BlockSpec((1, 4, 128), lambda n, t: (n, 0, 0)),
        compiler_params=_compiler_params(("parallel", "arbitrary")),
    )(x_img, cph, sph)

    # Finalize torch-style unbiased mean/std from the sums (O(N) scalar math).
    # Note: all-zero frames give inf/NaN, same as the pure-JAX reference.
    s = stats[:, :, 0]                                   # (N, 4)
    mean = s[:, 0:2] / HW
    var = (s[:, 2:4] - HW * mean * mean) / (HW - 1)
    std = jnp.sqrt(var)
    istd = 1.0 / std
    b2 = jnp.broadcast_to(params["b2"].reshape(1, 2), (N, 2))
    norm = jnp.concatenate([mean, std, istd, b2], axis=1).astype(jnp.float32)

    # MLP weights packed for SMEM scalar reads: cols = [w1_r, w1_i, b1, w2_r, w2_i].
    mlp = jnp.concatenate(
        [params["w1"], params["b1"].reshape(hidden, 1), params["w2"].T],
        axis=1).astype(jnp.float32)                      # (hidden, 5)

    # Pass 2: normalize + MLP + sens_expand, fully parallel grid.
    return pl.pallas_call(
        _apply_kernel,
        out_shape=jax.ShapeDtypeStruct((N, C2, HW), jnp.float32),
        grid=(N, n_t),
        in_specs=[x_spec, c_spec, c_spec, smem_spec, smem_spec],
        out_specs=x_spec,
        compiler_params=_compiler_params(("parallel", "parallel")),
    )(x_img, cph, sph, norm, mlp)


def dc_step(x_k, k_pack, mw):
    N, C2, HW = x_k.shape
    tile = _pick_tile(HW, _DC_TILE)
    n_t = HW // tile
    x_spec = pl.BlockSpec((1, C2, tile), lambda n, t: (n, 0, t))
    m_spec = pl.BlockSpec((2, tile), lambda n, t: (0, t))
    return pl.pallas_call(
        _dc_kernel,
        out_shape=jax.ShapeDtypeStruct((N, C2, HW), jnp.float32),
        grid=(N, n_t),
        in_specs=[x_spec, x_spec, m_spec],
        out_specs=x_spec,
        input_output_aliases={0: 0},       # reuse the fft2c-output buffer
        compiler_params=_compiler_params(("parallel", "parallel")),
    )(x_k, k_pack, mw)


# ------------------------- forward pass -------------------------
def mfmc_forward(masked_kspace, mask, params):
    b, T, coil, h, w, two = masked_kspace.shape
    assert two == 2
    assert b == 1, "reference forward's broadcasting is only valid for b == 1"
    HW = h * w
    N = b * T
    C2 = 2 * coil

    k = masked_kspace.reshape(N, coil, h, w, 2).astype(jnp.float32)
    kc = k[..., 0] + 1j * k[..., 1]
    img = ifft2c(kc)                                             # (N, coil, h, w) complex
    x_img = jnp.concatenate([jnp.real(img), jnp.imag(img)], axis=1)
    x_img = x_img.reshape(N, C2, HW).astype(jnp.float32)         # packed real|imag

    e_pack = image_chain(x_img, params)                          # (N, 2C, HW)

    er = e_pack[:, :coil].reshape(N, coil, h, w)
    ei = e_pack[:, coil:].reshape(N, coil, h, w)
    kf = fft2c(er + 1j * ei)
    x_k = jnp.concatenate([jnp.real(kf), jnp.imag(kf)], axis=1)
    x_k = x_k.reshape(N, C2, HW).astype(jnp.float32)
    k_pack = jnp.concatenate([k[..., 0], k[..., 1]], axis=1).reshape(N, C2, HW)

    # Mask as 0/1 planes (row 0 = real, row 1 = imag), pre-scaled by dc_weight
    # so the DC kernel is two FMAs per element (no compare/select).
    m2 = jnp.transpose((mask[0, 0, 0] != 0).astype(jnp.float32), (2, 0, 1))
    mw = m2.reshape(2, HW) * params["dc_weight"].reshape(())

    o_pack = dc_step(x_k, k_pack, mw)                            # (N, 2C, HW)
    o_r = o_pack[:, :coil].reshape(N, coil, h, w)
    o_i = o_pack[:, coil:].reshape(N, coil, h, w)
    return jnp.stack([o_r, o_i], axis=-1).reshape(b, T, coil, h, w, 2)


# ------------------------- pure-JAX reference -------------------------
def mfmc_reference(masked_kspace, mask, params):
    b, T, coil, h, w, _ = masked_kspace.shape
    k = masked_kspace.reshape(T, coil, h, w, 2).astype(jnp.float32)
    kc = k[..., 0] + 1j * k[..., 1]
    img = ifft2c(kc)
    r = jnp.real(img).astype(jnp.float32)                        # (T, coil, h, w)
    i = jnp.imag(img).astype(jnp.float32)

    phi = _coil_phase(coil)
    cph = jnp.cos(phi)[None, :, None, None]
    sph = jnp.sin(phi)[None, :, None, None]
    inv_rss = 1.0 / jnp.sqrt(jnp.sum(r * r + i * i, axis=1, keepdims=True))
    sr = (r * cph - i * sph) * inv_rss
    si = (r * sph + i * cph) * inv_rss

    red_r = jnp.sum(r * sr + i * si, axis=1)                     # (T, h, w)
    red_i = jnp.sum(i * sr - r * si, axis=1)
    x = jnp.stack([red_r, red_i], axis=1).reshape(T, 2, h * w)
    mean = x.mean(axis=2, keepdims=True)
    std = jnp.sqrt(jnp.sum((x - mean) ** 2, axis=2, keepdims=True) / (h * w - 1))
    xn = (x - mean) / std
    hid = jnp.maximum(
        jnp.einsum("hc,tcp->thp", params["w1"], xn,
                   precision=jax.lax.Precision.HIGHEST) + params["b1"][None], 0.0)
    y = jnp.einsum("ch,thp->tcp", params["w2"], hid,
                   precision=jax.lax.Precision.HIGHEST) + params["b2"][None]
    y = y * std + mean

    yr = y[:, 0].reshape(T, 1, h, w)
    yi = y[:, 1].reshape(T, 1, h, w)
    er = yr * sr - yi * si
    ei = yr * si + yi * sr
    kf = fft2c(er + 1j * ei)
    xo = jnp.stack([jnp.real(kf), jnp.imag(kf)], axis=-1)        # (T, coil, h, w, 2)
    m = mask[0, 0]                                               # (1, h, w, 2)
    soft = jnp.where(m[None], xo - k, 0.0) * params["dc_weight"][0]
    return (xo - soft).reshape(b, T, coil, h, w, 2)


def init_params(key, hidden=32):
    k1, k2 = jax.random.split(key)
    return {
        "w1": (0.1 * jax.random.normal(k1, (hidden, 2))).astype(jnp.float32),
        "b1": jnp.zeros((hidden, 1), jnp.float32),
        "w2": (0.1 * jax.random.normal(k2, (2, hidden))).astype(jnp.float32),
        "b2": jnp.zeros((2, 1), jnp.float32),
        "dc_weight": jnp.ones((1,), jnp.float32),   # nn.Parameter(torch.ones(1))
    }


if __name__ == "__main__":
    key = jax.random.PRNGKey(0)
    kk, km, kp = jax.random.split(key, 3)
    # h = w = 64 -> HW = 4096: exercises the multi-tile grid (image chain:
    # 4 tiles of 1024 lanes; DC: 2 tiles of 2048) and the two-pass statistics.
    b, T, coil, h, w = 1, 2, 4, 64, 64

    masked_kspace = jax.random.normal(kk, (b, T, coil, h, w, 2), jnp.float32)
    mask2d = jax.random.uniform(km, (h, w)) < 0.5
    mask = jnp.broadcast_to(mask2d[None, None, None, :, :, None], (b, 1, 1, h, w, 2))
    params = init_params(kp)

    out = jax.jit(mfmc_forward)(masked_kspace, mask, params)
    out = jax.block_until_ready(out)

    ref = mfmc_reference(masked_kspace, mask, params)
    assert out.shape == (b, T, coil, h, w, 2)
    err = float(jnp.max(jnp.abs(out - ref)))
    assert jnp.allclose(out, ref, rtol=2e-3, atol=2e-3), err
    print("KERNEL_OK")
</pallas_src>

<mosaic_0001>
module attributes {stable_mosaic.version = 11 : i64} {
  func.func @_stats_kernel(%arg0: i32, %arg1: i32, %arg2: memref<1x8x1024xf32, #tpu.memory_space<vmem>>, %arg3: memref<4x1xf32, #tpu.memory_space<vmem>>, %arg4: memref<4x1xf32, #tpu.memory_space<vmem>>, %arg5: memref<1x4x128xf32, #tpu.memory_space<vmem>>) attributes {dimension_semantics = [#tpu.dimension_semantics<parallel>, #tpu.dimension_semantics<arbitrary>], iteration_bounds = array<i64: 2, 4>, scalar_prefetch = 0 : i64, scratch_operands = 0 : i64, tpu.core_type = #tpu.core_type<tc>, window_params = [{transform_indices = @transform_0, window_bounds = array<i64: 1, 8, 1024>}, {pipeline_mode = #tpu.pipeline_mode<synchronous>, transform_indices = @transform_1, window_bounds = array<i64: 4, 1>}, {pipeline_mode = #tpu.pipeline_mode<synchronous>, transform_indices = @transform_2, window_bounds = array<i64: 4, 1>}, {transform_indices = @transform_3, window_bounds = array<i64: 1, 4, 128>}]} {
    %c0_i32 = arith.constant 0 : i32
    %0 = arith.cmpi eq, %arg1, %c0_i32 : i32
    %1 = arith.extui %0 : i1 to i32
    %c0_i32_0 = arith.constant 0 : i32
    %2 = arith.cmpi ne, %1, %c0_i32_0 : i32
    scf.if %2 {
      %cst_20 = arith.constant 0.000000e+00 : f32
      %44 = vector.broadcast %cst_20 : f32 to vector<1x4x128xf32>
      %c0_21 = arith.constant 0 : index
      %c0_22 = arith.constant 0 : index
      %c0_23 = arith.constant 0 : index
      %45 = vector.load %arg5[%c0_21, %c0_22, %c0_23] : memref<1x4x128xf32, #tpu.memory_space<vmem>>, vector<1x4x128xf32>
      tpu.vector_store %arg5[%c0_21, %c0_22, %c0_23], %44 {strides = array<i32>} : memref<1x4x128xf32, #tpu.memory_space<vmem>>, vector<1x4x128xf32>,
    } else {
    }
    %c0 = arith.constant 0 : index
    %c0_1 = arith.constant 0 : index
    %c0_2 = arith.constant 0 : index
    %3 = vector.load %arg2[%c0, %c0_1, %c0_2] : memref<1x8x1024xf32, #tpu.memory_space<vmem>>, vector<1x8x1024xf32>
    %4 = vector.shape_cast %3 : vector<1x8x1024xf32> to vector<8x1024xf32>
    %5 = vector.extract_strided_slice %4 {offsets = [0, 0], sizes = [4, 1024], strides = [1, 1]} : vector<8x1024xf32> to vector<4x1024xf32>
    %6 = vector.extract_strided_slice %4 {offsets = [4, 0], sizes = [4, 1024], strides = [1, 1]} : vector<8x1024xf32> to vector<4x1024xf32>
    %7 = arith.mulf %5, %5 : vector<4x1024xf32>
    %8 = arith.mulf %6, %6 : vector<4x1024xf32>
    %9 = arith.addf %7, %8 : vector<4x1024xf32>
    %cst = arith.constant dense<0.000000e+00> : vector<1024xf32>
    %10 = vector.multi_reduction <add>, %9, %cst [0] : vector<4x1024xf32> to vector<1024xf32>
    %11 = vector.shape_cast %10 : vector<1024xf32> to vector<1x1024xf32>
    %12 = math.rsqrt %11 : vector<1x1024xf32>
    %c0_3 = arith.constant 0 : index
    %c0_4 = arith.constant 0 : index
    %13 = vector.load %arg3[%c0_3, %c0_4] : memref<4x1xf32, #tpu.memory_space<vmem>>, vector<4x1xf32>
    %14 = vector.broadcast %13 : vector<4x1xf32> to vector<4x1024xf32>
    %15 = arith.mulf %9, %14 : vector<4x1024xf32>
    %cst_5 = arith.constant dense<0.000000e+00> : vector<1024xf32>
    %16 = vector.multi_reduction <add>, %15, %cst_5 [0] : vector<4x1024xf32> to vector<1024xf32>
    %17 = vector.shape_cast %16 : vector<1024xf32> to vector<1x1024xf32>
    %18 = arith.mulf %12, %17 : vector<1x1024xf32>
    %cst_6 = arith.constant 0.000000e+00 : f32
    %19 = vector.broadcast %cst_6 : f32 to vector<1x1024xf32>
    %20 = arith.subf %19, %12 : vector<1x1024xf32>
    %c0_7 = arith.constant 0 : index
    %c0_8 = arith.constant 0 : index
    %21 = vector.load %arg4[%c0_7, %c0_8] : memref<4x1xf32, #tpu.memory_space<vmem>>, vector<4x1xf32>
    %22 = vector.broadcast %21 : vector<4x1xf32> to vector<4x1024xf32>
    %23 = arith.mulf %9, %22 : vector<4x1024xf32>
    %cst_9 = arith.constant dense<0.000000e+00> : vector<1024xf32>
    %24 = vector.multi_reduction <add>, %23, %cst_9 [0] : vector<4x1024xf32> to vector<1024xf32>
    %25 = vector.shape_cast %24 : vector<1024xf32> to vector<1x1024xf32>
    %26 = arith.mulf %20, %25 : vector<1x1024xf32>
    %cst_10 = arith.constant dense<0.000000e+00> : vector<1xf32>
    %27 = vector.multi_reduction <add>, %18, %cst_10 [1] : vector<1x1024xf32> to vector<1xf32>
    %28 = vector.shape_cast %27 : vector<1xf32> to vector<1x1xf32>
    %cst_11 = arith.constant dense<0.000000e+00> : vector<1xf32>
    %29 = vector.multi_reduction <add>, %26, %cst_11 [1] : vector<1x1024xf32> to vector<1xf32>
    %30 = vector.shape_cast %29 : vector<1xf32> to vector<1x1xf32>
    %31 = arith.mulf %18, %18 : vector<1x1024xf32>
    %cst_12 = arith.constant dense<0.000000e+00> : vector<1xf32>
    %32 = vector.multi_reduction <add>, %31, %cst_12 [1] : vector<1x1024xf32> to vector<1xf32>
    %33 = vector.shape_cast %32 : vector<1xf32> to vector<1x1xf32>
    %34 = arith.mulf %26, %26 : vector<1x1024xf32>
    %cst_13 = arith.constant dense<0.000000e+00> : vector<1xf32>
    %35 = vector.multi_reduction <add>, %34, %cst_13 [1] : vector<1x1024xf32> to vector<1xf32>
    %36 = vector.shape_cast %35 : vector<1xf32> to vector<1x1xf32>
    %37 = tpu.concatenate %28, %30, %33, %36 in 0 : vector<1x1xf32>, vector<1x1xf32>, vector<1x1xf32>, vector<1x1xf32> -> vector<4x1xf32>
    %c0_14 = arith.constant 0 : index
    %c0_15 = arith.constant 0 : index
    %c0_16 = arith.constant 0 : index
    %38 = vector.load %arg5[%c0_14, %c0_15, %c0_16] : memref<1x4x128xf32, #tpu.memory_space<vmem>>, vector<1x4x128xf32>
    %39 = vector.shape_cast %37 : vector<4x1xf32> to vector<1x4x1xf32>
    %40 = vector.shape_cast %39 : vector<1x4x1xf32> to vector<1x4x1xf32>
    %41 = vector.broadcast %40 : vector<1x4x1xf32> to vector<1x4x128xf32>
    %42 = arith.addf %38, %41 : vector<1x4x128xf32>
    %c0_17 = arith.constant 0 : index
    %c0_18 = arith.constant 0 : index
    %c0_19 = arith.constant 0 : index
    %43 = vector.load %arg5[%c0_17, %c0_18, %c0_19] : memref<1x4x128xf32, #tpu.memory_space<vmem>>, vector<1x4x128xf32>
    tpu.vector_store %arg5[%c0_17, %c0_18, %c0_19], %42 {strides = array<i32>} : memref<1x4x128xf32, #tpu.memory_space<vmem>>, vector<1x4x128xf32>,
    return
  }
  func.func @transform_0(%arg0: i32, %arg1: i32) -> (i32, i32, i32) {
    %c0_i32 = arith.constant 0 : i32
    %c0_i32_0 = arith.constant 0 : i32
    return %arg0, %c0_i32, %arg1 : i32, i32, i32
  }
  func.func @transform_1(%arg0: i32, %arg1: i32) -> (i32, i32) {
    %c0_i32 = arith.constant 0 : i32
    %c0_i32_0 = arith.constant 0 : i32
    %c0_i32_1 = arith.constant 0 : i32
    return %c0_i32, %c0_i32_0 : i32, i32
  }
  func.func @transform_2(%arg0: i32, %arg1: i32) -> (i32, i32) {
    %c0_i32 = arith.constant 0 : i32
    %c0_i32_0 = arith.constant 0 : i32
    %c0_i32_1 = arith.constant 0 : i32
    return %c0_i32, %c0_i32_0 : i32, i32
  }
  func.func @transform_3(%arg0: i32, %arg1: i32) -> (i32, i32, i32) {
    %c0_i32 = arith.constant 0 : i32
    %c0_i32_0 = arith.constant 0 : i32
    %c0_i32_1 = arith.constant 0 : i32
    return %arg0, %c0_i32, %c0_i32_0 : i32, i32, i32
  }
}

module attributes {stable_mosaic.version = 11 : i64} {
  func.func @_apply_kernel(%arg0: i32, %arg1: i32, %arg2: memref<1x8x1024xf32, #tpu.memory_space<vmem>>, %arg3: memref<4x1xf32, #tpu.memory_space<vmem>>, %arg4: memref<4x1xf32, #tpu.memory_space<vmem>>, %arg5: memref<2x8xf32, #tpu.memory_space<smem>>, %arg6: memref<32x5xf32, #tpu.memory_space<smem>>, %arg7: memref<1x8x1024xf32, #tpu.memory_space<vmem>>) attributes {dimension_semantics = [#tpu.dimension_semantics<parallel>, #tpu.dimension_semantics<parallel>], iteration_bounds = array<i64: 2, 4>, scalar_prefetch = 0 : i64, scratch_operands = 0 : i64, tpu.core_type = #tpu.core_type<tc>, window_params = [{transform_indices = @transform_0, window_bounds = array<i64: 1, 8, 1024>}, {pipeline_mode = #tpu.pipeline_mode<synchronous>, transform_indices = @transform_1, window_bounds = array<i64: 4, 1>}, {pipeline_mode = #tpu.pipeline_mode<synchronous>, transform_indices = @transform_2, window_bounds = array<i64: 4, 1>}, {transform_indices = @transform_3, window_bounds = array<i64: 2, 8>}, {transform_indices = @transform_4, window_bounds = array<i64: 32, 5>}, {transform_indices = @transform_5, window_bounds = array<i64: 1, 8, 1024>}]} {
    %c0 = arith.constant 0 : index
    %c0_0 = arith.constant 0 : index
    %c0_1 = arith.constant 0 : index
    %0 = vector.load %arg2[%c0, %c0_0, %c0_1] : memref<1x8x1024xf32, #tpu.memory_space<vmem>>, vector<1x8x1024xf32>
    %1 = vector.shape_cast %0 : vector<1x8x1024xf32> to vector<8x1024xf32>
    %2 = vector.extract_strided_slice %1 {offsets = [0, 0], sizes = [4, 1024], strides = [1, 1]} : vector<8x1024xf32> to vector<4x1024xf32>
    %3 = vector.extract_strided_slice %1 {offsets = [4, 0], sizes = [4, 1024], strides = [1, 1]} : vector<8x1024xf32> to vector<4x1024xf32>
    %c0_2 = arith.constant 0 : index
    %c0_3 = arith.constant 0 : index
    %4 = vector.load %arg3[%c0_2, %c0_3] : memref<4x1xf32, #tpu.memory_space<vmem>>, vector<4x1xf32>
    %c0_4 = arith.constant 0 : index
    %c0_5 = arith.constant 0 : index
    %5 = vector.load %arg4[%c0_4, %c0_5] : memref<4x1xf32, #tpu.memory_space<vmem>>, vector<4x1xf32>
    %6 = arith.mulf %2, %2 : vector<4x1024xf32>
    %7 = arith.mulf %3, %3 : vector<4x1024xf32>
    %8 = arith.addf %6, %7 : vector<4x1024xf32>
    %cst = arith.constant dense<0.000000e+00> : vector<1024xf32>
    %9 = vector.multi_reduction <add>, %8, %cst [0] : vector<4x1024xf32> to vector<1024xf32>
    %10 = vector.shape_cast %9 : vector<1024xf32> to vector<1x1024xf32>
    %11 = math.rsqrt %10 : vector<1x1024xf32>
    %12 = vector.broadcast %4 : vector<4x1xf32> to vector<4x1024xf32>
    %13 = arith.mulf %2, %12 : vector<4x1024xf32>
    %14 = vector.broadcast %5 : vector<4x1xf32> to vector<4x1024xf32>
    %15 = arith.mulf %3, %14 : vector<4x1024xf32>
    %16 = arith.subf %13, %15 : vector<4x1024xf32>
    %17 = vector.broadcast %11 : vector<1x1024xf32> to vector<4x1024xf32>
    %18 = arith.mulf %16, %17 : vector<4x1024xf32>
    %19 = vector.broadcast %5 : vector<4x1xf32> to vector<4x1024xf32>
    %20 = arith.mulf %2, %19 : vector<4x1024xf32>
    %21 = vector.broadcast %4 : vector<4x1xf32> to vector<4x1024xf32>
    %22 = arith.mulf %3, %21 : vector<4x1024xf32>
    %23 = arith.addf %20, %22 : vector<4x1024xf32>
    %24 = vector.broadcast %11 : vector<1x1024xf32> to vector<4x1024xf32>
    %25 = arith.mulf %23, %24 : vector<4x1024xf32>
    %26 = vector.broadcast %4 : vector<4x1xf32> to vector<4x1024xf32>
    %27 = arith.mulf %8, %26 : vector<4x1024xf32>
    %cst_6 = arith.constant dense<0.000000e+00> : vector<1024xf32>
    %28 = vector.multi_reduction <add>, %27, %cst_6 [0] : vector<4x1024xf32> to vector<1024xf32>
    %29 = vector.shape_cast %28 : vector<1024xf32> to vector<1x1024xf32>
    %30 = arith.mulf %11, %29 : vector<1x1024xf32>
    %cst_7 = arith.constant 0.000000e+00 : f32
    %31 = vector.broadcast %cst_7 : f32 to vector<1x1024xf32>
    %32 = arith.subf %31, %11 : vector<1x1024xf32>
    %33 = vector.broadcast %5 : vector<4x1xf32> to vector<4x1024xf32>
    %34 = arith.mulf %8, %33 : vector<4x1024xf32>
    %cst_8 = arith.constant dense<0.000000e+00> : vector<1024xf32>
    %35 = vector.multi_reduction <add>, %34, %cst_8 [0] : vector<4x1024xf32> to vector<1024xf32>
    %36 = vector.shape_cast %35 : vector<1024xf32> to vector<1x1024xf32>
    %37 = arith.mulf %32, %36 : vector<1x1024xf32>
    %38 = arith.index_cast %arg0 : i32 to index
    %c0_9 = arith.constant 0 : index
    %39 = memref.load %arg5[%38, %c0_9] : memref<2x8xf32, #tpu.memory_space<smem>>
    %40 = arith.index_cast %arg0 : i32 to index
    %c1 = arith.constant 1 : index
    %41 = memref.load %arg5[%40, %c1] : memref<2x8xf32, #tpu.memory_space<smem>>
    %42 = arith.index_cast %arg0 : i32 to index
    %c2 = arith.constant 2 : index
    %43 = memref.load %arg5[%42, %c2] : memref<2x8xf32, #tpu.memory_space<smem>>
    %44 = arith.index_cast %arg0 : i32 to index
    %c3 = arith.constant 3 : index
    %45 = memref.load %arg5[%44, %c3] : memref<2x8xf32, #tpu.memory_space<smem>>
    %46 = arith.index_cast %arg0 : i32 to index
    %c4 = arith.constant 4 : index
    %47 = memref.load %arg5[%46, %c4] : memref<2x8xf32, #tpu.memory_space<smem>>
    %48 = arith.index_cast %arg0 : i32 to index
    %c5 = arith.constant 5 : index
    %49 = memref.load %arg5[%48, %c5] : memref<2x8xf32, #tpu.memory_space<smem>>
    %50 = arith.index_cast %arg0 : i32 to index
    %c6 = arith.constant 6 : index
    %51 = memref.load %arg5[%50, %c6] : memref<2x8xf32, #tpu.memory_space<smem>>
    %52 = arith.index_cast %arg0 : i32 to index
    %c7 = arith.constant 7 : index
    %53 = memref.load %arg5[%52, %c7] : memref<2x8xf32, #tpu.memory_space<smem>>
    %54 = vector.broadcast %39 : f32 to vector<1x1024xf32>
    %55 = arith.subf %30, %54 : vector<1x1024xf32>
    %56 = vector.broadcast %47 : f32 to vector<1x1024xf32>
    %57 = arith.mulf %55, %56 : vector<1x1024xf32>
    %58 = vector.broadcast %41 : f32 to vector<1x1024xf32>
    %59 = arith.subf %37, %58 : vector<1x1024xf32>
    %60 = vector.broadcast %49 : f32 to vector<1x1024xf32>
    %61 = arith.mulf %59, %60 : vector<1x1024xf32>
    %cst_10 = arith.constant 0.000000e+00 : f32
    %62 = vector.broadcast %cst_10 : f32 to vector<1x1024xf32>
    %cst_11 = arith.constant 0.000000e+00 : f32
    %63 = vector.broadcast %cst_11 : f32 to vector<1x1024xf32>
    %c0_i32 = arith.constant 0 : i32
    %64 = arith.index_cast %c0_i32 : i32 to index
    %c0_12 = arith.constant 0 : index
    %65 = memref.load %arg6[%64, %c0_12] : memref<32x5xf32, #tpu.memory_space<smem>>
    %66 = vector.broadcast %65 : f32 to vector<1x1024xf32>
    %67 = arith.mulf %66, %57 : vector<1x1024xf32>
    %68 = arith.index_cast %c0_i32 : i32 to index
    %c1_13 = arith.constant 1 : index
    %69 = memref.load %arg6[%68, %c1_13] : memref<32x5xf32, #tpu.memory_space<smem>>
    %70 = vector.broadcast %69 : f32 to vector<1x1024xf32>
    %71 = arith.mulf %70, %61 : vector<1x1024xf32>
    %72 = arith.addf %67, %71 : vector<1x1024xf32>
    %73 = arith.index_cast %c0_i32 : i32 to index
    %c2_14 = arith.constant 2 : index
    %74 = memref.load %arg6[%73, %c2_14] : memref<32x5xf32, #tpu.memory_space<smem>>
    %75 = vector.broadcast %74 : f32 to vector<1x1024xf32>
    %76 = arith.addf %72, %75 : vector<1x1024xf32>
    %cst_15 = arith.constant 0.000000e+00 : f32
    %77 = vector.broadcast %cst_15 : f32 to vector<1x1024xf32>
    %78 = arith.maximumf %76, %77 : vector<1x1024xf32>
    %79 = arith.index_cast %c0_i32 : i32 to index
    %c3_16 = arith.constant 3 : index
    %80 = memref.load %arg6[%79, %c3_16] : memref<32x5xf32, #tpu.memory_space<smem>>
    %81 = vector.broadcast %80 : f32 to vector<1x1024xf32>
    %82 = arith.mulf %81, %78 : vector<1x1024xf32>
    %83 = arith.addf %62, %82 : vector<1x1024xf32>
    %84 = arith.index_cast %c0_i32 : i32 to index
    %c4_17 = arith.constant 4 : index
    %85 = memref.load %arg6[%84, %c4_17] : memref<32x5xf32, #tpu.memory_space<smem>>
    %86 = vector.broadcast %85 : f32 to vector<1x1024xf32>
    %87 = arith.mulf %86, %78 : vector<1x1024xf32>
    %88 = arith.addf %63, %87 : vector<1x1024xf32>
    %c1_i32 = arith.constant 1 : i32
    %89 = arith.index_cast %c1_i32 : i32 to index
    %c0_18 = arith.constant 0 : index
    %90 = memref.load %arg6[%89, %c0_18] : memref<32x5xf32, #tpu.memory_space<smem>>
    %91 = vector.broadcast %90 : f32 to vector<1x1024xf32>
    %92 = arith.mulf %91, %57 : vector<1x1024xf32>
    %93 = arith.index_cast %c1_i32 : i32 to index
    %c1_19 = arith.constant 1 : index
    %94 = memref.load %arg6[%93, %c1_19] : memref<32x5xf32, #tpu.memory_space<smem>>
    %95 = vector.broadcast %94 : f32 to vector<1x1024xf32>
    %96 = arith.mulf %95, %61 : vector<1x1024xf32>
    %97 = arith.addf %92, %96 : vector<1x1024xf32>
    %98 = arith.index_cast %c1_i32 : i32 to index
    %c2_20 = arith.constant 2 : index
    %99 = memref.load %arg6[%98, %c2_20] : memref<32x5xf32, #tpu.memory_space<smem>>
    %100 = vector.broadcast %99 : f32 to vector<1x1024xf32>
    %101 = arith.addf %97, %100 : vector<1x1024xf32>
    %cst_21 = arith.constant 0.000000e+00 : f32
    %102 = vector.broadcast %cst_21 : f32 to vector<1x1024xf32>
    %103 = arith.maximumf %101, %102 : vector<1x1024xf32>
    %104 = arith.index_cast %c1_i32 : i32 to index
    %c3_22 = arith.constant 3 : index
    %105 = memref.load %arg6[%104, %c3_22] : memref<32x5xf32, #tpu.memory_space<smem>>
    %106 = vector.broadcast %105 : f32 to vector<1x1024xf32>
    %107 = arith.mulf %106, %103 : vector<1x1024xf32>
    %108 = arith.addf %83, %107 : vector<1x1024xf32>
    %109 = arith.index_cast %c1_i32 : i32 to index
    %c4_23 = arith.constant 4 : index
    %110 = memref.load %arg6[%109, %c4_23] : memref<32x5xf32, #tpu.memory_space<smem>>
    %111 = vector.broadcast %110 : f32 to vector<1x1024xf32>
    %112 = arith.mulf %111, %103 : vector<1x1024xf32>
    %113 = arith.addf %88, %112 : vector<1x1024xf32>
    %c2_i32 = arith.constant 2 : i32
    %114 = arith.index_cast %c2_i32 : i32 to index
    %c0_24 = arith.constant 0 : index
    %115 = memref.load %arg6[%114, %c0_24] : memref<32x5xf32, #tpu.memory_space<smem>>
    %116 = vector.broadcast %115 : f32 to vector<1x1024xf32>
    %117 = arith.mulf %116, %57 : vector<1x1024xf32>
    %118 = arith.index_cast %c2_i32 : i32 to index
    %c1_25 = arith.constant 1 : index
    %119 = memref.load %arg6[%118, %c1_25] : memref<32x5xf32, #tpu.memory_space<smem>>
    %120 = vector.broadcast %119 : f32 to vector<1x1024xf32>
    %121 = arith.mulf %120, %61 : vector<1x1024xf32>
    %122 = arith.addf %117, %121 : vector<1x1024xf32>
    %123 = arith.index_cast %c2_i32 : i32 to index
    %c2_26 = arith.constant 2 : index
    %124 = memref.load %arg6[%123, %c2_26] : memref<32x5xf32, #tpu.memory_space<smem>>
    %125 = vector.broadcast %124 : f32 to vector<1x1024xf32>
    %126 = arith.addf %122, %125 : vector<1x1024xf32>
    %cst_27 = arith.constant 0.000000e+00 : f32
    %127 = vector.broadcast %cst_27 : f32 to vector<1x1024xf32>
    %128 = arith.maximumf %126, %127 : vector<1x1024xf32>
    %129 = arith.index_cast %c2_i32 : i32 to index
    %c3_28 = arith.constant 3 : index
    %130 = memref.load %arg6[%129, %c3_28] : memref<32x5xf32, #tpu.memory_space<smem>>
    %131 = vector.broadcast %130 : f32 to vector<1x1024xf32>
    %132 = arith.mulf %131, %128 : vector<1x1024xf32>
    %133 = arith.addf %108, %132 : vector<1x1024xf32>
    %134 = arith.index_cast %c2_i32 : i32 to index
    %c4_29 = arith.constant 4 : index
    %135 = memref.load %arg6[%134, %c4_29] : memref<32x5xf32, #tpu.memory_space<smem>>
    %136 = vector.broadcast %135 : f32 to vector<1x1024xf32>
    %137 = arith.mulf %136, %128 : vector<1x1024xf32>
    %138 = arith.addf %113, %137 : vector<1x1024xf32>
    %c3_i32 = arith.constant 3 : i32
    %139 = arith.index_cast %c3_i32 : i32 to index
    %c0_30 = arith.constant 0 : index
    %140 = memref.load %arg6[%139, %c0_30] : memref<32x5xf32, #tpu.memory_space<smem>>
    %141 = vector.broadcast %140 : f32 to vector<1x1024xf32>
    %142 = arith.mulf %141, %57 : vector<1x1024xf32>
    %143 = arith.index_cast %c3_i32 : i32 to index
    %c1_31 = arith.constant 1 : index
    %144 = memref.load %arg6[%143, %c1_31] : memref<32x5xf32, #tpu.memory_space<smem>>
    %145 = vector.broadcast %144 : f32 to vector<1x1024xf32>
    %146 = arith.mulf %145, %61 : vector<1x1024xf32>
    %147 = arith.addf %142, %146 : vector<1x1024xf32>
    %148 = arith.index_cast %c3_i32 : i32 to index
    %c2_32 = arith.constant 2 : index
    %149 = memref.load %arg6[%148, %c2_32] : memref<32x5xf32, #tpu.memory_space<smem>>
    %150 = vector.broadcast %149 : f32 to vector<1x1024xf32>
    %151 = arith.addf %147, %150 : vector<1x1024xf32>
    %cst_33 = arith.constant 0.000000e+00 : f32
    %152 = vector.broadcast %cst_33 : f32 to vector<1x1024xf32>
    %153 = arith.maximumf %151, %152 : vector<1x1024xf32>
    %154 = arith.index_cast %c3_i32 : i32 to index
    %c3_34 = arith.constant 3 : index
    %155 = memref.load %arg6[%154, %c3_34] : memref<32x5xf32, #tpu.memory_space<smem>>
    %156 = vector.broadcast %155 : f32 to vector<1x1024xf32>
    %157 = arith.mulf %156, %153 : vector<1x1024xf32>
    %158 = arith.addf %133, %157 : vector<1x1024xf32>
    %159 = arith.index_cast %c3_i32 : i32 to index
    %c4_35 = arith.constant 4 : index
    %160 = memref.load %arg6[%159, %c4_35] : memref<32x5xf32, #tpu.memory_space<smem>>
    %161 = vector.broadcast %160 : f32 to vector<1x1024xf32>
    %162 = arith.mulf %161, %153 : vector<1x1024xf32>
    %163 = arith.addf %138, %162 : vector<1x1024xf32>
    %c4_i32 = arith.constant 4 : i32
    %164 = arith.index_cast %c4_i32 : i32 to index
    %c0_36 = arith.constant 0 : index
    %165 = memref.load %arg6[%164, %c0_36] : memref<32x5xf32, #tpu.memory_space<smem>>
    %166 = vector.broadcast %165 : f32 to vector<1x1024xf32>
    %167 = arith.mulf %166, %57 : vector<1x1024xf32>
    %168 = arith.index_cast %c4_i32 : i32 to index
    %c1_37 = arith.constant 1 : index
    %169 = memref.load %arg6[%168, %c1_37] : memref<32x5xf32, #tpu.memory_space<smem>>
    %170 = vector.broadcast %169 : f32 to vector<1x1024xf32>
    %171 = arith.mulf %170, %61 : vector<1x1024xf32>
    %172 = arith.addf %167, %171 : vector<1x1024xf32>
    %173 = arith.index_cast %c4_i32 : i32 to index
    %c2_38 = arith.constant 2 : index
    %174 = memref.load %arg6[%173, %c2_38] : memref<32x5xf32, #tpu.memory_space<smem>>
    %175 = vector.broadcast %174 : f32 to vector<1x1024xf32>
    %176 = arith.addf %172, %175 : vector<1x1024xf32>
    %cst_39 = arith.constant 0.000000e+00 : f32
    %177 = vector.broadcast %cst_39 : f32 to vector<1x1024xf32>
    %178 = arith.maximumf %176, %177 : vector<1x1024xf32>
    %179 = arith.index_cast %c4_i32 : i32 to index
    %c3_40 = arith.constant 3 : index
    %180 = memref.load %arg6[%179, %c3_40] : memref<32x5xf32, #tpu.memory_space<smem>>
    %181 = vector.broadcast %180 : f32 to vector<1x1024xf32>
    %182 = arith.mulf %181, %178 : vector<1x1024xf32>
    %183 = arith.addf %158, %182 : vector<1x1024xf32>
    %184 = arith.index_cast %c4_i32 : i32 to index
    %c4_41 = arith.constant 4 : index
    %185 = memref.load %arg6[%184, %c4_41] : memref<32x5xf32, #tpu.memory_space<smem>>
    %186 = vector.broadcast %185 : f32 to vector<1x1024xf32>
    %187 = arith.mulf %186, %178 : vector<1x1024xf32>
    %188 = arith.addf %163, %187 : vector<1x1024xf32>
    %c5_i32 = arith.constant 5 : i32
    %189 = arith.index_cast %c5_i32 : i32 to index
    %c0_42 = arith.constant 0 : index
    %190 = memref.load %arg6[%189, %c0_42] : memref<32x5xf32, #tpu.memory_space<smem>>
    %191 = vector.broadcast %190 : f32 to vector<1x1024xf32>
    %192 = arith.mulf %191, %57 : vector<1x1024xf32>
    %193 = arith.index_cast %c5_i32 : i32 to index
    %c1_43 = arith.constant 1 : index
    %194 = memref.load %arg6[%193, %c1_43] : memref<32x5xf32, #tpu.memory_space<smem>>
    %195 = vector.broadcast %194 : f32 to vector<1x1024xf32>
    %196 = arith.mulf %195, %61 : vector<1x1024xf32>
    %197 = arith.addf %192, %196 : vector<1x1024xf32>
    %198 = arith.index_cast %c5_i32 : i32 to index
    %c2_44 = arith.constant 2 : index
    %199 = memref.load %arg6[%198, %c2_44] : memref<32x5xf32, #tpu.memory_space<smem>>
    %200 = vector.broadcast %199 : f32 to vector<1x1024xf32>
    %201 = arith.addf %197, %200 : vector<1x1024xf32>
    %cst_45 = arith.constant 0.000000e+00 : f32
    %202 = vector.broadcast %cst_45 : f32 to vector<1x1024xf32>
    %203 = arith.maximumf %201, %202 : vector<1x1024xf32>
    %204 = arith.index_cast %c5_i32 : i32 to index
    %c3_46 = arith.constant 3 : index
    %205 = memref.load %arg6[%204, %c3_46] : memref<32x5xf32, #tpu.memory_space<smem>>
    %206 = vector.broadcast %205 : f32 to vector<1x1024xf32>
    %207 = arith.mulf %206, %203 : vector<1x1024xf32>
    %208 = arith.addf %183, %207 : vector<1x1024xf32>
    %209 = arith.index_cast %c5_i32 : i32 to index
    %c4_47 = arith.constant 4 : index
    %210 = memref.load %arg6[%209, %c4_47] : memref<32x5xf32, #tpu.memory_space<smem>>
    %211 = vector.broadcast %210 : f32 to vector<1x1024xf32>
    %212 = arith.mulf %211, %203 : vector<1x1024xf32>
    %213 = arith.addf %188, %212 : vector<1x1024xf32>
    %c6_i32 = arith.constant 6 : i32
    %214 = arith.index_cast %c6_i32 : i32 to index
    %c0_48 = arith.constant 0 : index
    %215 = memref.load %arg6[%214, %c0_48] : memref<32x5xf32, #tpu.memory_space<smem>>
    %216 = vector.broadcast %215 : f32 to vector<1x1024xf32>
    %217 = arith.mulf %216, %57 : vector<1x1024xf32>
    %218 = arith.index_cast %c6_i32 : i32 to index
    %c1_49 = arith.constant 1 : index
    %219 = memref.load %arg6[%218, %c1_49] : memref<32x5xf32, #tpu.memory_space<smem>>
    %220 = vector.broadcast %219 : f32 to vector<1x1024xf32>
    %221 = arith.mulf %220, %61 : vector<1x1024xf32>
    %222 = arith.addf %217, %221 : vector<1x1024xf32>
    %223 = arith.index_cast %c6_i32 : i32 to index
    %c2_50 = arith.constant 2 : index
    %224 = memref.load %arg6[%223, %c2_50] : memref<32x5xf32, #tpu.memory_space<smem>>
    %225 = vector.broadcast %224 : f32 to vector<1x1024xf32>
    %226 = arith.addf %222, %225 : vector<1x1024xf32>
    %cst_51 = arith.constant 0.000000e+00 : f32
    %227 = vector.broadcast %cst_51 : f32 to vector<1x1024xf32>
    %228 = arith.maximumf %226, %227 : vector<1x1024xf32>
    %229 = arith.index_cast %c6_i32 : i32 to index
    %c3_52 = arith.constant 3 : index
    %230 = memref.load %arg6[%229, %c3_52] : memref<32x5xf32, #tpu.memory_space<smem>>
    %231 = vector.broadcast %230 : f32 to vector<1x1024xf32>
    %232 = arith.mulf %231, %228 : vector<1x1024xf32>
    %233 = arith.addf %208, %232 : vector<1x1024xf32>
    %234 = arith.index_cast %c6_i32 : i32 to index
    %c4_53 = arith.constant 4 : index
    %235 = memref.load %arg6[%234, %c4_53] : memref<32x5xf32, #tpu.memory_space<smem>>
    %236 = vector.broadcast %235 : f32 to vector<1x1024xf32>
    %237 = arith.mulf %236, %228 : vector<1x1024xf32>
    %238 = arith.addf %213, %237 : vector<1x1024xf32>
    %c7_i32 = arith.constant 7 : i32
    %239 = arith.index_cast %c7_i32 : i32 to index
    %c0_54 = arith.constant 0 : index
    %240 = memref.load %arg6[%239, %c0_54] : memref<32x5xf32, #tpu.memory_space<smem>>
    %241 = vector.broadcast %240 : f32 to vector<1x1024xf32>
    %242 = arith.mulf %241, %57 : vector<1x1024xf32>
    %243 = arith.index_cast %c7_i32 : i32 to index
    %c1_55 = arith.constant 1 : index
    %244 = memref.load %arg6[%243, %c1_55] : memref<32x5xf32, #tpu.memory_space<smem>>
    %245 = vector.broadcast %244 : f32 to vector<1x1024xf32>
    %246 = arith.mulf %245, %61 : vector<1x1024xf32>
    %247 = arith.addf %242, %246 : vector<1x1024xf32>
    %248 = arith.index_cast %c7_i32 : i32 to index
    %c2_56 = arith.constant 2 : index
    %249 = memref.load %arg6[%248, %c2_56] : memref<32x5xf32, #tpu.memory_space<smem>>
    %250 = vector.broadcast %249 : f32 to vector<1x1024xf32>
    %251 = arith.addf %247, %250 : vector<1x1024xf32>
    %cst_57 = arith.constant 0.000000e+00 : f32
    %252 = vector.broadcast %cst_57 : f32 to vector<1x1024xf32>
    %253 = arith.maximumf %251, %252 : vector<1x1024xf32>
    %254 = arith.index_cast %c7_i32 : i32 to index
    %c3_58 = arith.constant 3 : index
    %255 = memref.load %arg6[%254, %c3_58] : memref<32x5xf32, #tpu.memory_space<smem>>
    %256 = vector.broadcast %255 : f32 to vector<1x1024xf32>
    %257 = arith.mulf %256, %253 : vector<1x1024xf32>
    %258 = arith.addf %233, %257 : vector<1x1024xf32>
    %259 = arith.index_cast %c7_i32 : i32 to index
    %c4_59 = arith.constant 4 : index
    %260 = memref.load %arg6[%259, %c4_59] : memref<32x5xf32, #tpu.memory_space<smem>>
    %261 = vector.broadcast %260 : f32 to vector<1x1024xf32>
    %262 = arith.mulf %261, %253 : vector<1x1024xf32>
    %263 = arith.addf %238, %262 : vector<1x1024xf32>
    %c8_i32 = arith.constant 8 : i32
    %264 = arith.index_cast %c8_i32 : i32 to index
    %c0_60 = arith.constant 0 : index
    %265 = memref.load %arg6[%264, %c0_60] : memref<32x5xf32, #tpu.memory_space<smem>>
    %266 = vector.broadcast %265 : f32 to vector<1x1024xf32>
    %267 = arith.mulf %266, %57 : vector<1x1024xf32>
    %268 = arith.index_cast %c8_i32 : i32 to index
    %c1_61 = arith.constant 1 : index
    %269 = memref.load %arg6[%268, %c1_61] : memref<32x5xf32, #tpu.memory_space<smem>>
    %270 = vector.broadcast %269 : f32 to vector<1x1024xf32>
    %271 = arith.mulf %270, %61 : vector<1x1024xf32>
    %272 = arith.addf %267, %271 : vector<1x1024xf32>
    %273 = arith.index_cast %c8_i32 : i32 to index
    %c2_62 = arith.constant 2 : index
    %274 = memref.load %arg6[%273, %c2_62] : memref<32x5xf32, #tpu.memory_space<smem>>
    %275 = vector.broadcast %274 : f32 to vector<1x1024xf32>
    %276 = arith.addf %272, %275 : vector<1x1024xf32>
    %cst_63 = arith.constant 0.000000e+00 : f32
    %277 = vector.broadcast %cst_63 : f32 to vector<1x1024xf32>
    %278 = arith.maximumf %276, %277 : vector<1x1024xf32>
    %279 = arith.index_cast %c8_i32 : i32 to index
    %c3_64 = arith.constant 3 : index
    %280 = memref.load %arg6[%279, %c3_64] : memref<32x5xf32, #tpu.memory_space<smem>>
    %281 = vector.broadcast %280 : f32 to vector<1x1024xf32>
    %282 = arith.mulf %281, %278 : vector<1x1024xf32>
    %283 = arith.addf %258, %282 : vector<1x1024xf32>
    %284 = arith.index_cast %c8_i32 : i32 to index
    %c4_65 = arith.constant 4 : index
    %285 = memref.load %arg6[%284, %c4_65] : memref<32x5xf32, #tpu.memory_space<smem>>
    %286 = vector.broadcast %285 : f32 to vector<1x1024xf32>
    %287 = arith.mulf %286, %278 : vector<1x1024xf32>
    %288 = arith.addf %263, %287 : vector<1x1024xf32>
    %c9_i32 = arith.constant 9 : i32
    %289 = arith.index_cast %c9_i32 : i32 to index
    %c0_66 = arith.constant 0 : index
    %290 = memref.load %arg6[%289, %c0_66] : memref<32x5xf32, #tpu.memory_space<smem>>
    %291 = vector.broadcast %290 : f32 to vector<1x1024xf32>
    %292 = arith.mulf %291, %57 : vector<1x1024xf32>
    %293 = arith.index_cast %c9_i32 : i32 to index
    %c1_67 = arith.constant 1 : index
    %294 = memref.load %arg6[%293, %c1_67] : memref<32x5xf32, #tpu.memory_space<smem>>
    %295 = vector.broadcast %294 : f32 to vector<1x1024xf32>
    %296 = arith.mulf %295, %61 : vector<1x1024xf32>
    %297 = arith.addf %292, %296 : vector<1x1024xf32>
    %298 = arith.index_cast %c9_i32 : i32 to index
    %c2_68 = arith.constant 2 : index
    %299 = memref.load %arg6[%298, %c2_68] : memref<32x5xf32, #tpu.memory_space<smem>>
    %300 = vector.broadcast %299 : f32 to vector<1x1024xf32>
    %301 = arith.addf %297, %300 : vector<1x1024xf32>
    %cst_69 = arith.constant 0.000000e+00 : f32
    %302 = vector.broadcast %cst_69 : f32 to vector<1x1024xf32>
    %303 = arith.maximumf %301, %302 : vector<1x1024xf32>
    %304 = arith.index_cast %c9_i32 : i32 to index
    %c3_70 = arith.constant 3 : index
    %305 = memref.load %arg6[%304, %c3_70] : memref<32x5xf32, #tpu.memory_space<smem>>
    %306 = vector.broadcast %305 : f32 to vector<1x1024xf32>
    %307 = arith.mulf %306, %303 : vector<1x1024xf32>
    %308 = arith.addf %283, %307 : vector<1x1024xf32>
    %309 = arith.index_cast %c9_i32 : i32 to index
    %c4_71 = arith.constant 4 : index
    %310 = memref.load %arg6[%309, %c4_71] : memref<32x5xf32, #tpu.memory_space<smem>>
    %311 = vector.broadcast %310 : f32 to vector<1x1024xf32>
    %312 = arith.mulf %311, %303 : vector<1x1024xf32>
    %313 = arith.addf %288, %312 : vector<1x1024xf32>
    %c10_i32 = arith.constant 10 : i32
    %314 = arith.index_cast %c10_i32 : i32 to index
    %c0_72 = arith.constant 0 : index
    %315 = memref.load %arg6[%314, %c0_72] : memref<32x5xf32, #tpu.memory_space<smem>>
    %316 = vector.broadcast %315 : f32 to vector<1x1024xf32>
    %317 = arith.mulf %316, %57 : vector<1x1024xf32>
    %318 = arith.index_cast %c10_i32 : i32 to index
    %c1_73 = arith.constant 1 : index
    %319 = memref.load %arg6[%318, %c1_73] : memref<32x5xf32, #tpu.memory_space<smem>>
    %320 = vector.broadcast %319 : f32 to vector<1x1024xf32>
    %321 = arith.mulf %320, %61 : vector<1x1024xf32>
    %322 = arith.addf %317, %321 : vector<1x1024xf32>
    %323 = arith.index_cast %c10_i32 : i32 to index
    %c2_74 = arith.constant 2 : index
    %324 = memref.load %arg6[%323, %c2_74] : memref<32x5xf32, #tpu.memory_space<smem>>
    %325 = vector.broadcast %324 : f32 to vector<1x1024xf32>
    %326 = arith.addf %322, %325 : vector<1x1024xf32>
    %cst_75 = arith.constant 0.000000e+00 : f32
    %327 = vector.broadcast %cst_75 : f32 to vector<1x1024xf32>
    %328 = arith.maximumf %326, %327 : vector<1x1024xf32>
    %329 = arith.index_cast %c10_i32 : i32 to index
    %c3_76 = arith.constant 3 : index
    %330 = memref.load %arg6[%329, %c3_76] : memref<32x5xf32, #tpu.memory_space<smem>>
    %331 = vector.broadcast %330 : f32 to vector<1x1024xf32>
    %332 = arith.mulf %331, %328 : vector<1x1024xf32>
    %333 = arith.addf %308, %332 : vector<1x1024xf32>
    %334 = arith.index_cast %c10_i32 : i32 to index
    %c4_77 = arith.constant 4 : index
    %335 = memref.load %arg6[%334, %c4_77] : memref<32x5xf32, #tpu.memory_space<smem>>
    %336 = vector.broadcast %335 : f32 to vector<1x1024xf32>
    %337 = arith.mulf %336, %328 : vector<1x1024xf32>
    %338 = arith.addf %313, %337 : vector<1x1024xf32>
    %c11_i32 = arith.constant 11 : i32
    %339 = arith.index_cast %c11_i32 : i32 to index
    %c0_78 = arith.constant 0 : index
    %340 = memref.load %arg6[%339, %c0_78] : memref<32x5xf32, #tpu.memory_space<smem>>
    %341 = vector.broadcast %340 : f32 to vector<1x1024xf32>
    %342 = arith.mulf %341, %57 : vector<1x1024xf32>
    %343 = arith.index_cast %c11_i32 : i32 to index
    %c1_79 = arith.constant 1 : index
    %344 = memref.load %arg6[%343, %c1_79] : memref<32x5xf32, #tpu.memory_space<smem>>
    %345 = vector.broadcast %344 : f32 to vector<1x1024xf32>
    %346 = arith.mulf %345, %61 : vector<1x1024xf32>
    %347 = arith.addf %342, %346 : vector<1x1024xf32>
    %348 = arith.index_cast %c11_i32 : i32 to index
    %c2_80 = arith.constant 2 : index
    %349 = memref.load %arg6[%348, %c2_80] : memref<32x5xf32, #tpu.memory_space<smem>>
    %350 = vector.broadcast %349 : f32 to vector<1x1024xf32>
    %351 = arith.addf %347, %350 : vector<1x1024xf32>
    %cst_81 = arith.constant 0.000000e+00 : f32
    %352 = vector.broadcast %cst_81 : f32 to vector<1x1024xf32>
    %353 = arith.maximumf %351, %352 : vector<1x1024xf32>
    %354 = arith.index_cast %c11_i32 : i32 to index
    %c3_82 = arith.constant 3 : index
    %355 = memref.load %arg6[%354, %c3_82] : memref<32x5xf32, #tpu.memory_space<smem>>
    %356 = vector.broadcast %355 : f32 to vector<1x1024xf32>
    %357 = arith.mulf %356, %353 : vector<1x1024xf32>
    %358 = arith.addf %333, %357 : vector<1x1024xf32>
    %359 = arith.index_cast %c11_i32 : i32 to index
    %c4_83 = arith.constant 4 : index
    %360 = memref.load %arg6[%359, %c4_83] : memref<32x5xf32, #tpu.memory_space<smem>>
    %361 = vector.broadcast %360 : f32 to vector<1x1024xf32>
    %362 = arith.mulf %361, %353 : vector<1x1024xf32>
    %363 = arith.addf %338, %362 : vector<1x1024xf32>
    %c12_i32 = arith.constant 12 : i32
    %364 = arith.index_cast %c12_i32 : i32 to index
    %c0_84 = arith.constant 0 : index
    %365 = memref.load %arg6[%364, %c0_84] : memref<32x5xf32, #tpu.memory_space<smem>>
    %366 = vector.broadcast %365 : f32 to vector<1x1024xf32>
    %367 = arith.mulf %366, %57 : vector<1x1024xf32>
    %368 = arith.index_cast %c12_i32 : i32 to index
    %c1_85 = arith.constant 1 : index
    %369 = memref.load %arg6[%368, %c1_85] : memref<32x5xf32, #tpu.memory_space<smem>>
    %370 = vector.broadcast %369 : f32 to vector<1x1024xf32>
    %371 = arith.mulf %370, %61 : vector<1x1024xf32>
    %372 = arith.addf %367, %371 : vector<1x1024xf32>
    %373 = arith.index_cast %c12_i32 : i32 to index
    %c2_86 = arith.constant 2 : index
    %374 = memref.load %arg6[%373, %c2_86] : memref<32x5xf32, #tpu.memory_space<smem>>
    %375 = vector.broadcast %374 : f32 to vector<1x1024xf32>
    %376 = arith.addf %372, %375 : vector<1x1024xf32>
    %cst_87 = arith.constant 0.000000e+00 : f32
    %377 = vector.broadcast %cst_87 : f32 to vector<1x1024xf32>
    %378 = arith.maximumf %376, %377 : vector<1x1024xf32>
    %379 = arith.index_cast %c12_i32 : i32 to index
    %c3_88 = arith.constant 3 : index
    %380 = memref.load %arg6[%379, %c3_88] : memref<32x5xf32, #tpu.memory_space<smem>>
    %381 = vector.broadcast %380 : f32 to vector<1x1024xf32>
    %382 = arith.mulf %381, %378 : vector<1x1024xf32>
    %383 = arith.addf %358, %382 : vector<1x1024xf32>
    %384 = arith.index_cast %c12_i32 : i32 to index
    %c4_89 = arith.constant 4 : index
    %385 = memref.load %arg6[%384, %c4_89] : memref<32x5xf32, #tpu.memory_space<smem>>
    %386 = vector.broadcast %385 : f32 to vector<1x1024xf32>
    %387 = arith.mulf %386, %378 : vector<1x1024xf32>
    %388 = arith.addf %363, %387 : vector<1x1024xf32>
    %c13_i32 = arith.constant 13 : i32
    %389 = arith.index_cast %c13_i32 : i32 to index
    %c0_90 = arith.constant 0 : index
    %390 = memref.load %arg6[%389, %c0_90] : memref<32x5xf32, #tpu.memory_space<smem>>
    %391 = vector.broadcast %390 : f32 to vector<1x1024xf32>
    %392 = arith.mulf %391, %57 : vector<1x1024xf32>
    %393 = arith.index_cast %c13_i32 : i32 to index
    %c1_91 = arith.constant 1 : index
    %394 = memref.load %arg6[%393, %c1_91] : memref<32x5xf32, #tpu.memory_space<smem>>
    %395 = vector.broadcast %394 : f32 to vector<1x1024xf32>
    %396 = arith.mulf %395, %61 : vector<1x1024xf32>
    %397 = arith.addf %392, %396 : vector<1x1024xf32>
    %398 = arith.index_cast %c13_i32 : i32 to index
    %c2_92 = arith.constant 2 : index
    %399 = memref.load %arg6[%398, %c2_92] : memref<32x5xf32, #tpu.memory_space<smem>>
    %400 = vector.broadcast %399 : f32 to vector<1x1024xf32>
    %401 = arith.addf %397, %400 : vector<1x1024xf32>
    %cst_93 = arith.constant 0.000000e+00 : f32
    %402 = vector.broadcast %cst_93 : f32 to vector<1x1024xf32>
    %403 = arith.maximumf %401, %402 : vector<1x1024xf32>
    %404 = arith.index_cast %c13_i32 : i32 to index
    %c3_94 = arith.constant 3 : index
    %405 = memref.load %arg6[%404, %c3_94] : memref<32x5xf32, #tpu.memory_space<smem>>
    %406 = vector.broadcast %405 : f32 to vector<1x1024xf32>
    %407 = arith.mulf %406, %403 : vector<1x1024xf32>
    %408 = arith.addf %383, %407 : vector<1x1024xf32>
    %409 = arith.index_cast %c13_i32 : i32 to index
    %c4_95 = arith.constant 4 : index
    %410 = memref.load %arg6[%409, %c4_95] : memref<32x5xf32, #tpu.memory_space<smem>>
    %411 = vector.broadcast %410 : f32 to vector<1x1024xf32>
    %412 = arith.mulf %411, %403 : vector<1x1024xf32>
    %413 = arith.addf %388, %412 : vector<1x1024xf32>
    %c14_i32 = arith.constant 14 : i32
    %414 = arith.index_cast %c14_i32 : i32 to index
    %c0_96 = arith.constant 0 : index
    %415 = memref.load %arg6[%414, %c0_96] : memref<32x5xf32, #tpu.memory_space<smem>>
    %416 = vector.broadcast %415 : f32 to vector<1x1024xf32>
    %417 = arith.mulf %416, %57 : vector<1x1024xf32>
    %418 = arith.index_cast %c14_i32 : i32 to index
    %c1_97 = arith.constant 1 : index
    %419 = memref.load %arg6[%418, %c1_97] : memref<32x5xf32, #tpu.memory_space<smem>>
    %420 = vector.broadcast %419 : f32 to vector<1x1024xf32>
    %421 = arith.mulf %420, %61 : vector<1x1024xf32>
    %422 = arith.addf %417, %421 : vector<1x1024xf32>
    %423 = arith.index_cast %c14_i32 : i32 to index
    %c2_98 = arith.constant 2 : index
    %424 = memref.load %arg6[%423, %c2_98] : memref<32x5xf32, #tpu.memory_space<smem>>
    %425 = vector.broadcast %424 : f32 to vector<1x1024xf32>
    %426 = arith.addf %422, %425 : vector<1x1024xf32>
    %cst_99 = arith.constant 0.000000e+00 : f32
    %427 = vector.broadcast %cst_99 : f32 to vector<1x1024xf32>
    %428 = arith.maximumf %426, %427 : vector<1x1024xf32>
    %429 = arith.index_cast %c14_i32 : i32 to index
    %c3_100 = arith.constant 3 : index
    %430 = memref.load %arg6[%429, %c3_100] : memref<32x5xf32, #tpu.memory_space<smem>>
    %431 = vector.broadcast %430 : f32 to vector<1x1024xf32>
    %432 = arith.mulf %431, %428 : vector<1x1024xf32>
    %433 = arith.addf %408, %432 : vector<1x1024xf32>
    %434 = arith.index_cast %c14_i32 : i32 to index
    %c4_101 = arith.constant 4 : index
    %435 = memref.load %arg6[%434, %c4_101] : memref<32x5xf32, #tpu.memory_space<smem>>
    %436 = vector.broadcast %435 : f32 to vector<1x1024xf32>
    %437 = arith.mulf %436, %428 : vector<1x1024xf32>
    %438 = arith.addf %413, %437 : vector<1x1024xf32>
    %c15_i32 = arith.constant 15 : i32
    %439 = arith.index_cast %c15_i32 : i32 to index
    %c0_102 = arith.constant 0 : index
    %440 = memref.load %arg6[%439, %c0_102] : memref<32x5xf32, #tpu.memory_space<smem>>
    %441 = vector.broadcast %440 : f32 to vector<1x1024xf32>
    %442 = arith.mulf %441, %57 : vector<1x1024xf32>
    %443 = arith.index_cast %c15_i32 : i32 to index
    %c1_103 = arith.constant 1 : index
    %444 = memref.load %arg6[%443, %c1_103] : memref<32x5xf32, #tpu.memory_space<smem>>
    %445 = vector.broadcast %444 : f32 to vector<1x1024xf32>
    %446 = arith.mulf %445, %61 : vector<1x1024xf32>
    %447 = arith.addf %442, %446 : vector<1x1024xf32>
    %448 = arith.index_cast %c15_i32 : i32 to index
    %c2_104 = arith.constant 2 : index
    %449 = memref.load %arg6[%448, %c2_104] : memref<32x5xf32, #tpu.memory_space<smem>>
    %450 = vector.broadcast %449 : f32 to vector<1x1024xf32>
    %451 = arith.addf %447, %450 : vector<1x1024xf32>
    %cst_105 = arith.constant 0.000000e+00 : f32
    %452 = vector.broadcast %cst_105 : f32 to vector<1x1024xf32>
    %453 = arith.maximumf %451, %452 : vector<1x1024xf32>
    %454 = arith.index_cast %c15_i32 : i32 to index
    %c3_106 = arith.constant 3 : index
    %455 = memref.load %arg6[%454, %c3_106] : memref<32x5xf32, #tpu.memory_space<smem>>
    %456 = vector.broadcast %455 : f32 to vector<1x1024xf32>
    %457 = arith.mulf %456, %453 : vector<1x1024xf32>
    %458 = arith.addf %433, %457 : vector<1x1024xf32>
    %459 = arith.index_cast %c15_i32 : i32 to index
    %c4_107 = arith.constant 4 : index
    %460 = memref.load %arg6[%459, %c4_107] : memref<32x5xf32, #tpu.memory_space<smem>>
    %461 = vector.broadcast %460 : f32 to vector<1x1024xf32>
    %462 = arith.mulf %461, %453 : vector<1x1024xf32>
    %463 = arith.addf %438, %462 : vector<1x1024xf32>
    %c16_i32 = arith.constant 16 : i32
    %464 = arith.index_cast %c16_i32 : i32 to index
    %c0_108 = arith.constant 0 : index
    %465 = memref.load %arg6[%464, %c0_108] : memref<32x5xf32, #tpu.memory_space<smem>>
    %466 = vector.broadcast %465 : f32 to vector<1x1024xf32>
    %467 = arith.mulf %466, %57 : vector<1x1024xf32>
    %468 = arith.index_cast %c16_i32 : i32 to index
    %c1_109 = arith.constant 1 : index
    %469 = memref.load %arg6[%468, %c1_109] : memref<32x5xf32, #tpu.memory_space<smem>>
    %470 = vector.broadcast %469 : f32 to vector<1x1024xf32>
    %471 = arith.mulf %470, %61 : vector<1x1024xf32>
    %472 = arith.addf %467, %471 : vector<1x1024xf32>
    %473 = arith.index_cast %c16_i32 : i32 to index
    %c2_110 = arith.constant 2 : index
    %474 = memref.load %arg6[%473, %c2_110] : memref<32x5xf32, #tpu.memory_space<smem>>
    %475 = vector.broadcast %474 : f32 to vector<1x1024xf32>
    %476 = arith.addf %472, %475 : vector<1x1024xf32>
    %cst_111 = arith.constant 0.000000e+00 : f32
    %477 = vector.broadcast %cst_111 : f32 to vector<1x1024xf32>
    %478 = arith.maximumf %476, %477 : vector<1x1024xf32>
    %479 = arith.index_cast %c16_i32 : i32 to index
    %c3_112 = arith.constant 3 : index
    %480 = memref.load %arg6[%479, %c3_112] : memref<32x5xf32, #tpu.memory_space<smem>>
    %481 = vector.broadcast %480 : f32 to vector<1x1024xf32>
    %482 = arith.mulf %481, %478 : vector<1x1024xf32>
    %483 = arith.addf %458, %482 : vector<1x1024xf32>
    %484 = arith.index_cast %c16_i32 : i32 to index
    %c4_113 = arith.constant 4 : index
    %485 = memref.load %arg6[%484, %c4_113] : memref<32x5xf32, #tpu.memory_space<smem>>
    %486 = vector.broadcast %485 : f32 to vector<1x1024xf32>
    %487 = arith.mulf %486, %478 : vector<1x1024xf32>
    %488 = arith.addf %463, %487 : vector<1x1024xf32>
    %c17_i32 = arith.constant 17 : i32
    %489 = arith.index_cast %c17_i32 : i32 to index
    %c0_114 = arith.constant 0 : index
    %490 = memref.load %arg6[%489, %c0_114] : memref<32x5xf32, #tpu.memory_space<smem>>
    %491 = vector.broadcast %490 : f32 to vector<1x1024xf32>
    %492 = arith.mulf %491, %57 : vector<1x1024xf32>
    %493 = arith.index_cast %c17_i32 : i32 to index
    %c1_115 = arith.constant 1 : index
    %494 = memref.load %arg6[%493, %c1_115] : memref<32x5xf32, #tpu.memory_space<smem>>
    %495 = vector.broadcast %494 : f32 to vector<1x1024xf32>
    %496 = arith.mulf %495, %61 : vector<1x1024xf32>
    %497 = arith.addf %492, %496 : vector<1x1024xf32>
    %498 = arith.index_cast %c17_i32 : i32 to index
    %c2_116 = arith.constant 2 : index
    %499 = memref.load %arg6[%498, %c2_116] : memref<32x5xf32, #tpu.memory_space<smem>>
    %500 = vector.broadcast %499 : f32 to vector<1x1024xf32>
    %501 = arith.addf %497, %500 : vector<1x1024xf32>
    %cst_117 = arith.constant 0.000000e+00 : f32
    %502 = vector.broadcast %cst_117 : f32 to vector<1x1024xf32>
    %503 = arith.maximumf %501, %502 : vector<1x1024xf32>
    %504 = arith.index_cast %c17_i32 : i32 to index
    %c3_118 = arith.constant 3 : index
    %505 = memref.load %arg6[%504, %c3_118] : memref<32x5xf32, #tpu.memory_space<smem>>
    %506 = vector.broadcast %505 : f32 to vector<1x1024xf32>
    %507 = arith.mulf %506, %503 : vector<1x1024xf32>
    %508 = arith.addf %483, %507 : vector<1x1024xf32>
    %509 = arith.index_cast %c17_i32 : i32 to index
    %c4_119 = arith.constant 4 : index
    %510 = memref.load %arg6[%509, %c4_119] : memref<32x5xf32, #tpu.memory_space<smem>>
    %511 = vector.broadcast %510 : f32 to vector<1x1024xf32>
    %512 = arith.mulf %511, %503 : vector<1x1024xf32>
    %513 = arith.addf %488, %512 : vector<1x1024xf32>
    %c18_i32 = arith.constant 18 : i32
    %514 = arith.index_cast %c18_i32 : i32 to index
    %c0_120 = arith.constant 0 : index
    %515 = memref.load %arg6[%514, %c0_120] : memref<32x5xf32, #tpu.memory_space<smem>>
    %516 = vector.broadcast %515 : f32 to vector<1x1024xf32>
    %517 = arith.mulf %516, %57 : vector<1x1024xf32>
    %518 = arith.index_cast %c18_i32 : i32 to index
    %c1_121 = arith.constant 1 : index
    %519 = memref.load %arg6[%518, %c1_121] : memref<32x5xf32, #tpu.memory_space<smem>>
    %520 = vector.broadcast %519 : f32 to vector<1x1024xf32>
    %521 = arith.mulf %520, %61 : vector<1x1024xf32>
    %522 = arith.addf %517, %521 : vector<1x1024xf32>
    %523 = arith.index_cast %c18_i32 : i32 to index
    %c2_122 = arith.constant 2 : index
    %524 = memref.load %arg6[%523, %c2_122] : memref<32x5xf32, #tpu.memory_space<smem>>
    %525 = vector.broadcast %524 : f32 to vector<1x1024xf32>
    %526 = arith.addf %522, %525 : vector<1x1024xf32>
    %cst_123 = arith.constant 0.000000e+00 : f32
    %527 = vector.broadcast %cst_123 : f32 to vector<1x1024xf32>
    %528 = arith.maximumf %526, %527 : vector<1x1024xf32>
    %529 = arith.index_cast %c18_i32 : i32 to index
    %c3_124 = arith.constant 3 : index
    %530 = memref.load %arg6[%529, %c3_124] : memref<32x5xf32, #tpu.memory_space<smem>>
    %531 = vector.broadcast %530 : f32 to vector<1x1024xf32>
    %532 = arith.mulf %531, %528 : vector<1x1024xf32>
    %533 = arith.addf %508, %532 : vector<1x1024xf32>
    %534 = arith.index_cast %c18_i32 : i32 to index
    %c4_125 = arith.constant 4 : index
    %535 = memref.load %arg6[%534, %c4_125] : memref<32x5xf32, #tpu.memory_space<smem>>
    %536 = vector.broadcast %535 : f32 to vector<1x1024xf32>
    %537 = arith.mulf %536, %528 : vector<1x1024xf32>
    %538 = arith.addf %513, %537 : vector<1x1024xf32>
    %c19_i32 = arith.constant 19 : i32
    %539 = arith.index_cast %c19_i32 : i32 to index
    %c0_126 = arith.constant 0 : index
    %540 = memref.load %arg6[%539, %c0_126] : memref<32x5xf32, #tpu.memory_space<smem>>
    %541 = vector.broadcast %540 : f32 to vector<1x1024xf32>
    %542 = arith.mulf %541, %57 : vector<1x1024xf32>
    %543 = arith.index_cast %c19_i32 : i32 to index
    %c1_127 = arith.constant 1 : index
    %544 = memref.load %arg6[%543, %c1_127] : memref<32x5xf32, #tpu.memory_space<smem>>
    %545 = vector.broadcast %544 : f32 to vector<1x1024xf32>
    %546 = arith.mulf %545, %61 : vector<1x1024xf32>
    %547 = arith.addf %542, %546 : vector<1x1024xf32>
    %548 = arith.index_cast %c19_i32 : i32 to index
    %c2_128 = arith.constant 2 : index
    %549 = memref.load %arg6[%548, %c2_128] : memref<32x5xf32, #tpu.memory_space<smem>>
    %550 = vector.broadcast %549 : f32 to vector<1x1024xf32>
    %551 = arith.addf %547, %550 : vector<1x1024xf32>
    %cst_129 = arith.constant 0.000000e+00 : f32
    %552 = vector.broadcast %cst_129 : f32 to vector<1x1024xf32>
    %553 = arith.maximumf %551, %552 : vector<1x1024xf32>
    %554 = arith.index_cast %c19_i32 : i32 to index
    %c3_130 = arith.constant 3 : index
    %555 = memref.load %arg6[%554, %c3_130] : memref<32x5xf32, #tpu.memory_space<smem>>
    %556 = vector.broadcast %555 : f32 to vector<1x1024xf32>
    %557 = arith.mulf %556, %553 : vector<1x1024xf32>
    %558 = arith.addf %533, %557 : vector<1x1024xf32>
    %559 = arith.index_cast %c19_i32 : i32 to index
    %c4_131 = arith.constant 4 : index
    %560 = memref.load %arg6[%559, %c4_131] : memref<32x5xf32, #tpu.memory_space<smem>>
    %561 = vector.broadcast %560 : f32 to vector<1x1024xf32>
    %562 = arith.mulf %561, %553 : vector<1x1024xf32>
    %563 = arith.addf %538, %562 : vector<1x1024xf32>
    %c20_i32 = arith.constant 20 : i32
    %564 = arith.index_cast %c20_i32 : i32 to index
    %c0_132 = arith.constant 0 : index
    %565 = memref.load %arg6[%564, %c0_132] : memref<32x5xf32, #tpu.memory_space<smem>>
    %566 = vector.broadcast %565 : f32 to vector<1x1024xf32>
    %567 = arith.mulf %566, %57 : vector<1x1024xf32>
    %568 = arith.index_cast %c20_i32 : i32 to index
    %c1_133 = arith.constant 1 : index
    %569 = memref.load %arg6[%568, %c1_133] : memref<32x5xf32, #tpu.memory_space<smem>>
    %570 = vector.broadcast %569 : f32 to vector<1x1024xf32>
    %571 = arith.mulf %570, %61 : vector<1x1024xf32>
    %572 = arith.addf %567, %571 : vector<1x1024xf32>
    %573 = arith.index_cast %c20_i32 : i32 to index
    %c2_134 = arith.constant 2 : index
    %574 = memref.load %arg6[%573, %c2_134] : memref<32x5xf32, #tpu.memory_space<smem>>
    %575 = vector.broadcast %574 : f32 to vector<1x1024xf32>
    %576 = arith.addf %572, %575 : vector<1x1024xf32>
    %cst_135 = arith.constant 0.000000e+00 : f32
    %577 = vector.broadcast %cst_135 : f32 to vector<1x1024xf32>
    %578 = arith.maximumf %576, %577 : vector<1x1024xf32>
    %579 = arith.index_cast %c20_i32 : i32 to index
    %c3_136 = arith.constant 3 : index
    %580 = memref.load %arg6[%579, %c3_136] : memref<32x5xf32, #tpu.memory_space<smem>>
    %581 = vector.broadcast %580 : f32 to vector<1x1024xf32>
    %582 = arith.mulf %581, %578 : vector<1x1024xf32>
    %583 = arith.addf %558, %582 : vector<1x1024xf32>
    %584 = arith.index_cast %c20_i32 : i32 to index
    %c4_137 = arith.constant 4 : index
    %585 = memref.load %arg6[%584, %c4_137] : memref<32x5xf32, #tpu.memory_space<smem>>
    %586 = vector.broadcast %585 : f32 to vector<1x1024xf32>
    %587 = arith.mulf %586, %578 : vector<1x1024xf32>
    %588 = arith.addf %563, %587 : vector<1x1024xf32>
    %c21_i32 = arith.constant 21 : i32
    %589 = arith.index_cast %c21_i32 : i32 to index
    %c0_138 = arith.constant 0 : index
    %590 = memref.load %arg6[%589, %c0_138] : memref<32x5xf32, #tpu.memory_space<smem>>
    %591 = vector.broadcast %590 : f32 to vector<1x1024xf32>
    %592 = arith.mulf %591, %57 : vector<1x1024xf32>
    %593 = arith.index_cast %c21_i32 : i32 to index
    %c1_139 = arith.constant 1 : index
    %594 = memref.load %arg6[%593, %c1_139] : memref<32x5xf32, #tpu.memory_space<smem>>
    %595 = vector.broadcast %594 : f32 to vector<1x1024xf32>
    %596 = arith.mulf %595, %61 : vector<1x1024xf32>
    %597 = arith.addf %592, %596 : vector<1x1024xf32>
    %598 = arith.index_cast %c21_i32 : i32 to index
    %c2_140 = arith.constant 2 : index
    %599 = memref.load %arg6[%598, %c2_140] : memref<32x5xf32, #tpu.memory_space<smem>>
    %600 = vector.broadcast %599 : f32 to vector<1x1024xf32>
    %601 = arith.addf %597, %600 : vector<1x1024xf32>
    %cst_141 = arith.constant 0.000000e+00 : f32
    %602 = vector.broadcast %cst_141 : f32 to vector<1x1024xf32>
    %603 = arith.maximumf %601, %602 : vector<1x1024xf32>
    %604 = arith.index_cast %c21_i32 : i32 to index
    %c3_142 = arith.constant 3 : index
    %605 = memref.load %arg6[%604, %c3_142] : memref<32x5xf32, #tpu.memory_space<smem>>
    %606 = vector.broadcast %605 : f32 to vector<1x1024xf32>
    %607 = arith.mulf %606, %603 : vector<1x1024xf32>
    %608 = arith.addf %583, %607 : vector<1x1024xf32>
    %609 = arith.index_cast %c21_i32 : i32 to index
    %c4_143 = arith.constant 4 : index
    %610 = memref.load %arg6[%609, %c4_143] : memref<32x5xf32, #tpu.memory_space<smem>>
    %611 = vector.broadcast %610 : f32 to vector<1x1024xf32>
    %612 = arith.mulf %611, %603 : vector<1x1024xf32>
    %613 = arith.addf %588, %612 : vector<1x1024xf32>
    %c22_i32 = arith.constant 22 : i32
    %614 = arith.index_cast %c22_i32 : i32 to index
    %c0_144 = arith.constant 0 : index
    %615 = memref.load %arg6[%614, %c0_144] : memref<32x5xf32, #tpu.memory_space<smem>>
    %616 = vector.broadcast %615 : f32 to vector<1x1024xf32>
    %617 = arith.mulf %616, %57 : vector<1x1024xf32>
    %618 = arith.index_cast %c22_i32 : i32 to index
    %c1_145 = arith.constant 1 : index
    %619 = memref.load %arg6[%618, %c1_145] : memref<32x5xf32, #tpu.memory_space<smem>>
    %620 = vector.broadcast %619 : f32 to vector<1x1024xf32>
    %621 = arith.mulf %620, %61 : vector<1x1024xf32>
    %622 = arith.addf %617, %621 : vector<1x1024xf32>
    %623 = arith.index_cast %c22_i32 : i32 to index
    %c2_146 = arith.constant 2 : index
    %624 = memref.load %arg6[%623, %c2_146] : memref<32x5xf32, #tpu.memory_space<smem>>
    %625 = vector.broadcast %624 : f32 to vector<1x1024xf32>
    %626 = arith.addf %622, %625 : vector<1x1024xf32>
    %cst_147 = arith.constant 0.000000e+00 : f32
    %627 = vector.broadcast %cst_147 : f32 to vector<1x1024xf32>
    %628 = arith.maximumf %626, %627 : vector<1x1024xf32>
    %629 = arith.index_cast %c22_i32 : i32 to index
    %c3_148 = arith.constant 3 : index
    %630 = memref.load %arg6[%629, %c3_148] : memref<32x5xf32, #tpu.memory_space<smem>>
    %631 = vector.broadcast %630 : f32 to vector<1x1024xf32>
    %632 = arith.mulf %631, %628 : vector<1x1024xf32>
    %633 = arith.addf %608, %632 : vector<1x1024xf32>
    %634 = arith.index_cast %c22_i32 : i32 to index
    %c4_149 = arith.constant 4 : index
    %635 = memref.load %arg6[%634, %c4_149] : memref<32x5xf32, #tpu.memory_space<smem>>
    %636 = vector.broadcast %635 : f32 to vector<1x1024xf32>
    %637 = arith.mulf %636, %628 : vector<1x1024xf32>
    %638 = arith.addf %613, %637 : vector<1x1024xf32>
    %c23_i32 = arith.constant 23 : i32
    %639 = arith.index_cast %c23_i32 : i32 to index
    %c0_150 = arith.constant 0 : index
    %640 = memref.load %arg6[%639, %c0_150] : memref<32x5xf32, #tpu.memory_space<smem>>
    %641 = vector.broadcast %640 : f32 to vector<1x1024xf32>
    %642 = arith.mulf %641, %57 : vector<1x1024xf32>
    %643 = arith.index_cast %c23_i32 : i32 to index
    %c1_151 = arith.constant 1 : index
    %644 = memref.load %arg6[%643, %c1_151] : memref<32x5xf32, #tpu.memory_space<smem>>
    %645 = vector.broadcast %644 : f32 to vector<1x1024xf32>
    %646 = arith.mulf %645, %61 : vector<1x1024xf32>
    %647 = arith.addf %642, %646 : vector<1x1024xf32>
    %648 = arith.index_cast %c23_i32 : i32 to index
    %c2_152 = arith.constant 2 : index
    %649 = memref.load %arg6[%648, %c2_152] : memref<32x5xf32, #tpu.memory_space<smem>>
    %650 = vector.broadcast %649 : f32 to vector<1x1024xf32>
    %651 = arith.addf %647, %650 : vector<1x1024xf32>
    %cst_153 = arith.constant 0.000000e+00 : f32
    %652 = vector.broadcast %cst_153 : f32 to vector<1x1024xf32>
    %653 = arith.maximumf %651, %652 : vector<1x1024xf32>
    %654 = arith.index_cast %c23_i32 : i32 to index
    %c3_154 = arith.constant 3 : index
    %655 = memref.load %arg6[%654, %c3_154] : memref<32x5xf32, #tpu.memory_space<smem>>
    %656 = vector.broadcast %655 : f32 to vector<1x1024xf32>
    %657 = arith.mulf %656, %653 : vector<1x1024xf32>
    %658 = arith.addf %633, %657 : vector<1x1024xf32>
    %659 = arith.index_cast %c23_i32 : i32 to index
    %c4_155 = arith.constant 4 : index
    %660 = memref.load %arg6[%659, %c4_155] : memref<32x5xf32, #tpu.memory_space<smem>>
    %661 = vector.broadcast %660 : f32 to vector<1x1024xf32>
    %662 = arith.mulf %661, %653 : vector<1x1024xf32>
    %663 = arith.addf %638, %662 : vector<1x1024xf32>
    %c24_i32 = arith.constant 24 : i32
    %664 = arith.index_cast %c24_i32 : i32 to index
    %c0_156 = arith.constant 0 : index
    %665 = memref.load %arg6[%664, %c0_156] : memref<32x5xf32, #tpu.memory_space<smem>>
    %666 = vector.broadcast %665 : f32 to vector<1x1024xf32>
    %667 = arith.mulf %666, %57 : vector<1x1024xf32>
    %668 = arith.index_cast %c24_i32 : i32 to index
    %c1_157 = arith.constant 1 : index
    %669 = memref.load %arg6[%668, %c1_157] : memref<32x5xf32, #tpu.memory_space<smem>>
    %670 = vector.broadcast %669 : f32 to vector<1x1024xf32>
    %671 = arith.mulf %670, %61 : vector<1x1024xf32>
    %672 = arith.addf %667, %671 : vector<1x1024xf32>
    %673 = arith.index_cast %c24_i32 : i32 to index
    %c2_158 = arith.constant 2 : index
    %674 = memref.load %arg6[%673, %c2_158] : memref<32x5xf32, #tpu.memory_space<smem>>
    %675 = vector.broadcast %674 : f32 to vector<1x1024xf32>
    %676 = arith.addf %672, %675 : vector<1x1024xf32>
    %cst_159 = arith.constant 0.000000e+00 : f32
    %677 = vector.broadcast %cst_159 : f32 to vector<1x1024xf32>
    %678 = arith.maximumf %676, %677 : vector<1x1024xf32>
    %679 = arith.index_cast %c24_i32 : i32 to index
    %c3_160 = arith.constant 3 : index
    %680 = memref.load %arg6[%679, %c3_160] : memref<32x5xf32, #tpu.memory_space<smem>>
    %681 = vector.broadcast %680 : f32 to vector<1x1024xf32>
    %682 = arith.mulf %681, %678 : vector<1x1024xf32>
    %683 = arith.addf %658, %682 : vector<1x1024xf32>
    %684 = arith.index_cast %c24_i32 : i32 to index
    %c4_161 = arith.constant 4 : index
    %685 = memref.load %arg6[%684, %c4_161] : memref<32x5xf32, #tpu.memory_space<smem>>
    %686 = vector.broadcast %685 : f32 to vector<1x1024xf32>
    %687 = arith.mulf %686, %678 : vector<1x1024xf32>
    %688 = arith.addf %663, %687 : vector<1x1024xf32>
    %c25_i32 = arith.constant 25 : i32
    %689 = arith.index_cast %c25_i32 : i32 to index
    %c0_162 = arith.constant 0 : index
    %690 = memref.load %arg6[%689, %c0_162] : memref<32x5xf32, #tpu.memory_space<smem>>
    %691 = vector.broadcast %690 : f32 to vector<1x1024xf32>
    %692 = arith.mulf %691, %57 : vector<1x1024xf32>
    %693 = arith.index_cast %c25_i32 : i32 to index
    %c1_163 = arith.constant 1 : index
    %694 = memref.load %arg6[%693, %c1_163] : memref<32x5xf32, #tpu.memory_space<smem>>
    %695 = vector.broadcast %694 : f32 to vector<1x1024xf32>
    %696 = arith.mulf %695, %61 : vector<1x1024xf32>
    %697 = arith.addf %692, %696 : vector<1x1024xf32>
    %698 = arith.index_cast %c25_i32 : i32 to index
    %c2_164 = arith.constant 2 : index
    %699 = memref.load %arg6[%698, %c2_164] : memref<32x5xf32, #tpu.memory_space<smem>>
    %700 = vector.broadcast %699 : f32 to vector<1x1024xf32>
    %701 = arith.addf %697, %700 : vector<1x1024xf32>
    %cst_165 = arith.constant 0.000000e+00 : f32
    %702 = vector.broadcast %cst_165 : f32 to vector<1x1024xf32>
    %703 = arith.maximumf %701, %702 : vector<1x1024xf32>
    %704 = arith.index_cast %c25_i32 : i32 to index
    %c3_166 = arith.constant 3 : index
    %705 = memref.load %arg6[%704, %c3_166] : memref<32x5xf32, #tpu.memory_space<smem>>
    %706 = vector.broadcast %705 : f32 to vector<1x1024xf32>
    %707 = arith.mulf %706, %703 : vector<1x1024xf32>
    %708 = arith.addf %683, %707 : vector<1x1024xf32>
    %709 = arith.index_cast %c25_i32 : i32 to index
    %c4_167 = arith.constant 4 : index
    %710 = memref.load %arg6[%709, %c4_167] : memref<32x5xf32, #tpu.memory_space<smem>>
    %711 = vector.broadcast %710 : f32 to vector<1x1024xf32>
    %712 = arith.mulf %711, %703 : vector<1x1024xf32>
    %713 = arith.addf %688, %712 : vector<1x1024xf32>
    %c26_i32 = arith.constant 26 : i32
    %714 = arith.index_cast %c26_i32 : i32 to index
    %c0_168 = arith.constant 0 : index
    %715 = memref.load %arg6[%714, %c0_168] : memref<32x5xf32, #tpu.memory_space<smem>>
    %716 = vector.broadcast %715 : f32 to vector<1x1024xf32>
    %717 = arith.mulf %716, %57 : vector<1x1024xf32>
    %718 = arith.index_cast %c26_i32 : i32 to index
    %c1_169 = arith.constant 1 : index
    %719 = memref.load %arg6[%718, %c1_169] : memref<32x5xf32, #tpu.memory_space<smem>>
    %720 = vector.broadcast %719 : f32 to vector<1x1024xf32>
    %721 = arith.mulf %720, %61 : vector<1x1024xf32>
    %722 = arith.addf %717, %721 : vector<1x1024xf32>
    %723 = arith.index_cast %c26_i32 : i32 to index
    %c2_170 = arith.constant 2 : index
    %724 = memref.load %arg6[%723, %c2_170] : memref<32x5xf32, #tpu.memory_space<smem>>
    %725 = vector.broadcast %724 : f32 to vector<1x1024xf32>
    %726 = arith.addf %722, %725 : vector<1x1024xf32>
    %cst_171 = arith.constant 0.000000e+00 : f32
    %727 = vector.broadcast %cst_171 : f32 to vector<1x1024xf32>
    %728 = arith.maximumf %726, %727 : vector<1x1024xf32>
    %729 = arith.index_cast %c26_i32 : i32 to index
    %c3_172 = arith.constant 3 : index
    %730 = memref.load %arg6[%729, %c3_172] : memref<32x5xf32, #tpu.memory_space<smem>>
    %731 = vector.broadcast %730 : f32 to vector<1x1024xf32>
    %732 = arith.mulf %731, %728 : vector<1x1024xf32>
    %733 = arith.addf %708, %732 : vector<1x1024xf32>
    %734 = arith.index_cast %c26_i32 : i32 to index
    %c4_173 = arith.constant 4 : index
    %735 = memref.load %arg6[%734, %c4_173] : memref<32x5xf32, #tpu.memory_space<smem>>
    %736 = vector.broadcast %735 : f32 to vector<1x1024xf32>
    %737 = arith.mulf %736, %728 : vector<1x1024xf32>
    %738 = arith.addf %713, %737 : vector<1x1024xf32>
    %c27_i32 = arith.constant 27 : i32
    %739 = arith.index_cast %c27_i32 : i32 to index
    %c0_174 = arith.constant 0 : index
    %740 = memref.load %arg6[%739, %c0_174] : memref<32x5xf32, #tpu.memory_space<smem>>
    %741 = vector.broadcast %740 : f32 to vector<1x1024xf32>
    %742 = arith.mulf %741, %57 : vector<1x1024xf32>
    %743 = arith.index_cast %c27_i32 : i32 to index
    %c1_175 = arith.constant 1 : index
    %744 = memref.load %arg6[%743, %c1_175] : memref<32x5xf32, #tpu.memory_space<smem>>
    %745 = vector.broadcast %744 : f32 to vector<1x1024xf32>
    %746 = arith.mulf %745, %61 : vector<1x1024xf32>
    %747 = arith.addf %742, %746 : vector<1x1024xf32>
    %748 = arith.index_cast %c27_i32 : i32 to index
    %c2_176 = arith.constant 2 : index
    %749 = memref.load %arg6[%748, %c2_176] : memref<32x5xf32, #tpu.memory_space<smem>>
    %750 = vector.broadcast %749 : f32 to vector<1x1024xf32>
    %751 = arith.addf %747, %750 : vector<1x1024xf32>
    %cst_177 = arith.constant 0.000000e+00 : f32
    %752 = vector.broadcast %cst_177 : f32 to vector<1x1024xf32>
    %753 = arith.maximumf %751, %752 : vector<1x1024xf32>
    %754 = arith.index_cast %c27_i32 : i32 to index
    %c3_178 = arith.constant 3 : index
    %755 = memref.load %arg6[%754, %c3_178] : memref<32x5xf32, #tpu.memory_space<smem>>
    %756 = vector.broadcast %755 : f32 to vector<1x1024xf32>
    %757 = arith.mulf %756, %753 : vector<1x1024xf32>
    %758 = arith.addf %733, %757 : vector<1x1024xf32>
    %759 = arith.index_cast %c27_i32 : i32 to index
    %c4_179 = arith.constant 4 : index
    %760 = memref.load %arg6[%759, %c4_179] : memref<32x5xf32, #tpu.memory_space<smem>>
    %761 = vector.broadcast %760 : f32 to vector<1x1024xf32>
    %762 = arith.mulf %761, %753 : vector<1x1024xf32>
    %763 = arith.addf %738, %762 : vector<1x1024xf32>
    %c28_i32 = arith.constant 28 : i32
    %764 = arith.index_cast %c28_i32 : i32 to index
    %c0_180 = arith.constant 0 : index
    %765 = memref.load %arg6[%764, %c0_180] : memref<32x5xf32, #tpu.memory_space<smem>>
    %766 = vector.broadcast %765 : f32 to vector<1x1024xf32>
    %767 = arith.mulf %766, %57 : vector<1x1024xf32>
    %768 = arith.index_cast %c28_i32 : i32 to index
    %c1_181 = arith.constant 1 : index
    %769 = memref.load %arg6[%768, %c1_181] : memref<32x5xf32, #tpu.memory_space<smem>>
    %770 = vector.broadcast %769 : f32 to vector<1x1024xf32>
    %771 = arith.mulf %770, %61 : vector<1x1024xf32>
    %772 = arith.addf %767, %771 : vector<1x1024xf32>
    %773 = arith.index_cast %c28_i32 : i32 to index
    %c2_182 = arith.constant 2 : index
    %774 = memref.load %arg6[%773, %c2_182] : memref<32x5xf32, #tpu.memory_space<smem>>
    %775 = vector.broadcast %774 : f32 to vector<1x1024xf32>
    %776 = arith.addf %772, %775 : vector<1x1024xf32>
    %cst_183 = arith.constant 0.000000e+00 : f32
    %777 = vector.broadcast %cst_183 : f32 to vector<1x1024xf32>
    %778 = arith.maximumf %776, %777 : vector<1x1024xf32>
    %779 = arith.index_cast %c28_i32 : i32 to index
    %c3_184 = arith.constant 3 : index
    %780 = memref.load %arg6[%779, %c3_184] : memref<32x5xf32, #tpu.memory_space<smem>>
    %781 = vector.broadcast %780 : f32 to vector<1x1024xf32>
    %782 = arith.mulf %781, %778 : vector<1x1024xf32>
    %783 = arith.addf %758, %782 : vector<1x1024xf32>
    %784 = arith.index_cast %c28_i32 : i32 to index
    %c4_185 = arith.constant 4 : index
    %785 = memref.load %arg6[%784, %c4_185] : memref<32x5xf32, #tpu.memory_space<smem>>
    %786 = vector.broadcast %785 : f32 to vector<1x1024xf32>
    %787 = arith.mulf %786, %778 : vector<1x1024xf32>
    %788 = arith.addf %763, %787 : vector<1x1024xf32>
    %c29_i32 = arith.constant 29 : i32
    %789 = arith.index_cast %c29_i32 : i32 to index
    %c0_186 = arith.constant 0 : index
    %790 = memref.load %arg6[%789, %c0_186] : memref<32x5xf32, #tpu.memory_space<smem>>
    %791 = vector.broadcast %790 : f32 to vector<1x1024xf32>
    %792 = arith.mulf %791, %57 : vector<1x1024xf32>
    %793 = arith.index_cast %c29_i32 : i32 to index
    %c1_187 = arith.constant 1 : index
    %794 = memref.load %arg6[%793, %c1_187] : memref<32x5xf32, #tpu.memory_space<smem>>
    %795 = vector.broadcast %794 : f32 to vector<1x1024xf32>
    %796 = arith.mulf %795, %61 : vector<1x1024xf32>
    %797 = arith.addf %792, %796 : vector<1x1024xf32>
    %798 = arith.index_cast %c29_i32 : i32 to index
    %c2_188 = arith.constant 2 : index
    %799 = memref.load %arg6[%798, %c2_188] : memref<32x5xf32, #tpu.memory_space<smem>>
    %800 = vector.broadcast %799 : f32 to vector<1x1024xf32>
    %801 = arith.addf %797, %800 : vector<1x1024xf32>
    %cst_189 = arith.constant 0.000000e+00 : f32
    %802 = vector.broadcast %cst_189 : f32 to vector<1x1024xf32>
    %803 = arith.maximumf %801, %802 : vector<1x1024xf32>
    %804 = arith.index_cast %c29_i32 : i32 to index
    %c3_190 = arith.constant 3 : index
    %805 = memref.load %arg6[%804, %c3_190] : memref<32x5xf32, #tpu.memory_space<smem>>
    %806 = vector.broadcast %805 : f32 to vector<1x1024xf32>
    %807 = arith.mulf %806, %803 : vector<1x1024xf32>
    %808 = arith.addf %783, %807 : vector<1x1024xf32>
    %809 = arith.index_cast %c29_i32 : i32 to index
    %c4_191 = arith.constant 4 : index
    %810 = memref.load %arg6[%809, %c4_191] : memref<32x5xf32, #tpu.memory_space<smem>>
    %811 = vector.broadcast %810 : f32 to vector<1x1024xf32>
    %812 = arith.mulf %811, %803 : vector<1x1024xf32>
    %813 = arith.addf %788, %812 : vector<1x1024xf32>
    %c30_i32 = arith.constant 30 : i32
    %814 = arith.index_cast %c30_i32 : i32 to index
    %c0_192 = arith.constant 0 : index
    %815 = memref.load %arg6[%814, %c0_192] : memref<32x5xf32, #tpu.memory_space<smem>>
    %816 = vector.broadcast %815 : f32 to vector<1x1024xf32>
    %817 = arith.mulf %816, %57 : vector<1x1024xf32>
    %818 = arith.index_cast %c30_i32 : i32 to index
    %c1_193 = arith.constant 1 : index
    %819 = memref.load %arg6[%818, %c1_193] : memref<32x5xf32, #tpu.memory_space<smem>>
    %820 = vector.broadcast %819 : f32 to vector<1x1024xf32>
    %821 = arith.mulf %820, %61 : vector<1x1024xf32>
    %822 = arith.addf %817, %821 : vector<1x1024xf32>
    %823 = arith.index_cast %c30_i32 : i32 to index
    %c2_194 = arith.constant 2 : index
    %824 = memref.load %arg6[%823, %c2_194] : memref<32x5xf32, #tpu.memory_space<smem>>
    %825 = vector.broadcast %824 : f32 to vector<1x1024xf32>
    %826 = arith.addf %822, %825 : vector<1x1024xf32>
    %cst_195 = arith.constant 0.000000e+00 : f32
    %827 = vector.broadcast %cst_195 : f32 to vector<1x1024xf32>
    %828 = arith.maximumf %826, %827 : vector<1x1024xf32>
    %829 = arith.index_cast %c30_i32 : i32 to index
    %c3_196 = arith.constant 3 : index
    %830 = memref.load %arg6[%829, %c3_196] : memref<32x5xf32, #tpu.memory_space<smem>>
    %831 = vector.broadcast %830 : f32 to vector<1x1024xf32>
    %832 = arith.mulf %831, %828 : vector<1x1024xf32>
    %833 = arith.addf %808, %832 : vector<1x1024xf32>
    %834 = arith.index_cast %c30_i32 : i32 to index
    %c4_197 = arith.constant 4 : index
    %835 = memref.load %arg6[%834, %c4_197] : memref<32x5xf32, #tpu.memory_space<smem>>
    %836 = vector.broadcast %835 : f32 to vector<1x1024xf32>
    %837 = arith.mulf %836, %828 : vector<1x1024xf32>
    %838 = arith.addf %813, %837 : vector<1x1024xf32>
    %c31_i32 = arith.constant 31 : i32
    %839 = arith.index_cast %c31_i32 : i32 to index
    %c0_198 = arith.constant 0 : index
    %840 = memref.load %arg6[%839, %c0_198] : memref<32x5xf32, #tpu.memory_space<smem>>
    %841 = vector.broadcast %840 : f32 to vector<1x1024xf32>
    %842 = arith.mulf %841, %57 : vector<1x1024xf32>
    %843 = arith.index_cast %c31_i32 : i32 to index
    %c1_199 = arith.constant 1 : index
    %844 = memref.load %arg6[%843, %c1_199] : memref<32x5xf32, #tpu.memory_space<smem>>
    %845 = vector.broadcast %844 : f32 to vector<1x1024xf32>
    %846 = arith.mulf %845, %61 : vector<1x1024xf32>
    %847 = arith.addf %842, %846 : vector<1x1024xf32>
    %848 = arith.index_cast %c31_i32 : i32 to index
    %c2_200 = arith.constant 2 : index
    %849 = memref.load %arg6[%848, %c2_200] : memref<32x5xf32, #tpu.memory_space<smem>>
    %850 = vector.broadcast %849 : f32 to vector<1x1024xf32>
    %851 = arith.addf %847, %850 : vector<1x1024xf32>
    %cst_201 = arith.constant 0.000000e+00 : f32
    %852 = vector.broadcast %cst_201 : f32 to vector<1x1024xf32>
    %853 = arith.maximumf %851, %852 : vector<1x1024xf32>
    %854 = arith.index_cast %c31_i32 : i32 to index
    %c3_202 = arith.constant 3 : index
    %855 = memref.load %arg6[%854, %c3_202] : memref<32x5xf32, #tpu.memory_space<smem>>
    %856 = vector.broadcast %855 : f32 to vector<1x1024xf32>
    %857 = arith.mulf %856, %853 : vector<1x1024xf32>
    %858 = arith.addf %833, %857 : vector<1x1024xf32>
    %859 = arith.index_cast %c31_i32 : i32 to index
    %c4_203 = arith.constant 4 : index
    %860 = memref.load %arg6[%859, %c4_203] : memref<32x5xf32, #tpu.memory_space<smem>>
    %861 = vector.broadcast %860 : f32 to vector<1x1024xf32>
    %862 = arith.mulf %861, %853 : vector<1x1024xf32>
    %863 = arith.addf %838, %862 : vector<1x1024xf32>
    %c32_i32 = arith.constant 32 : i32
    %864 = vector.broadcast %51 : f32 to vector<1x1024xf32>
    %865 = arith.addf %858, %864 : vector<1x1024xf32>
    %866 = vector.broadcast %43 : f32 to vector<1x1024xf32>
    %867 = arith.mulf %865, %866 : vector<1x1024xf32>
    %868 = vector.broadcast %39 : f32 to vector<1x1024xf32>
    %869 = arith.addf %867, %868 : vector<1x1024xf32>
    %870 = vector.broadcast %53 : f32 to vector<1x1024xf32>
    %871 = arith.addf %863, %870 : vector<1x1024xf32>
    %872 = vector.broadcast %45 : f32 to vector<1x1024xf32>
    %873 = arith.mulf %871, %872 : vector<1x1024xf32>
    %874 = vector.broadcast %41 : f32 to vector<1x1024xf32>
    %875 = arith.addf %873, %874 : vector<1x1024xf32>
    %876 = vector.broadcast %869 : vector<1x1024xf32> to vector<4x1024xf32>
    %877 = arith.mulf %876, %18 : vector<4x1024xf32>
    %878 = vector.broadcast %875 : vector<1x1024xf32> to vector<4x1024xf32>
    %879 = arith.mulf %878, %25 : vector<4x1024xf32>
    %880 = arith.subf %877, %879 : vector<4x1024xf32>
    %881 = vector.broadcast %869 : vector<1x1024xf32> to vector<4x1024xf32>
    %882 = arith.mulf %881, %25 : vector<4x1024xf32>
    %883 = vector.broadcast %875 : vector<1x1024xf32> to vector<4x1024xf32>
    %884 = arith.mulf %883, %18 : vector<4x1024xf32>
    %885 = arith.addf %882, %884 : vector<4x1024xf32>
    %886 = tpu.concatenate %880, %885 in 0 : vector<4x1024xf32>, vector<4x1024xf32> -> vector<8x1024xf32>
    %c0_204 = arith.constant 0 : index
    %c0_205 = arith.constant 0 : index
    %c0_206 = arith.constant 0 : index
    %887 = vector.load %arg7[%c0_204, %c0_205, %c0_206] : memref<1x8x1024xf32, #tpu.memory_space<vmem>>, vector<1x8x1024xf32>
    %888 = vector.shape_cast %887 : vector<1x8x1024xf32> to vector<8x1024xf32>
    %889 = vector.shape_cast %886 : vector<8x1024xf32> to vector<1x8x1024xf32>
    tpu.vector_store %arg7[%c0_204, %c0_205, %c0_206], %889 {strides = array<i32>} : memref<1x8x1024xf32, #tpu.memory_space<vmem>>, vector<1x8x1024xf32>,
    return
  }
  func.func @transform_0(%arg0: i32, %arg1: i32) -> (i32, i32, i32) {
    %c0_i32 = arith.constant 0 : i32
    %c0_i32_0 = arith.constant 0 : i32
    return %arg0, %c0_i32, %arg1 : i32, i32, i32
  }
  func.func @transform_1(%arg0: i32, %arg1: i32) -> (i32, i32) {
    %c0_i32 = arith.constant 0 : i32
    %c0_i32_0 = arith.constant 0 : i32
    %c0_i32_1 = arith.constant 0 : i32
    return %c0_i32, %c0_i32_0 : i32, i32
  }
  func.func @transform_2(%arg0: i32, %arg1: i32) -> (i32, i32) {
    %c0_i32 = arith.constant 0 : i32
    %c0_i32_0 = arith.constant 0 : i32
    %c0_i32_1 = arith.constant 0 : i32
    return %c0_i32, %c0_i32_0 : i32, i32
  }
  func.func @transform_3(%arg0: i32, %arg1: i32) -> (i32, i32) {
    %c0_i32 = arith.constant 0 : i32
    %c0_i32_0 = arith.constant 0 : i32
    %c0_i32_1 = arith.constant 0 : i32
    return %c0_i32, %c0_i32_0 : i32, i32
  }
  func.func @transform_4(%arg0: i32, %arg1: i32) -> (i32, i32) {
    %c0_i32 = arith.constant 0 : i32
    %c0_i32_0 = arith.constant 0 : i32
    %c0_i32_1 = arith.constant 0 : i32
    return %c0_i32, %c0_i32_0 : i32, i32
  }
  func.func @transform_5(%arg0: i32, %arg1: i32) -> (i32, i32, i32) {
    %c0_i32 = arith.constant 0 : i32
    %c0_i32_0 = arith.constant 0 : i32
    return %arg0, %c0_i32, %arg1 : i32, i32, i32
  }
}

module attributes {stable_mosaic.version = 11 : i64} {
  func.func @_dc_kernel(%arg0: i32, %arg1: i32, %arg2: memref<1x8x2048xf32, #tpu.memory_space<vmem>>, %arg3: memref<1x8x2048xf32, #tpu.memory_space<vmem>>, %arg4: memref<2x2048xf32, #tpu.memory_space<vmem>>, %arg5: memref<1x8x2048xf32, #tpu.memory_space<vmem>>) attributes {dimension_semantics = [#tpu.dimension_semantics<parallel>, #tpu.dimension_semantics<parallel>], iteration_bounds = array<i64: 2, 2>, scalar_prefetch = 0 : i64, scratch_operands = 0 : i64, tpu.core_type = #tpu.core_type<tc>, window_params = [{transform_indices = @transform_0, window_bounds = array<i64: 1, 8, 2048>}, {transform_indices = @transform_1, window_bounds = array<i64: 1, 8, 2048>}, {transform_indices = @transform_2, window_bounds = array<i64: 2, 2048>}, {transform_indices = @transform_3, window_bounds = array<i64: 1, 8, 2048>}]} {
    %c0 = arith.constant 0 : index
    %c0_0 = arith.constant 0 : index
    %c0_1 = arith.constant 0 : index
    %0 = vector.load %arg2[%c0, %c0_0, %c0_1] : memref<1x8x2048xf32, #tpu.memory_space<vmem>>, vector<1x8x2048xf32>
    %c0_2 = arith.constant 0 : index
    %c0_3 = arith.constant 0 : index
    %c0_4 = arith.constant 0 : index
    %1 = vector.load %arg3[%c0_2, %c0_3, %c0_4] : memref<1x8x2048xf32, #tpu.memory_space<vmem>>, vector<1x8x2048xf32>
    %c0_5 = arith.constant 0 : index
    %c0_6 = arith.constant 0 : index
    %2 = vector.load %arg4[%c0_5, %c0_6] : memref<2x2048xf32, #tpu.memory_space<vmem>>, vector<2x2048xf32>
    %3 = vector.extract_strided_slice %2 {offsets = [0, 0], sizes = [1, 2048], strides = [1, 1]} : vector<2x2048xf32> to vector<1x2048xf32>
    %4 = vector.shape_cast %3 : vector<1x2048xf32> to vector<1x2048xf32>
    %5 = vector.broadcast %4 : vector<1x2048xf32> to vector<4x2048xf32>
    %6 = vector.extract_strided_slice %2 {offsets = [1, 0], sizes = [1, 2048], strides = [1, 1]} : vector<2x2048xf32> to vector<1x2048xf32>
    %7 = vector.shape_cast %6 : vector<1x2048xf32> to vector<1x2048xf32>
    %8 = vector.broadcast %7 : vector<1x2048xf32> to vector<4x2048xf32>
    %9 = tpu.concatenate %5, %8 in 0 : vector<4x2048xf32>, vector<4x2048xf32> -> vector<8x2048xf32>
    %10 = arith.subf %0, %1 : vector<1x8x2048xf32>
    %11 = vector.shape_cast %9 : vector<8x2048xf32> to vector<1x8x2048xf32>
    %12 = arith.mulf %10, %11 : vector<1x8x2048xf32>
    %13 = arith.subf %0, %12 : vector<1x8x2048xf32>
    %c0_7 = arith.constant 0 : index
    %c0_8 = arith.constant 0 : index
    %c0_9 = arith.constant 0 : index
    %14 = vector.load %arg5[%c0_7, %c0_8, %c0_9] : memref<1x8x2048xf32, #tpu.memory_space<vmem>>, vector<1x8x2048xf32>
    tpu.vector_store %arg5[%c0_7, %c0_8, %c0_9], %13 {strides = array<i32>} : memref<1x8x2048xf32, #tpu.memory_space<vmem>>, vector<1x8x2048xf32>,
    return
  }
  func.func @transform_0(%arg0: i32, %arg1: i32) -> (i32, i32, i32) {
    %c0_i32 = arith.constant 0 : i32
    %c0_i32_0 = arith.constant 0 : i32
    return %arg0, %c0_i32, %arg1 : i32, i32, i32
  }
  func.func @transform_1(%arg0: i32, %arg1: i32) -> (i32, i32, i32) {
    %c0_i32 = arith.constant 0 : i32
    %c0_i32_0 = arith.constant 0 : i32
    return %arg0, %c0_i32, %arg1 : i32, i32, i32
  }
  func.func @transform_2(%arg0: i32, %arg1: i32) -> (i32, i32) {
    %c0_i32 = arith.constant 0 : i32
    %c0_i32_0 = arith.constant 0 : i32
    return %c0_i32, %arg1 : i32, i32
  }
  func.func @transform_3(%arg0: i32, %arg1: i32) -> (i32, i32, i32) {
    %c0_i32 = arith.constant 0 : i32
    %c0_i32_0 = arith.constant 0 : i32
    return %arg0, %c0_i32, %arg1 : i32, i32, i32
  }
}

</mosaic_0001>

<bundles_post_ra>
// kernel: mfmc_forward.3
= control target key start
LH: loop header
LB: loop body
LE: loop exit
PB: predicated region body
PF: predicated region fallthrough
CT: control target
= control target key end

     0   :  { %s820_s12 = smov 0   ;;  %s822_s13 = smov 0   ;;  %s1130_s0 = inlined_call_operand.vmem [shape: f32[2,8,4096], index: 0, kind: input, shape index: {}]   ;;  %s1131_s1 = inlined_call_operand.vmem [shape: f32[4,1], index: 1, kind: input, shape index: {}]   ;;  %s1132_s2 = inlined_call_operand.vmem [shape: f32[4,1], index: 2, kind: input, shape index: {}]   ;;  %s1133_s3 = inlined_call_operand.vmem [shape: f32[2,4,128], index: 3, kind: output, shape index: {}]  }
   0x1   :  { %s824_s14 = smov 0   ;;  %s826_s15 = smov 0  }
   0x2   :  { %s828_s16 = smov 0  }
   0x3 LB: > { %s22_s17 = sadd.s32 1, %s788_s14  ;;  %s25_s18 = sadd.s32 1, %s792_s15  ;;  %s796_s16 = sphi %s828_s16, %s13_s16   ;;  %s792_s15 = sphi %s826_s15, %s1162_s15   ;;  %s788_s14 = sphi %s824_s14, %s1161_s14   ;;  %s784_s13 = sphi %s822_s13, %s1160_s13   ;;  %s780_s12 = sphi %s820_s12, %s1159_s12  }
   0x4   : > { %p23_p0 = scmp.ge.s32.totalorder %s22_s17, 4  ;;  %p691_p1 = scmp.ge.s32.totalorder %s796_s16, 1 }
   0x5   : > { %p156_p2 = scmp.lt.s32.totalorder %s796_s16, 9 }
   0x6   : > { %s1164_s17 = smov (%p23_p0, %s22_s17), 0  ;;  %s1166_s18 = smov (!%p23_p0, %s25_s18), %s792_s15 }
   0x7   : > { %p157_p3 = pnand %p691_p1, %p156_p2  ;;  %p27_p4 = scmp.ge.s32.totalorder %s1166_s18, 2 }
   0x8   : > { %s692_s19 = sshll.u32 (!%p157_p3), %s780_s12, 3  ;;  %p184_p5 = scmp.lt.s32.totalorder (!%p157_p3), %s784_s13, 1 }
   0x9   : > { %s1168_s18 = smov (%p27_p4, %s1166_s18), 0  ;;  %160 = sbr.rel (%p157_p3) target bundleno = 430 (0x1ae), region = 32 }
   0xa   : > { %p186_p6 = scmp.lt.s32.totalorder (!%p157_p3), %s692_s19, 31  ;;  %p696_p7 = scmp.ne.s32.totalorder (!%p157_p3), %s780_s12, 0 }
   0xe   : > { %s1170_s13 = smov (!%p184_p5, %s784_s13), 1  ;;  %s1172_s19 = smov (!%p186_p6, %s692_s19), 31 }
   0xf   : > { %s693_s20 = sshll.u32 %s1170_s13, 5  ;;  %s695_s21 = sshll.u32 %s1170_s13, 2 }
  0x10   : > { %s189_s22 = sadd.s32 %s693_s20, %s1172_s19  ;;  %s853_s25 = scalar_lea.vmem %s1133_s3, %s695_s21 }
  0x11   : > { %s694_s26 = sshll.u32 %s189_s22, 3  ;;  %200 = sbr.rel (%p696_p7) target bundleno = 24 (0x18), region = 36 }
  0x12   : > { %s191_s29 = scalar_lea.vmem %s1130_s0, %s694_s26 }
  0x16   : > { %v798_v0 = vmov 0.0  }
  0x17   : > { %201 = vst [vmem:[%s853_s25] sm:$0xf] %v798_v0 }
  0x18 PF: > { %v387_v1 = vld [vmem:[%s1131_s1] sm:$0xf]  ;;  %v799_v2 = vmov 0   ;;  %v203_v5 = vld [vmem:[%s191_s29 + $0x8] sm:$0xff]  ;;  %v204_v6 = vld [vmem:[%s191_s29 + $0x10] sm:$0xff]  ;;  %vm1134_vm0 = vcmask 1043456  }
  0x19   : > { %741 = vset.pattern.permute.xlu0 %v799_v2  ;;  %v473_v3 = vld [vmem:[%s1132_s2] sm:$0xf]  ;;  %v211_v8 = vmul.f32 %v203_v5, %v203_v5  ;;  %v212_v9 = vmul.f32 %v204_v6, %v204_v6  ;;  %v205_v10 = vld [vmem:[%s191_s29 + $0x18] sm:$0xff]  ;;  %v207_v12 = vld [vmem:[%s191_s29 + $0x28] sm:$0xff] }
  0x1a   : > { %390 = vperm.xlu0 %741, %v387_v1   ;;  %v202_v4 = vld [vmem:[%s191_s29] sm:$0xff]  ;;  %v213_v13 = vmul.f32 %v205_v10, %v205_v10  ;;  %v208_v14 = vld [vmem:[%s191_s29 + $0x30] sm:$0xff]  ;;  %v209_v15 = vld [vmem:[%s191_s29 + $0x38] sm:$0xff]  ;;  %v215_v17 = vmul.f32 %v207_v12, %v207_v12 }
  0x1b   : > { %v210_v7 = vmul.f32 %v202_v4, %v202_v4  ;;  %v206_v11 = vld [vmem:[%s191_s29 + $0x20] sm:$0xff]  ;;  %v227_v19 = vrot.slane %v211_v8, 4  ;;  %v228_v20 = vrot.slane %v212_v9, 4  ;;  %v216_v21 = vmul.f32 %v208_v14, %v208_v14 }
  0x1c   : > { %v214_v16 = vmul.f32 %v206_v11, %v206_v11  ;;  %v229_v22 = vrot.slane %v213_v13, 4  ;;  %v217_v23 = vmul.f32 %v209_v15, %v209_v15  ;;  %v231_v25 = vrot.slane %v215_v17, 4 }
  0x1d   : > { %v226_v18 = vrot.slane %v210_v7, 4  ;;  %v867_v27 = vadd.f32 %v227_v19, %v211_v8  ;;  %v869_v28 = vadd.f32 %v228_v20, %v212_v9  ;;  %v232_v29 = vrot.slane %v216_v21, 4 }
  0x1e   : > { %v230_v24 = vrot.slane %v214_v16, 4  ;;  %v871_v30 = vadd.f32 %v229_v22, %v213_v13  ;;  %v233_v31 = vrot.slane %v217_v23, 4  ;;  %v875_v33 = vadd.f32 %v231_v25, %v215_v17 }
  0x1f   : > { %v865_v26 = vadd.f32 %v226_v18, %v210_v7  ;;  %v877_v34 = vadd.f32 %v232_v29, %v216_v21  ;;  %v258_v36 = vsel %vm1134_vm0, %v867_v27, 0.0  ;;  %v265_v40 = vsel %vm1134_vm0, %v869_v28, 0.0 }
  0x20   : > { %v873_v32 = vadd.f32 %v230_v24, %v214_v16  ;;  %v883_v37 = vadd.f32 %v233_v31, %v217_v23  ;;  %v259_v39 = vrot.slane %v258_v36, 4  ;;  %v266_v41 = vrot.slane %v265_v40, 4 }
  0x21   : > { %v251_v35 = vsel %vm1134_vm0, %v865_v26, 0.0  ;;  %v272_v42 = vsel %vm1134_vm0, %v871_v30, 0.0  ;;  %v286_v44 = vsel %vm1134_vm0, %v875_v33, 0.0  ;;  %v293_v51 = vsel %vm1134_vm0, %v877_v34, 0.0 }
  0x22   : > { %476 = vperm.xlu0 %741, %v473_v3   ;;  %v252_v38 = vrot.slane %v251_v35, 4  ;;  %v279_v43 = vsel %vm1134_vm0, %v873_v32, 0.0  ;;  %v260_v46 = vadd.f32 %v259_v39, %v258_v36  ;;  %v273_v47 = vrot.slane %v272_v42, 4 }
  0x23   : > { %v280_v48 = vrot.slane %v279_v43, 4  ;;  %v267_v49 = vadd.f32 %v266_v41, %v265_v40  ;;  %v287_v50 = vrot.slane %v286_v44, 4  ;;  %v300_v52 = vsel %vm1134_vm0, %v883_v37, 0.0 }
  0x24   : > { %v253_v45 = vadd.f32 %v252_v38, %v251_v35  ;;  %v261_v54 = vrot.slane %v260_v46, 2  ;;  %v274_v55 = vadd.f32 %v273_v47, %v272_v42  ;;  %v294_v59 = vrot.slane %v293_v51, 4 }
  0x25   : > { %v281_v56 = vadd.f32 %v280_v48, %v279_v43  ;;  %v268_v57 = vrot.slane %v267_v49, 2  ;;  %v288_v58 = vadd.f32 %v287_v50, %v286_v44  ;;  %v301_v60 = vrot.slane %v300_v52, 4 }
  0x26   : > { %v254_v53 = vrot.slane %v253_v45, 2  ;;  %v262_v62 = vadd.f32 %v261_v54, %v260_v46  ;;  %v275_v63 = vrot.slane %v274_v55, 2  ;;  %v295_v3 = vadd.f32 %v294_v59, %v293_v51 }
  0x27   : > { %v282_v0 = vrot.slane %v281_v56, 2  ;;  %v269_v1 = vadd.f32 %v268_v57, %v267_v49  ;;  %v289_v2 = vrot.slane %v288_v58, 2  ;;  %v302_v4 = vadd.f32 %v301_v60, %v300_v52 }
  0x28   : > { %v255_v61 = vadd.f32 %v254_v53, %v253_v45  ;;  %v263_v6 = vrot.slane %v262_v62, 1  ;;  %v276_v7 = vadd.f32 %v275_v63, %v274_v55  ;;  %v296_v11 = vrot.slane %v295_v3, 2 }
  0x29   : > { %v283_v8 = vadd.f32 %v282_v0, %v281_v56  ;;  %v270_v9 = vrot.slane %v269_v1, 1  ;;  %v290_v10 = vadd.f32 %v289_v2, %v288_v58  ;;  %v303_v12 = vrot.slane %v302_v4, 2 }
  0x2a   : > { %v256_v5 = vrot.slane %v255_v61, 1  ;;  %v899_v14 = vadd.f32 %v263_v6, %v262_v62  ;;  %v277_v15 = vrot.slane %v276_v7, 1  ;;  %v297_v19 = vadd.f32 %v296_v11, %v295_v3 }
  0x2b   : > { %v284_v16 = vrot.slane %v283_v8, 1  ;;  %v901_v17 = vadd.f32 %v270_v9, %v269_v1  ;;  %v291_v18 = vrot.slane %v290_v10, 1  ;;  %v304_v22 = vadd.f32 %v303_v12, %v302_v4 }
  0x2c   : > { %v897_v13 = vadd.f32 %v256_v5, %v255_v61  ;;  %v903_v20 = vadd.f32 %v277_v15, %v276_v7  ;;  %v298_v23 = vrot.slane %v297_v19, 1  ;;  %vm323_vm3 = vweird.f32 %v899_v14 }
  0x2d   : > { %v905_v21 = vadd.f32 %v284_v16, %v283_v8  ;;  %v909_v24 = vadd.f32 %v291_v18, %v290_v10  ;;  %v305_v29 = vrot.slane %v304_v22, 1  ;;  %vm333_vm5 = vweird.f32 %v901_v17 }
  0x2e   : > { %742 = vrsqrt.f32 %v897_v13  ;;  %v912_v25 = vadd.f32 %v298_v23, %v297_v19  ;;  %vm313_vm1 = vweird.f32 %v897_v13  ;;  %vm343_vm8 = vweird.f32 %v903_v20 }
  0x2f   : > { %744 = vrsqrt.f32 %v899_v14  ;;  %v926_v39 = vadd.f32 %v305_v29, %v304_v22  ;;  %vm353_vm11 = vweird.f32 %v905_v21  ;;  %vm363_vm14 = vweird.f32 %v909_v24 }
  0x30   : > { %746 = vrsqrt.f32 %v901_v17 }
  0x31   : > { %748 = vrsqrt.f32 %v903_v20 }
  0x32   : > { %750 = vrsqrt.f32 %v905_v21 }
  0x33   : > { %752 = vrsqrt.f32 %v909_v24 }
  0x34   : > { %v916_v31 = vpop.eup %742  ;;  %754 = vrsqrt.f32 %v912_v25 }
  0x35   : > { %v919_v35 = vpop.eup %744  ;;  %v308_v36 = vmul.f32 %v916_v31, %v897_v13  ;;  %756 = vrsqrt.f32 %v926_v39  ;;  %vm314_vm2 = vweird.f32 %v916_v31 }
  0x36   : > { %v924_v38 = vpop.eup %746  ;;  %v318_v41 = vmul.f32 %v919_v35, %v899_v14  ;;  %vm324_vm4 = vweird.f32 %v919_v35  ;;  %vm970_vm7 = vmor %vm313_vm1, %vm314_vm2  ;;  %vm373_vm2 = vweird.f32 %v912_v25 }
  0x37   : > { %v928_v40 = vpop.eup %748  ;;  %v309_v43 = vmul.f32 %v916_v31, %v308_v36  ;;  %v328_v44 = vmul.f32 %v924_v38, %v901_v17  ;;  %vm334_vm6 = vweird.f32 %v924_v38  ;;  %vm976_vm10 = vmor %vm323_vm3, %vm324_vm4 }
  0x38   : > { %v932_v42 = vpop.eup %750  ;;  %v338_v46 = vmul.f32 %v928_v40, %v903_v20  ;;  %v319_v49 = vmul.f32 %v919_v35, %v318_v41  ;;  %vm344_vm9 = vweird.f32 %v928_v40  ;;  %vm983_vm13 = vmor %vm333_vm5, %vm334_vm6  ;;  %vm383_vm5 = vweird.f32 %v926_v39 }
  0x39   : > { %v937_v45 = vpop.eup %752  ;;  %v348_v47 = vmul.f32 %v932_v42, %v905_v21  ;;  %v310_v50 = vmul.f32 0.5, %v309_v43  ;;  %v329_v51 = vmul.f32 %v924_v38, %v328_v44  ;;  %vm354_vm12 = vweird.f32 %v932_v42  ;;  %vm990_vm1 = vmor %vm343_vm8, %vm344_vm9 }
  0x3a   : > { %v944_v48 = vpop.eup %754  ;;  %v358_v52 = vmul.f32 %v937_v45, %v909_v24  ;;  %v339_v53 = vmul.f32 %v928_v40, %v338_v46  ;;  %v320_v56 = vmul.f32 0.5, %v319_v49  ;;  %vm364_vm15 = vweird.f32 %v937_v45  ;;  %vm355_vm4 = vmor %vm353_vm11, %vm354_vm12 }
  0x3b   : > { %v349_v54 = vmul.f32 %v932_v42, %v348_v47  ;;  %v368_v55 = vmul.f32 %v944_v48, %v912_v25  ;;  %v954_v57 = vpop.eup %756  ;;  %v311_v58 = vsub.f32 1.5, %v310_v50  ;;  %v330_v59 = vmul.f32 0.5, %v329_v51  ;;  %vm365_vm8 = vmor %vm363_vm14, %vm364_vm15 }
  0x3c   : > { %v359_v60 = vmul.f32 %v937_v45, %v358_v52  ;;  %v340_v61 = vmul.f32 0.5, %v339_v53  ;;  %v321_v0 = vsub.f32 1.5, %v320_v56  ;;  %v378_v2 = vmul.f32 %v954_v57, %v926_v39 }
  0x3d   : > { %v350_v62 = vmul.f32 0.5, %v349_v54  ;;  %v369_v63 = vmul.f32 %v944_v48, %v368_v55  ;;  %v312_v3 = vmul.f32 %v916_v31, %v311_v58  ;;  %v331_v5 = vsub.f32 1.5, %v330_v59 }
  0x3e   : > { %v360_v1 = vmul.f32 0.5, %v359_v60  ;;  %v379_v6 = vmul.f32 %v954_v57, %v378_v2  ;;  %v341_v8 = vsub.f32 1.5, %v340_v61  ;;  %v322_v13 = vmul.f32 %v919_v35, %v321_v0 }
  0x3f   : > { %v370_v4 = vmul.f32 0.5, %v369_v63  ;;  %v351_v9 = vsub.f32 1.5, %v350_v62  ;;  %v332_v16 = vmul.f32 %v924_v38, %v331_v5  ;;  %vm374_vm3 = vweird.f32 %v944_v48 }
  0x40   : > { %v361_v11 = vsub.f32 1.5, %v360_v1  ;;  %v380_v12 = vmul.f32 0.5, %v379_v6  ;;  %v342_v19 = vmul.f32 %v928_v40, %v341_v8  ;;  %vm384_vm6 = vweird.f32 %v954_v57  ;;  %vm375_vm9 = vmor %vm373_vm2, %vm374_vm3 }
  0x41   : > { %v371_v15 = vsub.f32 1.5, %v370_v4  ;;  %v352_v20 = vmul.f32 %v932_v42, %v351_v9  ;;  %v1010_v25 = vsel %vm970_vm7, %v916_v31, %v312_v3  ;;  %vm385_vm0 = vmor %vm383_vm5, %vm384_vm6  ;;  %v1015_v21 = vsel %vm976_vm10, %v919_v35, %v322_v13 }
  0x42   : > { %v381_v18 = vsub.f32 1.5, %v380_v12  ;;  %v362_v22 = vmul.f32 %v937_v45, %v361_v11  ;;  %v1020_v29 = vsel %vm983_vm13, %v924_v38, %v332_v16  ;;  %v1025_v36 = vsel %vm990_vm1, %v928_v40, %v342_v19 }
  0x43   : > { %v372_v23 = vmul.f32 %v944_v48, %v371_v15  ;;  %v1028_v39 = vsel %vm355_vm4, %v932_v42, %v352_v20  ;;  %v465_v41 = vsub.f32 0.0, %v1010_v25  ;;  %v466_v35 = vsub.f32 0.0, %v1015_v21 }
  0x44   : > { %v382_v24 = vmul.f32 %v954_v57, %v381_v18  ;;  %v1031_v31 = vsel %vm365_vm8, %v937_v45, %v362_v22  ;;  %v467_v43 = vsub.f32 0.0, %v1020_v29  ;;  %v468_v40 = vsub.f32 0.0, %v1025_v36 }
  0x45   : > { %v1037_v38 = vsel %vm375_vm9, %v944_v48, %v372_v23  ;;  %v469_v42 = vsub.f32 0.0, %v1028_v39 }
  0x46   : > { %v1040_v46 = vsel %vm385_vm0, %v954_v57, %v382_v24  ;;  %vm1143_vm0 = vcmask 1043456  }
  0x47   : > { %vm1144_vm7 = vmmov %vm1143_vm0 }
  0x48   : > { %vm1145_vm10 = vmmov %vm1143_vm0 }
  0x49   : > { %vm1146_vm11 = vmmov %vm1143_vm0 }
  0x4a   : > { %vm1147_vm12 = vmmov %vm1143_vm0 }
  0x4b   : > { %vm1148_vm13 = vmmov %vm1143_vm0 }
  0x4c   : > { %vm1149_vm14 = vmmov %vm1143_vm0 }
  0x4d   : > { %vm1150_vm15 = vmmov %vm1143_vm0 }
  0x4e   : > { %vm1151_vm1 = vmmov %vm1143_vm0 }
  0x4f   : > { %vm1152_vm2 = vmmov %vm1143_vm0 }
  0x50   : > { %vm1153_vm3 = vmmov %vm1143_vm0 }
  0x51   : > { %vm1154_vm4 = vmmov %vm1143_vm0 }
  0x52   : > { %vm1155_vm5 = vmmov %vm1143_vm0 }
  0x53   : > { %vm1156_vm6 = vmmov %vm1143_vm0 }
  0x54   : > { %vm1157_vm8 = vmmov %vm1143_vm0 }
  0x55   : > { %vm1158_vm9 = vmmov %vm1143_vm0 }
  0x8c   : > { %v391_v44 = vpop.permute.xlu0 %390 }
  0x8d   : > { %v393_v45 = vmul.f32 %v391_v44, %v865_v26  ;;  %v394_v47 = vmul.f32 %v391_v44, %v867_v27  ;;  %v395_v49 = vmul.f32 %v391_v44, %v869_v28  ;;  %v396_v50 = vmul.f32 %v391_v44, %v871_v30 }
  0x8e   : > { %v397_v51 = vmul.f32 %v391_v44, %v873_v32  ;;  %v398_v48 = vmul.f32 %v391_v44, %v875_v33  ;;  %v399_v52 = vmul.f32 %v391_v44, %v877_v34  ;;  %v400_v53 = vmul.f32 %v391_v44, %v883_v37 }
  0x8f   : > { %v401_v54 = vsel %vm1143_vm0, %v393_v45, 0.0  ;;  %v408_v55 = vsel %vm1144_vm7, %v394_v47, 0.0  ;;  %v415_v56 = vsel %vm1145_vm10, %v395_v49, 0.0  ;;  %v422_v57 = vsel %vm1146_vm11, %v396_v50, 0.0 }
  0x90   : > { %v402_v58 = vrot.slane %v401_v54, 4  ;;  %v409_v59 = vrot.slane %v408_v55, 4  ;;  %v416_v60 = vrot.slane %v415_v56, 4  ;;  %v423_v61 = vrot.slane %v422_v57, 4 }
  0x91   : > { %v429_v62 = vsel %vm1147_vm12, %v397_v51, 0.0  ;;  %v436_v63 = vsel %vm1148_vm13, %v398_v48, 0.0  ;;  %v443_v0 = vsel %vm1149_vm14, %v399_v52, 0.0  ;;  %v450_v1 = vsel %vm1150_vm15, %v400_v53, 0.0 }
  0x92   : > { %v403_v2 = vadd.f32 %v402_v58, %v401_v54  ;;  %v410_v3 = vadd.f32 %v409_v59, %v408_v55  ;;  %v417_v4 = vadd.f32 %v416_v60, %v415_v56  ;;  %v424_v5 = vadd.f32 %v423_v61, %v422_v57 }
  0x93   : > { %v430_v6 = vrot.slane %v429_v62, 4  ;;  %v437_v7 = vrot.slane %v436_v63, 4  ;;  %v444_v8 = vrot.slane %v443_v0, 4  ;;  %v451_v9 = vrot.slane %v450_v1, 4 }
  0x94   : > { %v1060_v10 = vpop.permute.xlu0 %476  ;;  %v404_v11 = vrot.slane %v403_v2, 2  ;;  %v411_v12 = vrot.slane %v410_v3, 2  ;;  %v418_v13 = vrot.slane %v417_v4, 2  ;;  %v425_v14 = vrot.slane %v424_v5, 2 }
  0x95   : > { %v479_v15 = vmul.f32 %v1060_v10, %v865_v26  ;;  %v480_v16 = vmul.f32 %v1060_v10, %v867_v27  ;;  %v1068_v17 = vmul.f32 %v1060_v10, %v869_v28  ;;  %v1072_v18 = vmul.f32 %v1060_v10, %v871_v30 }
  0x96   : > { %v405_v19 = vadd.f32 %v404_v11, %v403_v2  ;;  %v412_v20 = vadd.f32 %v411_v12, %v410_v3  ;;  %v419_v22 = vadd.f32 %v418_v13, %v417_v4  ;;  %v426_v23 = vadd.f32 %v425_v14, %v424_v5 }
  0x97   : > { %v487_v24 = vsel %vm1151_vm1, %v479_v15, 0.0  ;;  %v494_v44 = vsel %vm1152_vm2, %v480_v16, 0.0  ;;  %v431_v26 = vadd.f32 %v430_v6, %v429_v62  ;;  %v438_v45 = vadd.f32 %v437_v7, %v436_v63 }
  0x98   : > { %v488_v47 = vrot.slane %v487_v24, 4  ;;  %v495_v27 = vrot.slane %v494_v44, 4  ;;  %v406_v49 = vrot.slane %v405_v19, 1  ;;  %v413_v50 = vrot.slane %v412_v20, 1 }
  0x99   : > { %v420_v28 = vrot.slane %v419_v22, 1  ;;  %v427_v51 = vrot.slane %v426_v23, 1  ;;  %v432_v48 = vrot.slane %v431_v26, 2  ;;  %v439_v52 = vrot.slane %v438_v45, 2 }
  0x9a   : > { %v407_v30 = vadd.f32 %v406_v49, %v405_v19  ;;  %v414_v53 = vadd.f32 %v413_v50, %v412_v20  ;;  %v445_v54 = vadd.f32 %v444_v8, %v443_v0  ;;  %v452_v55 = vadd.f32 %v451_v9, %v450_v1 }
  0x9b   : > { %v421_v56 = vadd.f32 %v420_v28, %v419_v22  ;;  %v428_v57 = vadd.f32 %v427_v51, %v426_v23  ;;  %v433_v58 = vadd.f32 %v432_v48, %v431_v26  ;;  %v440_v59 = vadd.f32 %v439_v52, %v438_v45 }
  0x9c   : > { %v446_v60 = vrot.slane %v445_v54, 2  ;;  %v453_v61 = vrot.slane %v452_v55, 2  ;;  %v457_v62 = vmul.f32 %v407_v30, %v1010_v25  ;;  %v458_v63 = vmul.f32 %v414_v53, %v1015_v21 }
  0x9d   : > { %v434_v2 = vrot.slane %v433_v58, 1  ;;  %v441_v3 = vrot.slane %v440_v59, 1  ;;  %v459_v4 = vmul.f32 %v421_v56, %v1020_v29  ;;  %v460_v5 = vmul.f32 %v428_v57, %v1025_v36 }
  0x9e   : > { %v447_v6 = vadd.f32 %v446_v60, %v445_v54  ;;  %v454_v7 = vadd.f32 %v453_v61, %v452_v55  ;;  %v551_v0 = vadd.f32 %v458_v63, %v457_v62  ;;  %v569_v1 = vmul.f32 %v457_v62, %v457_v62 }
  0x9f   : > { %v435_v8 = vadd.f32 %v434_v2, %v433_v58  ;;  %v442_v9 = vadd.f32 %v441_v3, %v440_v59  ;;  %v570_v11 = vmul.f32 %v458_v63, %v458_v63  ;;  %v571_v12 = vmul.f32 %v459_v4, %v459_v4 }
  0xa0   : > { %v448_v13 = vrot.slane %v447_v6, 1  ;;  %v455_v14 = vrot.slane %v454_v7, 1  ;;  %v552_v15 = vadd.f32 %v551_v0, %v459_v4  ;;  %v572_v16 = vmul.f32 %v460_v5, %v460_v5 }
  0xa1   : > { %v461_v19 = vmul.f32 %v435_v8, %v1028_v39  ;;  %v462_v20 = vmul.f32 %v442_v9, %v1031_v31  ;;  %v577_v22 = vadd.f32 %v570_v11, %v569_v1  ;;  %v483_v23 = vmul.f32 %v1060_v10, %v873_v32 }
  0xa2   : > { %v449_v26 = vadd.f32 %v448_v13, %v447_v6  ;;  %v456_v45 = vadd.f32 %v455_v14, %v454_v7  ;;  %v553_v49 = vadd.f32 %v552_v15, %v460_v5  ;;  %v484_v50 = vmul.f32 %v1060_v10, %v875_v33 }
  0xa3   : > { %v573_v28 = vmul.f32 %v461_v19, %v461_v19  ;;  %v574_v51 = vmul.f32 %v462_v20, %v462_v20  ;;  %v578_v48 = vadd.f32 %v577_v22, %v571_v12  ;;  %v485_v52 = vmul.f32 %v1060_v10, %v877_v34 }
  0xa4   : > { %v463_v30 = vmul.f32 %v449_v26, %v1037_v38  ;;  %v464_v53 = vmul.f32 %v456_v45, %v1040_v46  ;;  %v554_v54 = vadd.f32 %v553_v49, %v461_v19  ;;  %v486_v32 = vmul.f32 %v1060_v10, %v883_v37 }
  0xa5   : > { %v579_v55 = vadd.f32 %v578_v48, %v572_v16  ;;  %v489_v56 = vadd.f32 %v488_v47, %v487_v24  ;;  %v496_v57 = vadd.f32 %v495_v27, %v494_v44  ;;  %v501_v33 = vsel %vm1153_vm3, %v1068_v17, 0.0 }
  0xa6   : > { %v555_v58 = vadd.f32 %v554_v54, %v462_v20  ;;  %v575_v59 = vmul.f32 %v463_v30, %v463_v30  ;;  %v576_v60 = vmul.f32 %v464_v53, %v464_v53  ;;  %v502_v61 = vrot.slane %v501_v33, 4 }
  0xa7   : > { %v580_v62 = vadd.f32 %v579_v55, %v573_v28  ;;  %v490_v34 = vrot.slane %v489_v56, 2  ;;  %v497_v63 = vrot.slane %v496_v57, 2  ;;  %v508_v2 = vsel %vm1154_vm4, %v1072_v18, 0.0 }
  0xa8   : > { %v556_v3 = vadd.f32 %v555_v58, %v463_v30  ;;  %v503_v4 = vadd.f32 %v502_v61, %v501_v33  ;;  %v509_v5 = vrot.slane %v508_v2, 4  ;;  %v515_v37 = vsel %vm1155_vm5, %v483_v23, 0.0 }
  0xa9   : > { %v581_v10 = vadd.f32 %v580_v62, %v574_v51  ;;  %v491_v24 = vadd.f32 %v490_v34, %v489_v56  ;;  %v498_v44 = vadd.f32 %v497_v63, %v496_v57  ;;  %v516_v47 = vrot.slane %v515_v37, 4 }
  0xaa   : > { %v557_v17 = vadd.f32 %v556_v3, %v464_v53  ;;  %v504_v27 = vrot.slane %v503_v4, 2  ;;  %v510_v6 = vadd.f32 %v509_v5, %v508_v2  ;;  %v522_v7 = vsel %vm1156_vm6, %v484_v50, 0.0 }
  0xab   : > { %v582_v0 = vadd.f32 %v581_v10, %v575_v59  ;;  %v492_v1 = vrot.slane %v491_v24, 1  ;;  %v499_v8 = vrot.slane %v498_v44, 1  ;;  %v517_v9 = vadd.f32 %v516_v47, %v515_v37 }
  0xac   : > { %558 = vadd.xlane.f32.xlu1 %v557_v17  ;;  %v505_v18 = vadd.f32 %v504_v27, %v503_v4  ;;  %v511_v11 = vrot.slane %v510_v6, 2  ;;  %v523_v12 = vrot.slane %v522_v7, 4  ;;  %v529_v13 = vsel %vm1157_vm8, %v485_v52, 0.0 }
  0xad   : > { %v583_v14 = vadd.f32 %v582_v0, %v576_v60  ;;  %v493_v15 = vadd.f32 %v492_v1, %v491_v24  ;;  %v500_v16 = vadd.f32 %v499_v8, %v498_v44  ;;  %v518_v19 = vrot.slane %v517_v9, 2 }
  0xae   : > { %v506_v20 = vrot.slane %v505_v18, 1  ;;  %v512_v22 = vadd.f32 %v511_v11, %v510_v6  ;;  %v524_v23 = vadd.f32 %v523_v12, %v522_v7  ;;  %v530_v26 = vrot.slane %v529_v13, 4 }
  0xaf   : > { %584 = vadd.xlane.f32.xlu2 %v583_v14  ;;  %v519_v45 = vadd.f32 %v518_v19, %v517_v9  ;;  %v536_v49 = vsel %vm1158_vm9, %v486_v32, 0.0  ;;  %v543_v50 = vmul.f32 %v493_v15, %v465_v41  ;;  %v544_v28 = vmul.f32 %v500_v16, %v466_v35 }
  0xb0   : > { %v507_v51 = vadd.f32 %v506_v20, %v505_v18  ;;  %v513_v48 = vrot.slane %v512_v22, 1  ;;  %v525_v52 = vrot.slane %v524_v23, 2  ;;  %v531_v30 = vadd.f32 %v530_v26, %v529_v13 }
  0xb1   : > { %v520_v53 = vrot.slane %v519_v45, 1  ;;  %v537_v54 = vrot.slane %v536_v49, 4  ;;  %v560_v55 = vadd.f32 %v544_v28, %v543_v50  ;;  %v586_v56 = vmul.f32 %v543_v50, %v543_v50 }
  0xb2   : > { %v514_v57 = vadd.f32 %v513_v48, %v512_v22  ;;  %v526_v33 = vadd.f32 %v525_v52, %v524_v23  ;;  %v532_v58 = vrot.slane %v531_v30, 2  ;;  %v545_v32 = vmul.f32 %v507_v51, %v467_v43  ;;  %v609_v23 = vld [vmem:[%s853_s25] sm:$0xf] }
  0xb3   : > { %v470_v25 = vsub.f32 0.0, %v1031_v31  ;;  %v521_v41 = vadd.f32 %v520_v53, %v519_v45  ;;  %v538_v59 = vadd.f32 %v537_v54, %v536_v49  ;;  %v587_v21 = vmul.f32 %v544_v28, %v544_v28 }
  0xb4   : > { %v527_v35 = vrot.slane %v526_v33, 1  ;;  %v533_v60 = vadd.f32 %v532_v58, %v531_v30  ;;  %v546_v61 = vmul.f32 %v514_v57, %v468_v40  ;;  %v561_v62 = vadd.f32 %v560_v55, %v545_v32 }
  0xb5   : > { %v539_v34 = vrot.slane %v538_v59, 2  ;;  %v547_v63 = vmul.f32 %v521_v41, %v469_v42  ;;  %v588_v2 = vmul.f32 %v545_v32, %v545_v32  ;;  %v594_v3 = vadd.f32 %v587_v21, %v586_v56 }
  0xb6   : > { %v471_v29 = vsub.f32 0.0, %v1037_v38  ;;  %v528_v43 = vadd.f32 %v527_v35, %v526_v33  ;;  %v534_v4 = vrot.slane %v533_v60, 1  ;;  %v562_v31 = vadd.f32 %v561_v62, %v546_v61 }
  0xb7   : > { %v540_v5 = vadd.f32 %v539_v34, %v538_v59  ;;  %v589_v37 = vmul.f32 %v546_v61, %v546_v61  ;;  %v595_v10 = vadd.f32 %v594_v3, %v588_v2  ;;  %v472_v36 = vsub.f32 0.0, %v1040_v46 }
  0xb8   : > { %v535_v24 = vadd.f32 %v534_v4, %v533_v60  ;;  %v548_v44 = vmul.f32 %v528_v43, %v470_v25  ;;  %v563_v47 = vadd.f32 %v562_v31, %v547_v63  ;;  %v590_v17 = vmul.f32 %v547_v63, %v547_v63 }
  0xb9   : > { %v541_v40 = vrot.slane %v540_v5, 1  ;;  %v596_v27 = vadd.f32 %v595_v10, %v589_v37  ;;  %vm603_vm0 = vcmask 1040384   ;;  %vm605_vm7 = vcmask 1041408  }
  0xba   : > { %v549_v39 = vmul.f32 %v535_v24, %v471_v29  ;;  %v564_v42 = vadd.f32 %v563_v47, %v548_v44  ;;  %v591_v7 = vmul.f32 %v548_v44, %v548_v44  ;;  %vm607_vm10 = vcmask 1042432  }
  0xbb   : > { %v542_v6 = vadd.f32 %v541_v40, %v540_v5  ;;  %v597_v0 = vadd.f32 %v596_v27, %v590_v17 }
  0xbc   : > { %v565_v38 = vadd.f32 %v564_v42, %v549_v39  ;;  %v592_v8 = vmul.f32 %v549_v39, %v549_v39 }
  0xbd   : > { %v550_v1 = vmul.f32 %v542_v6, %v472_v36  ;;  %v598_v9 = vadd.f32 %v597_v0, %v591_v7 }
  0xbf   : > { %v566_v18 = vadd.f32 %v565_v38, %v550_v1  ;;  %v593_v11 = vmul.f32 %v550_v1, %v550_v1  ;;  %v599_v12 = vadd.f32 %v598_v9, %v592_v8 }
  0xc1   : > { %567 = vadd.xlane.f32.xlu1 %v566_v18  ;;  %v600_v13 = vadd.f32 %v599_v12, %v593_v11 }
  0xc3   : > { %601 = vadd.xlane.f32.xlu2 %v600_v13 }
 0x11f   : > { %v559_v46 = vpop.xlane.xlu1 %558 }
 0x122   : > { %v585_v14 = vpop.xlane.xlu2 %584 }
 0x134   : > { %v568_v15 = vpop.xlane.xlu1 %567 }
 0x135   : > { %v604_v16 = vsel %vm603_vm0, %v559_v46, %v568_v15 }
 0x136   : > { %v602_v19 = vpop.xlane.xlu2 %601  ;;  %v606_v20 = vsel %vm605_vm7, %v604_v16, %v585_v14 }
 0x137   : > { %v608_v22 = vsel %vm607_vm10, %v606_v20, %v602_v19 }
 0x138   : > { %612 = vperm.xlu0 %741, %v608_v22  }
 0x1aa   : > { %v613_v26 = vpop.permute.xlu0 %612 }
 0x1ab   : > { %v615_v45 = vadd.f32 %v613_v26, %v609_v23 }
 0x1ad   : > { %616 = vst [vmem:[%s853_s25] sm:$0xf] %v615_v45 }
 0x1ae PF: > { %s13_s16 = sadd.s32 1, %s796_s16   ;;  %s1159_s12 = smov %s788_s14 }
 0x1af   : > { %p10_p8 = scmp.ge.s32.totalorder %s13_s16, 10   ;;  %s1160_s13 = smov %s792_s15 }
 0x1b0   : > { %s1161_s14 = smov %s1164_s17  ;;  %s1162_s15 = smov %s1168_s18 }
 0x1b1   :  { %12 = sbr.rel (!%p10_p8) target bundleno = 3 (0x3), region = 66 }

// kernel: mfmc_forward.4
= control target key start
LH: loop header
LB: loop body
LE: loop exit
PB: predicated region body
PF: predicated region fallthrough
CT: control target
= control target key end

     0   :  { %10 = vsyncpa [#allocation3], 0  ;;  %s7229_s0 = inlined_call_operand.vmem [shape: f32[2,8,4096], index: 0, kind: input, shape index: {}]   ;;  %s7230_s1 = inlined_call_operand.vmem [shape: f32[4,1], index: 1, kind: input, shape index: {}]   ;;  %s7231_s2 = inlined_call_operand.vmem [shape: f32[4,1], index: 2, kind: input, shape index: {}]   ;;  %s7232_s3 = inlined_call_operand.vmem [shape: f32[2,8], index: 3, kind: input, shape index: {}]   ;;  %s7233_s4 = inlined_call_operand.vmem [shape: f32[32,5], index: 4, kind: input, shape index: {}]   ;;  %s7234_s5 = inlined_call_operand.vmem [shape: f32[2,8,4096], index: 5, kind: output, shape index: {}]  }
   0x1   :  { %11 = vsyncpa [#allocation5], 0  ;;  %s4057_s18 = smov 0   ;;  %s4059_s19 = smov 0  }
   0x2   :  { %s4061_s20 = smov 0   ;;  %s4063_s21 = smov 0  }
   0x3   :  { %s4065_s22 = smov 0  }
   0x4 LB: > { %s3686_s23 = sadd.s32 4294967295, %s4020_s22   ;;  %s26_s24 = sadd.s32 1, %s4012_s20  ;;  %s4020_s22 = sphi %s4065_s22, %s17_s22   ;;  %s4016_s21 = sphi %s4063_s21, %s7466_s21   ;;  %s4012_s20 = sphi %s4061_s20, %s7465_s20   ;;  %s4008_s19 = sphi %s4059_s19, %s7464_s19   ;;  %s4004_s18 = sphi %s4057_s18, %s7463_s18  }
   0x5   : > { %p27_p0 = scmp.ge.s32.totalorder %s26_s24, 4  ;;  %s29_s25 = sadd.s32 1, %s4016_s21 }
   0x6   : > { %p3688_p1 = scmp.ge.s32.totalorder %s4020_s22, 1  ;;  %p174_p2 = scmp.lt.s32.totalorder %s4020_s22, 9 }
   0x7   : > { %s7468_s24 = smov (%p27_p0, %s26_s24), 0  ;;  %s7470_s25 = smov (!%p27_p0, %s29_s25), %s4016_s21 }
   0x8   : > { %p4090_p3 = pnand %p3688_p1, %p174_p2  ;;  %p31_p4 = scmp.ge.s32.totalorder %s7470_s25, 2 }
   0x9   : > { %p4094_p5 = scmp.eq.s32.totalorder %s3686_s23, 0  ;;  %s192_s30 = sshll.u32 %s7232_s3, 4  ;;  %s193_s30 = int_to_ptr.vmem [resolvable:$true] %s192_s30 }
   0xa   : > { %p3871_p6 = pneg %p4090_p3  ;;  %s7472_s25 = smov (%p31_p4, %s7470_s25), 0 }
   0xb   : > { %s201_s8 = sshll.u32 %s7233_s4, 4  ;;  %s4022_s9 = smov [#allocation2]   ;;  %s202_s8 = int_to_ptr.vmem [resolvable:$true] %s201_s8 }
   0xc   : > { %p3872_p7 = pnand %p4094_p5, %p3871_p6  ;;  %s4023_s10 = smov [#allocation4]  }
   0xd   : > { %s4024_s11 = smov 128   ;;  %s4025_s12 = smov 8  }
   0xe   : > { %3874 = dma.vmem_to_smem (!%p3872_p7), %s193_s30, 32, %s4022_s9, [#allocation3]  }
   0xf   : > { %3877 = dma.vmem_to_smem (!%p3872_p7), %s202_s8, 512, %s4023_s10, [#allocation5], %s4024_s11, %s4024_s11, %s4025_s12  }
  0x10   : > { %230 = sbr.rel (%p4090_p3) target bundleno = 858 (0x35a), region = 40 }
  0x15   : > { %3995 = dma.done.wait (%p4094_p5), [#allocation3], 32  }
  0x16   : > { %3997 = vsyncadd (%p4094_p5), [#allocation3], 4294967264 }
  0x17   : > { %3999 = dma.done.wait (%p4094_p5), [#allocation5], 512  }
  0x18   : > { %4001 = vsyncadd (%p4094_p5), [#allocation5], 4294966784 }
  0x19   : > { %242 = sfence }
  0x1a   : > { %v301_v0 = vld [vmem:[%s7230_s1] sm:$0xf]  ;;  %v4026_v1 = vmov 0   ;;  %s3695_s17 = sshll.u32 %s4004_s18, 3  ;;  %p274_p8 = scmp.lt.s32.totalorder %s4008_s19, 1  ;;  %vm343_vm0 = vcmask 1043456  }
  0x1b   : > { %3927 = vset.pattern.permute.xlu0 %v4026_v1  ;;  %v302_v2 = vld [vmem:[%s7231_s2] sm:$0xf]  ;;  %p276_p9 = scmp.lt.s32.totalorder %s3695_s17, 31  ;;  %s4553_s18 = sshll.u32 %s4008_s19, 7 }
  0x1c   : > { %482 = vperm.xlu0 %3927, %v301_v0   ;;  %s275_s23 = scalar_select %p274_p8, %s4008_s19, 1 }
  0x1d   : > { %s7474_s17 = smov (!%p276_p9, %s3695_s17), 31  ;;  %s766_s19 = sadd.s32 4, %s4553_s18 }
  0x1e   : > { %s3696_s26 = sshll.u32 %s275_s23, 5  ;;  %s4561_s7 = sld [smem:[#allocation2 + %s4553_s18]] }
  0x1f   : > { %s4129_s27 = sadd.s32 %s3696_s26, %s7474_s17  ;;  %s760_s8 = sadd.s32 1, %s4553_s18 }
  0x20   : > { %s3697_s28 = sshll.u32 %s4129_s27, 3  ;;  %s4564_s9 = sld [smem:[#allocation2 + %s766_s19]] }
  0x21   : > { %s281_s6 = scalar_lea.vmem %s7229_s0, %s3697_s28  ;;  %s768_s10 = sadd.s32 5, %s4553_s18 }
  0x22   : > { %v4137_v3 = vld [vmem:[%s281_s6] sm:$0xff]  ;;  %v4139_v4 = vld [vmem:[%s281_s6 + $0x8] sm:$0xff]  ;;  %v4141_v5 = vld [vmem:[%s281_s6 + $0x10] sm:$0xff]  ;;  %s4567_s11 = sld [smem:[#allocation2 + %s760_s8]] }
  0x23   : > { %v4143_v6 = vld [vmem:[%s281_s6 + $0x18] sm:$0xff]  ;;  %v4145_v7 = vld [vmem:[%s281_s6 + $0x20] sm:$0xff]  ;;  %v4147_v8 = vld [vmem:[%s281_s6 + $0x28] sm:$0xff]  ;;  %v303_v9 = vmul.f32 %v4137_v3, %v4137_v3  ;;  %v304_v10 = vmul.f32 %v4139_v4, %v4139_v4  ;;  %v305_v11 = vmul.f32 %v4141_v5, %v4141_v5  ;;  %s4569_s12 = sld [smem:[#allocation2 + %s768_s10]] }
  0x24   : > { %495 = vperm.xlu0 %3927, %v302_v2   ;;  %v4155_v12 = vld [vmem:[%s281_s6 + $0x30] sm:$0xff]  ;;  %v4157_v13 = vld [vmem:[%s281_s6 + $0x38] sm:$0xff]  ;;  %v306_v14 = vmul.f32 %v4143_v6, %v4143_v6  ;;  %v307_v15 = vmul.f32 %v4145_v7, %v4145_v7  ;;  %v308_v16 = vmul.f32 %v4147_v8, %v4147_v8  ;;  %s4571_s13 = sld [smem:[#allocation4]] }
  0x25   : > { %v309_v17 = vmul.f32 %v4155_v12, %v4155_v12  ;;  %v310_v18 = vmul.f32 %v4157_v13, %v4157_v13  ;;  %v319_v19 = vrot.slane %v303_v9, 4  ;;  %v320_v20 = vrot.slane %v304_v10, 4  ;;  %s4577_s14 = sld [smem:[#allocation4 + $0x1]] }
  0x26   : > { %v321_v21 = vrot.slane %v305_v11, 4  ;;  %v322_v22 = vrot.slane %v306_v14, 4  ;;  %v323_v23 = vrot.slane %v307_v15, 4  ;;  %v324_v24 = vrot.slane %v308_v16, 4  ;;  %s4633_s15 = sld [smem:[#allocation4 + $0x80]] }
  0x27   : > { %v325_v25 = vrot.slane %v309_v17, 4  ;;  %v326_v26 = vrot.slane %v310_v18, 4  ;;  %v4169_v27 = vadd.f32 %v319_v19, %v303_v9  ;;  %v4171_v28 = vadd.f32 %v320_v20, %v304_v10  ;;  %s4639_s16 = sld [smem:[#allocation4 + $0x2]] }
  0x28   : > { %v4173_v29 = vadd.f32 %v321_v21, %v305_v11  ;;  %v4175_v30 = vadd.f32 %v322_v22, %v306_v14  ;;  %v4177_v31 = vadd.f32 %v323_v23, %v307_v15  ;;  %v4179_v32 = vadd.f32 %v324_v24, %v308_v16  ;;  %s4645_s17 = sld [smem:[#allocation4 + $0x3]] }
  0x29   : > { %7309 = vst [vmem:[#allocation8_spill] sm:$0xff] %v4169_v27  ;;  %v4181_v33 = vadd.f32 %v325_v25, %v309_v17  ;;  %v4183_v34 = vadd.f32 %v326_v26, %v310_v18  ;;  %v344_v35 = vsel %vm343_vm0, %v4169_v27, 0.0  ;;  %v351_v36 = vsel %vm343_vm0, %v4171_v28, 0.0  ;;  %s4655_s23 = sld [smem:[#allocation4 + $0x4]] }
  0x2a   : > { %7310 = vst [vmem:[#allocation9_spill] sm:$0xff] %v4171_v28  ;;  %v358_v37 = vsel %vm343_vm0, %v4173_v29, 0.0  ;;  %v365_v38 = vsel %vm343_vm0, %v4175_v30, 0.0  ;;  %v345_v39 = vrot.slane %v344_v35, 4  ;;  %v352_v40 = vrot.slane %v351_v36, 4  ;;  %s4685_s26 = sld [smem:[#allocation4 + $0x81]] }
  0x2b   : > { %7311 = vst [vmem:[#allocation10_spill] sm:$0xff] %v4173_v29  ;;  %v359_v41 = vrot.slane %v358_v37, 4  ;;  %v366_v42 = vrot.slane %v365_v38, 4  ;;  %v372_v43 = vsel %vm343_vm0, %v4177_v31, 0.0  ;;  %v379_v44 = vsel %vm343_vm0, %v4179_v32, 0.0  ;;  %s4687_s29 = sld [smem:[#allocation4 + $0x82]] }
  0x2c   : > { %7312 = vst [vmem:[#allocation11_spill] sm:$0xff] %v4175_v30  ;;  %v386_v45 = vsel %vm343_vm0, %v4181_v33, 0.0  ;;  %v393_v46 = vsel %vm343_vm0, %v4183_v34, 0.0  ;;  %v346_v47 = vadd.f32 %v345_v39, %v344_v35  ;;  %v353_v48 = vadd.f32 %v352_v40, %v351_v36  ;;  %s4689_s30 = sld [smem:[#allocation4 + $0x83]] }
  0x2d   : > { %7313 = vst [vmem:[#allocation12_spill] sm:$0xff] %v4177_v31  ;;  %v360_v49 = vadd.f32 %v359_v41, %v358_v37  ;;  %v367_v50 = vadd.f32 %v366_v42, %v365_v38  ;;  %v373_v51 = vrot.slane %v372_v43, 4  ;;  %v380_v52 = vrot.slane %v379_v44, 4  ;;  %s4691_s6 = sld [smem:[#allocation4 + $0x84]] }
  0x2e   : > { %7314 = vst [vmem:[#allocation13_spill] sm:$0xff] %v4179_v32  ;;  %v387_v53 = vrot.slane %v386_v45, 4  ;;  %v394_v54 = vrot.slane %v393_v46, 4  ;;  %v347_v55 = vrot.slane %v346_v47, 2  ;;  %v354_v56 = vrot.slane %v353_v48, 2  ;;  %s4745_s19 = sld [smem:[#allocation4 + $0x100]] }
  0x2f   : > { %7315 = vst [vmem:[#allocation14_spill] sm:$0xff] %v4181_v33  ;;  %v361_v57 = vrot.slane %v360_v49, 2  ;;  %v368_v58 = vrot.slane %v367_v50, 2  ;;  %v374_v59 = vadd.f32 %v373_v51, %v372_v43  ;;  %v381_v60 = vadd.f32 %v380_v52, %v379_v44  ;;  %s4749_s8 = sld [smem:[#allocation4 + $0x102]] }
  0x30   : > { %v388_v61 = vadd.f32 %v387_v53, %v386_v45  ;;  %v395_v62 = vadd.f32 %v394_v54, %v393_v46  ;;  %v348_v63 = vadd.f32 %v347_v55, %v346_v47  ;;  %v355_v0 = vadd.f32 %v354_v56, %v353_v48  ;;  %s4821_s10 = sld [smem:[#allocation4 + $0x180]] }
  0x31   : > { %v362_v1 = vadd.f32 %v361_v57, %v360_v49  ;;  %v369_v2 = vadd.f32 %v368_v58, %v367_v50  ;;  %v375_v9 = vrot.slane %v374_v59, 2  ;;  %v382_v10 = vrot.slane %v381_v60, 2 }
  0x32   : > { %v389_v11 = vrot.slane %v388_v61, 2  ;;  %v349_v14 = vrot.slane %v348_v63, 1  ;;  %v356_v15 = vrot.slane %v355_v0, 1  ;;  %v396_v17 = vrot.slane %v395_v62, 2 }
  0x33   : > { %v363_v16 = vrot.slane %v362_v1, 1  ;;  %v370_v18 = vrot.slane %v369_v2, 1  ;;  %v376_v19 = vadd.f32 %v375_v9, %v374_v59  ;;  %v383_v20 = vadd.f32 %v382_v10, %v381_v60 }
  0x34   : > { %v350_v21 = vadd.f32 %v349_v14, %v348_v63  ;;  %v390_v22 = vadd.f32 %v389_v11, %v388_v61  ;;  %v4201_v23 = vadd.f32 %v356_v15, %v355_v0  ;;  %v397_v35 = vadd.f32 %v396_v17, %v395_v62 }
  0x35   : > { %v377_v24 = vrot.slane %v376_v19, 1  ;;  %v384_v25 = vrot.slane %v383_v20, 1  ;;  %v4203_v26 = vadd.f32 %v363_v16, %v362_v1  ;;  %v4205_v36 = vadd.f32 %v370_v18, %v369_v2 }
  0x36   : > { %v391_v38 = vrot.slane %v390_v22, 1  ;;  %3928 = vrsqrt.f32 %v350_v21  ;;  %v398_v40 = vrot.slane %v397_v35, 1  ;;  %vm406_vm1 = vweird.f32 %v350_v21 }
  0x37   : > { %v4207_v37 = vadd.f32 %v377_v24, %v376_v19  ;;  %v4209_v39 = vadd.f32 %v384_v25, %v383_v20  ;;  %3930 = vrsqrt.f32 %v4201_v23  ;;  %vm416_vm3 = vweird.f32 %v4201_v23 }
  0x38   : > { %3932 = vrsqrt.f32 %v4203_v26  ;;  %v4214_v41 = vadd.f32 %v391_v38, %v390_v22  ;;  %v4220_v43 = vadd.f32 %v398_v40, %v397_v35  ;;  %vm426_vm5 = vweird.f32 %v4203_v26 }
  0x39   : > { %3934 = vrsqrt.f32 %v4205_v36  ;;  %vm436_vm7 = vweird.f32 %v4205_v36  ;;  %vm446_vm10 = vweird.f32 %v4207_v37  ;;  %vm456_vm13 = vweird.f32 %v4209_v39 }
  0x3a   : > { %3936 = vrsqrt.f32 %v4207_v37 }
  0x3b   : > { %3938 = vrsqrt.f32 %v4209_v39 }
  0x3c   : > { %v4218_v42 = vpop.eup %3928  ;;  %3940 = vrsqrt.f32 %v4214_v41 }
  0x3d   : > { %v4222_v44 = vpop.eup %3930  ;;  %v401_v48 = vmul.f32 %v4218_v42, %v350_v21  ;;  %3942 = vrsqrt.f32 %v4220_v43  ;;  %vm407_vm2 = vweird.f32 %v4218_v42 }
  0x3e   : > { %v4224_v45 = vpop.eup %3932  ;;  %v411_v50 = vmul.f32 %v4222_v44, %v4201_v23  ;;  %vm417_vm4 = vweird.f32 %v4222_v44  ;;  %vm4270_vm8 = vmor %vm406_vm1, %vm407_vm2  ;;  %vm466_vm2 = vweird.f32 %v4214_v41 }
  0x3f   : > { %v4227_v46 = vpop.eup %3934  ;;  %v421_v51 = vmul.f32 %v4224_v45, %v4203_v26  ;;  %v402_v54 = vmul.f32 %v4218_v42, %v401_v48  ;;  %vm427_vm6 = vweird.f32 %v4224_v45  ;;  %vm4281_vm12 = vmor %vm416_vm3, %vm417_vm4 }
  0x40   : > { %v4229_v47 = vpop.eup %3936  ;;  %v431_v52 = vmul.f32 %v4227_v46, %v4205_v36  ;;  %v412_v58 = vmul.f32 %v4222_v44, %v411_v50  ;;  %vm437_vm9 = vweird.f32 %v4227_v46  ;;  %vm4287_vm15 = vmor %vm426_vm5, %vm427_vm6  ;;  %vm476_vm5 = vweird.f32 %v4220_v43 }
  0x41   : > { %v4233_v49 = vpop.eup %3938  ;;  %v441_v55 = vmul.f32 %v4229_v47, %v4207_v37  ;;  %v422_v59 = vmul.f32 %v4224_v45, %v421_v51  ;;  %v403_v62 = vmul.f32 0.5, %v402_v54  ;;  %vm447_vm11 = vweird.f32 %v4229_v47  ;;  %vm4293_vm1 = vmor %vm436_vm7, %vm437_vm9 }
  0x42   : > { %v4241_v53 = vpop.eup %3940  ;;  %v451_v56 = vmul.f32 %v4233_v49, %v4209_v39  ;;  %v432_v60 = vmul.f32 %v4227_v46, %v431_v52  ;;  %v413_v9 = vmul.f32 0.5, %v412_v58  ;;  %vm457_vm14 = vweird.f32 %v4233_v49  ;;  %vm4301_vm4 = vmor %vm446_vm10, %vm447_vm11 }
  0x43   : > { %v4248_v57 = vpop.eup %3942  ;;  %v461_v61 = vmul.f32 %v4241_v53, %v4214_v41  ;;  %v442_v63 = vmul.f32 %v4229_v47, %v441_v55  ;;  %v423_v10 = vmul.f32 0.5, %v422_v59  ;;  %v404_v15 = vsub.f32 1.5, %v403_v62  ;;  %vm458_vm7 = vmor %vm456_vm13, %vm457_vm14 }
  0x44   : > { %v452_v0 = vmul.f32 %v4233_v49, %v451_v56  ;;  %v471_v2 = vmul.f32 %v4248_v57, %v4220_v43  ;;  %v433_v11 = vmul.f32 0.5, %v432_v60  ;;  %v414_v22 = vsub.f32 1.5, %v413_v9 }
  0x45   : > { %v462_v1 = vmul.f32 %v4241_v53, %v461_v61  ;;  %v443_v16 = vmul.f32 0.5, %v442_v63  ;;  %v424_v21 = vsub.f32 1.5, %v423_v10  ;;  %vm467_vm3 = vweird.f32 %v4241_v53 }
  0x46   : > { %v472_v14 = vmul.f32 %v4248_v57, %v471_v2  ;;  %v453_v17 = vmul.f32 0.5, %v452_v0  ;;  %v434_v25 = vsub.f32 1.5, %v433_v11  ;;  %vm477_vm6 = vweird.f32 %v4248_v57  ;;  %vm468_vm9 = vmor %vm466_vm2, %vm467_vm3 }
  0x47   : > { %v463_v18 = vmul.f32 0.5, %v462_v1  ;;  %v444_v35 = vsub.f32 1.5, %v443_v16  ;;  %v405_v36 = vmul.f32 %v4218_v42, %v404_v15  ;;  %v415_v51 = vmul.f32 %v4222_v44, %v414_v22  ;;  %vm478_vm10 = vmor %vm476_vm5, %vm477_vm6 }
  0x48   : > { %v473_v19 = vmul.f32 0.5, %v472_v14  ;;  %v454_v38 = vsub.f32 1.5, %v453_v17  ;;  %v425_v52 = vmul.f32 %v4224_v45, %v424_v21  ;;  %v435_v41 = vmul.f32 %v4227_v46, %v434_v25 }
  0x49   : > { %v464_v40 = vsub.f32 1.5, %v463_v18  ;;  %v445_v37 = vmul.f32 %v4229_v47, %v444_v35  ;;  %v4322_v56 = vsel %vm4270_vm8, %v4218_v42, %v405_v36  ;;  %v4327_v39 = vsel %vm4281_vm12, %v4222_v44, %v415_v51 }
  0x4a   : > { %v474_v48 = vsub.f32 1.5, %v473_v19  ;;  %v455_v54 = vmul.f32 %v4233_v49, %v454_v38  ;;  %v4332_v58 = vsel %vm4287_vm15, %v4224_v45, %v425_v52  ;;  %v4337_v59 = vsel %vm4293_vm1, %v4227_v46, %v435_v41 }
  0x4b   : > { %v465_v43 = vmul.f32 %v4241_v53, %v464_v40  ;;  %v4344_v42 = vsel %vm4301_vm4, %v4229_v47, %v445_v37 }
  0x4c   : > { %v475_v55 = vmul.f32 %v4248_v57, %v474_v48  ;;  %v4347_v44 = vsel %vm458_vm7, %v4233_v49, %v455_v54 }
  0x4d   : > { %v4350_v61 = vsel %vm468_vm9, %v4241_v53, %v465_v43 }
  0x4e   : > { %v4353_v45 = vsel %vm478_vm10, %v4248_v57, %v475_v55 }
  0x8e   : > { %v4339_v60 = vpop.permute.xlu0 %482 }
  0x8f   : > { %v485_v46 = vmul.f32 %v4339_v60, %v4137_v3  ;;  %v486_v62 = vmul.f32 %v4339_v60, %v4139_v4  ;;  %v487_v63 = vmul.f32 %v4339_v60, %v4141_v5  ;;  %v488_v47 = vmul.f32 %v4339_v60, %v4143_v6 }
  0x90   : > { %v489_v49 = vmul.f32 %v4339_v60, %v4145_v7  ;;  %v490_v53 = vmul.f32 %v4339_v60, %v4147_v8  ;;  %v491_v57 = vmul.f32 %v4339_v60, %v4155_v12  ;;  %v492_v0 = vmul.f32 %v4339_v60, %v4157_v13 }
  0x91   : > { %v556_v1 = vrot.slane %v4339_v60, 4  ;;  %v4374_v2 = vmul.f32 %v4339_v60, %v4169_v27  ;;  %v4378_v9 = vmul.f32 %v4339_v60, %v4171_v28  ;;  %v4382_v10 = vmul.f32 %v4339_v60, %v4173_v29 }
  0x92   : > { %v4386_v11 = vmul.f32 %v4339_v60, %v4175_v30  ;;  %v4390_v14 = vmul.f32 %v4339_v60, %v4177_v31  ;;  %v4394_v15 = vmul.f32 %v4339_v60, %v4179_v32  ;;  %v4398_v16 = vmul.f32 %v4339_v60, %v4181_v33 }
  0x93   : > { %v558_v17 = vmul.f32 %v556_v1, %v4137_v3  ;;  %v559_v18 = vmul.f32 %v556_v1, %v4139_v4  ;;  %v560_v19 = vmul.f32 %v556_v1, %v4141_v5  ;;  %v561_v20 = vmul.f32 %v556_v1, %v4143_v6 }
  0x94   : > { %7326 = vst [vmem:[#allocation15_spill] sm:$0xff] %v4386_v11  ;;  %v562_v22 = vmul.f32 %v556_v1, %v4145_v7  ;;  %v563_v24 = vmul.f32 %v556_v1, %v4147_v8  ;;  %v564_v21 = vmul.f32 %v556_v1, %v4155_v12  ;;  %v565_v25 = vmul.f32 %v556_v1, %v4157_v13 }
  0x95   : > { %7327 = vst [vmem:[#allocation16_spill] sm:$0xff] %v4390_v14  ;;  %v574_v26 = vrot.slane %v558_v17, 4  ;;  %v575_v35 = vrot.slane %v559_v18, 4  ;;  %v576_v38 = vrot.slane %v560_v19, 4  ;;  %v577_v40 = vrot.slane %v561_v20, 4 }
  0x96   : > { %7328 = vst [vmem:[#allocation17_spill] sm:$0xff] %v4394_v15  ;;  %v4408_v48 = vpop.permute.xlu0 %495  ;;  %v578_v23 = vrot.slane %v562_v22, 4  ;;  %v579_v50 = vrot.slane %v563_v24, 4  ;;  %v580_v36 = vrot.slane %v564_v21, 4  ;;  %v581_v51 = vrot.slane %v565_v25, 4 }
  0x97   : > { %7329 = vst [vmem:[#allocation18_spill] sm:$0xff] %v4398_v16  ;;  %v498_v52 = vrot.slane %v4408_v48, 4  ;;  %v548_v41 = vmul.f32 %v4408_v48, %v4137_v3  ;;  %v549_v37 = vmul.f32 %v4408_v48, %v4139_v4  ;;  %v550_v54 = vmul.f32 %v4408_v48, %v4141_v5 }
  0x98   : > { %v551_v43 = vmul.f32 %v4408_v48, %v4143_v6  ;;  %v552_v55 = vmul.f32 %v4408_v48, %v4145_v7  ;;  %v553_v1 = vmul.f32 %v4408_v48, %v4147_v8  ;;  %v554_v17 = vmul.f32 %v4408_v48, %v4155_v12 }
  0x99   : > { %v500_v18 = vmul.f32 %v498_v52, %v4137_v3  ;;  %v501_v19 = vmul.f32 %v498_v52, %v4139_v4  ;;  %v502_v20 = vmul.f32 %v498_v52, %v4141_v5  ;;  %v503_v22 = vmul.f32 %v498_v52, %v4143_v6 }
  0x9a   : > { %v504_v24 = vmul.f32 %v498_v52, %v4145_v7  ;;  %v505_v21 = vmul.f32 %v498_v52, %v4147_v8  ;;  %v506_v25 = vmul.f32 %v498_v52, %v4155_v12  ;;  %v507_v33 = vmul.f32 %v498_v52, %v4157_v13 }
  0x9b   : > { %v516_v32 = vrot.slane %v500_v18, 4  ;;  %v517_v31 = vrot.slane %v501_v19, 4  ;;  %v518_v30 = vrot.slane %v502_v20, 4  ;;  %v519_v29 = vrot.slane %v503_v22, 4 }
  0x9c   : > { %v520_v28 = vrot.slane %v504_v24, 4  ;;  %v521_v3 = vrot.slane %v505_v21, 4  ;;  %v522_v27 = vrot.slane %v506_v25, 4  ;;  %v523_v4 = vrot.slane %v507_v33, 4 }
  0x9d   : > { %v532_v16 = vsub.f32 %v485_v46, %v516_v32  ;;  %v533_v5 = vsub.f32 %v486_v62, %v517_v31  ;;  %v534_v15 = vsub.f32 %v487_v63, %v518_v30  ;;  %v535_v6 = vsub.f32 %v488_v47, %v519_v29 }
  0x9e   : > { %v536_v14 = vsub.f32 %v489_v49, %v520_v28  ;;  %v537_v7 = vsub.f32 %v490_v53, %v521_v3  ;;  %v538_v11 = vsub.f32 %v491_v57, %v522_v27  ;;  %v539_v8 = vsub.f32 %v492_v0, %v523_v4  ;;  %v7349_v21 = vld [vmem:[#allocation18_spill] sm:$0xff] }
  0x9f   : > { %v4434_v12 = vmul.f32 %v532_v16, %v4322_v56  ;;  %v4437_v52 = vmul.f32 %v533_v5, %v4327_v39  ;;  %v4440_v18 = vmul.f32 %v534_v15, %v4332_v58  ;;  %v4443_v19 = vmul.f32 %v535_v6, %v4337_v59 }
  0xa0   : > { %v4446_v31 = vmul.f32 %v536_v14, %v4344_v42  ;;  %v4449_v28 = vmul.f32 %v537_v7, %v4347_v44  ;;  %v4452_v27 = vmul.f32 %v538_v11, %v4350_v61  ;;  %v4455_v29 = vmul.f32 %v539_v8, %v4353_v45 }
  0xa1   : > { %7330 = vst [vmem:[#allocation19_spill] sm:$0xff] %v4434_v12  ;;  %v555_v30 = vmul.f32 %v4408_v48, %v4157_v13  ;;  %v590_v32 = vadd.f32 %v574_v26, %v548_v41  ;;  %v591_v33 = vadd.f32 %v575_v35, %v549_v37  ;;  %v592_v46 = vadd.f32 %v576_v38, %v550_v54 }
  0xa2   : > { %7331 = vst [vmem:[#allocation20_spill] sm:$0xff] %v4437_v52  ;;  %v593_v62 = vadd.f32 %v577_v40, %v551_v43  ;;  %v594_v63 = vadd.f32 %v578_v23, %v552_v55  ;;  %v595_v47 = vadd.f32 %v579_v50, %v553_v1  ;;  %v596_v49 = vadd.f32 %v580_v36, %v554_v17  ;;  %v7347_v43 = vld [vmem:[#allocation16_spill] sm:$0xff] }
  0xa3   : > { %7332 = vst [vmem:[#allocation21_spill] sm:$0xff] %v4440_v18  ;;  %v597_v53 = vadd.f32 %v581_v51, %v555_v30  ;;  %v4460_v57 = vmul.f32 %v590_v32, %v4322_v56  ;;  %v4463_v0 = vmul.f32 %v591_v33, %v4327_v39  ;;  %v4466_v11 = vmul.f32 %v592_v46, %v4332_v58  ;;  %v7346_v51 = vld [vmem:[#allocation15_spill] sm:$0xff] }
  0xa4   : > { %7333 = vst [vmem:[#allocation22_spill] sm:$0xff] %v4443_v19  ;;  %v4469_v14 = vmul.f32 %v593_v62, %v4337_v59  ;;  %v4472_v13 = vmul.f32 %v594_v63, %v4344_v42  ;;  %v4475_v15 = vmul.f32 %v595_v47, %v4347_v44  ;;  %v4478_v16 = vmul.f32 %v596_v49, %v4350_v61 }
  0xa5   : > { %7334 = vst [vmem:[#allocation23_spill] sm:$0xff] %v4446_v31  ;;  %v4481_v26 = vmul.f32 %v597_v53, %v4353_v45  ;;  %v613_v35 = vmul.f32 %v4339_v60, %v4183_v34  ;;  %v614_v38 = vsel %vm343_vm0, %v4374_v2, 0.0  ;;  %v621_v40 = vsel %vm343_vm0, %v4378_v9, 0.0  ;;  %v7348_v60 = vld [vmem:[#allocation17_spill] sm:$0xff] }
  0xa6   : > { %7335 = vst [vmem:[#allocation24_spill] sm:$0xff] %v4449_v28  ;;  %v615_v23 = vrot.slane %v614_v38, 4  ;;  %v622_v50 = vrot.slane %v621_v40, 4  ;;  %v628_v36 = vsel %vm343_vm0, %v4382_v10, 0.0  ;;  %v635_v41 = vsel %vm343_vm0, %v7346_v51, 0.0 }
  0xa7   : > { %7336 = vst [vmem:[#allocation25_spill] sm:$0xff] %v4452_v27  ;;  %v629_v37 = vrot.slane %v628_v36, 4  ;;  %v636_v54 = vrot.slane %v635_v41, 4  ;;  %v642_v55 = vsel %vm343_vm0, %v7347_v43, 0.0  ;;  %v649_v1 = vsel %vm343_vm0, %v7348_v60, 0.0 }
  0xa8   : > { %7337 = vst [vmem:[#allocation26_spill] sm:$0xff] %v4455_v29  ;;  %v616_v2 = vadd.f32 %v615_v23, %v614_v38  ;;  %v623_v17 = vadd.f32 %v622_v50, %v621_v40  ;;  %v643_v20 = vrot.slane %v642_v55, 4  ;;  %v650_v9 = vrot.slane %v649_v1, 4 }
  0xa9   : > { %7338 = vst [vmem:[#allocation27_spill] sm:$0xff] %v4460_v57  ;;  %v630_v22 = vadd.f32 %v629_v37, %v628_v36  ;;  %v637_v24 = vadd.f32 %v636_v54, %v635_v41  ;;  %v656_v10 = vsel %vm343_vm0, %v7349_v21, 0.0  ;;  %v663_v25 = vsel %vm343_vm0, %v613_v35, 0.0 }
  0xaa   : > { %7339 = vst [vmem:[#allocation28_spill] sm:$0xff] %v4463_v0  ;;  %v617_v3 = vrot.slane %v616_v2, 2  ;;  %v624_v4 = vrot.slane %v623_v17, 2  ;;  %v644_v5 = vadd.f32 %v643_v20, %v642_v55  ;;  %v651_v6 = vadd.f32 %v650_v9, %v649_v1 }
  0xab   : > { %7340 = vst [vmem:[#allocation29_spill] sm:$0xff] %v4466_v11  ;;  %v631_v7 = vrot.slane %v630_v22, 2  ;;  %v638_v8 = vrot.slane %v637_v24, 2  ;;  %v657_v30 = vrot.slane %v656_v10, 4  ;;  %v664_v32 = vrot.slane %v663_v25, 4 }
  0xac   : > { %7341 = vst [vmem:[#allocation30_spill] sm:$0xff] %v4469_v14  ;;  %v618_v33 = vadd.f32 %v617_v3, %v616_v2  ;;  %v625_v46 = vadd.f32 %v624_v4, %v623_v17  ;;  %v645_v62 = vrot.slane %v644_v5, 2  ;;  %v652_v63 = vrot.slane %v651_v6, 2 }
  0xad   : > { %7342 = vst [vmem:[#allocation31_spill] sm:$0xff] %v4472_v13  ;;  %v632_v47 = vadd.f32 %v631_v7, %v630_v22  ;;  %v639_v49 = vadd.f32 %v638_v8, %v637_v24  ;;  %v658_v53 = vadd.f32 %v657_v30, %v656_v10  ;;  %v665_v38 = vadd.f32 %v664_v32, %v663_v25 }
  0xae   : > { %7343 = vst [vmem:[#allocation32_spill] sm:$0xff] %v4475_v15  ;;  %v619_v40 = vrot.slane %v618_v33, 1  ;;  %v626_v23 = vrot.slane %v625_v46, 1  ;;  %v646_v50 = vadd.f32 %v645_v62, %v644_v5  ;;  %v653_v35 = vadd.f32 %v652_v63, %v651_v6 }
  0xaf   : > { %7344 = vst [vmem:[#allocation33_spill] sm:$0xff] %v4478_v16  ;;  %v633_v36 = vrot.slane %v632_v47, 1  ;;  %v640_v51 = vrot.slane %v639_v49, 1  ;;  %v659_v41 = vrot.slane %v658_v53, 2  ;;  %v666_v37 = vrot.slane %v665_v38, 2 }
  0xb0   : > { %7345 = vst [vmem:[#allocation34_spill] sm:$0xff] %v4481_v26  ;;  %v620_v54 = vadd.f32 %v619_v40, %v618_v33  ;;  %v627_v43 = vadd.f32 %v626_v23, %v625_v46  ;;  %v647_v55 = vrot.slane %v646_v50, 1  ;;  %v654_v60 = vrot.slane %v653_v35, 1  ;;  %v7350_v40 = vld [vmem:[#allocation8_spill] sm:$0xff] }
  0xb1   : > { %v634_v1 = vadd.f32 %v633_v36, %v632_v47  ;;  %v641_v2 = vadd.f32 %v640_v51, %v639_v49  ;;  %v660_v17 = vadd.f32 %v659_v41, %v658_v53  ;;  %v667_v20 = vadd.f32 %v666_v37, %v665_v38  ;;  %v7352_v36 = vld [vmem:[#allocation10_spill] sm:$0xff]  ;;  %v7353_v41 = vld [vmem:[#allocation11_spill] sm:$0xff] }
  0xb2   : > { %v648_v9 = vadd.f32 %v647_v55, %v646_v50  ;;  %v655_v22 = vadd.f32 %v654_v60, %v653_v35  ;;  %v4501_v24 = vmul.f32 %v620_v54, %v4322_v56  ;;  %v4504_v21 = vmul.f32 %v627_v43, %v4327_v39  ;;  %v7351_v50 = vld [vmem:[#allocation9_spill] sm:$0xff]  ;;  %v7354_v54 = vld [vmem:[#allocation12_spill] sm:$0xff] }
  0xb3   : > { %v661_v10 = vrot.slane %v660_v17, 1  ;;  %v668_v25 = vrot.slane %v667_v20, 1  ;;  %v4507_v3 = vmul.f32 %v634_v1, %v4332_v58  ;;  %v4510_v4 = vmul.f32 %v641_v2, %v4337_v59  ;;  %v7355_v55 = vld [vmem:[#allocation13_spill] sm:$0xff]  ;;  %v7356_v1 = vld [vmem:[#allocation14_spill] sm:$0xff] }
  0xb4   : > { %v4513_v5 = vmul.f32 %v648_v9, %v4344_v42  ;;  %v4516_v6 = vmul.f32 %v655_v22, %v4347_v44  ;;  %v678_v7 = vsub.f32 0.0, %v4322_v56  ;;  %v679_v8 = vsub.f32 0.0, %v4327_v39 }
  0xb5   : > { %v662_v30 = vadd.f32 %v661_v10, %v660_v17  ;;  %v669_v32 = vadd.f32 %v668_v25, %v667_v20  ;;  %v686_v23 = vmul.f32 %v4408_v48, %v7350_v40  ;;  %v687_v35 = vmul.f32 %v4408_v48, %v7351_v50 }
  0xb6   : > { %v688_v51 = vmul.f32 %v4408_v48, %v7352_v36  ;;  %v689_v37 = vmul.f32 %v4408_v48, %v7353_v41  ;;  %v690_v43 = vmul.f32 %v4408_v48, %v7354_v54  ;;  %v691_v60 = vmul.f32 %v4408_v48, %v7355_v55 }
  0xb7   : > { %v4527_v53 = vmul.f32 %v662_v30, %v4350_v61  ;;  %v4530_v38 = vmul.f32 %v669_v32, %v4353_v45  ;;  %v692_v2 = vmul.f32 %v4408_v48, %v7356_v1  ;;  %v693_v17 = vmul.f32 %v4408_v48, %v4183_v34 }
  0xb8   : > { %v694_v20 = vsel %vm343_vm0, %v686_v23, 0.0  ;;  %v701_v9 = vsel %vm343_vm0, %v687_v35, 0.0  ;;  %v708_v25 = vsel %vm343_vm0, %v688_v51, 0.0  ;;  %v715_v30 = vsel %vm343_vm0, %v689_v37, 0.0 }
  0xb9   : > { %v695_v22 = vrot.slane %v694_v20, 4  ;;  %v702_v10 = vrot.slane %v701_v9, 4  ;;  %v709_v32 = vrot.slane %v708_v25, 4  ;;  %v716_v40 = vrot.slane %v715_v30, 4 }
  0xba   : > { %v722_v50 = vsel %vm343_vm0, %v690_v43, 0.0  ;;  %v729_v36 = vsel %vm343_vm0, %v691_v60, 0.0  ;;  %v736_v51 = vsel %vm343_vm0, %v692_v2, 0.0  ;;  %v743_v37 = vsel %vm343_vm0, %v693_v17, 0.0 }
  0xbb   : > { %v696_v34 = vadd.f32 %v695_v22, %v694_v20  ;;  %v703_v48 = vadd.f32 %v702_v10, %v701_v9  ;;  %v723_v23 = vrot.slane %v722_v50, 4  ;;  %v730_v35 = vrot.slane %v729_v36, 4 }
  0xbc   : > { %v710_v41 = vadd.f32 %v709_v32, %v708_v25  ;;  %v717_v54 = vadd.f32 %v716_v40, %v715_v30  ;;  %v737_v20 = vrot.slane %v736_v51, 4  ;;  %v744_v9 = vrot.slane %v743_v37, 4 }
  0xbd   : > { %v697_v55 = vrot.slane %v696_v34, 2  ;;  %v704_v1 = vrot.slane %v703_v48, 2  ;;  %v724_v49 = vadd.f32 %v723_v23, %v722_v50  ;;  %v731_v47 = vadd.f32 %v730_v35, %v729_v36 }
  0xbe   : > { %v711_v43 = vrot.slane %v710_v41, 2  ;;  %v718_v60 = vrot.slane %v717_v54, 2  ;;  %v738_v32 = vadd.f32 %v737_v20, %v736_v51  ;;  %v745_v40 = vadd.f32 %v744_v9, %v743_v37 }
  0xbf   : > { %v698_v22 = vadd.f32 %v697_v55, %v696_v34  ;;  %v705_v10 = vadd.f32 %v704_v1, %v703_v48  ;;  %v725_v25 = vrot.slane %v724_v49, 2  ;;  %v732_v30 = vrot.slane %v731_v47, 2 }
  0xc0   : > { %v712_v2 = vadd.f32 %v711_v43, %v710_v41  ;;  %v719_v17 = vadd.f32 %v718_v60, %v717_v54  ;;  %v739_v46 = vrot.slane %v738_v32, 2  ;;  %v746_v33 = vrot.slane %v745_v40, 2 }
  0xc1   : > { %v699_v50 = vrot.slane %v698_v22, 1  ;;  %v706_v36 = vrot.slane %v705_v10, 1  ;;  %v726_v23 = vadd.f32 %v725_v25, %v724_v49  ;;  %v733_v35 = vadd.f32 %v732_v30, %v731_v47 }
  0xc2   : > { %v713_v63 = vrot.slane %v712_v2, 1  ;;  %v720_v62 = vrot.slane %v719_v17, 1  ;;  %v740_v51 = vadd.f32 %v739_v46, %v738_v32  ;;  %v747_v37 = vadd.f32 %v746_v33, %v745_v40 }
  0xc3   : > { %v700_v34 = vadd.f32 %v699_v50, %v698_v22  ;;  %v707_v48 = vadd.f32 %v706_v36, %v705_v10  ;;  %v727_v55 = vrot.slane %v726_v23, 1  ;;  %v734_v1 = vrot.slane %v733_v35, 1 }
  0xc4   : > { %v714_v41 = vadd.f32 %v713_v63, %v712_v2  ;;  %v721_v54 = vadd.f32 %v720_v62, %v719_v17  ;;  %v741_v20 = vrot.slane %v740_v51, 1  ;;  %v748_v9 = vrot.slane %v747_v37, 1 }
  0xc5   : > { %v728_v47 = vadd.f32 %v727_v55, %v726_v23  ;;  %v735_v49 = vadd.f32 %v734_v1, %v733_v35  ;;  %v750_v43 = vmul.f32 %v700_v34, %v678_v7  ;;  %v751_v60 = vmul.f32 %v707_v48, %v679_v8 }
  0xc6   : > { %v7357_v63 = vsub.f32 0.0, %v4332_v58  ;;  %v7358_v46 = vsub.f32 0.0, %v4337_v59  ;;  %v7359_v22 = vsub.f32 0.0, %v4344_v42  ;;  %v7360_v25 = vsub.f32 0.0, %v4347_v44 }
  0xc7   : > { %v4588_v7 = vstv %s4561_s7  ;;  %v783_v39 = vstv %s4564_s9  ;;  %v742_v8 = vadd.f32 %v741_v20, %v740_v51  ;;  %v749_v30 = vadd.f32 %v748_v9, %v747_v37  ;;  %s4747_s7 = sld [smem:[#allocation4 + $0x101]] }
  0xc8   : > { %v752_v62 = vmul.f32 %v714_v41, %v7357_v63  ;;  %v753_v33 = vmul.f32 %v721_v54, %v7358_v46  ;;  %v754_v10 = vmul.f32 %v728_v47, %v7359_v22  ;;  %v755_v56 = vmul.f32 %v735_v49, %v7360_v25  ;;  %7361 = vst [vmem:[#allocation15_spill] sm:$0xff] %v4588_v7  ;;  %s4751_s9 = sld [smem:[#allocation4 + $0x103]] }
  0xc9   : > { %v775_v2 = vsub.f32 %v4501_v24, %v4588_v7  ;;  %v776_v58 = vsub.f32 %v4504_v21, %v4588_v7  ;;  %v777_v59 = vsub.f32 %v4507_v3, %v4588_v7  ;;  %v778_v42 = vsub.f32 %v4510_v4, %v4588_v7 }
  0xca   : > { %v779_v44 = vsub.f32 %v4513_v5, %v4588_v7  ;;  %v780_v17 = vsub.f32 %v4516_v6, %v4588_v7  ;;  %v7362_v24 = vsub.f32 0.0, %v4350_v61  ;;  %v7363_v21 = vsub.f32 0.0, %v4353_v45 }
  0xcb   : > { %v781_v3 = vsub.f32 %v4527_v53, %v4588_v7  ;;  %v782_v4 = vsub.f32 %v4530_v38, %v4588_v7  ;;  %v4611_v50 = vmul.f32 %v783_v39, %v775_v2  ;;  %v4613_v5 = vmul.f32 %v783_v39, %v776_v58 }
  0xcc   : > { %v756_v32 = vmul.f32 %v742_v8, %v7362_v24  ;;  %v757_v40 = vmul.f32 %v749_v30, %v7363_v21  ;;  %v4615_v36 = vmul.f32 %v783_v39, %v777_v59  ;;  %v4617_v6 = vmul.f32 %v783_v39, %v778_v42 }
  0xcd   : > { %v4619_v61 = vmul.f32 %v783_v39, %v779_v44  ;;  %v4621_v23 = vmul.f32 %v783_v39, %v780_v17  ;;  %v4623_v45 = vmul.f32 %v783_v39, %v781_v3  ;;  %v4625_v35 = vmul.f32 %v783_v39, %v782_v4 }
  0xce   : > { %v4628_v53 = vstv %s4567_s11  ;;  %v801_v34 = vstv %s4569_s12  ;;  %v811_v38 = vstv %s4571_s13  ;;  %v821_v48 = vstv %s4577_s14  ;;  %s4823_s11 = sld [smem:[#allocation4 + $0x104]] }
  0xcf   : > { %7364 = vst [vmem:[#allocation16_spill] sm:$0xff] %v4628_v53  ;;  %v793_v55 = vsub.f32 %v750_v43, %v4628_v53  ;;  %v794_v1 = vsub.f32 %v751_v60, %v4628_v53  ;;  %v795_v41 = vsub.f32 %v752_v62, %v4628_v53  ;;  %v796_v54 = vsub.f32 %v753_v33, %v4628_v53  ;;  %s4825_s12 = sld [smem:[#allocation4 + $0x181]] }
  0xd0   : > { %v797_v51 = vsub.f32 %v754_v10, %v4628_v53  ;;  %v798_v37 = vsub.f32 %v755_v56, %v4628_v53  ;;  %v799_v47 = vsub.f32 %v756_v32, %v4628_v53  ;;  %v800_v49 = vsub.f32 %v757_v40, %v4628_v53  ;;  %s4827_s13 = sld [smem:[#allocation4 + $0x182]] }
  0xd1   : > { %v4647_v20 = vmul.f32 %v801_v34, %v793_v55  ;;  %v4649_v43 = vmul.f32 %v801_v34, %v794_v1  ;;  %v4651_v60 = vmul.f32 %v801_v34, %v795_v41  ;;  %v4653_v9 = vmul.f32 %v801_v34, %v796_v54  ;;  %s4881_s14 = sld [smem:[#allocation4 + $0x200]] }
  0xd2   : > { %v4657_v63 = vmul.f32 %v801_v34, %v797_v51  ;;  %v4659_v62 = vmul.f32 %v801_v34, %v798_v37  ;;  %v4661_v46 = vmul.f32 %v801_v34, %v799_v47  ;;  %v4663_v33 = vmul.f32 %v801_v34, %v800_v49 }
  0xd3   : > { %7365 = vst [vmem:[#allocation17_spill] sm:$0xff] %v4651_v60  ;;  %v812_v22 = vmul.f32 %v811_v38, %v4611_v50  ;;  %v813_v10 = vmul.f32 %v811_v38, %v4613_v5  ;;  %v814_v25 = vmul.f32 %v811_v38, %v4615_v36  ;;  %v815_v56 = vmul.f32 %v811_v38, %v4617_v6 }
  0xd4   : > { %7366 = vst [vmem:[#allocation18_spill] sm:$0xff] %v4653_v9  ;;  %v816_v39 = vmul.f32 %v811_v38, %v4619_v61  ;;  %v817_v8 = vmul.f32 %v811_v38, %v4621_v23  ;;  %v818_v30 = vmul.f32 %v811_v38, %v4623_v45  ;;  %v819_v2 = vmul.f32 %v811_v38, %v4625_v35 }
  0xd5   : > { %7367 = vst [vmem:[#allocation8_spill] sm:$0xff] %v4657_v63  ;;  %v822_v58 = vmul.f32 %v821_v48, %v4647_v20  ;;  %v823_v59 = vmul.f32 %v821_v48, %v4649_v43  ;;  %v824_v42 = vmul.f32 %v821_v48, %v4651_v60  ;;  %v825_v44 = vmul.f32 %v821_v48, %v4653_v9 }
  0xd6   : > { %7368 = vst [vmem:[#allocation9_spill] sm:$0xff] %v4659_v62  ;;  %v826_v17 = vmul.f32 %v821_v48, %v4657_v63  ;;  %v827_v24 = vmul.f32 %v821_v48, %v4659_v62  ;;  %v828_v32 = vmul.f32 %v821_v48, %v4661_v46  ;;  %v829_v21 = vmul.f32 %v821_v48, %v4663_v33 }
  0xd7   : > { %7369 = vst [vmem:[#allocation10_spill] sm:$0xff] %v4661_v46  ;;  %v830_v40 = vadd.f32 %v822_v58, %v812_v22  ;;  %v831_v3 = vadd.f32 %v823_v59, %v813_v10  ;;  %v832_v4 = vadd.f32 %v824_v42, %v814_v25  ;;  %v833_v34 = vadd.f32 %v825_v44, %v815_v56 }
  0xd8   : > { %v834_v38 = vadd.f32 %v826_v17, %v816_v39  ;;  %v835_v55 = vadd.f32 %v827_v24, %v817_v8  ;;  %v836_v1 = vadd.f32 %v828_v32, %v818_v30  ;;  %v837_v41 = vadd.f32 %v829_v21, %v819_v2 }
  0xd9   : > { %v839_v54 = vstv %s4639_s16  ;;  %v857_v51 = vstv %s4645_s17  ;;  %v875_v37 = vstv %s4655_s23  ;;  %v893_v47 = vstv %s4633_s15  ;;  %s4887_s15 = sld [smem:[#allocation4 + $0x183]] }
  0xda   : > { %v840_v49 = vadd.f32 %v839_v54, %v830_v40  ;;  %v841_v26 = vadd.f32 %v839_v54, %v831_v3  ;;  %v842_v16 = vadd.f32 %v839_v54, %v832_v4  ;;  %v843_v15 = vadd.f32 %v839_v54, %v833_v34  ;;  %s4893_s16 = sld [smem:[#allocation4 + $0x184]] }
  0xdb   : > { %v844_v48 = vadd.f32 %v839_v54, %v834_v38  ;;  %v845_v22 = vadd.f32 %v839_v54, %v835_v55  ;;  %v846_v10 = vadd.f32 %v839_v54, %v836_v1  ;;  %v847_v25 = vadd.f32 %v839_v54, %v837_v41  ;;  %s4899_s17 = sld [smem:[#allocation4 + $0x201]] }
  0xdc   : > { %v848_v56 = vmax.f32 %v840_v49, 0.0  ;;  %v849_v39 = vmax.f32 %v841_v26, 0.0  ;;  %v850_v8 = vmax.f32 %v842_v16, 0.0  ;;  %v851_v30 = vmax.f32 %v843_v15, 0.0  ;;  %s4933_s23 = sld [smem:[#allocation4 + $0x280]] }
  0xdd   : > { %v852_v2 = vmax.f32 %v844_v48, 0.0  ;;  %v853_v58 = vmax.f32 %v845_v22, 0.0  ;;  %v854_v59 = vmax.f32 %v846_v10, 0.0  ;;  %v855_v42 = vmax.f32 %v847_v25, 0.0 }
  0xde   : > { %v4693_v44 = vmul.f32 %v857_v51, %v848_v56  ;;  %v4695_v17 = vmul.f32 %v857_v51, %v849_v39  ;;  %v4697_v24 = vmul.f32 %v857_v51, %v850_v8  ;;  %v4699_v32 = vmul.f32 %v857_v51, %v851_v30 }
  0xdf   : > { %v4701_v21 = vmul.f32 %v857_v51, %v852_v2  ;;  %v4703_v40 = vmul.f32 %v857_v51, %v853_v58  ;;  %v4705_v16 = vmul.f32 %v857_v51, %v854_v59  ;;  %v4707_v15 = vmul.f32 %v857_v51, %v855_v42 }
  0xe0   : > { %v4709_v26 = vmul.f32 %v875_v37, %v848_v56  ;;  %v4711_v3 = vmul.f32 %v875_v37, %v849_v39  ;;  %v4713_v4 = vmul.f32 %v875_v37, %v850_v8  ;;  %v4715_v34 = vmul.f32 %v875_v37, %v851_v30 }
  0xe1   : > { %v4717_v38 = vmul.f32 %v875_v37, %v852_v2  ;;  %v4719_v55 = vmul.f32 %v875_v37, %v853_v58  ;;  %v4721_v1 = vmul.f32 %v875_v37, %v854_v59  ;;  %v4723_v41 = vmul.f32 %v875_v37, %v855_v42 }
  0xe2   : > { %v894_v54 = vmul.f32 %v893_v47, %v4611_v50  ;;  %v895_v51 = vmul.f32 %v893_v47, %v4613_v5  ;;  %v896_v49 = vmul.f32 %v893_v47, %v4615_v36  ;;  %v897_v48 = vmul.f32 %v893_v47, %v4617_v6 }
  0xe3   : > { %v898_v22 = vmul.f32 %v893_v47, %v4619_v61  ;;  %v899_v10 = vmul.f32 %v893_v47, %v4621_v23  ;;  %v900_v25 = vmul.f32 %v893_v47, %v4623_v45  ;;  %v901_v56 = vmul.f32 %v893_v47, %v4625_v35 }
  0xe4   : > { %v903_v39 = vstv %s4685_s26  ;;  %v921_v8 = vstv %s4687_s29  ;;  %v939_v37 = vstv %s4689_s30  ;;  %v957_v30 = vstv %s4691_s6  ;;  %s4935_s26 = sld [smem:[#allocation4 + $0x202]] }
  0xe5   : > { %v904_v2 = vmul.f32 %v903_v39, %v4647_v20  ;;  %v905_v58 = vmul.f32 %v903_v39, %v4649_v43  ;;  %v906_v59 = vmul.f32 %v903_v39, %v4651_v60  ;;  %v907_v42 = vmul.f32 %v903_v39, %v4653_v9  ;;  %s4937_s29 = sld [smem:[#allocation4 + $0x203]] }
  0xe6   : > { %v908_v13 = vmul.f32 %v903_v39, %v4657_v63  ;;  %v909_v14 = vmul.f32 %v903_v39, %v4659_v62  ;;  %v910_v11 = vmul.f32 %v903_v39, %v4661_v46  ;;  %v911_v47 = vmul.f32 %v903_v39, %v4663_v33  ;;  %s4951_s30 = sld [smem:[#allocation4 + $0x204]] }
  0xe7   : > { %v912_v0 = vadd.f32 %v904_v2, %v894_v54  ;;  %v913_v57 = vadd.f32 %v905_v58, %v895_v51  ;;  %v914_v29 = vadd.f32 %v906_v59, %v896_v49  ;;  %v915_v27 = vadd.f32 %v907_v42, %v897_v48  ;;  %s4985_s6 = sld [smem:[#allocation4 + $0x281]] }
  0xe8   : > { %v916_v28 = vadd.f32 %v908_v13, %v898_v22  ;;  %v917_v31 = vadd.f32 %v909_v14, %v899_v10  ;;  %v918_v19 = vadd.f32 %v910_v11, %v900_v25  ;;  %v919_v18 = vadd.f32 %v911_v47, %v901_v56 }
  0xe9   : > { %v922_v53 = vadd.f32 %v921_v8, %v912_v0  ;;  %v923_v52 = vadd.f32 %v921_v8, %v913_v57  ;;  %v924_v12 = vadd.f32 %v921_v8, %v914_v29  ;;  %v925_v7 = vadd.f32 %v921_v8, %v915_v27 }
  0xea   : > { %v926_v9 = vadd.f32 %v921_v8, %v916_v28  ;;  %v927_v63 = vadd.f32 %v921_v8, %v917_v31  ;;  %v928_v60 = vadd.f32 %v921_v8, %v918_v19  ;;  %v929_v62 = vadd.f32 %v921_v8, %v919_v18 }
  0xeb   : > { %v930_v46 = vmax.f32 %v922_v53, 0.0  ;;  %v931_v39 = vmax.f32 %v923_v52, 0.0  ;;  %v932_v54 = vmax.f32 %v924_v12, 0.0  ;;  %v933_v51 = vmax.f32 %v925_v7, 0.0 }
  0xec   : > { %v934_v13 = vmax.f32 %v926_v9, 0.0  ;;  %v935_v14 = vmax.f32 %v927_v63, 0.0  ;;  %v936_v11 = vmax.f32 %v928_v60, 0.0  ;;  %v937_v49 = vmax.f32 %v929_v62, 0.0 }
  0xed   : > { %v940_v29 = vmul.f32 %v939_v37, %v930_v46  ;;  %v941_v27 = vmul.f32 %v939_v37, %v931_v39  ;;  %v942_v28 = vmul.f32 %v939_v37, %v932_v54  ;;  %v943_v31 = vmul.f32 %v939_v37, %v933_v51 }
  0xee   : > { %v944_v18 = vmul.f32 %v939_v37, %v934_v13  ;;  %v945_v19 = vmul.f32 %v939_v37, %v935_v14  ;;  %v946_v57 = vmul.f32 %v939_v37, %v936_v11  ;;  %v947_v52 = vmul.f32 %v939_v37, %v937_v49 }
  0xef   : > { %v4754_v12 = vadd.f32 %v940_v29, %v4693_v44  ;;  %v4757_v0 = vadd.f32 %v941_v27, %v4695_v17  ;;  %v4760_v7 = vadd.f32 %v942_v28, %v4697_v24  ;;  %v4763_v53 = vadd.f32 %v943_v31, %v4699_v32  ;;  %v7374_v27 = vld [vmem:[#allocation10_spill] sm:$0xff] }
  0xf0   : > { %v4766_v60 = vadd.f32 %v944_v18, %v4701_v21  ;;  %v4769_v9 = vadd.f32 %v945_v19, %v4703_v40  ;;  %v4772_v63 = vadd.f32 %v946_v57, %v4705_v16  ;;  %v4775_v62 = vadd.f32 %v947_v52, %v4707_v15 }
  0xf1   : > { %v958_v44 = vmul.f32 %v957_v30, %v930_v46  ;;  %v959_v17 = vmul.f32 %v957_v30, %v931_v39  ;;  %v960_v24 = vmul.f32 %v957_v30, %v932_v54  ;;  %v961_v32 = vmul.f32 %v957_v30, %v933_v51  ;;  %v7370_v39 = vld [vmem:[#allocation17_spill] sm:$0xff]  ;;  %v7371_v51 = vld [vmem:[#allocation18_spill] sm:$0xff] }
  0xf2   : > { %v962_v48 = vmul.f32 %v957_v30, %v934_v13  ;;  %v963_v21 = vmul.f32 %v957_v30, %v935_v14  ;;  %v964_v22 = vmul.f32 %v957_v30, %v936_v11  ;;  %v965_v10 = vmul.f32 %v957_v30, %v937_v49  ;;  %v7372_v14 = vld [vmem:[#allocation8_spill] sm:$0xff]  ;;  %v7373_v49 = vld [vmem:[#allocation9_spill] sm:$0xff] }
  0xf3   : > { %v4778_v40 = vadd.f32 %v958_v44, %v4709_v26  ;;  %v4781_v16 = vadd.f32 %v959_v17, %v4711_v3  ;;  %v4784_v15 = vadd.f32 %v960_v24, %v4713_v4  ;;  %v4787_v46 = vadd.f32 %v961_v32, %v4715_v34 }
  0xf4   : > { %v4790_v25 = vadd.f32 %v962_v48, %v4717_v38  ;;  %v4793_v56 = vadd.f32 %v963_v21, %v4719_v55  ;;  %v4796_v8 = vadd.f32 %v964_v22, %v4721_v1  ;;  %v4799_v26 = vadd.f32 %v965_v10, %v4723_v41 }
  0xf5   : > { %v975_v3 = vstv %s4745_s19  ;;  %v985_v37 = vstv %s4747_s7  ;;  %v1003_v30 = vstv %s4749_s8  ;;  %v1021_v4 = vstv %s4751_s9  ;;  %s4987_s19 = sld [smem:[#allocation4 + $0x282]] }
  0xf6   : > { %v976_v2 = vmul.f32 %v975_v3, %v4611_v50  ;;  %v977_v34 = vmul.f32 %v975_v3, %v4613_v5  ;;  %v978_v38 = vmul.f32 %v975_v3, %v4615_v36  ;;  %v979_v58 = vmul.f32 %v975_v3, %v4617_v6  ;;  %s4989_s7 = sld [smem:[#allocation4 + $0x283]] }
  0xf7   : > { %v980_v55 = vmul.f32 %v975_v3, %v4619_v61  ;;  %v981_v1 = vmul.f32 %v975_v3, %v4621_v23  ;;  %v982_v59 = vmul.f32 %v975_v3, %v4623_v45  ;;  %v983_v41 = vmul.f32 %v975_v3, %v4625_v35  ;;  %s5003_s8 = sld [smem:[#allocation4 + $0x284]] }
  0xf8   : > { %v986_v42 = vmul.f32 %v985_v37, %v4647_v20  ;;  %v987_v47 = vmul.f32 %v985_v37, %v4649_v43  ;;  %v988_v54 = vmul.f32 %v985_v37, %v7370_v39  ;;  %v989_v13 = vmul.f32 %v985_v37, %v7371_v51  ;;  %s5061_s9 = sld [smem:[#allocation4 + $0x300]] }
  0xf9   : > { %v990_v11 = vmul.f32 %v985_v37, %v7372_v14  ;;  %v991_v29 = vmul.f32 %v985_v37, %v7373_v49  ;;  %v992_v28 = vmul.f32 %v985_v37, %v7374_v27  ;;  %v993_v31 = vmul.f32 %v985_v37, %v4663_v33 }
  0xfa   : > { %v994_v18 = vadd.f32 %v986_v42, %v976_v2  ;;  %v995_v19 = vadd.f32 %v987_v47, %v977_v34  ;;  %v996_v57 = vadd.f32 %v988_v54, %v978_v38  ;;  %v997_v52 = vadd.f32 %v989_v13, %v979_v58 }
  0xfb   : > { %v998_v44 = vadd.f32 %v990_v11, %v980_v55  ;;  %v999_v17 = vadd.f32 %v991_v29, %v981_v1  ;;  %v1000_v24 = vadd.f32 %v992_v28, %v982_v59  ;;  %v1001_v32 = vadd.f32 %v993_v31, %v983_v41 }
  0xfc   : > { %v1004_v48 = vadd.f32 %v1003_v30, %v994_v18  ;;  %v1005_v21 = vadd.f32 %v1003_v30, %v995_v19  ;;  %v1006_v22 = vadd.f32 %v1003_v30, %v996_v57  ;;  %v1007_v10 = vadd.f32 %v1003_v30, %v997_v52 }
  0xfd   : > { %v1008_v3 = vadd.f32 %v1003_v30, %v998_v44  ;;  %v1009_v37 = vadd.f32 %v1003_v30, %v999_v17  ;;  %v1010_v2 = vadd.f32 %v1003_v30, %v1000_v24  ;;  %v1011_v34 = vadd.f32 %v1003_v30, %v1001_v32 }
  0xfe   : > { %v1012_v38 = vmax.f32 %v1004_v48, 0.0  ;;  %v1013_v58 = vmax.f32 %v1005_v21, 0.0  ;;  %v1014_v42 = vmax.f32 %v1006_v22, 0.0  ;;  %v1015_v47 = vmax.f32 %v1007_v10, 0.0 }
  0xff   : > { %v1016_v55 = vmax.f32 %v1008_v3, 0.0  ;;  %v1017_v1 = vmax.f32 %v1009_v37, 0.0  ;;  %v1018_v59 = vmax.f32 %v1010_v2, 0.0  ;;  %v1019_v41 = vmax.f32 %v1011_v34, 0.0 }
 0x100   : > { %v1022_v54 = vmul.f32 %v1021_v4, %v1012_v38  ;;  %v1023_v13 = vmul.f32 %v1021_v4, %v1013_v58  ;;  %v1024_v11 = vmul.f32 %v1021_v4, %v1014_v42  ;;  %v1025_v29 = vmul.f32 %v1021_v4, %v1015_v47 }
 0x101   : > { %v1026_v28 = vmul.f32 %v1021_v4, %v1016_v55  ;;  %v1027_v31 = vmul.f32 %v1021_v4, %v1017_v1  ;;  %v1028_v18 = vmul.f32 %v1021_v4, %v1018_v59  ;;  %v1029_v30 = vmul.f32 %v1021_v4, %v1019_v41 }
 0x102   : > { %v4830_v19 = vadd.f32 %v1022_v54, %v4754_v12  ;;  %v4833_v57 = vadd.f32 %v1023_v13, %v4757_v0  ;;  %v4836_v52 = vadd.f32 %v1024_v11, %v4760_v7  ;;  %v4839_v44 = vadd.f32 %v1025_v29, %v4763_v53 }
 0x103   : > { %v4842_v17 = vadd.f32 %v1026_v28, %v4766_v60  ;;  %v4845_v24 = vadd.f32 %v1027_v31, %v4769_v9  ;;  %v4848_v4 = vadd.f32 %v1028_v18, %v4772_v63  ;;  %v4851_v12 = vadd.f32 %v1029_v30, %v4775_v62 }
 0x104   : > { %v1039_v0 = vstv %s4823_s11  ;;  %v1057_v32 = vstv %s4821_s10  ;;  %v1067_v48 = vstv %s4825_s12  ;;  %v1085_v7 = vstv %s4827_s13  ;;  %s5063_s10 = sld [smem:[#allocation4 + $0x301]] }
 0x105   : > { %v1040_v21 = vmul.f32 %v1039_v0, %v1012_v38  ;;  %v1041_v22 = vmul.f32 %v1039_v0, %v1013_v58  ;;  %v1042_v53 = vmul.f32 %v1039_v0, %v1014_v42  ;;  %v1043_v10 = vmul.f32 %v1039_v0, %v1015_v47  ;;  %s5065_s11 = sld [smem:[#allocation4 + $0x302]] }
 0x106   : > { %v1044_v3 = vmul.f32 %v1039_v0, %v1016_v55  ;;  %v1045_v60 = vmul.f32 %v1039_v0, %v1017_v1  ;;  %v1046_v37 = vmul.f32 %v1039_v0, %v1018_v59  ;;  %v1047_v2 = vmul.f32 %v1039_v0, %v1019_v41  ;;  %s5067_s12 = sld [smem:[#allocation4 + $0x303]] }
 0x107   : > { %v4858_v9 = vadd.f32 %v1040_v21, %v4778_v40  ;;  %v4861_v63 = vadd.f32 %v1041_v22, %v4781_v16  ;;  %v4864_v62 = vadd.f32 %v1042_v53, %v4784_v15  ;;  %v4867_v34 = vadd.f32 %v1043_v10, %v4787_v46  ;;  %s5137_s13 = sld [smem:[#allocation4 + $0x380]] }
 0x108   : > { %v4870_v38 = vadd.f32 %v1044_v3, %v4790_v25  ;;  %v4873_v58 = vadd.f32 %v1045_v60, %v4793_v56  ;;  %v4876_v42 = vadd.f32 %v1046_v37, %v4796_v8  ;;  %v4879_v40 = vadd.f32 %v1047_v2, %v4799_v26 }
 0x109   : > { %v1058_v16 = vmul.f32 %v1057_v32, %v4611_v50  ;;  %v1059_v15 = vmul.f32 %v1057_v32, %v4613_v5  ;;  %v1060_v46 = vmul.f32 %v1057_v32, %v4615_v36  ;;  %v1061_v25 = vmul.f32 %v1057_v32, %v4617_v6 }
 0x10a   : > { %v1062_v56 = vmul.f32 %v1057_v32, %v4619_v61  ;;  %v1063_v8 = vmul.f32 %v1057_v32, %v4621_v23  ;;  %v1064_v47 = vmul.f32 %v1057_v32, %v4623_v45  ;;  %v1065_v26 = vmul.f32 %v1057_v32, %v4625_v35 }
 0x10b   : > { %v1068_v55 = vmul.f32 %v1067_v48, %v4647_v20  ;;  %v1069_v1 = vmul.f32 %v1067_v48, %v4649_v43  ;;  %v1070_v59 = vmul.f32 %v1067_v48, %v7370_v39  ;;  %v1071_v41 = vmul.f32 %v1067_v48, %v7371_v51 }
 0x10c   : > { %v1072_v54 = vmul.f32 %v1067_v48, %v7372_v14  ;;  %v1073_v13 = vmul.f32 %v1067_v48, %v7373_v49  ;;  %v1074_v11 = vmul.f32 %v1067_v48, %v7374_v27  ;;  %v1075_v29 = vmul.f32 %v1067_v48, %v4663_v33 }
 0x10d   : > { %v1076_v28 = vadd.f32 %v1068_v55, %v1058_v16  ;;  %v1077_v31 = vadd.f32 %v1069_v1, %v1059_v15  ;;  %v1078_v18 = vadd.f32 %v1070_v59, %v1060_v46  ;;  %v1079_v30 = vadd.f32 %v1071_v41, %v1061_v25 }
 0x10e   : > { %v1080_v0 = vadd.f32 %v1072_v54, %v1062_v56  ;;  %v1081_v32 = vadd.f32 %v1073_v13, %v1063_v8  ;;  %v1082_v21 = vadd.f32 %v1074_v11, %v1064_v47  ;;  %v1083_v22 = vadd.f32 %v1075_v29, %v1065_v26 }
 0x10f   : > { %v1086_v53 = vadd.f32 %v1085_v7, %v1076_v28  ;;  %v1087_v10 = vadd.f32 %v1085_v7, %v1077_v31  ;;  %v1088_v3 = vadd.f32 %v1085_v7, %v1078_v18  ;;  %v1089_v60 = vadd.f32 %v1085_v7, %v1079_v30 }
 0x110   : > { %v1090_v37 = vadd.f32 %v1085_v7, %v1080_v0  ;;  %v1091_v2 = vadd.f32 %v1085_v7, %v1081_v32  ;;  %v1092_v27 = vadd.f32 %v1085_v7, %v1082_v21  ;;  %v1093_v48 = vadd.f32 %v1085_v7, %v1083_v22 }
 0x111   : > { %v1094_v16 = vmax.f32 %v1086_v53, 0.0  ;;  %v1095_v15 = vmax.f32 %v1087_v10, 0.0  ;;  %v1096_v46 = vmax.f32 %v1088_v3, 0.0  ;;  %v1097_v25 = vmax.f32 %v1089_v60, 0.0 }
 0x112   : > { %v1098_v56 = vmax.f32 %v1090_v37, 0.0  ;;  %v1099_v8 = vmax.f32 %v1091_v2, 0.0  ;;  %v1100_v47 = vmax.f32 %v1092_v27, 0.0  ;;  %v1101_v26 = vmax.f32 %v1093_v48, 0.0 }
 0x113   : > { %v1103_v55 = vstv %s4887_s15  ;;  %v1121_v1 = vstv %s4893_s16  ;;  %v1139_v59 = vstv %s4881_s14  ;;  %v1149_v41 = vstv %s4899_s17  ;;  %s5139_s14 = sld [smem:[#allocation4 + $0x304]] }
 0x114   : > { %v1104_v54 = vmul.f32 %v1103_v55, %v1094_v16  ;;  %v1105_v13 = vmul.f32 %v1103_v55, %v1095_v15  ;;  %v1106_v11 = vmul.f32 %v1103_v55, %v1096_v46  ;;  %v1107_v29 = vmul.f32 %v1103_v55, %v1097_v25  ;;  %s5141_s15 = sld [smem:[#allocation4 + $0x381]] }
 0x115   : > { %v1108_v28 = vmul.f32 %v1103_v55, %v1098_v56  ;;  %v1109_v31 = vmul.f32 %v1103_v55, %v1099_v8  ;;  %v1110_v18 = vmul.f32 %v1103_v55, %v1100_v47  ;;  %v1111_v7 = vmul.f32 %v1103_v55, %v1101_v26  ;;  %s5143_s16 = sld [smem:[#allocation4 + $0x382]] }
 0x116   : > { %v4910_v30 = vadd.f32 %v1104_v54, %v4830_v19  ;;  %v4913_v0 = vadd.f32 %v1105_v13, %v4833_v57  ;;  %v4916_v27 = vadd.f32 %v1106_v11, %v4836_v52  ;;  %v4919_v32 = vadd.f32 %v1107_v29, %v4839_v44  ;;  %s5197_s17 = sld [smem:[#allocation4 + $0x400]] }
 0x117   : > { %v4922_v21 = vadd.f32 %v1108_v28, %v4842_v17  ;;  %v4925_v22 = vadd.f32 %v1109_v31, %v4845_v24  ;;  %v4928_v53 = vadd.f32 %v1110_v18, %v4848_v4  ;;  %v4931_v19 = vadd.f32 %v1111_v7, %v4851_v12 }
 0x118   : > { %v1122_v57 = vmul.f32 %v1121_v1, %v1094_v16  ;;  %v1123_v52 = vmul.f32 %v1121_v1, %v1095_v15  ;;  %v1124_v10 = vmul.f32 %v1121_v1, %v1096_v46  ;;  %v1125_v3 = vmul.f32 %v1121_v1, %v1097_v25 }
 0x119   : > { %v1126_v44 = vmul.f32 %v1121_v1, %v1098_v56  ;;  %v1127_v17 = vmul.f32 %v1121_v1, %v1099_v8  ;;  %v1128_v60 = vmul.f32 %v1121_v1, %v1100_v47  ;;  %v1129_v37 = vmul.f32 %v1121_v1, %v1101_v26  ;;  %v7375_v1 = vld [vmem:[#allocation10_spill] sm:$0xff] }
 0x11a   : > { %v4940_v24 = vadd.f32 %v1122_v57, %v4858_v9  ;;  %v4943_v4 = vadd.f32 %v1123_v52, %v4861_v63  ;;  %v4946_v12 = vadd.f32 %v1124_v10, %v4864_v62  ;;  %v4949_v2 = vadd.f32 %v1125_v3, %v4867_v34 }
 0x11b   : > { %v4954_v48 = vadd.f32 %v1126_v44, %v4870_v38  ;;  %v4957_v16 = vadd.f32 %v1127_v17, %v4873_v58  ;;  %v4960_v9 = vadd.f32 %v1128_v60, %v4876_v42  ;;  %v4963_v63 = vadd.f32 %v1129_v37, %v4879_v40 }
 0x11c   : > { %v1140_v62 = vmul.f32 %v1139_v59, %v4611_v50  ;;  %v1141_v15 = vmul.f32 %v1139_v59, %v4613_v5  ;;  %v1142_v34 = vmul.f32 %v1139_v59, %v4615_v36  ;;  %v1143_v46 = vmul.f32 %v1139_v59, %v4617_v6 }
 0x11d   : > { %v1144_v38 = vmul.f32 %v1139_v59, %v4619_v61  ;;  %v1145_v25 = vmul.f32 %v1139_v59, %v4621_v23  ;;  %v1146_v58 = vmul.f32 %v1139_v59, %v4623_v45  ;;  %v1147_v42 = vmul.f32 %v1139_v59, %v4625_v35 }
 0x11e   : > { %v1150_v56 = vmul.f32 %v1149_v41, %v4647_v20  ;;  %v1151_v40 = vmul.f32 %v1149_v41, %v4649_v43  ;;  %v1152_v8 = vmul.f32 %v1149_v41, %v7370_v39  ;;  %v1153_v47 = vmul.f32 %v1149_v41, %v7371_v51 }
 0x11f   : > { %v1154_v26 = vmul.f32 %v1149_v41, %v7372_v14  ;;  %v1155_v55 = vmul.f32 %v1149_v41, %v7373_v49  ;;  %v1156_v54 = vmul.f32 %v1149_v41, %v7375_v1  ;;  %v1157_v59 = vmul.f32 %v1149_v41, %v4663_v33 }
 0x120   : > { %v1158_v13 = vadd.f32 %v1150_v56, %v1140_v62  ;;  %v1159_v11 = vadd.f32 %v1151_v40, %v1141_v15  ;;  %v1160_v29 = vadd.f32 %v1152_v8, %v1142_v34  ;;  %v1161_v28 = vadd.f32 %v1153_v47, %v1143_v46 }
 0x121   : > { %v1162_v31 = vadd.f32 %v1154_v26, %v1144_v38  ;;  %v1163_v18 = vadd.f32 %v1155_v55, %v1145_v25  ;;  %v1164_v7 = vadd.f32 %v1156_v54, %v1146_v58  ;;  %v1165_v57 = vadd.f32 %v1157_v59, %v1147_v42 }
 0x122   : > { %v1167_v52 = vstv %s4935_s26  ;;  %v1185_v10 = vstv %s4937_s29  ;;  %v1203_v3 = vstv %s4951_s30  ;;  %v1221_v44 = vstv %s4933_s23  ;;  %s5203_s23 = sld [smem:[#allocation4 + $0x383]] }
 0x123   : > { %v1168_v17 = vadd.f32 %v1167_v52, %v1158_v13  ;;  %v1169_v60 = vadd.f32 %v1167_v52, %v1159_v11  ;;  %v1170_v37 = vadd.f32 %v1167_v52, %v1160_v29  ;;  %v1171_v49 = vadd.f32 %v1167_v52, %v1161_v28  ;;  %s5209_s26 = sld [smem:[#allocation4 + $0x384]] }
 0x124   : > { %v1172_v14 = vadd.f32 %v1167_v52, %v1162_v31  ;;  %v1173_v1 = vadd.f32 %v1167_v52, %v1163_v18  ;;  %v1174_v51 = vadd.f32 %v1167_v52, %v1164_v7  ;;  %v1175_v41 = vadd.f32 %v1167_v52, %v1165_v57  ;;  %s5215_s29 = sld [smem:[#allocation4 + $0x401]] }
 0x125   : > { %v1176_v62 = vmax.f32 %v1168_v17, 0.0  ;;  %v1177_v15 = vmax.f32 %v1169_v60, 0.0  ;;  %v1178_v34 = vmax.f32 %v1170_v37, 0.0  ;;  %v1179_v46 = vmax.f32 %v1171_v49, 0.0  ;;  %s5249_s30 = sld [smem:[#allocation4 + $0x480]] }
 0x126   : > { %v1180_v38 = vmax.f32 %v1172_v14, 0.0  ;;  %v1181_v25 = vmax.f32 %v1173_v1, 0.0  ;;  %v1182_v58 = vmax.f32 %v1174_v51, 0.0  ;;  %v1183_v42 = vmax.f32 %v1175_v41, 0.0 }
 0x127   : > { %v1186_v56 = vmul.f32 %v1185_v10, %v1176_v62  ;;  %v1187_v40 = vmul.f32 %v1185_v10, %v1177_v15  ;;  %v1188_v8 = vmul.f32 %v1185_v10, %v1178_v34  ;;  %v1189_v47 = vmul.f32 %v1185_v10, %v1179_v46 }
 0x128   : > { %v1190_v26 = vmul.f32 %v1185_v10, %v1180_v38  ;;  %v1191_v55 = vmul.f32 %v1185_v10, %v1181_v25  ;;  %v1192_v54 = vmul.f32 %v1185_v10, %v1182_v58  ;;  %v1193_v59 = vmul.f32 %v1185_v10, %v1183_v42 }
 0x129   : > { %v4992_v49 = vadd.f32 %v1186_v56, %v4910_v30  ;;  %v4995_v51 = vadd.f32 %v1187_v40, %v4913_v0  ;;  %v4998_v14 = vadd.f32 %v1188_v8, %v4916_v27  ;;  %v5001_v1 = vadd.f32 %v1189_v47, %v4919_v32  ;;  %v7378_v56 = vld [vmem:[#allocation9_spill] sm:$0xff]  ;;  %v7379_v8 = vld [vmem:[#allocation10_spill] sm:$0xff] }
 0x12a   : > { %v5006_v13 = vadd.f32 %v1190_v26, %v4922_v21  ;;  %v5009_v11 = vadd.f32 %v1191_v55, %v4925_v22  ;;  %v5012_v30 = vadd.f32 %v1192_v54, %v4928_v53  ;;  %v5015_v0 = vadd.f32 %v1193_v59, %v4931_v19 }
 0x12b   : > { %v1204_v29 = vmul.f32 %v1203_v3, %v1176_v62  ;;  %v1205_v27 = vmul.f32 %v1203_v3, %v1177_v15  ;;  %v1206_v28 = vmul.f32 %v1203_v3, %v1178_v34  ;;  %v1207_v31 = vmul.f32 %v1203_v3, %v1179_v46 }
 0x12c   : > { %v1208_v32 = vmul.f32 %v1203_v3, %v1180_v38  ;;  %v1209_v18 = vmul.f32 %v1203_v3, %v1181_v25  ;;  %v1210_v7 = vmul.f32 %v1203_v3, %v1182_v58  ;;  %v1211_v57 = vmul.f32 %v1203_v3, %v1183_v42  ;;  %v7376_v38 = vld [vmem:[#allocation18_spill] sm:$0xff]  ;;  %v7377_v58 = vld [vmem:[#allocation8_spill] sm:$0xff] }
 0x12d   : > { %v5018_v21 = vadd.f32 %v1204_v29, %v4940_v24  ;;  %v5021_v22 = vadd.f32 %v1205_v27, %v4943_v4  ;;  %v5024_v53 = vadd.f32 %v1206_v28, %v4946_v12  ;;  %v5027_v19 = vadd.f32 %v1207_v31, %v4949_v2 }
 0x12e   : > { %v5030_v52 = vadd.f32 %v1208_v32, %v4954_v48  ;;  %v5033_v10 = vadd.f32 %v1209_v18, %v4957_v16  ;;  %v5036_v24 = vadd.f32 %v1210_v7, %v4960_v9  ;;  %v5039_v4 = vadd.f32 %v1211_v57, %v4963_v63 }
 0x12f   : > { %v1222_v12 = vmul.f32 %v1221_v44, %v4611_v50  ;;  %v1223_v3 = vmul.f32 %v1221_v44, %v4613_v5  ;;  %v1224_v2 = vmul.f32 %v1221_v44, %v4615_v36  ;;  %v1225_v17 = vmul.f32 %v1221_v44, %v4617_v6 }
 0x130   : > { %v1226_v48 = vmul.f32 %v1221_v44, %v4619_v61  ;;  %v1227_v60 = vmul.f32 %v1221_v44, %v4621_v23  ;;  %v1228_v16 = vmul.f32 %v1221_v44, %v4623_v45  ;;  %v1229_v9 = vmul.f32 %v1221_v44, %v4625_v35 }
 0x131   : > { %v1231_v37 = vstv %s4985_s6  ;;  %v1249_v41 = vstv %s4987_s19  ;;  %v1267_v63 = vstv %s4989_s7  ;;  %v1285_v62 = vstv %s5003_s8  ;;  %s5251_s6 = sld [smem:[#allocation4 + $0x402]] }
 0x132   : > { %v1232_v15 = vmul.f32 %v1231_v37, %v4647_v20  ;;  %v1233_v34 = vmul.f32 %v1231_v37, %v4649_v43  ;;  %v1234_v46 = vmul.f32 %v1231_v37, %v7370_v39  ;;  %v1235_v25 = vmul.f32 %v1231_v37, %v7376_v38  ;;  %s5253_s19 = sld [smem:[#allocation4 + $0x403]] }
 0x133   : > { %v1236_v42 = vmul.f32 %v1231_v37, %v7377_v58  ;;  %v1237_v40 = vmul.f32 %v1231_v37, %v7378_v56  ;;  %v1238_v47 = vmul.f32 %v1231_v37, %v7379_v8  ;;  %v1239_v44 = vmul.f32 %v1231_v37, %v4663_v33  ;;  %s5267_s7 = sld [smem:[#allocation4 + $0x404]] }
 0x134   : > { %v1240_v26 = vadd.f32 %v1232_v15, %v1222_v12  ;;  %v1241_v55 = vadd.f32 %v1233_v34, %v1223_v3  ;;  %v1242_v54 = vadd.f32 %v1234_v46, %v1224_v2  ;;  %v1243_v59 = vadd.f32 %v1235_v25, %v1225_v17  ;;  %s5301_s8 = sld [smem:[#allocation4 + $0x481]] }
 0x135   : > { %v1244_v29 = vadd.f32 %v1236_v42, %v1226_v48  ;;  %v1245_v27 = vadd.f32 %v1237_v40, %v1227_v60  ;;  %v1246_v28 = vadd.f32 %v1238_v47, %v1228_v16  ;;  %v1247_v31 = vadd.f32 %v1239_v44, %v1229_v9 }
 0x136   : > { %v1250_v32 = vadd.f32 %v1249_v41, %v1240_v26  ;;  %v1251_v18 = vadd.f32 %v1249_v41, %v1241_v55  ;;  %v1252_v7 = vadd.f32 %v1249_v41, %v1242_v54  ;;  %v1253_v57 = vadd.f32 %v1249_v41, %v1243_v59 }
 0x137   : > { %v1254_v38 = vadd.f32 %v1249_v41, %v1244_v29  ;;  %v1255_v58 = vadd.f32 %v1249_v41, %v1245_v27  ;;  %v1256_v39 = vadd.f32 %v1249_v41, %v1246_v28  ;;  %v1257_v56 = vadd.f32 %v1249_v41, %v1247_v31 }
 0x138   : > { %v1258_v8 = vmax.f32 %v1250_v32, 0.0  ;;  %v1259_v37 = vmax.f32 %v1251_v18, 0.0  ;;  %v1260_v12 = vmax.f32 %v1252_v7, 0.0  ;;  %v1261_v3 = vmax.f32 %v1253_v57, 0.0 }
 0x139   : > { %v1262_v2 = vmax.f32 %v1254_v38, 0.0  ;;  %v1263_v17 = vmax.f32 %v1255_v58, 0.0  ;;  %v1264_v48 = vmax.f32 %v1256_v39, 0.0  ;;  %v1265_v60 = vmax.f32 %v1257_v56, 0.0 }
 0x13a   : > { %v1268_v16 = vmul.f32 %v1267_v63, %v1258_v8  ;;  %v1269_v9 = vmul.f32 %v1267_v63, %v1259_v37  ;;  %v1270_v15 = vmul.f32 %v1267_v63, %v1260_v12  ;;  %v1271_v34 = vmul.f32 %v1267_v63, %v1261_v3 }
 0x13b   : > { %v1272_v41 = vmul.f32 %v1267_v63, %v1262_v2  ;;  %v1273_v46 = vmul.f32 %v1267_v63, %v1263_v17  ;;  %v1274_v25 = vmul.f32 %v1267_v63, %v1264_v48  ;;  %v1275_v42 = vmul.f32 %v1267_v63, %v1265_v60 }
 0x13c   : > { %v5070_v40 = vadd.f32 %v1268_v16, %v4992_v49  ;;  %v5073_v38 = vadd.f32 %v1269_v9, %v4995_v51  ;;  %v5076_v39 = vadd.f32 %v1270_v15, %v4998_v14  ;;  %v5079_v58 = vadd.f32 %v1271_v34, %v5001_v1  ;;  %v7384_v9 = vld [vmem:[#allocation10_spill] sm:$0xff] }
 0x13d   : > { %v5082_v56 = vadd.f32 %v1272_v41, %v5006_v13  ;;  %v5085_v47 = vadd.f32 %v1273_v46, %v5009_v11  ;;  %v5088_v63 = vadd.f32 %v1274_v25, %v5012_v30  ;;  %v5091_v49 = vadd.f32 %v1275_v42, %v5015_v0 }
 0x13e   : > { %v1286_v51 = vmul.f32 %v1285_v62, %v1258_v8  ;;  %v1287_v44 = vmul.f32 %v1285_v62, %v1259_v37  ;;  %v1288_v14 = vmul.f32 %v1285_v62, %v1260_v12  ;;  %v1289_v1 = vmul.f32 %v1285_v62, %v1261_v3  ;;  %v7380_v37 = vld [vmem:[#allocation17_spill] sm:$0xff]  ;;  %v7381_v3 = vld [vmem:[#allocation18_spill] sm:$0xff] }
 0x13f   : > { %v1290_v26 = vmul.f32 %v1285_v62, %v1262_v2  ;;  %v1291_v13 = vmul.f32 %v1285_v62, %v1263_v17  ;;  %v1292_v55 = vmul.f32 %v1285_v62, %v1264_v48  ;;  %v1293_v54 = vmul.f32 %v1285_v62, %v1265_v60  ;;  %v7382_v17 = vld [vmem:[#allocation8_spill] sm:$0xff]  ;;  %v7383_v60 = vld [vmem:[#allocation9_spill] sm:$0xff] }
 0x140   : > { %v5094_v11 = vadd.f32 %v1286_v51, %v5018_v21  ;;  %v5097_v30 = vadd.f32 %v1287_v44, %v5021_v22  ;;  %v5100_v0 = vadd.f32 %v1288_v14, %v5024_v53  ;;  %v5103_v8 = vadd.f32 %v1289_v1, %v5027_v19 }
 0x141   : > { %v5106_v59 = vadd.f32 %v1290_v26, %v5030_v52  ;;  %v5109_v29 = vadd.f32 %v1291_v13, %v5033_v10  ;;  %v5112_v62 = vadd.f32 %v1292_v55, %v5036_v24  ;;  %v5115_v21 = vadd.f32 %v1293_v54, %v5039_v4 }
 0x142   : > { %v1303_v22 = vstv %s5061_s9  ;;  %v1313_v27 = vstv %s5063_s10  ;;  %v1331_v28 = vstv %s5065_s11  ;;  %v1349_v53 = vstv %s5067_s12  ;;  %s5303_s9 = sld [smem:[#allocation4 + $0x482]] }
 0x143   : > { %v1304_v31 = vmul.f32 %v1303_v22, %v4611_v50  ;;  %v1305_v19 = vmul.f32 %v1303_v22, %v4613_v5  ;;  %v1306_v52 = vmul.f32 %v1303_v22, %v4615_v36  ;;  %v1307_v32 = vmul.f32 %v1303_v22, %v4617_v6  ;;  %s5305_s10 = sld [smem:[#allocation4 + $0x483]] }
 0x144   : > { %v1308_v10 = vmul.f32 %v1303_v22, %v4619_v61  ;;  %v1309_v24 = vmul.f32 %v1303_v22, %v4621_v23  ;;  %v1310_v18 = vmul.f32 %v1303_v22, %v4623_v45  ;;  %v1311_v4 = vmul.f32 %v1303_v22, %v4625_v35  ;;  %s5319_s11 = sld [smem:[#allocation4 + $0x484]] }
 0x145   : > { %v1314_v7 = vmul.f32 %v1313_v27, %v4647_v20  ;;  %v1315_v57 = vmul.f32 %v1313_v27, %v4649_v43  ;;  %v1316_v12 = vmul.f32 %v1313_v27, %v7380_v37  ;;  %v1317_v2 = vmul.f32 %v1313_v27, %v7381_v3  ;;  %s5377_s12 = sld [smem:[#allocation4 + $0x500]] }
 0x146   : > { %v1318_v48 = vmul.f32 %v1313_v27, %v7382_v17  ;;  %v1319_v16 = vmul.f32 %v1313_v27, %v7383_v60  ;;  %v1320_v15 = vmul.f32 %v1313_v27, %v7384_v9  ;;  %v1321_v34 = vmul.f32 %v1313_v27, %v4663_v33 }
 0x147   : > { %v1322_v41 = vadd.f32 %v1314_v7, %v1304_v31  ;;  %v1323_v46 = vadd.f32 %v1315_v57, %v1305_v19  ;;  %v1324_v25 = vadd.f32 %v1316_v12, %v1306_v52  ;;  %v1325_v42 = vadd.f32 %v1317_v2, %v1307_v32 }
 0x148   : > { %v1326_v51 = vadd.f32 %v1318_v48, %v1308_v10  ;;  %v1327_v44 = vadd.f32 %v1319_v16, %v1309_v24  ;;  %v1328_v14 = vadd.f32 %v1320_v15, %v1310_v18  ;;  %v1329_v1 = vadd.f32 %v1321_v34, %v1311_v4 }
 0x149   : > { %v1332_v26 = vadd.f32 %v1331_v28, %v1322_v41  ;;  %v1333_v13 = vadd.f32 %v1331_v28, %v1323_v46  ;;  %v1334_v55 = vadd.f32 %v1331_v28, %v1324_v25  ;;  %v1335_v54 = vadd.f32 %v1331_v28, %v1325_v42 }
 0x14a   : > { %v1336_v22 = vadd.f32 %v1331_v28, %v1326_v51  ;;  %v1337_v27 = vadd.f32 %v1331_v28, %v1327_v44  ;;  %v1338_v31 = vadd.f32 %v1331_v28, %v1328_v14  ;;  %v1339_v19 = vadd.f32 %v1331_v28, %v1329_v1 }
 0x14b   : > { %v1340_v52 = vmax.f32 %v1332_v26, 0.0  ;;  %v1341_v32 = vmax.f32 %v1333_v13, 0.0  ;;  %v1342_v7 = vmax.f32 %v1334_v55, 0.0  ;;  %v1343_v57 = vmax.f32 %v1335_v54, 0.0 }
 0x14c   : > { %v1344_v10 = vmax.f32 %v1336_v22, 0.0  ;;  %v1345_v24 = vmax.f32 %v1337_v27, 0.0  ;;  %v1346_v18 = vmax.f32 %v1338_v31, 0.0  ;;  %v1347_v4 = vmax.f32 %v1339_v19, 0.0 }
 0x14d   : > { %v1350_v12 = vmul.f32 %v1349_v53, %v1340_v52  ;;  %v1351_v2 = vmul.f32 %v1349_v53, %v1341_v32  ;;  %v1352_v48 = vmul.f32 %v1349_v53, %v1342_v7  ;;  %v1353_v16 = vmul.f32 %v1349_v53, %v1343_v57 }
 0x14e   : > { %v1354_v15 = vmul.f32 %v1349_v53, %v1344_v10  ;;  %v1355_v34 = vmul.f32 %v1349_v53, %v1345_v24  ;;  %v1356_v41 = vmul.f32 %v1349_v53, %v1346_v18  ;;  %v1357_v28 = vmul.f32 %v1349_v53, %v1347_v4 }
 0x14f   : > { %v5146_v46 = vadd.f32 %v1350_v12, %v5070_v40  ;;  %v5149_v25 = vadd.f32 %v1351_v2, %v5073_v38  ;;  %v5152_v42 = vadd.f32 %v1352_v48, %v5076_v39  ;;  %v5155_v51 = vadd.f32 %v1353_v16, %v5079_v58 }
 0x150   : > { %v5158_v44 = vadd.f32 %v1354_v15, %v5082_v56  ;;  %v5161_v14 = vadd.f32 %v1355_v34, %v5085_v47  ;;  %v5164_v53 = vadd.f32 %v1356_v41, %v5088_v63  ;;  %v5167_v40 = vadd.f32 %v1357_v28, %v5091_v49 }
 0x151   : > { %v1367_v38 = vstv %s5139_s14  ;;  %v1385_v1 = vstv %s5137_s13  ;;  %v1395_v26 = vstv %s5141_s15  ;;  %v1413_v39 = vstv %s5143_s16  ;;  %s5379_s13 = sld [smem:[#allocation4 + $0x501]] }
 0x152   : > { %v1368_v13 = vmul.f32 %v1367_v38, %v1340_v52  ;;  %v1369_v55 = vmul.f32 %v1367_v38, %v1341_v32  ;;  %v1370_v58 = vmul.f32 %v1367_v38, %v1342_v7  ;;  %v1371_v54 = vmul.f32 %v1367_v38, %v1343_v57  ;;  %s5381_s14 = sld [smem:[#allocation4 + $0x502]] }
 0x153   : > { %v1372_v22 = vmul.f32 %v1367_v38, %v1344_v10  ;;  %v1373_v56 = vmul.f32 %v1367_v38, %v1345_v24  ;;  %v1374_v27 = vmul.f32 %v1367_v38, %v1346_v18  ;;  %v1375_v31 = vmul.f32 %v1367_v38, %v1347_v4  ;;  %s5383_s15 = sld [smem:[#allocation4 + $0x503]] }
 0x154   : > { %v5174_v47 = vadd.f32 %v1368_v13, %v5094_v11  ;;  %v5177_v63 = vadd.f32 %v1369_v55, %v5097_v30  ;;  %v5180_v49 = vadd.f32 %v1370_v58, %v5100_v0  ;;  %v5183_v19 = vadd.f32 %v1371_v54, %v5103_v8  ;;  %s5453_s16 = sld [smem:[#allocation4 + $0x580]] }
 0x155   : > { %v5186_v52 = vadd.f32 %v1372_v22, %v5106_v59  ;;  %v5189_v32 = vadd.f32 %v1373_v56, %v5109_v29  ;;  %v5192_v7 = vadd.f32 %v1374_v27, %v5112_v62  ;;  %v5195_v11 = vadd.f32 %v1375_v31, %v5115_v21 }
 0x156   : > { %v1386_v30 = vmul.f32 %v1385_v1, %v4611_v50  ;;  %v1387_v0 = vmul.f32 %v1385_v1, %v4613_v5  ;;  %v1388_v8 = vmul.f32 %v1385_v1, %v4615_v36  ;;  %v1389_v59 = vmul.f32 %v1385_v1, %v4617_v6 }
 0x157   : > { %v1390_v29 = vmul.f32 %v1385_v1, %v4619_v61  ;;  %v1391_v62 = vmul.f32 %v1385_v1, %v4621_v23  ;;  %v1392_v57 = vmul.f32 %v1385_v1, %v4623_v45  ;;  %v1393_v21 = vmul.f32 %v1385_v1, %v4625_v35 }
 0x158   : > { %v1396_v10 = vmul.f32 %v1395_v26, %v4647_v20  ;;  %v1397_v24 = vmul.f32 %v1395_v26, %v4649_v43  ;;  %v1398_v18 = vmul.f32 %v1395_v26, %v7380_v37  ;;  %v1399_v4 = vmul.f32 %v1395_v26, %v7381_v3 }
 0x159   : > { %v1400_v12 = vmul.f32 %v1395_v26, %v7382_v17  ;;  %v1401_v2 = vmul.f32 %v1395_v26, %v7383_v60  ;;  %v1402_v48 = vmul.f32 %v1395_v26, %v7384_v9  ;;  %v1403_v16 = vmul.f32 %v1395_v26, %v4663_v33 }
 0x15a   : > { %v1404_v15 = vadd.f32 %v1396_v10, %v1386_v30  ;;  %v1405_v34 = vadd.f32 %v1397_v24, %v1387_v0  ;;  %v1406_v41 = vadd.f32 %v1398_v18, %v1388_v8  ;;  %v1407_v28 = vadd.f32 %v1399_v4, %v1389_v59 }
 0x15b   : > { %v1408_v38 = vadd.f32 %v1400_v12, %v1390_v29  ;;  %v1409_v1 = vadd.f32 %v1401_v2, %v1391_v62  ;;  %v1410_v13 = vadd.f32 %v1402_v48, %v1392_v57  ;;  %v1411_v55 = vadd.f32 %v1403_v16, %v1393_v21 }
 0x15c   : > { %v1414_v58 = vadd.f32 %v1413_v39, %v1404_v15  ;;  %v1415_v54 = vadd.f32 %v1413_v39, %v1405_v34  ;;  %v1416_v22 = vadd.f32 %v1413_v39, %v1406_v41  ;;  %v1417_v56 = vadd.f32 %v1413_v39, %v1407_v28 }
 0x15d   : > { %v1418_v27 = vadd.f32 %v1413_v39, %v1408_v38  ;;  %v1419_v31 = vadd.f32 %v1413_v39, %v1409_v1  ;;  %v1420_v9 = vadd.f32 %v1413_v39, %v1410_v13  ;;  %v1421_v26 = vadd.f32 %v1413_v39, %v1411_v55 }
 0x15e   : > { %v1422_v30 = vmax.f32 %v1414_v58, 0.0  ;;  %v1423_v0 = vmax.f32 %v1415_v54, 0.0  ;;  %v1424_v8 = vmax.f32 %v1416_v22, 0.0  ;;  %v1425_v59 = vmax.f32 %v1417_v56, 0.0 }
 0x15f   : > { %v1426_v29 = vmax.f32 %v1418_v27, 0.0  ;;  %v1427_v62 = vmax.f32 %v1419_v31, 0.0  ;;  %v1428_v57 = vmax.f32 %v1420_v9, 0.0  ;;  %v1429_v21 = vmax.f32 %v1421_v26, 0.0 }
 0x160   : > { %v1431_v10 = vstv %s5203_s23  ;;  %v1449_v24 = vstv %s5209_s26  ;;  %v1467_v18 = vstv %s5197_s17  ;;  %v1477_v4 = vstv %s5215_s29  ;;  %s5455_s17 = sld [smem:[#allocation4 + $0x504]] }
 0x161   : > { %v1432_v12 = vmul.f32 %v1431_v10, %v1422_v30  ;;  %v1433_v2 = vmul.f32 %v1431_v10, %v1423_v0  ;;  %v1434_v48 = vmul.f32 %v1431_v10, %v1424_v8  ;;  %v1435_v16 = vmul.f32 %v1431_v10, %v1425_v59  ;;  %s5457_s23 = sld [smem:[#allocation4 + $0x581]] }
 0x162   : > { %v1436_v15 = vmul.f32 %v1431_v10, %v1426_v29  ;;  %v1437_v34 = vmul.f32 %v1431_v10, %v1427_v62  ;;  %v1438_v41 = vmul.f32 %v1431_v10, %v1428_v57  ;;  %v1439_v39 = vmul.f32 %v1431_v10, %v1429_v21  ;;  %s5459_s26 = sld [smem:[#allocation4 + $0x582]] }
 0x163   : > { %v5226_v28 = vadd.f32 %v1432_v12, %v5146_v46  ;;  %v5229_v38 = vadd.f32 %v1433_v2, %v5149_v25  ;;  %v5232_v9 = vadd.f32 %v1434_v48, %v5152_v42  ;;  %v5235_v1 = vadd.f32 %v1435_v16, %v5155_v51  ;;  %s5513_s29 = sld [smem:[#allocation4 + $0x600]] }
 0x164   : > { %v5238_v13 = vadd.f32 %v1436_v15, %v5158_v44  ;;  %v5241_v55 = vadd.f32 %v1437_v34, %v5161_v14  ;;  %v5244_v58 = vadd.f32 %v1438_v41, %v5164_v53  ;;  %v5247_v46 = vadd.f32 %v1439_v39, %v5167_v40 }
 0x165   : > { %v1450_v25 = vmul.f32 %v1449_v24, %v1422_v30  ;;  %v1451_v42 = vmul.f32 %v1449_v24, %v1423_v0  ;;  %v1452_v54 = vmul.f32 %v1449_v24, %v1424_v8  ;;  %v1453_v22 = vmul.f32 %v1449_v24, %v1425_v59 }
 0x166   : > { %v1454_v51 = vmul.f32 %v1449_v24, %v1426_v29  ;;  %v1455_v44 = vmul.f32 %v1449_v24, %v1427_v62  ;;  %v1456_v56 = vmul.f32 %v1449_v24, %v1428_v57  ;;  %v1457_v27 = vmul.f32 %v1449_v24, %v1429_v21  ;;  %v7385_v24 = vld [vmem:[#allocation10_spill] sm:$0xff] }
 0x167   : > { %v5256_v14 = vadd.f32 %v1450_v25, %v5174_v47  ;;  %v5259_v53 = vadd.f32 %v1451_v42, %v5177_v63  ;;  %v5262_v40 = vadd.f32 %v1452_v54, %v5180_v49  ;;  %v5265_v31 = vadd.f32 %v1453_v22, %v5183_v19 }
 0x168   : > { %v5270_v26 = vadd.f32 %v1454_v51, %v5186_v52  ;;  %v5273_v30 = vadd.f32 %v1455_v44, %v5189_v32  ;;  %v5276_v47 = vadd.f32 %v1456_v56, %v5192_v7  ;;  %v5279_v63 = vadd.f32 %v1457_v27, %v5195_v11 }
 0x169   : > { %v1468_v49 = vmul.f32 %v1467_v18, %v4611_v50  ;;  %v1469_v0 = vmul.f32 %v1467_v18, %v4613_v5  ;;  %v1470_v19 = vmul.f32 %v1467_v18, %v4615_v36  ;;  %v1471_v8 = vmul.f32 %v1467_v18, %v4617_v6 }
 0x16a   : > { %v1472_v52 = vmul.f32 %v1467_v18, %v4619_v61  ;;  %v1473_v59 = vmul.f32 %v1467_v18, %v4621_v23  ;;  %v1474_v32 = vmul.f32 %v1467_v18, %v4623_v45  ;;  %v1475_v7 = vmul.f32 %v1467_v18, %v4625_v35 }
 0x16b   : > { %v1478_v29 = vmul.f32 %v1477_v4, %v4647_v20  ;;  %v1479_v11 = vmul.f32 %v1477_v4, %v4649_v43  ;;  %v1480_v62 = vmul.f32 %v1477_v4, %v7380_v37  ;;  %v1481_v57 = vmul.f32 %v1477_v4, %v7381_v3 }
 0x16c   : > { %v1482_v21 = vmul.f32 %v1477_v4, %v7382_v17  ;;  %v1483_v10 = vmul.f32 %v1477_v4, %v7383_v60  ;;  %v1484_v12 = vmul.f32 %v1477_v4, %v7385_v24  ;;  %v1485_v18 = vmul.f32 %v1477_v4, %v4663_v33 }
 0x16d   : > { %v1486_v2 = vadd.f32 %v1478_v29, %v1468_v49  ;;  %v1487_v48 = vadd.f32 %v1479_v11, %v1469_v0  ;;  %v1488_v16 = vadd.f32 %v1480_v62, %v1470_v19  ;;  %v1489_v15 = vadd.f32 %v1481_v57, %v1471_v8 }
 0x16e   : > { %v1490_v34 = vadd.f32 %v1482_v21, %v1472_v52  ;;  %v1491_v41 = vadd.f32 %v1483_v10, %v1473_v59  ;;  %v1492_v39 = vadd.f32 %v1484_v12, %v1474_v32  ;;  %v1493_v25 = vadd.f32 %v1485_v18, %v1475_v7 }
 0x16f   : > { %v1495_v42 = vstv %s5251_s6  ;;  %v1513_v54 = vstv %s5253_s19  ;;  %v1531_v22 = vstv %s5267_s7  ;;  %v1549_v51 = vstv %s5249_s30  ;;  %s5519_s30 = sld [smem:[#allocation4 + $0x583]] }
 0x170   : > { %v1496_v44 = vadd.f32 %v1495_v42, %v1486_v2  ;;  %v1497_v56 = vadd.f32 %v1495_v42, %v1487_v48  ;;  %v1498_v27 = vadd.f32 %v1495_v42, %v1488_v16  ;;  %v1499_v60 = vadd.f32 %v1495_v42, %v1489_v15  ;;  %s5525_s6 = sld [smem:[#allocation4 + $0x584]] }
 0x171   : > { %v1500_v17 = vadd.f32 %v1495_v42, %v1490_v34  ;;  %v1501_v24 = vadd.f32 %v1495_v42, %v1491_v41  ;;  %v1502_v3 = vadd.f32 %v1495_v42, %v1492_v39  ;;  %v1503_v4 = vadd.f32 %v1495_v42, %v1493_v25  ;;  %s5531_s19 = sld [smem:[#allocation4 + $0x601]] }
 0x172   : > { %v1504_v49 = vmax.f32 %v1496_v44, 0.0  ;;  %v1505_v0 = vmax.f32 %v1497_v56, 0.0  ;;  %v1506_v19 = vmax.f32 %v1498_v27, 0.0  ;;  %v1507_v8 = vmax.f32 %v1499_v60, 0.0  ;;  %s5565_s7 = sld [smem:[#allocation4 + $0x680]] }
 0x173   : > { %v1508_v52 = vmax.f32 %v1500_v17, 0.0  ;;  %v1509_v59 = vmax.f32 %v1501_v24, 0.0  ;;  %v1510_v32 = vmax.f32 %v1502_v3, 0.0  ;;  %v1511_v7 = vmax.f32 %v1503_v4, 0.0 }
 0x174   : > { %v1514_v29 = vmul.f32 %v1513_v54, %v1504_v49  ;;  %v1515_v11 = vmul.f32 %v1513_v54, %v1505_v0  ;;  %v1516_v62 = vmul.f32 %v1513_v54, %v1506_v19  ;;  %v1517_v57 = vmul.f32 %v1513_v54, %v1507_v8 }
 0x175   : > { %v1518_v21 = vmul.f32 %v1513_v54, %v1508_v52  ;;  %v1519_v10 = vmul.f32 %v1513_v54, %v1509_v59  ;;  %v1520_v12 = vmul.f32 %v1513_v54, %v1510_v32  ;;  %v1521_v18 = vmul.f32 %v1513_v54, %v1511_v7 }
 0x176   : > { %v5308_v60 = vadd.f32 %v1514_v29, %v5226_v28  ;;  %v5311_v3 = vadd.f32 %v1515_v11, %v5229_v38  ;;  %v5314_v17 = vadd.f32 %v1516_v62, %v5232_v9  ;;  %v5317_v24 = vadd.f32 %v1517_v57, %v5235_v1  ;;  %v7388_v29 = vld [vmem:[#allocation9_spill] sm:$0xff]  ;;  %v7389_v62 = vld [vmem:[#allocation10_spill] sm:$0xff] }
 0x177   : > { %v5322_v2 = vadd.f32 %v1518_v21, %v5238_v13  ;;  %v5325_v48 = vadd.f32 %v1519_v10, %v5241_v55  ;;  %v5328_v28 = vadd.f32 %v1520_v12, %v5244_v58  ;;  %v5331_v38 = vadd.f32 %v1521_v18, %v5247_v46 }
 0x178   : > { %v1532_v16 = vmul.f32 %v1531_v22, %v1504_v49  ;;  %v1533_v9 = vmul.f32 %v1531_v22, %v1505_v0  ;;  %v1534_v15 = vmul.f32 %v1531_v22, %v1506_v19  ;;  %v1535_v34 = vmul.f32 %v1531_v22, %v1507_v8 }
 0x179   : > { %v1536_v1 = vmul.f32 %v1531_v22, %v1508_v52  ;;  %v1537_v41 = vmul.f32 %v1531_v22, %v1509_v59  ;;  %v1538_v39 = vmul.f32 %v1531_v22, %v1510_v32  ;;  %v1539_v25 = vmul.f32 %v1531_v22, %v1511_v7  ;;  %v7386_v52 = vld [vmem:[#allocation18_spill] sm:$0xff]  ;;  %v7387_v32 = vld [vmem:[#allocation8_spill] sm:$0xff] }
 0x17a   : > { %v5334_v13 = vadd.f32 %v1532_v16, %v5256_v14  ;;  %v5337_v55 = vadd.f32 %v1533_v9, %v5259_v53  ;;  %v5340_v58 = vadd.f32 %v1534_v15, %v5262_v40  ;;  %v5343_v46 = vadd.f32 %v1535_v34, %v5265_v31 }
 0x17b   : > { %v5346_v42 = vadd.f32 %v1536_v1, %v5270_v26  ;;  %v5349_v54 = vadd.f32 %v1537_v41, %v5273_v30  ;;  %v5352_v14 = vadd.f32 %v1538_v39, %v5276_v47  ;;  %v5355_v53 = vadd.f32 %v1539_v25, %v5279_v63 }
 0x17c   : > { %v1550_v40 = vmul.f32 %v1549_v51, %v4611_v50  ;;  %v1551_v22 = vmul.f32 %v1549_v51, %v4613_v5  ;;  %v1552_v31 = vmul.f32 %v1549_v51, %v4615_v36  ;;  %v1553_v44 = vmul.f32 %v1549_v51, %v4617_v6 }
 0x17d   : > { %v1554_v26 = vmul.f32 %v1549_v51, %v4619_v61  ;;  %v1555_v56 = vmul.f32 %v1549_v51, %v4621_v23  ;;  %v1556_v30 = vmul.f32 %v1549_v51, %v4623_v45  ;;  %v1557_v47 = vmul.f32 %v1549_v51, %v4625_v35 }
 0x17e   : > { %v1559_v27 = vstv %s5301_s8  ;;  %v1577_v4 = vstv %s5303_s9  ;;  %v1595_v63 = vstv %s5305_s10  ;;  %v1613_v49 = vstv %s5319_s11  ;;  %s5567_s8 = sld [smem:[#allocation4 + $0x602]] }
 0x17f   : > { %v1560_v0 = vmul.f32 %v1559_v27, %v4647_v20  ;;  %v1561_v19 = vmul.f32 %v1559_v27, %v4649_v43  ;;  %v1562_v8 = vmul.f32 %v1559_v27, %v7380_v37  ;;  %v1563_v59 = vmul.f32 %v1559_v27, %v7386_v52  ;;  %s5569_s9 = sld [smem:[#allocation4 + $0x603]] }
 0x180   : > { %v1564_v7 = vmul.f32 %v1559_v27, %v7387_v32  ;;  %v1565_v11 = vmul.f32 %v1559_v27, %v7388_v29  ;;  %v1566_v57 = vmul.f32 %v1559_v27, %v7389_v62  ;;  %v1567_v51 = vmul.f32 %v1559_v27, %v4663_v33  ;;  %s5583_s10 = sld [smem:[#allocation4 + $0x604]] }
 0x181   : > { %v1568_v21 = vadd.f32 %v1560_v0, %v1550_v40  ;;  %v1569_v10 = vadd.f32 %v1561_v19, %v1551_v22  ;;  %v1570_v12 = vadd.f32 %v1562_v8, %v1552_v31  ;;  %v1571_v18 = vadd.f32 %v1563_v59, %v1553_v44  ;;  %s5617_s11 = sld [smem:[#allocation4 + $0x681]] }
 0x182   : > { %v1572_v16 = vadd.f32 %v1564_v7, %v1554_v26  ;;  %v1573_v9 = vadd.f32 %v1565_v11, %v1555_v56  ;;  %v1574_v15 = vadd.f32 %v1566_v57, %v1556_v30  ;;  %v1575_v34 = vadd.f32 %v1567_v51, %v1557_v47 }
 0x183   : > { %v1578_v1 = vadd.f32 %v1577_v4, %v1568_v21  ;;  %v1579_v41 = vadd.f32 %v1577_v4, %v1569_v10  ;;  %v1580_v39 = vadd.f32 %v1577_v4, %v1570_v12  ;;  %v1581_v25 = vadd.f32 %v1577_v4, %v1571_v18 }
 0x184   : > { %v1582_v52 = vadd.f32 %v1577_v4, %v1572_v16  ;;  %v1583_v32 = vadd.f32 %v1577_v4, %v1573_v9  ;;  %v1584_v37 = vadd.f32 %v1577_v4, %v1574_v15  ;;  %v1585_v29 = vadd.f32 %v1577_v4, %v1575_v34 }
 0x185   : > { %v1586_v62 = vmax.f32 %v1578_v1, 0.0  ;;  %v1587_v27 = vmax.f32 %v1579_v41, 0.0  ;;  %v1588_v40 = vmax.f32 %v1580_v39, 0.0  ;;  %v1589_v22 = vmax.f32 %v1581_v25, 0.0 }
 0x186   : > { %v1590_v31 = vmax.f32 %v1582_v52, 0.0  ;;  %v1591_v44 = vmax.f32 %v1583_v32, 0.0  ;;  %v1592_v26 = vmax.f32 %v1584_v37, 0.0  ;;  %v1593_v56 = vmax.f32 %v1585_v29, 0.0 }
 0x187   : > { %v1596_v30 = vmul.f32 %v1595_v63, %v1586_v62  ;;  %v1597_v47 = vmul.f32 %v1595_v63, %v1587_v27  ;;  %v1598_v0 = vmul.f32 %v1595_v63, %v1588_v40  ;;  %v1599_v19 = vmul.f32 %v1595_v63, %v1589_v22 }
 0x188   : > { %v1600_v4 = vmul.f32 %v1595_v63, %v1590_v31  ;;  %v1601_v8 = vmul.f32 %v1595_v63, %v1591_v44  ;;  %v1602_v59 = vmul.f32 %v1595_v63, %v1592_v26  ;;  %v1603_v7 = vmul.f32 %v1595_v63, %v1593_v56 }
 0x189   : > { %v5386_v11 = vadd.f32 %v1596_v30, %v5308_v60  ;;  %v5389_v52 = vadd.f32 %v1597_v47, %v5311_v3  ;;  %v5392_v37 = vadd.f32 %v1598_v0, %v5314_v17  ;;  %v5395_v32 = vadd.f32 %v1599_v19, %v5317_v24  ;;  %v7394_v47 = vld [vmem:[#allocation10_spill] sm:$0xff] }
 0x18a   : > { %v5398_v29 = vadd.f32 %v1600_v4, %v5322_v2  ;;  %v5401_v57 = vadd.f32 %v1601_v8, %v5325_v48  ;;  %v5404_v63 = vadd.f32 %v1602_v59, %v5328_v28  ;;  %v5407_v60 = vadd.f32 %v1603_v7, %v5331_v38 }
 0x18b   : > { %v1614_v3 = vmul.f32 %v1613_v49, %v1586_v62  ;;  %v1615_v51 = vmul.f32 %v1613_v49, %v1587_v27  ;;  %v1616_v17 = vmul.f32 %v1613_v49, %v1588_v40  ;;  %v1617_v24 = vmul.f32 %v1613_v49, %v1589_v22  ;;  %v7390_v27 = vld [vmem:[#allocation17_spill] sm:$0xff]  ;;  %v7391_v22 = vld [vmem:[#allocation18_spill] sm:$0xff] }
 0x18c   : > { %v1618_v21 = vmul.f32 %v1613_v49, %v1590_v31  ;;  %v1619_v2 = vmul.f32 %v1613_v49, %v1591_v44  ;;  %v1620_v10 = vmul.f32 %v1613_v49, %v1592_v26  ;;  %v1621_v12 = vmul.f32 %v1613_v49, %v1593_v56  ;;  %v7392_v44 = vld [vmem:[#allocation8_spill] sm:$0xff]  ;;  %v7393_v56 = vld [vmem:[#allocation9_spill] sm:$0xff] }
 0x18d   : > { %v5410_v48 = vadd.f32 %v1614_v3, %v5334_v13  ;;  %v5413_v28 = vadd.f32 %v1615_v51, %v5337_v55  ;;  %v5416_v38 = vadd.f32 %v1616_v17, %v5340_v58  ;;  %v5419_v62 = vadd.f32 %v1617_v24, %v5343_v46 }
 0x18e   : > { %v5422_v18 = vadd.f32 %v1618_v21, %v5346_v42  ;;  %v5425_v16 = vadd.f32 %v1619_v2, %v5349_v54  ;;  %v5428_v49 = vadd.f32 %v1620_v10, %v5352_v14  ;;  %v5431_v13 = vadd.f32 %v1621_v12, %v5355_v53 }
 0x18f   : > { %v1631_v55 = vstv %s5377_s12  ;;  %v1641_v9 = vstv %s5379_s13  ;;  %v1659_v15 = vstv %s5381_s14  ;;  %v1677_v58 = vstv %s5383_s15  ;;  %s5619_s12 = sld [smem:[#allocation4 + $0x682]] }
 0x190   : > { %v1632_v34 = vmul.f32 %v1631_v55, %v4611_v50  ;;  %v1633_v46 = vmul.f32 %v1631_v55, %v4613_v5  ;;  %v1634_v42 = vmul.f32 %v1631_v55, %v4615_v36  ;;  %v1635_v1 = vmul.f32 %v1631_v55, %v4617_v6  ;;  %s5621_s13 = sld [smem:[#allocation4 + $0x683]] }
 0x191   : > { %v1636_v54 = vmul.f32 %v1631_v55, %v4619_v61  ;;  %v1637_v14 = vmul.f32 %v1631_v55, %v4621_v23  ;;  %v1638_v41 = vmul.f32 %v1631_v55, %v4623_v45  ;;  %v1639_v53 = vmul.f32 %v1631_v55, %v4625_v35  ;;  %s5635_s14 = sld [smem:[#allocation4 + $0x684]] }
 0x192   : > { %v1642_v39 = vmul.f32 %v1641_v9, %v4647_v20  ;;  %v1643_v25 = vmul.f32 %v1641_v9, %v4649_v43  ;;  %v1644_v40 = vmul.f32 %v1641_v9, %v7390_v27  ;;  %v1645_v31 = vmul.f32 %v1641_v9, %v7391_v22  ;;  %s5693_s15 = sld [smem:[#allocation4 + $0x700]] }
 0x193   : > { %v1646_v26 = vmul.f32 %v1641_v9, %v7392_v44  ;;  %v1647_v30 = vmul.f32 %v1641_v9, %v7393_v56  ;;  %v1648_v0 = vmul.f32 %v1641_v9, %v7394_v47  ;;  %v1649_v19 = vmul.f32 %v1641_v9, %v4663_v33 }
 0x194   : > { %v1650_v4 = vadd.f32 %v1642_v39, %v1632_v34  ;;  %v1651_v8 = vadd.f32 %v1643_v25, %v1633_v46  ;;  %v1652_v59 = vadd.f32 %v1644_v40, %v1634_v42  ;;  %v1653_v7 = vadd.f32 %v1645_v31, %v1635_v1 }
 0x195   : > { %v1654_v3 = vadd.f32 %v1646_v26, %v1636_v54  ;;  %v1655_v51 = vadd.f32 %v1647_v30, %v1637_v14  ;;  %v1656_v17 = vadd.f32 %v1648_v0, %v1638_v41  ;;  %v1657_v24 = vadd.f32 %v1649_v19, %v1639_v53 }
 0x196   : > { %v1660_v21 = vadd.f32 %v1659_v15, %v1650_v4  ;;  %v1661_v2 = vadd.f32 %v1659_v15, %v1651_v8  ;;  %v1662_v10 = vadd.f32 %v1659_v15, %v1652_v59  ;;  %v1663_v12 = vadd.f32 %v1659_v15, %v1653_v7 }
 0x197   : > { %v1664_v55 = vadd.f32 %v1659_v15, %v1654_v3  ;;  %v1665_v9 = vadd.f32 %v1659_v15, %v1655_v51  ;;  %v1666_v34 = vadd.f32 %v1659_v15, %v1656_v17  ;;  %v1667_v46 = vadd.f32 %v1659_v15, %v1657_v24 }
 0x198   : > { %v1668_v42 = vmax.f32 %v1660_v21, 0.0  ;;  %v1669_v1 = vmax.f32 %v1661_v2, 0.0  ;;  %v1670_v39 = vmax.f32 %v1662_v10, 0.0  ;;  %v1671_v25 = vmax.f32 %v1663_v12, 0.0 }
 0x199   : > { %v1672_v54 = vmax.f32 %v1664_v55, 0.0  ;;  %v1673_v14 = vmax.f32 %v1665_v9, 0.0  ;;  %v1674_v41 = vmax.f32 %v1666_v34, 0.0  ;;  %v1675_v53 = vmax.f32 %v1667_v46, 0.0 }
 0x19a   : > { %v1678_v40 = vmul.f32 %v1677_v58, %v1668_v42  ;;  %v1679_v31 = vmul.f32 %v1677_v58, %v1669_v1  ;;  %v1680_v26 = vmul.f32 %v1677_v58, %v1670_v39  ;;  %v1681_v30 = vmul.f32 %v1677_v58, %v1671_v25 }
 0x19b   : > { %v1682_v0 = vmul.f32 %v1677_v58, %v1672_v54  ;;  %v1683_v19 = vmul.f32 %v1677_v58, %v1673_v14  ;;  %v1684_v4 = vmul.f32 %v1677_v58, %v1674_v41  ;;  %v1685_v15 = vmul.f32 %v1677_v58, %v1675_v53 }
 0x19c   : > { %v5462_v8 = vadd.f32 %v1678_v40, %v5386_v11  ;;  %v5465_v59 = vadd.f32 %v1679_v31, %v5389_v52  ;;  %v5468_v7 = vadd.f32 %v1680_v26, %v5392_v37  ;;  %v5471_v3 = vadd.f32 %v1681_v30, %v5395_v32 }
 0x19d   : > { %v5474_v51 = vadd.f32 %v1682_v0, %v5398_v29  ;;  %v5477_v17 = vadd.f32 %v1683_v19, %v5401_v57  ;;  %v5480_v58 = vadd.f32 %v1684_v4, %v5404_v63  ;;  %v5483_v11 = vadd.f32 %v1685_v15, %v5407_v60 }
 0x19e   : > { %v1695_v52 = vstv %s5455_s17  ;;  %v1713_v24 = vstv %s5453_s16  ;;  %v1723_v21 = vstv %s5457_s23  ;;  %v1741_v37 = vstv %s5459_s26  ;;  %s5695_s16 = sld [smem:[#allocation4 + $0x701]] }
 0x19f   : > { %v1696_v2 = vmul.f32 %v1695_v52, %v1668_v42  ;;  %v1697_v10 = vmul.f32 %v1695_v52, %v1669_v1  ;;  %v1698_v32 = vmul.f32 %v1695_v52, %v1670_v39  ;;  %v1699_v12 = vmul.f32 %v1695_v52, %v1671_v25  ;;  %s5697_s17 = sld [smem:[#allocation4 + $0x702]] }
 0x1a0   : > { %v1700_v55 = vmul.f32 %v1695_v52, %v1672_v54  ;;  %v1701_v29 = vmul.f32 %v1695_v52, %v1673_v14  ;;  %v1702_v9 = vmul.f32 %v1695_v52, %v1674_v41  ;;  %v1703_v34 = vmul.f32 %v1695_v52, %v1675_v53  ;;  %s5699_s23 = sld [smem:[#allocation4 + $0x703]] }
 0x1a1   : > { %v5490_v57 = vadd.f32 %v1696_v2, %v5410_v48  ;;  %v5493_v63 = vadd.f32 %v1697_v10, %v5413_v28  ;;  %v5496_v60 = vadd.f32 %v1698_v32, %v5416_v38  ;;  %v5499_v46 = vadd.f32 %v1699_v12, %v5419_v62  ;;  %s5769_s26 = sld [smem:[#allocation4 + $0x780]] }
 0x1a2   : > { %v5502_v42 = vadd.f32 %v1700_v55, %v5422_v18  ;;  %v5505_v1 = vadd.f32 %v1701_v29, %v5425_v16  ;;  %v5508_v39 = vadd.f32 %v1702_v9, %v5428_v49  ;;  %v5511_v48 = vadd.f32 %v1703_v34, %v5431_v13 }
 0x1a3   : > { %v1714_v28 = vmul.f32 %v1713_v24, %v4611_v50  ;;  %v1715_v38 = vmul.f32 %v1713_v24, %v4613_v5  ;;  %v1716_v62 = vmul.f32 %v1713_v24, %v4615_v36  ;;  %v1717_v18 = vmul.f32 %v1713_v24, %v4617_v6 }
 0x1a4   : > { %v1718_v16 = vmul.f32 %v1713_v24, %v4619_v61  ;;  %v1719_v49 = vmul.f32 %v1713_v24, %v4621_v23  ;;  %v1720_v25 = vmul.f32 %v1713_v24, %v4623_v45  ;;  %v1721_v13 = vmul.f32 %v1713_v24, %v4625_v35 }
 0x1a5   : > { %v1724_v54 = vmul.f32 %v1723_v21, %v4647_v20  ;;  %v1725_v14 = vmul.f32 %v1723_v21, %v4649_v43  ;;  %v1726_v41 = vmul.f32 %v1723_v21, %v7390_v27  ;;  %v1727_v53 = vmul.f32 %v1723_v21, %v7391_v22 }
 0x1a6   : > { %v1728_v40 = vmul.f32 %v1723_v21, %v7392_v44  ;;  %v1729_v31 = vmul.f32 %v1723_v21, %v7393_v56  ;;  %v1730_v26 = vmul.f32 %v1723_v21, %v7394_v47  ;;  %v1731_v30 = vmul.f32 %v1723_v21, %v4663_v33 }
 0x1a7   : > { %v1732_v0 = vadd.f32 %v1724_v54, %v1714_v28  ;;  %v1733_v19 = vadd.f32 %v1725_v14, %v1715_v38  ;;  %v1734_v4 = vadd.f32 %v1726_v41, %v1716_v62  ;;  %v1735_v15 = vadd.f32 %v1727_v53, %v1717_v18 }
 0x1a8   : > { %v1736_v52 = vadd.f32 %v1728_v40, %v1718_v16  ;;  %v1737_v24 = vadd.f32 %v1729_v31, %v1719_v49  ;;  %v1738_v2 = vadd.f32 %v1730_v26, %v1720_v25  ;;  %v1739_v10 = vadd.f32 %v1731_v30, %v1721_v13 }
 0x1a9   : > { %v1742_v32 = vadd.f32 %v1741_v37, %v1732_v0  ;;  %v1743_v12 = vadd.f32 %v1741_v37, %v1733_v19  ;;  %v1744_v55 = vadd.f32 %v1741_v37, %v1734_v4  ;;  %v1745_v29 = vadd.f32 %v1741_v37, %v1735_v15 }
 0x1aa   : > { %v1746_v9 = vadd.f32 %v1741_v37, %v1736_v52  ;;  %v1747_v34 = vadd.f32 %v1741_v37, %v1737_v24  ;;  %v1748_v47 = vadd.f32 %v1741_v37, %v1738_v2  ;;  %v1749_v21 = vadd.f32 %v1741_v37, %v1739_v10 }
 0x1ab   : > { %v1750_v28 = vmax.f32 %v1742_v32, 0.0  ;;  %v1751_v38 = vmax.f32 %v1743_v12, 0.0  ;;  %v1752_v62 = vmax.f32 %v1744_v55, 0.0  ;;  %v1753_v18 = vmax.f32 %v1745_v29, 0.0 }
 0x1ac   : > { %v1754_v16 = vmax.f32 %v1746_v9, 0.0  ;;  %v1755_v49 = vmax.f32 %v1747_v34, 0.0  ;;  %v1756_v25 = vmax.f32 %v1748_v47, 0.0  ;;  %v1757_v13 = vmax.f32 %v1749_v21, 0.0 }
 0x1ad   : > { %v1759_v54 = vstv %s5519_s30  ;;  %v1777_v14 = vstv %s5525_s6  ;;  %v1795_v41 = vstv %s5513_s29  ;;  %v1805_v53 = vstv %s5531_s19  ;;  %s5771_s29 = sld [smem:[#allocation4 + $0x704]] }
 0x1ae   : > { %v1760_v40 = vmul.f32 %v1759_v54, %v1750_v28  ;;  %v1761_v31 = vmul.f32 %v1759_v54, %v1751_v38  ;;  %v1762_v26 = vmul.f32 %v1759_v54, %v1752_v62  ;;  %v1763_v30 = vmul.f32 %v1759_v54, %v1753_v18  ;;  %s5773_s30 = sld [smem:[#allocation4 + $0x781]] }
 0x1af   : > { %v1764_v0 = vmul.f32 %v1759_v54, %v1754_v16  ;;  %v1765_v19 = vmul.f32 %v1759_v54, %v1755_v49  ;;  %v1766_v4 = vmul.f32 %v1759_v54, %v1756_v25  ;;  %v1767_v37 = vmul.f32 %v1759_v54, %v1757_v13  ;;  %s5775_s6 = sld [smem:[#allocation4 + $0x782]] }
 0x1b0   : > { %v5542_v15 = vadd.f32 %v1760_v40, %v5462_v8  ;;  %v5545_v52 = vadd.f32 %v1761_v31, %v5465_v59  ;;  %v5548_v47 = vadd.f32 %v1762_v26, %v5468_v7  ;;  %v5551_v24 = vadd.f32 %v1763_v30, %v5471_v3  ;;  %s5829_s19 = sld [smem:[#allocation4 + $0x800]] }
 0x1b1   : > { %v5554_v2 = vadd.f32 %v1764_v0, %v5474_v51  ;;  %v5557_v10 = vadd.f32 %v1765_v19, %v5477_v17  ;;  %v5560_v32 = vadd.f32 %v1766_v4, %v5480_v58  ;;  %v5563_v8 = vadd.f32 %v1767_v37, %v5483_v11 }
 0x1b2   : > { %v1778_v59 = vmul.f32 %v1777_v14, %v1750_v28  ;;  %v1779_v7 = vmul.f32 %v1777_v14, %v1751_v38  ;;  %v1780_v12 = vmul.f32 %v1777_v14, %v1752_v62  ;;  %v1781_v55 = vmul.f32 %v1777_v14, %v1753_v18 }
 0x1b3   : > { %v1782_v3 = vmul.f32 %v1777_v14, %v1754_v16  ;;  %v1783_v51 = vmul.f32 %v1777_v14, %v1755_v49  ;;  %v1784_v29 = vmul.f32 %v1777_v14, %v1756_v25  ;;  %v1785_v9 = vmul.f32 %v1777_v14, %v1757_v13  ;;  %v7395_v14 = vld [vmem:[#allocation10_spill] sm:$0xff] }
 0x1b4   : > { %v5572_v17 = vadd.f32 %v1778_v59, %v5490_v57  ;;  %v5575_v58 = vadd.f32 %v1779_v7, %v5493_v63  ;;  %v5578_v11 = vadd.f32 %v1780_v12, %v5496_v60  ;;  %v5581_v34 = vadd.f32 %v1781_v55, %v5499_v46 }
 0x1b5   : > { %v5586_v21 = vadd.f32 %v1782_v3, %v5502_v42  ;;  %v5589_v28 = vadd.f32 %v1783_v51, %v5505_v1  ;;  %v5592_v57 = vadd.f32 %v1784_v29, %v5508_v39  ;;  %v5595_v63 = vadd.f32 %v1785_v9, %v5511_v48 }
 0x1b6   : > { %v1796_v60 = vmul.f32 %v1795_v41, %v4611_v50  ;;  %v1797_v38 = vmul.f32 %v1795_v41, %v4613_v5  ;;  %v1798_v46 = vmul.f32 %v1795_v41, %v4615_v36  ;;  %v1799_v62 = vmul.f32 %v1795_v41, %v4617_v6 }
 0x1b7   : > { %v1800_v42 = vmul.f32 %v1795_v41, %v4619_v61  ;;  %v1801_v18 = vmul.f32 %v1795_v41, %v4621_v23  ;;  %v1802_v1 = vmul.f32 %v1795_v41, %v4623_v45  ;;  %v1803_v39 = vmul.f32 %v1795_v41, %v4625_v35 }
 0x1b8   : > { %v1806_v16 = vmul.f32 %v1805_v53, %v4647_v20  ;;  %v1807_v48 = vmul.f32 %v1805_v53, %v4649_v43  ;;  %v1808_v49 = vmul.f32 %v1805_v53, %v7390_v27  ;;  %v1809_v25 = vmul.f32 %v1805_v53, %v7391_v22 }
 0x1b9   : > { %v1810_v13 = vmul.f32 %v1805_v53, %v7392_v44  ;;  %v1811_v54 = vmul.f32 %v1805_v53, %v7393_v56  ;;  %v1812_v40 = vmul.f32 %v1805_v53, %v7395_v14  ;;  %v1813_v41 = vmul.f32 %v1805_v53, %v4663_v33 }
 0x1ba   : > { %v1814_v31 = vadd.f32 %v1806_v16, %v1796_v60  ;;  %v1815_v26 = vadd.f32 %v1807_v48, %v1797_v38  ;;  %v1816_v30 = vadd.f32 %v1808_v49, %v1798_v46  ;;  %v1817_v0 = vadd.f32 %v1809_v25, %v1799_v62 }
 0x1bb   : > { %v1818_v19 = vadd.f32 %v1810_v13, %v1800_v42  ;;  %v1819_v4 = vadd.f32 %v1811_v54, %v1801_v18  ;;  %v1820_v37 = vadd.f32 %v1812_v40, %v1802_v1  ;;  %v1821_v59 = vadd.f32 %v1813_v41, %v1803_v39 }
 0x1bc   : > { %v1823_v7 = vstv %s5567_s8  ;;  %v1841_v12 = vstv %s5569_s9  ;;  %v1859_v55 = vstv %s5583_s10  ;;  %v1877_v3 = vstv %s5565_s7  ;;  %s5835_s7 = sld [smem:[#allocation4 + $0x783]] }
 0x1bd   : > { %v1824_v51 = vadd.f32 %v1823_v7, %v1814_v31  ;;  %v1825_v29 = vadd.f32 %v1823_v7, %v1815_v26  ;;  %v1826_v9 = vadd.f32 %v1823_v7, %v1816_v30  ;;  %v1827_v56 = vadd.f32 %v1823_v7, %v1817_v0  ;;  %s5841_s8 = sld [smem:[#allocation4 + $0x784]] }
 0x1be   : > { %v1828_v44 = vadd.f32 %v1823_v7, %v1818_v19  ;;  %v1829_v14 = vadd.f32 %v1823_v7, %v1819_v4  ;;  %v1830_v22 = vadd.f32 %v1823_v7, %v1820_v37  ;;  %v1831_v53 = vadd.f32 %v1823_v7, %v1821_v59  ;;  %s5847_s9 = sld [smem:[#allocation4 + $0x801]] }
 0x1bf   : > { %v1832_v60 = vmax.f32 %v1824_v51, 0.0  ;;  %v1833_v38 = vmax.f32 %v1825_v29, 0.0  ;;  %v1834_v46 = vmax.f32 %v1826_v9, 0.0  ;;  %v1835_v62 = vmax.f32 %v1827_v56, 0.0  ;;  %s5881_s10 = sld [smem:[#allocation4 + $0x880]] }
 0x1c0   : > { %v1836_v42 = vmax.f32 %v1828_v44, 0.0  ;;  %v1837_v18 = vmax.f32 %v1829_v14, 0.0  ;;  %v1838_v1 = vmax.f32 %v1830_v22, 0.0  ;;  %v1839_v39 = vmax.f32 %v1831_v53, 0.0 }
 0x1c1   : > { %v1842_v16 = vmul.f32 %v1841_v12, %v1832_v60  ;;  %v1843_v48 = vmul.f32 %v1841_v12, %v1833_v38  ;;  %v1844_v49 = vmul.f32 %v1841_v12, %v1834_v46  ;;  %v1845_v25 = vmul.f32 %v1841_v12, %v1835_v62 }
 0x1c2   : > { %v1846_v13 = vmul.f32 %v1841_v12, %v1836_v42  ;;  %v1847_v54 = vmul.f32 %v1841_v12, %v1837_v18  ;;  %v1848_v40 = vmul.f32 %v1841_v12, %v1838_v1  ;;  %v1849_v41 = vmul.f32 %v1841_v12, %v1839_v39 }
 0x1c3   : > { %v5624_v56 = vadd.f32 %v1842_v16, %v5542_v15  ;;  %v5627_v22 = vadd.f32 %v1843_v48, %v5545_v52  ;;  %v5630_v44 = vadd.f32 %v1844_v49, %v5548_v47  ;;  %v5633_v14 = vadd.f32 %v1845_v25, %v5551_v24  ;;  %v7398_v16 = vld [vmem:[#allocation9_spill] sm:$0xff]  ;;  %v7399_v49 = vld [vmem:[#allocation10_spill] sm:$0xff] }
 0x1c4   : > { %v5638_v31 = vadd.f32 %v1846_v13, %v5554_v2  ;;  %v5641_v26 = vadd.f32 %v1847_v54, %v5557_v10  ;;  %v5644_v15 = vadd.f32 %v1848_v40, %v5560_v32  ;;  %v5647_v52 = vadd.f32 %v1849_v41, %v5563_v8 }
 0x1c5   : > { %v1860_v30 = vmul.f32 %v1859_v55, %v1832_v60  ;;  %v1861_v47 = vmul.f32 %v1859_v55, %v1833_v38  ;;  %v1862_v0 = vmul.f32 %v1859_v55, %v1834_v46  ;;  %v1863_v19 = vmul.f32 %v1859_v55, %v1835_v62 }
 0x1c6   : > { %v1864_v24 = vmul.f32 %v1859_v55, %v1836_v42  ;;  %v1865_v4 = vmul.f32 %v1859_v55, %v1837_v18  ;;  %v1866_v37 = vmul.f32 %v1859_v55, %v1838_v1  ;;  %v1867_v59 = vmul.f32 %v1859_v55, %v1839_v39  ;;  %v7396_v42 = vld [vmem:[#allocation18_spill] sm:$0xff]  ;;  %v7397_v1 = vld [vmem:[#allocation8_spill] sm:$0xff] }
 0x1c7   : > { %v5650_v2 = vadd.f32 %v1860_v30, %v5572_v17  ;;  %v5653_v10 = vadd.f32 %v1861_v47, %v5575_v58  ;;  %v5656_v32 = vadd.f32 %v1862_v0, %v5578_v11  ;;  %v5659_v8 = vadd.f32 %v1863_v19, %v5581_v34 }
 0x1c8   : > { %v5662_v7 = vadd.f32 %v1864_v24, %v5586_v21  ;;  %v5665_v12 = vadd.f32 %v1865_v4, %v5589_v28  ;;  %v5668_v17 = vadd.f32 %v1866_v37, %v5592_v57  ;;  %v5671_v58 = vadd.f32 %v1867_v59, %v5595_v63 }
 0x1c9   : > { %v1878_v11 = vmul.f32 %v1877_v3, %v4611_v50  ;;  %v1879_v55 = vmul.f32 %v1877_v3, %v4613_v5  ;;  %v1880_v34 = vmul.f32 %v1877_v3, %v4615_v36  ;;  %v1881_v51 = vmul.f32 %v1877_v3, %v4617_v6 }
 0x1ca   : > { %v1882_v21 = vmul.f32 %v1877_v3, %v4619_v61  ;;  %v1883_v29 = vmul.f32 %v1877_v3, %v4621_v23  ;;  %v1884_v28 = vmul.f32 %v1877_v3, %v4623_v45  ;;  %v1885_v57 = vmul.f32 %v1877_v3, %v4625_v35 }
 0x1cb   : > { %v1887_v9 = vstv %s5617_s11  ;;  %v1905_v53 = vstv %s5619_s12  ;;  %v1923_v63 = vstv %s5621_s13  ;;  %v1941_v60 = vstv %s5635_s14  ;;  %s5883_s11 = sld [smem:[#allocation4 + $0x802]] }
 0x1cc   : > { %v1888_v38 = vmul.f32 %v1887_v9, %v4647_v20  ;;  %v1889_v46 = vmul.f32 %v1887_v9, %v4649_v43  ;;  %v1890_v62 = vmul.f32 %v1887_v9, %v7390_v27  ;;  %v1891_v18 = vmul.f32 %v1887_v9, %v7396_v42  ;;  %s5885_s12 = sld [smem:[#allocation4 + $0x803]] }
 0x1cd   : > { %v1892_v39 = vmul.f32 %v1887_v9, %v7397_v1  ;;  %v1893_v48 = vmul.f32 %v1887_v9, %v7398_v16  ;;  %v1894_v25 = vmul.f32 %v1887_v9, %v7399_v49  ;;  %v1895_v3 = vmul.f32 %v1887_v9, %v4663_v33  ;;  %s5899_s13 = sld [smem:[#allocation4 + $0x804]] }
 0x1ce   : > { %v1896_v13 = vadd.f32 %v1888_v38, %v1878_v11  ;;  %v1897_v54 = vadd.f32 %v1889_v46, %v1879_v55  ;;  %v1898_v40 = vadd.f32 %v1890_v62, %v1880_v34  ;;  %v1899_v41 = vadd.f32 %v1891_v18, %v1881_v51  ;;  %s5933_s14 = sld [smem:[#allocation4 + $0x881]] }
 0x1cf   : > { %v1900_v30 = vadd.f32 %v1892_v39, %v1882_v21  ;;  %v1901_v47 = vadd.f32 %v1893_v48, %v1883_v29  ;;  %v1902_v0 = vadd.f32 %v1894_v25, %v1884_v28  ;;  %v1903_v19 = vadd.f32 %v1895_v3, %v1885_v57 }
 0x1d0   : > { %v1906_v24 = vadd.f32 %v1905_v53, %v1896_v13  ;;  %v1907_v4 = vadd.f32 %v1905_v53, %v1897_v54  ;;  %v1908_v37 = vadd.f32 %v1905_v53, %v1898_v40  ;;  %v1909_v59 = vadd.f32 %v1905_v53, %v1899_v41 }
 0x1d1   : > { %v1910_v42 = vadd.f32 %v1905_v53, %v1900_v30  ;;  %v1911_v1 = vadd.f32 %v1905_v53, %v1901_v47  ;;  %v1912_v27 = vadd.f32 %v1905_v53, %v1902_v0  ;;  %v1913_v16 = vadd.f32 %v1905_v53, %v1903_v19 }
 0x1d2   : > { %v1914_v49 = vmax.f32 %v1906_v24, 0.0  ;;  %v1915_v9 = vmax.f32 %v1907_v4, 0.0  ;;  %v1916_v11 = vmax.f32 %v1908_v37, 0.0  ;;  %v1917_v55 = vmax.f32 %v1909_v59, 0.0 }
 0x1d3   : > { %v1918_v34 = vmax.f32 %v1910_v42, 0.0  ;;  %v1919_v51 = vmax.f32 %v1911_v1, 0.0  ;;  %v1920_v21 = vmax.f32 %v1912_v27, 0.0  ;;  %v1921_v29 = vmax.f32 %v1913_v16, 0.0 }
 0x1d4   : > { %v1924_v28 = vmul.f32 %v1923_v63, %v1914_v49  ;;  %v1925_v57 = vmul.f32 %v1923_v63, %v1915_v9  ;;  %v1926_v38 = vmul.f32 %v1923_v63, %v1916_v11  ;;  %v1927_v46 = vmul.f32 %v1923_v63, %v1917_v55 }
 0x1d5   : > { %v1928_v53 = vmul.f32 %v1923_v63, %v1918_v34  ;;  %v1929_v62 = vmul.f32 %v1923_v63, %v1919_v51  ;;  %v1930_v18 = vmul.f32 %v1923_v63, %v1920_v21  ;;  %v1931_v39 = vmul.f32 %v1923_v63, %v1921_v29 }
 0x1d6   : > { %v5702_v48 = vadd.f32 %v1924_v28, %v5624_v56  ;;  %v5705_v42 = vadd.f32 %v1925_v57, %v5627_v22  ;;  %v5708_v27 = vadd.f32 %v1926_v38, %v5630_v44  ;;  %v5711_v1 = vadd.f32 %v1927_v46, %v5633_v14  ;;  %v7404_v57 = vld [vmem:[#allocation10_spill] sm:$0xff] }
 0x1d7   : > { %v5714_v16 = vadd.f32 %v1928_v53, %v5638_v31  ;;  %v5717_v25 = vadd.f32 %v1929_v62, %v5641_v26  ;;  %v5720_v63 = vadd.f32 %v1930_v18, %v5644_v15  ;;  %v5723_v56 = vadd.f32 %v1931_v39, %v5647_v52 }
 0x1d8   : > { %v1942_v22 = vmul.f32 %v1941_v60, %v1914_v49  ;;  %v1943_v3 = vmul.f32 %v1941_v60, %v1915_v9  ;;  %v1944_v44 = vmul.f32 %v1941_v60, %v1916_v11  ;;  %v1945_v14 = vmul.f32 %v1941_v60, %v1917_v55  ;;  %v7400_v9 = vld [vmem:[#allocation17_spill] sm:$0xff]  ;;  %v7401_v55 = vld [vmem:[#allocation18_spill] sm:$0xff] }
 0x1d9   : > { %v1946_v13 = vmul.f32 %v1941_v60, %v1918_v34  ;;  %v1947_v31 = vmul.f32 %v1941_v60, %v1919_v51  ;;  %v1948_v54 = vmul.f32 %v1941_v60, %v1920_v21  ;;  %v1949_v40 = vmul.f32 %v1941_v60, %v1921_v29  ;;  %v7402_v51 = vld [vmem:[#allocation8_spill] sm:$0xff]  ;;  %v7403_v29 = vld [vmem:[#allocation9_spill] sm:$0xff] }
 0x1da   : > { %v5726_v26 = vadd.f32 %v1942_v22, %v5650_v2  ;;  %v5729_v15 = vadd.f32 %v1943_v3, %v5653_v10  ;;  %v5732_v52 = vadd.f32 %v1944_v44, %v5656_v32  ;;  %v5735_v49 = vadd.f32 %v1945_v14, %v5659_v8 }
 0x1db   : > { %v5738_v41 = vadd.f32 %v1946_v13, %v5662_v7  ;;  %v5741_v30 = vadd.f32 %v1947_v31, %v5665_v12  ;;  %v5744_v60 = vadd.f32 %v1948_v54, %v5668_v17  ;;  %v5747_v2 = vadd.f32 %v1949_v40, %v5671_v58 }
 0x1dc   : > { %v1959_v10 = vstv %s5693_s15  ;;  %v1969_v47 = vstv %s5695_s16  ;;  %v1987_v0 = vstv %s5697_s17  ;;  %v2005_v32 = vstv %s5699_s23  ;;  %s5935_s15 = sld [smem:[#allocation4 + $0x882]] }
 0x1dd   : > { %v1960_v19 = vmul.f32 %v1959_v10, %v4611_v50  ;;  %v1961_v8 = vmul.f32 %v1959_v10, %v4613_v5  ;;  %v1962_v7 = vmul.f32 %v1959_v10, %v4615_v36  ;;  %v1963_v24 = vmul.f32 %v1959_v10, %v4617_v6  ;;  %s5937_s16 = sld [smem:[#allocation4 + $0x883]] }
 0x1de   : > { %v1964_v12 = vmul.f32 %v1959_v10, %v4619_v61  ;;  %v1965_v17 = vmul.f32 %v1959_v10, %v4621_v23  ;;  %v1966_v4 = vmul.f32 %v1959_v10, %v4623_v45  ;;  %v1967_v58 = vmul.f32 %v1959_v10, %v4625_v35  ;;  %s5951_s17 = sld [smem:[#allocation4 + $0x884]] }
 0x1df   : > { %v1970_v37 = vmul.f32 %v1969_v47, %v4647_v20  ;;  %v1971_v59 = vmul.f32 %v1969_v47, %v4649_v43  ;;  %v1972_v11 = vmul.f32 %v1969_v47, %v7400_v9  ;;  %v1973_v34 = vmul.f32 %v1969_v47, %v7401_v55  ;;  %s6009_s23 = sld [smem:[#allocation4 + $0x900]] }
 0x1e0   : > { %v1974_v21 = vmul.f32 %v1969_v47, %v7402_v51  ;;  %v1975_v28 = vmul.f32 %v1969_v47, %v7403_v29  ;;  %v1976_v38 = vmul.f32 %v1969_v47, %v7404_v57  ;;  %v1977_v46 = vmul.f32 %v1969_v47, %v4663_v33 }
 0x1e1   : > { %v1978_v53 = vadd.f32 %v1970_v37, %v1960_v19  ;;  %v1979_v62 = vadd.f32 %v1971_v59, %v1961_v8  ;;  %v1980_v18 = vadd.f32 %v1972_v11, %v1962_v7  ;;  %v1981_v39 = vadd.f32 %v1973_v34, %v1963_v24 }
 0x1e2   : > { %v1982_v22 = vadd.f32 %v1974_v21, %v1964_v12  ;;  %v1983_v3 = vadd.f32 %v1975_v28, %v1965_v17  ;;  %v1984_v44 = vadd.f32 %v1976_v38, %v1966_v4  ;;  %v1985_v14 = vadd.f32 %v1977_v46, %v1967_v58 }
 0x1e3   : > { %v1988_v13 = vadd.f32 %v1987_v0, %v1978_v53  ;;  %v1989_v31 = vadd.f32 %v1987_v0, %v1979_v62  ;;  %v1990_v54 = vadd.f32 %v1987_v0, %v1980_v18  ;;  %v1991_v40 = vadd.f32 %v1987_v0, %v1981_v39 }
 0x1e4   : > { %v1992_v10 = vadd.f32 %v1987_v0, %v1982_v22  ;;  %v1993_v47 = vadd.f32 %v1987_v0, %v1983_v3  ;;  %v1994_v19 = vadd.f32 %v1987_v0, %v1984_v44  ;;  %v1995_v8 = vadd.f32 %v1987_v0, %v1985_v14 }
 0x1e5   : > { %v1996_v7 = vmax.f32 %v1988_v13, 0.0  ;;  %v1997_v24 = vmax.f32 %v1989_v31, 0.0  ;;  %v1998_v37 = vmax.f32 %v1990_v54, 0.0  ;;  %v1999_v59 = vmax.f32 %v1991_v40, 0.0 }
 0x1e6   : > { %v2000_v12 = vmax.f32 %v1992_v10, 0.0  ;;  %v2001_v17 = vmax.f32 %v1993_v47, 0.0  ;;  %v2002_v4 = vmax.f32 %v1994_v19, 0.0  ;;  %v2003_v58 = vmax.f32 %v1995_v8, 0.0 }
 0x1e7   : > { %v2006_v11 = vmul.f32 %v2005_v32, %v1996_v7  ;;  %v2007_v34 = vmul.f32 %v2005_v32, %v1997_v24  ;;  %v2008_v21 = vmul.f32 %v2005_v32, %v1998_v37  ;;  %v2009_v28 = vmul.f32 %v2005_v32, %v1999_v59 }
 0x1e8   : > { %v2010_v38 = vmul.f32 %v2005_v32, %v2000_v12  ;;  %v2011_v46 = vmul.f32 %v2005_v32, %v2001_v17  ;;  %v2012_v53 = vmul.f32 %v2005_v32, %v2002_v4  ;;  %v2013_v0 = vmul.f32 %v2005_v32, %v2003_v58 }
 0x1e9   : > { %v5778_v62 = vadd.f32 %v2006_v11, %v5702_v48  ;;  %v5781_v18 = vadd.f32 %v2007_v34, %v5705_v42  ;;  %v5784_v39 = vadd.f32 %v2008_v21, %v5708_v27  ;;  %v5787_v22 = vadd.f32 %v2009_v28, %v5711_v1 }
 0x1ea   : > { %v5790_v3 = vadd.f32 %v2010_v38, %v5714_v16  ;;  %v5793_v44 = vadd.f32 %v2011_v46, %v5717_v25  ;;  %v5796_v32 = vadd.f32 %v2012_v53, %v5720_v63  ;;  %v5799_v48 = vadd.f32 %v2013_v0, %v5723_v56 }
 0x1eb   : > { %v2023_v42 = vstv %s5771_s29  ;;  %v2041_v14 = vstv %s5769_s26  ;;  %v2051_v13 = vstv %s5773_s30  ;;  %v2069_v27 = vstv %s5775_s6  ;;  %s6011_s26 = sld [smem:[#allocation4 + $0x901]] }
 0x1ec   : > { %v2024_v31 = vmul.f32 %v2023_v42, %v1996_v7  ;;  %v2025_v54 = vmul.f32 %v2023_v42, %v1997_v24  ;;  %v2026_v1 = vmul.f32 %v2023_v42, %v1998_v37  ;;  %v2027_v40 = vmul.f32 %v2023_v42, %v1999_v59  ;;  %s6013_s29 = sld [smem:[#allocation4 + $0x902]] }
 0x1ed   : > { %v2028_v10 = vmul.f32 %v2023_v42, %v2000_v12  ;;  %v2029_v16 = vmul.f32 %v2023_v42, %v2001_v17  ;;  %v2030_v47 = vmul.f32 %v2023_v42, %v2002_v4  ;;  %v2031_v19 = vmul.f32 %v2023_v42, %v2003_v58  ;;  %s6015_s30 = sld [smem:[#allocation4 + $0x903]] }
 0x1ee   : > { %v5806_v25 = vadd.f32 %v2024_v31, %v5726_v26  ;;  %v5809_v63 = vadd.f32 %v2025_v54, %v5729_v15  ;;  %v5812_v56 = vadd.f32 %v2026_v1, %v5732_v52  ;;  %v5815_v8 = vadd.f32 %v2027_v40, %v5735_v49  ;;  %s6085_s6 = sld [smem:[#allocation4 + $0x980]] }
 0x1ef   : > { %v5818_v7 = vadd.f32 %v2028_v10, %v5738_v41  ;;  %v5821_v24 = vadd.f32 %v2029_v16, %v5741_v30  ;;  %v5824_v37 = vadd.f32 %v2030_v47, %v5744_v60  ;;  %v5827_v26 = vadd.f32 %v2031_v19, %v5747_v2 }
 0x1f0   : > { %v2042_v15 = vmul.f32 %v2041_v14, %v4611_v50  ;;  %v2043_v52 = vmul.f32 %v2041_v14, %v4613_v5  ;;  %v2044_v49 = vmul.f32 %v2041_v14, %v4615_v36  ;;  %v2045_v41 = vmul.f32 %v2041_v14, %v4617_v6 }
 0x1f1   : > { %v2046_v30 = vmul.f32 %v2041_v14, %v4619_v61  ;;  %v2047_v60 = vmul.f32 %v2041_v14, %v4621_v23  ;;  %v2048_v59 = vmul.f32 %v2041_v14, %v4623_v45  ;;  %v2049_v2 = vmul.f32 %v2041_v14, %v4625_v35 }
 0x1f2   : > { %v2052_v12 = vmul.f32 %v2051_v13, %v4647_v20  ;;  %v2053_v17 = vmul.f32 %v2051_v13, %v4649_v43  ;;  %v2054_v4 = vmul.f32 %v2051_v13, %v7400_v9  ;;  %v2055_v58 = vmul.f32 %v2051_v13, %v7401_v55 }
 0x1f3   : > { %v2056_v11 = vmul.f32 %v2051_v13, %v7402_v51  ;;  %v2057_v34 = vmul.f32 %v2051_v13, %v7403_v29  ;;  %v2058_v21 = vmul.f32 %v2051_v13, %v7404_v57  ;;  %v2059_v28 = vmul.f32 %v2051_v13, %v4663_v33 }
 0x1f4   : > { %v2060_v38 = vadd.f32 %v2052_v12, %v2042_v15  ;;  %v2061_v46 = vadd.f32 %v2053_v17, %v2043_v52  ;;  %v2062_v53 = vadd.f32 %v2054_v4, %v2044_v49  ;;  %v2063_v0 = vadd.f32 %v2055_v58, %v2045_v41 }
 0x1f5   : > { %v2064_v42 = vadd.f32 %v2056_v11, %v2046_v30  ;;  %v2065_v14 = vadd.f32 %v2057_v34, %v2047_v60  ;;  %v2066_v31 = vadd.f32 %v2058_v21, %v2048_v59  ;;  %v2067_v54 = vadd.f32 %v2059_v28, %v2049_v2 }
 0x1f6   : > { %v2070_v1 = vadd.f32 %v2069_v27, %v2060_v38  ;;  %v2071_v40 = vadd.f32 %v2069_v27, %v2061_v46  ;;  %v2072_v10 = vadd.f32 %v2069_v27, %v2062_v53  ;;  %v2073_v16 = vadd.f32 %v2069_v27, %v2063_v0 }
 0x1f7   : > { %v2074_v47 = vadd.f32 %v2069_v27, %v2064_v42  ;;  %v2075_v19 = vadd.f32 %v2069_v27, %v2065_v14  ;;  %v2076_v57 = vadd.f32 %v2069_v27, %v2066_v31  ;;  %v2077_v13 = vadd.f32 %v2069_v27, %v2067_v54 }
 0x1f8   : > { %v2078_v15 = vmax.f32 %v2070_v1, 0.0  ;;  %v2079_v52 = vmax.f32 %v2071_v40, 0.0  ;;  %v2080_v49 = vmax.f32 %v2072_v10, 0.0  ;;  %v2081_v41 = vmax.f32 %v2073_v16, 0.0 }
 0x1f9   : > { %v2082_v30 = vmax.f32 %v2074_v47, 0.0  ;;  %v2083_v60 = vmax.f32 %v2075_v19, 0.0  ;;  %v2084_v59 = vmax.f32 %v2076_v57, 0.0  ;;  %v2085_v2 = vmax.f32 %v2077_v13, 0.0 }
 0x1fa   : > { %v2087_v12 = vstv %s5835_s7  ;;  %v2105_v17 = vstv %s5841_s8  ;;  %v2123_v4 = vstv %s5829_s19  ;;  %v2133_v58 = vstv %s5847_s9  ;;  %s6087_s19 = sld [smem:[#allocation4 + $0x904]] }
 0x1fb   : > { %v2088_v11 = vmul.f32 %v2087_v12, %v2078_v15  ;;  %v2089_v34 = vmul.f32 %v2087_v12, %v2079_v52  ;;  %v2090_v21 = vmul.f32 %v2087_v12, %v2080_v49  ;;  %v2091_v28 = vmul.f32 %v2087_v12, %v2081_v41  ;;  %s6089_s7 = sld [smem:[#allocation4 + $0x981]] }
 0x1fc   : > { %v2092_v38 = vmul.f32 %v2087_v12, %v2082_v30  ;;  %v2093_v46 = vmul.f32 %v2087_v12, %v2083_v60  ;;  %v2094_v53 = vmul.f32 %v2087_v12, %v2084_v59  ;;  %v2095_v27 = vmul.f32 %v2087_v12, %v2085_v2  ;;  %s6091_s8 = sld [smem:[#allocation4 + $0x982]] }
 0x1fd   : > { %v5858_v0 = vadd.f32 %v2088_v11, %v5778_v62  ;;  %v5861_v42 = vadd.f32 %v2089_v34, %v5781_v18  ;;  %v5864_v57 = vadd.f32 %v2090_v21, %v5784_v39  ;;  %v5867_v14 = vadd.f32 %v2091_v28, %v5787_v22  ;;  %s6145_s9 = sld [smem:[#allocation4 + $0xa00]] }
 0x1fe   : > { %v5870_v31 = vadd.f32 %v2092_v38, %v5790_v3  ;;  %v5873_v54 = vadd.f32 %v2093_v46, %v5793_v44  ;;  %v5876_v1 = vadd.f32 %v2094_v53, %v5796_v32  ;;  %v5879_v62 = vadd.f32 %v2095_v27, %v5799_v48 }
 0x1ff   : > { %v2106_v18 = vmul.f32 %v2105_v17, %v2078_v15  ;;  %v2107_v39 = vmul.f32 %v2105_v17, %v2079_v52  ;;  %v2108_v40 = vmul.f32 %v2105_v17, %v2080_v49  ;;  %v2109_v10 = vmul.f32 %v2105_v17, %v2081_v41 }
 0x200   : > { %v2110_v22 = vmul.f32 %v2105_v17, %v2082_v30  ;;  %v2111_v3 = vmul.f32 %v2105_v17, %v2083_v60  ;;  %v2112_v16 = vmul.f32 %v2105_v17, %v2084_v59  ;;  %v2113_v47 = vmul.f32 %v2105_v17, %v2085_v2  ;;  %v7405_v17 = vld [vmem:[#allocation10_spill] sm:$0xff] }
 0x201   : > { %v5888_v44 = vadd.f32 %v2106_v18, %v5806_v25  ;;  %v5891_v32 = vadd.f32 %v2107_v39, %v5809_v63  ;;  %v5894_v48 = vadd.f32 %v2108_v40, %v5812_v56  ;;  %v5897_v19 = vadd.f32 %v2109_v10, %v5815_v8 }
 0x202   : > { %v5902_v13 = vadd.f32 %v2110_v22, %v5818_v7  ;;  %v5905_v15 = vadd.f32 %v2111_v3, %v5821_v24  ;;  %v5908_v25 = vadd.f32 %v2112_v16, %v5824_v37  ;;  %v5911_v63 = vadd.f32 %v2113_v47, %v5827_v26 }
 0x203   : > { %v2124_v56 = vmul.f32 %v2123_v4, %v4611_v50  ;;  %v2125_v52 = vmul.f32 %v2123_v4, %v4613_v5  ;;  %v2126_v8 = vmul.f32 %v2123_v4, %v4615_v36  ;;  %v2127_v49 = vmul.f32 %v2123_v4, %v4617_v6 }
 0x204   : > { %v2128_v7 = vmul.f32 %v2123_v4, %v4619_v61  ;;  %v2129_v41 = vmul.f32 %v2123_v4, %v4621_v23  ;;  %v2130_v24 = vmul.f32 %v2123_v4, %v4623_v45  ;;  %v2131_v37 = vmul.f32 %v2123_v4, %v4625_v35 }
 0x205   : > { %v2134_v30 = vmul.f32 %v2133_v58, %v4647_v20  ;;  %v2135_v26 = vmul.f32 %v2133_v58, %v4649_v43  ;;  %v2136_v60 = vmul.f32 %v2133_v58, %v7400_v9  ;;  %v2137_v59 = vmul.f32 %v2133_v58, %v7401_v55 }
 0x206   : > { %v2138_v2 = vmul.f32 %v2133_v58, %v7402_v51  ;;  %v2139_v12 = vmul.f32 %v2133_v58, %v7403_v29  ;;  %v2140_v11 = vmul.f32 %v2133_v58, %v7405_v17  ;;  %v2141_v4 = vmul.f32 %v2133_v58, %v4663_v33 }
 0x207   : > { %v2142_v34 = vadd.f32 %v2134_v30, %v2124_v56  ;;  %v2143_v21 = vadd.f32 %v2135_v26, %v2125_v52  ;;  %v2144_v28 = vadd.f32 %v2136_v60, %v2126_v8  ;;  %v2145_v38 = vadd.f32 %v2137_v59, %v2127_v49 }
 0x208   : > { %v2146_v46 = vadd.f32 %v2138_v2, %v2128_v7  ;;  %v2147_v53 = vadd.f32 %v2139_v12, %v2129_v41  ;;  %v2148_v27 = vadd.f32 %v2140_v11, %v2130_v24  ;;  %v2149_v18 = vadd.f32 %v2141_v4, %v2131_v37 }
 0x209   : > { %v2151_v39 = vstv %s5883_s11  ;;  %v2169_v40 = vstv %s5885_s12  ;;  %v2187_v10 = vstv %s5899_s13  ;;  %v2205_v22 = vstv %s5881_s10  ;;  %s6151_s10 = sld [smem:[#allocation4 + $0x983]] }
 0x20a   : > { %v2152_v3 = vadd.f32 %v2151_v39, %v2142_v34  ;;  %v2153_v16 = vadd.f32 %v2151_v39, %v2143_v21  ;;  %v2154_v47 = vadd.f32 %v2151_v39, %v2144_v28  ;;  %v2155_v29 = vadd.f32 %v2151_v39, %v2145_v38  ;;  %s6157_s11 = sld [smem:[#allocation4 + $0x984]] }
 0x20b   : > { %v2156_v51 = vadd.f32 %v2151_v39, %v2146_v46  ;;  %v2157_v17 = vadd.f32 %v2151_v39, %v2147_v53  ;;  %v2158_v55 = vadd.f32 %v2151_v39, %v2148_v27  ;;  %v2159_v58 = vadd.f32 %v2151_v39, %v2149_v18  ;;  %s6163_s12 = sld [smem:[#allocation4 + $0xa01]] }
 0x20c   : > { %v2160_v56 = vmax.f32 %v2152_v3, 0.0  ;;  %v2161_v52 = vmax.f32 %v2153_v16, 0.0  ;;  %v2162_v8 = vmax.f32 %v2154_v47, 0.0  ;;  %v2163_v49 = vmax.f32 %v2155_v29, 0.0  ;;  %s6197_s13 = sld [smem:[#allocation4 + $0xa80]] }
 0x20d   : > { %v2164_v7 = vmax.f32 %v2156_v51, 0.0  ;;  %v2165_v41 = vmax.f32 %v2157_v17, 0.0  ;;  %v2166_v24 = vmax.f32 %v2158_v55, 0.0  ;;  %v2167_v37 = vmax.f32 %v2159_v58, 0.0 }
 0x20e   : > { %v2170_v30 = vmul.f32 %v2169_v40, %v2160_v56  ;;  %v2171_v26 = vmul.f32 %v2169_v40, %v2161_v52  ;;  %v2172_v60 = vmul.f32 %v2169_v40, %v2162_v8  ;;  %v2173_v59 = vmul.f32 %v2169_v40, %v2163_v49 }
 0x20f   : > { %v2174_v2 = vmul.f32 %v2169_v40, %v2164_v7  ;;  %v2175_v12 = vmul.f32 %v2169_v40, %v2165_v41  ;;  %v2176_v11 = vmul.f32 %v2169_v40, %v2166_v24  ;;  %v2177_v4 = vmul.f32 %v2169_v40, %v2167_v37 }
 0x210   : > { %v5940_v29 = vadd.f32 %v2170_v30, %v5858_v0  ;;  %v5943_v55 = vadd.f32 %v2171_v26, %v5861_v42  ;;  %v5946_v51 = vadd.f32 %v2172_v60, %v5864_v57  ;;  %v5949_v17 = vadd.f32 %v2173_v59, %v5867_v14  ;;  %v7408_v30 = vld [vmem:[#allocation9_spill] sm:$0xff]  ;;  %v7409_v60 = vld [vmem:[#allocation10_spill] sm:$0xff] }
 0x211   : > { %v5954_v34 = vadd.f32 %v2174_v2, %v5870_v31  ;;  %v5957_v21 = vadd.f32 %v2175_v12, %v5873_v54  ;;  %v5960_v0 = vadd.f32 %v2176_v11, %v5876_v1  ;;  %v5963_v42 = vadd.f32 %v2177_v4, %v5879_v62 }
 0x212   : > { %v2188_v28 = vmul.f32 %v2187_v10, %v2160_v56  ;;  %v2189_v57 = vmul.f32 %v2187_v10, %v2161_v52  ;;  %v2190_v38 = vmul.f32 %v2187_v10, %v2162_v8  ;;  %v2191_v46 = vmul.f32 %v2187_v10, %v2163_v49 }
 0x213   : > { %v2192_v14 = vmul.f32 %v2187_v10, %v2164_v7  ;;  %v2193_v53 = vmul.f32 %v2187_v10, %v2165_v41  ;;  %v2194_v27 = vmul.f32 %v2187_v10, %v2166_v24  ;;  %v2195_v18 = vmul.f32 %v2187_v10, %v2167_v37  ;;  %v7406_v7 = vld [vmem:[#allocation18_spill] sm:$0xff]  ;;  %v7407_v24 = vld [vmem:[#allocation8_spill] sm:$0xff] }
 0x214   : > { %v5966_v31 = vadd.f32 %v2188_v28, %v5888_v44  ;;  %v5969_v54 = vadd.f32 %v2189_v57, %v5891_v32  ;;  %v5972_v1 = vadd.f32 %v2190_v38, %v5894_v48  ;;  %v5975_v62 = vadd.f32 %v2191_v46, %v5897_v19 }
 0x215   : > { %v5978_v39 = vadd.f32 %v2192_v14, %v5902_v13  ;;  %v5981_v40 = vadd.f32 %v2193_v53, %v5905_v15  ;;  %v5984_v44 = vadd.f32 %v2194_v27, %v5908_v25  ;;  %v5987_v32 = vadd.f32 %v2195_v18, %v5911_v63 }
 0x216   : > { %v2206_v48 = vmul.f32 %v2205_v22, %v4611_v50  ;;  %v2207_v10 = vmul.f32 %v2205_v22, %v4613_v5  ;;  %v2208_v19 = vmul.f32 %v2205_v22, %v4615_v36  ;;  %v2209_v3 = vmul.f32 %v2205_v22, %v4617_v6 }
 0x217   : > { %v2210_v13 = vmul.f32 %v2205_v22, %v4619_v61  ;;  %v2211_v16 = vmul.f32 %v2205_v22, %v4621_v23  ;;  %v2212_v15 = vmul.f32 %v2205_v22, %v4623_v45  ;;  %v2213_v25 = vmul.f32 %v2205_v22, %v4625_v35 }
 0x218   : > { %v2215_v47 = vstv %s5933_s14  ;;  %v2233_v58 = vstv %s5935_s15  ;;  %v2251_v63 = vstv %s5937_s16  ;;  %v2269_v56 = vstv %s5951_s17  ;;  %s6199_s14 = sld [smem:[#allocation4 + $0xa02]] }
 0x219   : > { %v2216_v52 = vmul.f32 %v2215_v47, %v4647_v20  ;;  %v2217_v8 = vmul.f32 %v2215_v47, %v4649_v43  ;;  %v2218_v49 = vmul.f32 %v2215_v47, %v7400_v9  ;;  %v2219_v41 = vmul.f32 %v2215_v47, %v7406_v7  ;;  %s6201_s15 = sld [smem:[#allocation4 + $0xa03]] }
 0x21a   : > { %v2220_v37 = vmul.f32 %v2215_v47, %v7407_v24  ;;  %v2221_v26 = vmul.f32 %v2215_v47, %v7408_v30  ;;  %v2222_v59 = vmul.f32 %v2215_v47, %v7409_v60  ;;  %v2223_v22 = vmul.f32 %v2215_v47, %v4663_v33  ;;  %s6215_s16 = sld [smem:[#allocation4 + $0xa04]] }
 0x21b   : > { %v2224_v2 = vadd.f32 %v2216_v52, %v2206_v48  ;;  %v2225_v12 = vadd.f32 %v2217_v8, %v2207_v10  ;;  %v2226_v11 = vadd.f32 %v2218_v49, %v2208_v19  ;;  %v2227_v4 = vadd.f32 %v2219_v41, %v2209_v3  ;;  %s6249_s17 = sld [smem:[#allocation4 + $0xa81]] }
 0x21c   : > { %v2228_v28 = vadd.f32 %v2220_v37, %v2210_v13  ;;  %v2229_v57 = vadd.f32 %v2221_v26, %v2211_v16  ;;  %v2230_v38 = vadd.f32 %v2222_v59, %v2212_v15  ;;  %v2231_v46 = vadd.f32 %v2223_v22, %v2213_v25 }
 0x21d   : > { %v2234_v14 = vadd.f32 %v2233_v58, %v2224_v2  ;;  %v2235_v53 = vadd.f32 %v2233_v58, %v2225_v12  ;;  %v2236_v27 = vadd.f32 %v2233_v58, %v2226_v11  ;;  %v2237_v18 = vadd.f32 %v2233_v58, %v2227_v4 }
 0x21e   : > { %v2238_v7 = vadd.f32 %v2233_v58, %v2228_v28  ;;  %v2239_v24 = vadd.f32 %v2233_v58, %v2229_v57  ;;  %v2240_v9 = vadd.f32 %v2233_v58, %v2230_v38  ;;  %v2241_v30 = vadd.f32 %v2233_v58, %v2231_v46 }
 0x21f   : > { %v2242_v60 = vmax.f32 %v2234_v14, 0.0  ;;  %v2243_v47 = vmax.f32 %v2235_v53, 0.0  ;;  %v2244_v48 = vmax.f32 %v2236_v27, 0.0  ;;  %v2245_v10 = vmax.f32 %v2237_v18, 0.0 }
 0x220   : > { %v2246_v19 = vmax.f32 %v2238_v7, 0.0  ;;  %v2247_v3 = vmax.f32 %v2239_v24, 0.0  ;;  %v2248_v13 = vmax.f32 %v2240_v9, 0.0  ;;  %v2249_v16 = vmax.f32 %v2241_v30, 0.0 }
 0x221   : > { %v2252_v15 = vmul.f32 %v2251_v63, %v2242_v60  ;;  %v2253_v25 = vmul.f32 %v2251_v63, %v2243_v47  ;;  %v2254_v52 = vmul.f32 %v2251_v63, %v2244_v48  ;;  %v2255_v8 = vmul.f32 %v2251_v63, %v2245_v10 }
 0x222   : > { %v2256_v58 = vmul.f32 %v2251_v63, %v2246_v19  ;;  %v2257_v49 = vmul.f32 %v2251_v63, %v2247_v3  ;;  %v2258_v41 = vmul.f32 %v2251_v63, %v2248_v13  ;;  %v2259_v37 = vmul.f32 %v2251_v63, %v2249_v16 }
 0x223   : > { %v6018_v26 = vadd.f32 %v2252_v15, %v5940_v29  ;;  %v6021_v7 = vadd.f32 %v2253_v25, %v5943_v55  ;;  %v6024_v9 = vadd.f32 %v2254_v52, %v5946_v51  ;;  %v6027_v24 = vadd.f32 %v2255_v8, %v5949_v17  ;;  %v7414_v25 = vld [vmem:[#allocation10_spill] sm:$0xff] }
 0x224   : > { %v6030_v30 = vadd.f32 %v2256_v58, %v5954_v34  ;;  %v6033_v59 = vadd.f32 %v2257_v49, %v5957_v21  ;;  %v6036_v63 = vadd.f32 %v2258_v41, %v5960_v0  ;;  %v6039_v29 = vadd.f32 %v2259_v37, %v5963_v42 }
 0x225   : > { %v2270_v55 = vmul.f32 %v2269_v56, %v2242_v60  ;;  %v2271_v22 = vmul.f32 %v2269_v56, %v2243_v47  ;;  %v2272_v51 = vmul.f32 %v2269_v56, %v2244_v48  ;;  %v2273_v17 = vmul.f32 %v2269_v56, %v2245_v10  ;;  %v7410_v47 = vld [vmem:[#allocation17_spill] sm:$0xff]  ;;  %v7411_v10 = vld [vmem:[#allocation18_spill] sm:$0xff] }
 0x226   : > { %v2274_v2 = vmul.f32 %v2269_v56, %v2246_v19  ;;  %v2275_v34 = vmul.f32 %v2269_v56, %v2247_v3  ;;  %v2276_v12 = vmul.f32 %v2269_v56, %v2248_v13  ;;  %v2277_v11 = vmul.f32 %v2269_v56, %v2249_v16  ;;  %v7412_v3 = vld [vmem:[#allocation8_spill] sm:$0xff]  ;;  %v7413_v16 = vld [vmem:[#allocation9_spill] sm:$0xff] }
 0x227   : > { %v6042_v21 = vadd.f32 %v2270_v55, %v5966_v31  ;;  %v6045_v0 = vadd.f32 %v2271_v22, %v5969_v54  ;;  %v6048_v42 = vadd.f32 %v2272_v51, %v5972_v1  ;;  %v6051_v60 = vadd.f32 %v2273_v17, %v5975_v62 }
 0x228   : > { %v6054_v4 = vadd.f32 %v2274_v2, %v5978_v39  ;;  %v6057_v28 = vadd.f32 %v2275_v34, %v5981_v40  ;;  %v6060_v56 = vadd.f32 %v2276_v12, %v5984_v44  ;;  %v6063_v31 = vadd.f32 %v2277_v11, %v5987_v32 }
 0x229   : > { %v2287_v54 = vstv %s6009_s23  ;;  %v2297_v57 = vstv %s6011_s26  ;;  %v2315_v38 = vstv %s6013_s29  ;;  %v2333_v1 = vstv %s6015_s30  ;;  %s6251_s23 = sld [smem:[#allocation4 + $0xa82]] }
 0x22a   : > { %v2288_v46 = vmul.f32 %v2287_v54, %v4611_v50  ;;  %v2289_v62 = vmul.f32 %v2287_v54, %v4613_v5  ;;  %v2290_v39 = vmul.f32 %v2287_v54, %v4615_v36  ;;  %v2291_v14 = vmul.f32 %v2287_v54, %v4617_v6  ;;  %s6253_s26 = sld [smem:[#allocation4 + $0xa83]] }
 0x22b   : > { %v2292_v40 = vmul.f32 %v2287_v54, %v4619_v61  ;;  %v2293_v44 = vmul.f32 %v2287_v54, %v4621_v23  ;;  %v2294_v53 = vmul.f32 %v2287_v54, %v4623_v45  ;;  %v2295_v32 = vmul.f32 %v2287_v54, %v4625_v35  ;;  %s6267_s29 = sld [smem:[#allocation4 + $0xa84]] }
 0x22c   : > { %v2298_v27 = vmul.f32 %v2297_v57, %v4647_v20  ;;  %v2299_v18 = vmul.f32 %v2297_v57, %v4649_v43  ;;  %v2300_v48 = vmul.f32 %v2297_v57, %v7410_v47  ;;  %v2301_v19 = vmul.f32 %v2297_v57, %v7411_v10  ;;  %s6325_s30 = sld [smem:[#allocation4 + $0xb00]] }
 0x22d   : > { %v2302_v13 = vmul.f32 %v2297_v57, %v7412_v3  ;;  %v2303_v15 = vmul.f32 %v2297_v57, %v7413_v16  ;;  %v2304_v52 = vmul.f32 %v2297_v57, %v7414_v25  ;;  %v2305_v8 = vmul.f32 %v2297_v57, %v4663_v33 }
 0x22e   : > { %v2306_v58 = vadd.f32 %v2298_v27, %v2288_v46  ;;  %v2307_v49 = vadd.f32 %v2299_v18, %v2289_v62  ;;  %v2308_v41 = vadd.f32 %v2300_v48, %v2290_v39  ;;  %v2309_v37 = vadd.f32 %v2301_v19, %v2291_v14 }
 0x22f   : > { %v2310_v55 = vadd.f32 %v2302_v13, %v2292_v40  ;;  %v2311_v22 = vadd.f32 %v2303_v15, %v2293_v44  ;;  %v2312_v51 = vadd.f32 %v2304_v52, %v2294_v53  ;;  %v2313_v17 = vadd.f32 %v2305_v8, %v2295_v32 }
 0x230   : > { %v2316_v2 = vadd.f32 %v2315_v38, %v2306_v58  ;;  %v2317_v34 = vadd.f32 %v2315_v38, %v2307_v49  ;;  %v2318_v12 = vadd.f32 %v2315_v38, %v2308_v41  ;;  %v2319_v11 = vadd.f32 %v2315_v38, %v2309_v37 }
 0x231   : > { %v2320_v54 = vadd.f32 %v2315_v38, %v2310_v55  ;;  %v2321_v57 = vadd.f32 %v2315_v38, %v2311_v22  ;;  %v2322_v46 = vadd.f32 %v2315_v38, %v2312_v51  ;;  %v2323_v62 = vadd.f32 %v2315_v38, %v2313_v17 }
 0x232   : > { %v2324_v39 = vmax.f32 %v2316_v2, 0.0  ;;  %v2325_v14 = vmax.f32 %v2317_v34, 0.0  ;;  %v2326_v27 = vmax.f32 %v2318_v12, 0.0  ;;  %v2327_v18 = vmax.f32 %v2319_v11, 0.0 }
 0x233   : > { %v2328_v40 = vmax.f32 %v2320_v54, 0.0  ;;  %v2329_v44 = vmax.f32 %v2321_v57, 0.0  ;;  %v2330_v53 = vmax.f32 %v2322_v46, 0.0  ;;  %v2331_v32 = vmax.f32 %v2323_v62, 0.0 }
 0x234   : > { %v2334_v48 = vmul.f32 %v2333_v1, %v2324_v39  ;;  %v2335_v19 = vmul.f32 %v2333_v1, %v2325_v14  ;;  %v2336_v13 = vmul.f32 %v2333_v1, %v2326_v27  ;;  %v2337_v15 = vmul.f32 %v2333_v1, %v2327_v18 }
 0x235   : > { %v2338_v52 = vmul.f32 %v2333_v1, %v2328_v40  ;;  %v2339_v8 = vmul.f32 %v2333_v1, %v2329_v44  ;;  %v2340_v58 = vmul.f32 %v2333_v1, %v2330_v53  ;;  %v2341_v38 = vmul.f32 %v2333_v1, %v2331_v32 }
 0x236   : > { %v6094_v49 = vadd.f32 %v2334_v48, %v6018_v26  ;;  %v6097_v41 = vadd.f32 %v2335_v19, %v6021_v7  ;;  %v6100_v37 = vadd.f32 %v2336_v13, %v6024_v9  ;;  %v6103_v55 = vadd.f32 %v2337_v15, %v6027_v24 }
 0x237   : > { %v6106_v22 = vadd.f32 %v2338_v52, %v6030_v30  ;;  %v6109_v51 = vadd.f32 %v2339_v8, %v6033_v59  ;;  %v6112_v1 = vadd.f32 %v2340_v58, %v6036_v63  ;;  %v6115_v26 = vadd.f32 %v2341_v38, %v6039_v29 }
 0x238   : > { %v2351_v7 = vstv %s6087_s19  ;;  %v2369_v17 = vstv %s6085_s6  ;;  %v2379_v2 = vstv %s6089_s7  ;;  %v2397_v9 = vstv %s6091_s8  ;;  %s6327_s6 = sld [smem:[#allocation4 + $0xb01]] }
 0x239   : > { %v2352_v34 = vmul.f32 %v2351_v7, %v2324_v39  ;;  %v2353_v12 = vmul.f32 %v2351_v7, %v2325_v14  ;;  %v2354_v24 = vmul.f32 %v2351_v7, %v2326_v27  ;;  %v2355_v11 = vmul.f32 %v2351_v7, %v2327_v18  ;;  %s6329_s19 = sld [smem:[#allocation4 + $0xb02]] }
 0x23a   : > { %v2356_v54 = vmul.f32 %v2351_v7, %v2328_v40  ;;  %v2357_v30 = vmul.f32 %v2351_v7, %v2329_v44  ;;  %v2358_v57 = vmul.f32 %v2351_v7, %v2330_v53  ;;  %v2359_v46 = vmul.f32 %v2351_v7, %v2331_v32  ;;  %s6331_s7 = sld [smem:[#allocation4 + $0xb03]] }
 0x23b   : > { %v6122_v59 = vadd.f32 %v2352_v34, %v6042_v21  ;;  %v6125_v63 = vadd.f32 %v2353_v12, %v6045_v0  ;;  %v6128_v29 = vadd.f32 %v2354_v24, %v6048_v42  ;;  %v6131_v62 = vadd.f32 %v2355_v11, %v6051_v60  ;;  %s6401_s8 = sld [smem:[#allocation4 + $0xb80]] }
 0x23c   : > { %v6134_v39 = vadd.f32 %v2356_v54, %v6054_v4  ;;  %v6137_v14 = vadd.f32 %v2357_v30, %v6057_v28  ;;  %v6140_v27 = vadd.f32 %v2358_v57, %v6060_v56  ;;  %v6143_v21 = vadd.f32 %v2359_v46, %v6063_v31 }
 0x23d   : > { %v2370_v0 = vmul.f32 %v2369_v17, %v4611_v50  ;;  %v2371_v42 = vmul.f32 %v2369_v17, %v4613_v5  ;;  %v2372_v60 = vmul.f32 %v2369_v17, %v4615_v36  ;;  %v2373_v4 = vmul.f32 %v2369_v17, %v4617_v6 }
 0x23e   : > { %v2374_v28 = vmul.f32 %v2369_v17, %v4619_v61  ;;  %v2375_v56 = vmul.f32 %v2369_v17, %v4621_v23  ;;  %v2376_v18 = vmul.f32 %v2369_v17, %v4623_v45  ;;  %v2377_v31 = vmul.f32 %v2369_v17, %v4625_v35 }
 0x23f   : > { %v2380_v40 = vmul.f32 %v2379_v2, %v4647_v20  ;;  %v2381_v44 = vmul.f32 %v2379_v2, %v4649_v43  ;;  %v2382_v53 = vmul.f32 %v2379_v2, %v7410_v47  ;;  %v2383_v32 = vmul.f32 %v2379_v2, %v7411_v10 }
 0x240   : > { %v2384_v48 = vmul.f32 %v2379_v2, %v7412_v3  ;;  %v2385_v19 = vmul.f32 %v2379_v2, %v7413_v16  ;;  %v2386_v13 = vmul.f32 %v2379_v2, %v7414_v25  ;;  %v2387_v15 = vmul.f32 %v2379_v2, %v4663_v33 }
 0x241   : > { %v2388_v52 = vadd.f32 %v2380_v40, %v2370_v0  ;;  %v2389_v8 = vadd.f32 %v2381_v44, %v2371_v42  ;;  %v2390_v58 = vadd.f32 %v2382_v53, %v2372_v60  ;;  %v2391_v38 = vadd.f32 %v2383_v32, %v2373_v4 }
 0x242   : > { %v2392_v7 = vadd.f32 %v2384_v48, %v2374_v28  ;;  %v2393_v17 = vadd.f32 %v2385_v19, %v2375_v56  ;;  %v2394_v34 = vadd.f32 %v2386_v13, %v2376_v18  ;;  %v2395_v12 = vadd.f32 %v2387_v15, %v2377_v31 }
 0x243   : > { %v2398_v24 = vadd.f32 %v2397_v9, %v2388_v52  ;;  %v2399_v11 = vadd.f32 %v2397_v9, %v2389_v8  ;;  %v2400_v54 = vadd.f32 %v2397_v9, %v2390_v58  ;;  %v2401_v30 = vadd.f32 %v2397_v9, %v2391_v38 }
 0x244   : > { %v2402_v57 = vadd.f32 %v2397_v9, %v2392_v7  ;;  %v2403_v46 = vadd.f32 %v2397_v9, %v2393_v17  ;;  %v2404_v25 = vadd.f32 %v2397_v9, %v2394_v34  ;;  %v2405_v2 = vadd.f32 %v2397_v9, %v2395_v12 }
 0x245   : > { %v2406_v0 = vmax.f32 %v2398_v24, 0.0  ;;  %v2407_v42 = vmax.f32 %v2399_v11, 0.0  ;;  %v2408_v60 = vmax.f32 %v2400_v54, 0.0  ;;  %v2409_v4 = vmax.f32 %v2401_v30, 0.0 }
 0x246   : > { %v2410_v28 = vmax.f32 %v2402_v57, 0.0  ;;  %v2411_v56 = vmax.f32 %v2403_v46, 0.0  ;;  %v2412_v18 = vmax.f32 %v2404_v25, 0.0  ;;  %v2413_v31 = vmax.f32 %v2405_v2, 0.0 }
 0x247   : > { %v2415_v40 = vstv %s6151_s10  ;;  %v2433_v44 = vstv %s6157_s11  ;;  %v2451_v53 = vstv %s6145_s9  ;;  %v2461_v32 = vstv %s6163_s12  ;;  %s6403_s9 = sld [smem:[#allocation4 + $0xb04]] }
 0x248   : > { %v2416_v48 = vmul.f32 %v2415_v40, %v2406_v0  ;;  %v2417_v19 = vmul.f32 %v2415_v40, %v2407_v42  ;;  %v2418_v13 = vmul.f32 %v2415_v40, %v2408_v60  ;;  %v2419_v15 = vmul.f32 %v2415_v40, %v2409_v4  ;;  %s6405_s10 = sld [smem:[#allocation4 + $0xb81]] }
 0x249   : > { %v2420_v52 = vmul.f32 %v2415_v40, %v2410_v28  ;;  %v2421_v8 = vmul.f32 %v2415_v40, %v2411_v56  ;;  %v2422_v58 = vmul.f32 %v2415_v40, %v2412_v18  ;;  %v2423_v9 = vmul.f32 %v2415_v40, %v2413_v31  ;;  %s6407_s11 = sld [smem:[#allocation4 + $0xb82]] }
 0x24a   : > { %v6174_v38 = vadd.f32 %v2416_v48, %v6094_v49  ;;  %v6177_v7 = vadd.f32 %v2417_v19, %v6097_v41  ;;  %v6180_v25 = vadd.f32 %v2418_v13, %v6100_v37  ;;  %v6183_v17 = vadd.f32 %v2419_v15, %v6103_v55  ;;  %s6461_s12 = sld [smem:[#allocation4 + $0xc00]] }
 0x24b   : > { %v6186_v34 = vadd.f32 %v2420_v52, %v6106_v22  ;;  %v6189_v12 = vadd.f32 %v2421_v8, %v6109_v51  ;;  %v6192_v24 = vadd.f32 %v2422_v58, %v6112_v1  ;;  %v6195_v49 = vadd.f32 %v2423_v9, %v6115_v26 }
 0x24c   : > { %v2434_v41 = vmul.f32 %v2433_v44, %v2406_v0  ;;  %v2435_v37 = vmul.f32 %v2433_v44, %v2407_v42  ;;  %v2436_v11 = vmul.f32 %v2433_v44, %v2408_v60  ;;  %v2437_v54 = vmul.f32 %v2433_v44, %v2409_v4 }
 0x24d   : > { %v2438_v55 = vmul.f32 %v2433_v44, %v2410_v28  ;;  %v2439_v22 = vmul.f32 %v2433_v44, %v2411_v56  ;;  %v2440_v30 = vmul.f32 %v2433_v44, %v2412_v18  ;;  %v2441_v57 = vmul.f32 %v2433_v44, %v2413_v31  ;;  %v7415_v44 = vld [vmem:[#allocation10_spill] sm:$0xff] }
 0x24e   : > { %v6204_v51 = vadd.f32 %v2434_v41, %v6122_v59  ;;  %v6207_v1 = vadd.f32 %v2435_v37, %v6125_v63  ;;  %v6210_v26 = vadd.f32 %v2436_v11, %v6128_v29  ;;  %v6213_v46 = vadd.f32 %v2437_v54, %v6131_v62 }
 0x24f   : > { %v6218_v2 = vadd.f32 %v2438_v55, %v6134_v39  ;;  %v6221_v0 = vadd.f32 %v2439_v22, %v6137_v14  ;;  %v6224_v59 = vadd.f32 %v2440_v30, %v6140_v27  ;;  %v6227_v63 = vadd.f32 %v2441_v57, %v6143_v21 }
 0x250   : > { %v2452_v29 = vmul.f32 %v2451_v53, %v4611_v50  ;;  %v2453_v42 = vmul.f32 %v2451_v53, %v4613_v5  ;;  %v2454_v62 = vmul.f32 %v2451_v53, %v4615_v36  ;;  %v2455_v60 = vmul.f32 %v2451_v53, %v4617_v6 }
 0x251   : > { %v2456_v39 = vmul.f32 %v2451_v53, %v4619_v61  ;;  %v2457_v4 = vmul.f32 %v2451_v53, %v4621_v23  ;;  %v2458_v14 = vmul.f32 %v2451_v53, %v4623_v45  ;;  %v2459_v27 = vmul.f32 %v2451_v53, %v4625_v35 }
 0x252   : > { %v2462_v28 = vmul.f32 %v2461_v32, %v4647_v20  ;;  %v2463_v21 = vmul.f32 %v2461_v32, %v4649_v43  ;;  %v2464_v56 = vmul.f32 %v2461_v32, %v7410_v47  ;;  %v2465_v18 = vmul.f32 %v2461_v32, %v7411_v10 }
 0x253   : > { %v2466_v31 = vmul.f32 %v2461_v32, %v7412_v3  ;;  %v2467_v40 = vmul.f32 %v2461_v32, %v7413_v16  ;;  %v2468_v48 = vmul.f32 %v2461_v32, %v7415_v44  ;;  %v2469_v53 = vmul.f32 %v2461_v32, %v4663_v33 }
 0x254   : > { %v2470_v19 = vadd.f32 %v2462_v28, %v2452_v29  ;;  %v2471_v13 = vadd.f32 %v2463_v21, %v2453_v42  ;;  %v2472_v15 = vadd.f32 %v2464_v56, %v2454_v62  ;;  %v2473_v52 = vadd.f32 %v2465_v18, %v2455_v60 }
 0x255   : > { %v2474_v8 = vadd.f32 %v2466_v31, %v2456_v39  ;;  %v2475_v58 = vadd.f32 %v2467_v40, %v2457_v4  ;;  %v2476_v9 = vadd.f32 %v2468_v48, %v2458_v14  ;;  %v2477_v41 = vadd.f32 %v2469_v53, %v2459_v27 }
 0x256   : > { %v2479_v37 = vstv %s6199_s14  ;;  %v2497_v11 = vstv %s6201_s15  ;;  %v2515_v54 = vstv %s6215_s16  ;;  %v2533_v55 = vstv %s6197_s13  ;;  %s6467_s13 = sld [smem:[#allocation4 + $0xb83]] }
 0x257   : > { %v2480_v22 = vadd.f32 %v2479_v37, %v2470_v19  ;;  %v2481_v30 = vadd.f32 %v2479_v37, %v2471_v13  ;;  %v2482_v57 = vadd.f32 %v2479_v37, %v2472_v15  ;;  %v2483_v16 = vadd.f32 %v2479_v37, %v2473_v52  ;;  %s6473_s14 = sld [smem:[#allocation4 + $0xb84]] }
 0x258   : > { %v2484_v3 = vadd.f32 %v2479_v37, %v2474_v8  ;;  %v2485_v44 = vadd.f32 %v2479_v37, %v2475_v58  ;;  %v2486_v10 = vadd.f32 %v2479_v37, %v2476_v9  ;;  %v2487_v32 = vadd.f32 %v2479_v37, %v2477_v41  ;;  %s6479_s15 = sld [smem:[#allocation4 + $0xc01]] }
 0x259   : > { %v2488_v29 = vmax.f32 %v2480_v22, 0.0  ;;  %v2489_v42 = vmax.f32 %v2481_v30, 0.0  ;;  %v2490_v62 = vmax.f32 %v2482_v57, 0.0  ;;  %v2491_v60 = vmax.f32 %v2483_v16, 0.0  ;;  %s6513_s16 = sld [smem:[#allocation4 + $0xc80]] }
 0x25a   : > { %v2492_v39 = vmax.f32 %v2484_v3, 0.0  ;;  %v2493_v4 = vmax.f32 %v2485_v44, 0.0  ;;  %v2494_v14 = vmax.f32 %v2486_v10, 0.0  ;;  %v2495_v27 = vmax.f32 %v2487_v32, 0.0 }
 0x25b   : > { %v2498_v28 = vmul.f32 %v2497_v11, %v2488_v29  ;;  %v2499_v21 = vmul.f32 %v2497_v11, %v2489_v42  ;;  %v2500_v56 = vmul.f32 %v2497_v11, %v2490_v62  ;;  %v2501_v18 = vmul.f32 %v2497_v11, %v2491_v60 }
 0x25c   : > { %v2502_v31 = vmul.f32 %v2497_v11, %v2492_v39  ;;  %v2503_v40 = vmul.f32 %v2497_v11, %v2493_v4  ;;  %v2504_v48 = vmul.f32 %v2497_v11, %v2494_v14  ;;  %v2505_v53 = vmul.f32 %v2497_v11, %v2495_v27 }
 0x25d   : > { %v6256_v16 = vadd.f32 %v2498_v28, %v6174_v38  ;;  %v6259_v10 = vadd.f32 %v2499_v21, %v6177_v7  ;;  %v6262_v3 = vadd.f32 %v2500_v56, %v6180_v25  ;;  %v6265_v44 = vadd.f32 %v2501_v18, %v6183_v17  ;;  %v7418_v28 = vld [vmem:[#allocation9_spill] sm:$0xff]  ;;  %v7419_v56 = vld [vmem:[#allocation10_spill] sm:$0xff] }
 0x25e   : > { %v6270_v19 = vadd.f32 %v2502_v31, %v6186_v34  ;;  %v6273_v13 = vadd.f32 %v2503_v40, %v6189_v12  ;;  %v6276_v38 = vadd.f32 %v2504_v48, %v6192_v24  ;;  %v6279_v7 = vadd.f32 %v2505_v53, %v6195_v49 }
 0x25f   : > { %v2516_v15 = vmul.f32 %v2515_v54, %v2488_v29  ;;  %v2517_v25 = vmul.f32 %v2515_v54, %v2489_v42  ;;  %v2518_v52 = vmul.f32 %v2515_v54, %v2490_v62  ;;  %v2519_v8 = vmul.f32 %v2515_v54, %v2491_v60 }
 0x260   : > { %v2520_v17 = vmul.f32 %v2515_v54, %v2492_v39  ;;  %v2521_v58 = vmul.f32 %v2515_v54, %v2493_v4  ;;  %v2522_v9 = vmul.f32 %v2515_v54, %v2494_v14  ;;  %v2523_v41 = vmul.f32 %v2515_v54, %v2495_v27  ;;  %v7416_v39 = vld [vmem:[#allocation18_spill] sm:$0xff]  ;;  %v7417_v14 = vld [vmem:[#allocation8_spill] sm:$0xff] }
 0x261   : > { %v6282_v34 = vadd.f32 %v2516_v15, %v6204_v51  ;;  %v6285_v12 = vadd.f32 %v2517_v25, %v6207_v1  ;;  %v6288_v24 = vadd.f32 %v2518_v52, %v6210_v26  ;;  %v6291_v49 = vadd.f32 %v2519_v8, %v6213_v46 }
 0x262   : > { %v6294_v37 = vadd.f32 %v2520_v17, %v6218_v2  ;;  %v6297_v11 = vadd.f32 %v2521_v58, %v6221_v0  ;;  %v6300_v51 = vadd.f32 %v2522_v9, %v6224_v59  ;;  %v6303_v1 = vadd.f32 %v2523_v41, %v6227_v63 }
 0x263   : > { %v2534_v26 = vmul.f32 %v2533_v55, %v4611_v50  ;;  %v2535_v54 = vmul.f32 %v2533_v55, %v4613_v5  ;;  %v2536_v46 = vmul.f32 %v2533_v55, %v4615_v36  ;;  %v2537_v22 = vmul.f32 %v2533_v55, %v4617_v6 }
 0x264   : > { %v2538_v2 = vmul.f32 %v2533_v55, %v4619_v61  ;;  %v2539_v30 = vmul.f32 %v2533_v55, %v4621_v23  ;;  %v2540_v0 = vmul.f32 %v2533_v55, %v4623_v45  ;;  %v2541_v59 = vmul.f32 %v2533_v55, %v4625_v35 }
 0x265   : > { %v2543_v57 = vstv %s6249_s17  ;;  %v2561_v32 = vstv %s6251_s23  ;;  %v2579_v63 = vstv %s6253_s26  ;;  %v2597_v29 = vstv %s6267_s29  ;;  %s6515_s17 = sld [smem:[#allocation4 + $0xc02]] }
 0x266   : > { %v2544_v42 = vmul.f32 %v2543_v57, %v4647_v20  ;;  %v2545_v62 = vmul.f32 %v2543_v57, %v4649_v43  ;;  %v2546_v60 = vmul.f32 %v2543_v57, %v7410_v47  ;;  %v2547_v4 = vmul.f32 %v2543_v57, %v7416_v39  ;;  %s6517_s23 = sld [smem:[#allocation4 + $0xc03]] }
 0x267   : > { %v2548_v27 = vmul.f32 %v2543_v57, %v7417_v14  ;;  %v2549_v21 = vmul.f32 %v2543_v57, %v7418_v28  ;;  %v2550_v18 = vmul.f32 %v2543_v57, %v7419_v56  ;;  %v2551_v55 = vmul.f32 %v2543_v57, %v4663_v33  ;;  %s6531_s26 = sld [smem:[#allocation4 + $0xc04]] }
 0x268   : > { %v2552_v31 = vadd.f32 %v2544_v42, %v2534_v26  ;;  %v2553_v40 = vadd.f32 %v2545_v62, %v2535_v54  ;;  %v2554_v48 = vadd.f32 %v2546_v60, %v2536_v46  ;;  %v2555_v53 = vadd.f32 %v2547_v4, %v2537_v22  ;;  %s6565_s29 = sld [smem:[#allocation4 + $0xc81]] }
 0x269   : > { %v2556_v15 = vadd.f32 %v2548_v27, %v2538_v2  ;;  %v2557_v25 = vadd.f32 %v2549_v21, %v2539_v30  ;;  %v2558_v52 = vadd.f32 %v2550_v18, %v2540_v0  ;;  %v2559_v8 = vadd.f32 %v2551_v55, %v2541_v59 }
 0x26a   : > { %v2562_v17 = vadd.f32 %v2561_v32, %v2552_v31  ;;  %v2563_v58 = vadd.f32 %v2561_v32, %v2553_v40  ;;  %v2564_v9 = vadd.f32 %v2561_v32, %v2554_v48  ;;  %v2565_v41 = vadd.f32 %v2561_v32, %v2555_v53 }
 0x26b   : > { %v2566_v39 = vadd.f32 %v2561_v32, %v2556_v15  ;;  %v2567_v14 = vadd.f32 %v2561_v32, %v2557_v25  ;;  %v2568_v47 = vadd.f32 %v2561_v32, %v2558_v52  ;;  %v2569_v28 = vadd.f32 %v2561_v32, %v2559_v8 }
 0x26c   : > { %v2570_v56 = vmax.f32 %v2562_v17, 0.0  ;;  %v2571_v57 = vmax.f32 %v2563_v58, 0.0  ;;  %v2572_v26 = vmax.f32 %v2564_v9, 0.0  ;;  %v2573_v54 = vmax.f32 %v2565_v41, 0.0 }
 0x26d   : > { %v2574_v46 = vmax.f32 %v2566_v39, 0.0  ;;  %v2575_v22 = vmax.f32 %v2567_v14, 0.0  ;;  %v2576_v2 = vmax.f32 %v2568_v47, 0.0  ;;  %v2577_v30 = vmax.f32 %v2569_v28, 0.0 }
 0x26e   : > { %v2580_v0 = vmul.f32 %v2579_v63, %v2570_v56  ;;  %v2581_v59 = vmul.f32 %v2579_v63, %v2571_v57  ;;  %v2582_v42 = vmul.f32 %v2579_v63, %v2572_v26  ;;  %v2583_v62 = vmul.f32 %v2579_v63, %v2573_v54 }
 0x26f   : > { %v2584_v32 = vmul.f32 %v2579_v63, %v2574_v46  ;;  %v2585_v60 = vmul.f32 %v2579_v63, %v2575_v22  ;;  %v2586_v4 = vmul.f32 %v2579_v63, %v2576_v2  ;;  %v2587_v27 = vmul.f32 %v2579_v63, %v2577_v30 }
 0x270   : > { %v6334_v21 = vadd.f32 %v2580_v0, %v6256_v16  ;;  %v6337_v39 = vadd.f32 %v2581_v59, %v6259_v10  ;;  %v6340_v47 = vadd.f32 %v2582_v42, %v6262_v3  ;;  %v6343_v14 = vadd.f32 %v2583_v62, %v6265_v44  ;;  %v7424_v59 = vld [vmem:[#allocation10_spill] sm:$0xff] }
 0x271   : > { %v6346_v28 = vadd.f32 %v2584_v32, %v6270_v19  ;;  %v6349_v18 = vadd.f32 %v2585_v60, %v6273_v13  ;;  %v6352_v63 = vadd.f32 %v2586_v4, %v6276_v38  ;;  %v6355_v16 = vadd.f32 %v2587_v27, %v6279_v7 }
 0x272   : > { %v2598_v10 = vmul.f32 %v2597_v29, %v2570_v56  ;;  %v2599_v55 = vmul.f32 %v2597_v29, %v2571_v57  ;;  %v2600_v3 = vmul.f32 %v2597_v29, %v2572_v26  ;;  %v2601_v44 = vmul.f32 %v2597_v29, %v2573_v54  ;;  %v7420_v57 = vld [vmem:[#allocation17_spill] sm:$0xff]  ;;  %v7421_v54 = vld [vmem:[#allocation18_spill] sm:$0xff] }
 0x273   : > { %v2602_v31 = vmul.f32 %v2597_v29, %v2574_v46  ;;  %v2603_v19 = vmul.f32 %v2597_v29, %v2575_v22  ;;  %v2604_v40 = vmul.f32 %v2597_v29, %v2576_v2  ;;  %v2605_v48 = vmul.f32 %v2597_v29, %v2577_v30  ;;  %v7422_v22 = vld [vmem:[#allocation8_spill] sm:$0xff]  ;;  %v7423_v30 = vld [vmem:[#allocation9_spill] sm:$0xff] }
 0x274   : > { %v6358_v13 = vadd.f32 %v2598_v10, %v6282_v34  ;;  %v6361_v38 = vadd.f32 %v2599_v55, %v6285_v12  ;;  %v6364_v7 = vadd.f32 %v2600_v3, %v6288_v24  ;;  %v6367_v56 = vadd.f32 %v2601_v44, %v6291_v49 }
 0x275   : > { %v6370_v53 = vadd.f32 %v2602_v31, %v6294_v37  ;;  %v6373_v15 = vadd.f32 %v2603_v19, %v6297_v11  ;;  %v6376_v29 = vadd.f32 %v2604_v40, %v6300_v51  ;;  %v6379_v34 = vadd.f32 %v2605_v48, %v6303_v1 }
 0x276   : > { %v2615_v12 = vstv %s6325_s30  ;;  %v2625_v25 = vstv %s6327_s6  ;;  %v2643_v52 = vstv %s6329_s19  ;;  %v2661_v24 = vstv %s6331_s7  ;;  %s6567_s30 = sld [smem:[#allocation4 + $0xc82]] }
 0x277   : > { %v2616_v8 = vmul.f32 %v2615_v12, %v4611_v50  ;;  %v2617_v49 = vmul.f32 %v2615_v12, %v4613_v5  ;;  %v2618_v37 = vmul.f32 %v2615_v12, %v4615_v36  ;;  %v2619_v17 = vmul.f32 %v2615_v12, %v4617_v6  ;;  %s6569_s6 = sld [smem:[#allocation4 + $0xc83]] }
 0x278   : > { %v2620_v11 = vmul.f32 %v2615_v12, %v4619_v61  ;;  %v2621_v51 = vmul.f32 %v2615_v12, %v4621_v23  ;;  %v2622_v58 = vmul.f32 %v2615_v12, %v4623_v45  ;;  %v2623_v1 = vmul.f32 %v2615_v12, %v4625_v35  ;;  %s6583_s19 = sld [smem:[#allocation4 + $0xc84]] }
 0x279   : > { %v2626_v9 = vmul.f32 %v2625_v25, %v4647_v20  ;;  %v2627_v41 = vmul.f32 %v2625_v25, %v4649_v43  ;;  %v2628_v26 = vmul.f32 %v2625_v25, %v7420_v57  ;;  %v2629_v46 = vmul.f32 %v2625_v25, %v7421_v54  ;;  %s6641_s7 = sld [smem:[#allocation4 + $0xd00]] }
 0x27a   : > { %v2630_v2 = vmul.f32 %v2625_v25, %v7422_v22  ;;  %v2631_v0 = vmul.f32 %v2625_v25, %v7423_v30  ;;  %v2632_v42 = vmul.f32 %v2625_v25, %v7424_v59  ;;  %v2633_v62 = vmul.f32 %v2625_v25, %v4663_v33 }
 0x27b   : > { %v2634_v32 = vadd.f32 %v2626_v9, %v2616_v8  ;;  %v2635_v60 = vadd.f32 %v2627_v41, %v2617_v49  ;;  %v2636_v4 = vadd.f32 %v2628_v26, %v2618_v37  ;;  %v2637_v27 = vadd.f32 %v2629_v46, %v2619_v17 }
 0x27c   : > { %v2638_v10 = vadd.f32 %v2630_v2, %v2620_v11  ;;  %v2639_v55 = vadd.f32 %v2631_v0, %v2621_v51  ;;  %v2640_v3 = vadd.f32 %v2632_v42, %v2622_v58  ;;  %v2641_v44 = vadd.f32 %v2633_v62, %v2623_v1 }
 0x27d   : > { %v2644_v31 = vadd.f32 %v2643_v52, %v2634_v32  ;;  %v2645_v19 = vadd.f32 %v2643_v52, %v2635_v60  ;;  %v2646_v40 = vadd.f32 %v2643_v52, %v2636_v4  ;;  %v2647_v48 = vadd.f32 %v2643_v52, %v2637_v27 }
 0x27e   : > { %v2648_v12 = vadd.f32 %v2643_v52, %v2638_v10  ;;  %v2649_v25 = vadd.f32 %v2643_v52, %v2639_v55  ;;  %v2650_v8 = vadd.f32 %v2643_v52, %v2640_v3  ;;  %v2651_v49 = vadd.f32 %v2643_v52, %v2641_v44 }
 0x27f   : > { %v2652_v37 = vmax.f32 %v2644_v31, 0.0  ;;  %v2653_v17 = vmax.f32 %v2645_v19, 0.0  ;;  %v2654_v9 = vmax.f32 %v2646_v40, 0.0  ;;  %v2655_v41 = vmax.f32 %v2647_v48, 0.0 }
 0x280   : > { %v2656_v11 = vmax.f32 %v2648_v12, 0.0  ;;  %v2657_v51 = vmax.f32 %v2649_v25, 0.0  ;;  %v2658_v58 = vmax.f32 %v2650_v8, 0.0  ;;  %v2659_v1 = vmax.f32 %v2651_v49, 0.0 }
 0x281   : > { %v2662_v26 = vmul.f32 %v2661_v24, %v2652_v37  ;;  %v2663_v46 = vmul.f32 %v2661_v24, %v2653_v17  ;;  %v2664_v2 = vmul.f32 %v2661_v24, %v2654_v9  ;;  %v2665_v0 = vmul.f32 %v2661_v24, %v2655_v41 }
 0x282   : > { %v2666_v42 = vmul.f32 %v2661_v24, %v2656_v11  ;;  %v2667_v62 = vmul.f32 %v2661_v24, %v2657_v51  ;;  %v2668_v32 = vmul.f32 %v2661_v24, %v2658_v58  ;;  %v2669_v52 = vmul.f32 %v2661_v24, %v2659_v1 }
 0x283   : > { %v6410_v60 = vadd.f32 %v2662_v26, %v6334_v21  ;;  %v6413_v4 = vadd.f32 %v2663_v46, %v6337_v39  ;;  %v6416_v27 = vadd.f32 %v2664_v2, %v6340_v47  ;;  %v6419_v10 = vadd.f32 %v2665_v0, %v6343_v14 }
 0x284   : > { %v6422_v55 = vadd.f32 %v2666_v42, %v6346_v28  ;;  %v6425_v3 = vadd.f32 %v2667_v62, %v6349_v18  ;;  %v6428_v24 = vadd.f32 %v2668_v32, %v6352_v63  ;;  %v6431_v21 = vadd.f32 %v2669_v52, %v6355_v16 }
 0x285   : > { %v2679_v39 = vstv %s6403_s9  ;;  %v2697_v44 = vstv %s6401_s8  ;;  %v2707_v31 = vstv %s6405_s10  ;;  %v2725_v47 = vstv %s6407_s11  ;;  %s6643_s8 = sld [smem:[#allocation4 + $0xd01]] }
 0x286   : > { %v2680_v19 = vmul.f32 %v2679_v39, %v2652_v37  ;;  %v2681_v40 = vmul.f32 %v2679_v39, %v2653_v17  ;;  %v2682_v14 = vmul.f32 %v2679_v39, %v2654_v9  ;;  %v2683_v48 = vmul.f32 %v2679_v39, %v2655_v41  ;;  %s6645_s9 = sld [smem:[#allocation4 + $0xd02]] }
 0x287   : > { %v2684_v12 = vmul.f32 %v2679_v39, %v2656_v11  ;;  %v2685_v28 = vmul.f32 %v2679_v39, %v2657_v51  ;;  %v2686_v25 = vmul.f32 %v2679_v39, %v2658_v58  ;;  %v2687_v8 = vmul.f32 %v2679_v39, %v2659_v1  ;;  %s6647_s10 = sld [smem:[#allocation4 + $0xd03]] }
 0x288   : > { %v6438_v18 = vadd.f32 %v2680_v19, %v6358_v13  ;;  %v6441_v63 = vadd.f32 %v2681_v40, %v6361_v38  ;;  %v6444_v16 = vadd.f32 %v2682_v14, %v6364_v7  ;;  %v6447_v49 = vadd.f32 %v2683_v48, %v6367_v56  ;;  %s6717_s11 = sld [smem:[#allocation4 + $0xd80]] }
 0x289   : > { %v6450_v37 = vadd.f32 %v2684_v12, %v6370_v53  ;;  %v6453_v17 = vadd.f32 %v2685_v28, %v6373_v15  ;;  %v6456_v9 = vadd.f32 %v2686_v25, %v6376_v29  ;;  %v6459_v13 = vadd.f32 %v2687_v8, %v6379_v34 }
 0x28a   : > { %v2698_v38 = vmul.f32 %v2697_v44, %v4611_v50  ;;  %v2699_v7 = vmul.f32 %v2697_v44, %v4613_v5  ;;  %v2700_v56 = vmul.f32 %v2697_v44, %v4615_v36  ;;  %v2701_v53 = vmul.f32 %v2697_v44, %v4617_v6 }
 0x28b   : > { %v2702_v15 = vmul.f32 %v2697_v44, %v4619_v61  ;;  %v2703_v29 = vmul.f32 %v2697_v44, %v4621_v23  ;;  %v2704_v41 = vmul.f32 %v2697_v44, %v4623_v45  ;;  %v2705_v34 = vmul.f32 %v2697_v44, %v4625_v35 }
 0x28c   : > { %v2708_v11 = vmul.f32 %v2707_v31, %v4647_v20  ;;  %v2709_v51 = vmul.f32 %v2707_v31, %v4649_v43  ;;  %v2710_v58 = vmul.f32 %v2707_v31, %v7420_v57  ;;  %v2711_v1 = vmul.f32 %v2707_v31, %v7421_v54 }
 0x28d   : > { %v2712_v26 = vmul.f32 %v2707_v31, %v7422_v22  ;;  %v2713_v46 = vmul.f32 %v2707_v31, %v7423_v30  ;;  %v2714_v2 = vmul.f32 %v2707_v31, %v7424_v59  ;;  %v2715_v0 = vmul.f32 %v2707_v31, %v4663_v33 }
 0x28e   : > { %v2716_v42 = vadd.f32 %v2708_v11, %v2698_v38  ;;  %v2717_v62 = vadd.f32 %v2709_v51, %v2699_v7  ;;  %v2718_v32 = vadd.f32 %v2710_v58, %v2700_v56  ;;  %v2719_v52 = vadd.f32 %v2711_v1, %v2701_v53 }
 0x28f   : > { %v2720_v39 = vadd.f32 %v2712_v26, %v2702_v15  ;;  %v2721_v44 = vadd.f32 %v2713_v46, %v2703_v29  ;;  %v2722_v19 = vadd.f32 %v2714_v2, %v2704_v41  ;;  %v2723_v40 = vadd.f32 %v2715_v0, %v2705_v34 }
 0x290   : > { %v2726_v14 = vadd.f32 %v2725_v47, %v2716_v42  ;;  %v2727_v48 = vadd.f32 %v2725_v47, %v2717_v62  ;;  %v2728_v12 = vadd.f32 %v2725_v47, %v2718_v32  ;;  %v2729_v28 = vadd.f32 %v2725_v47, %v2719_v52 }
 0x291   : > { %v2730_v25 = vadd.f32 %v2725_v47, %v2720_v39  ;;  %v2731_v8 = vadd.f32 %v2725_v47, %v2721_v44  ;;  %v2732_v59 = vadd.f32 %v2725_v47, %v2722_v19  ;;  %v2733_v31 = vadd.f32 %v2725_v47, %v2723_v40 }
 0x292   : > { %v2734_v38 = vmax.f32 %v2726_v14, 0.0  ;;  %v2735_v7 = vmax.f32 %v2727_v48, 0.0  ;;  %v2736_v56 = vmax.f32 %v2728_v12, 0.0  ;;  %v2737_v53 = vmax.f32 %v2729_v28, 0.0 }
 0x293   : > { %v2738_v15 = vmax.f32 %v2730_v25, 0.0  ;;  %v2739_v29 = vmax.f32 %v2731_v8, 0.0  ;;  %v2740_v41 = vmax.f32 %v2732_v59, 0.0  ;;  %v2741_v34 = vmax.f32 %v2733_v31, 0.0 }
 0x294   : > { %v2743_v11 = vstv %s6467_s13  ;;  %v2761_v51 = vstv %s6473_s14  ;;  %v2779_v58 = vstv %s6461_s12  ;;  %v2789_v1 = vstv %s6479_s15  ;;  %s6719_s12 = sld [smem:[#allocation4 + $0xd04]] }
 0x295   : > { %v2744_v26 = vmul.f32 %v2743_v11, %v2734_v38  ;;  %v2745_v46 = vmul.f32 %v2743_v11, %v2735_v7  ;;  %v2746_v2 = vmul.f32 %v2743_v11, %v2736_v56  ;;  %v2747_v0 = vmul.f32 %v2743_v11, %v2737_v53  ;;  %s6721_s13 = sld [smem:[#allocation4 + $0xd81]] }
 0x296   : > { %v2748_v42 = vmul.f32 %v2743_v11, %v2738_v15  ;;  %v2749_v62 = vmul.f32 %v2743_v11, %v2739_v29  ;;  %v2750_v32 = vmul.f32 %v2743_v11, %v2740_v41  ;;  %v2751_v47 = vmul.f32 %v2743_v11, %v2741_v34  ;;  %s6723_s14 = sld [smem:[#allocation4 + $0xd82]] }
 0x297   : > { %v6490_v52 = vadd.f32 %v2744_v26, %v6410_v60  ;;  %v6493_v39 = vadd.f32 %v2745_v46, %v6413_v4  ;;  %v6496_v59 = vadd.f32 %v2746_v2, %v6416_v27  ;;  %v6499_v44 = vadd.f32 %v2747_v0, %v6419_v10  ;;  %s6777_s15 = sld [smem:[#allocation4 + $0xe00]] }
 0x298   : > { %v6502_v19 = vadd.f32 %v2748_v42, %v6422_v55  ;;  %v6505_v40 = vadd.f32 %v2749_v62, %v6425_v3  ;;  %v6508_v14 = vadd.f32 %v2750_v32, %v6428_v24  ;;  %v6511_v60 = vadd.f32 %v2751_v47, %v6431_v21 }
 0x299   : > { %v2762_v4 = vmul.f32 %v2761_v51, %v2734_v38  ;;  %v2763_v27 = vmul.f32 %v2761_v51, %v2735_v7  ;;  %v2764_v48 = vmul.f32 %v2761_v51, %v2736_v56  ;;  %v2765_v12 = vmul.f32 %v2761_v51, %v2737_v53 }
 0x29a   : > { %v2766_v10 = vmul.f32 %v2761_v51, %v2738_v15  ;;  %v2767_v55 = vmul.f32 %v2761_v51, %v2739_v29  ;;  %v2768_v28 = vmul.f32 %v2761_v51, %v2740_v41  ;;  %v2769_v25 = vmul.f32 %v2761_v51, %v2741_v34  ;;  %v7425_v51 = vld [vmem:[#allocation10_spill] sm:$0xff] }
 0x29b   : > { %v6520_v3 = vadd.f32 %v2762_v4, %v6438_v18  ;;  %v6523_v24 = vadd.f32 %v2763_v27, %v6441_v63  ;;  %v6526_v21 = vadd.f32 %v2764_v48, %v6444_v16  ;;  %v6529_v8 = vadd.f32 %v2765_v12, %v6447_v49 }
 0x29c   : > { %v6534_v31 = vadd.f32 %v2766_v10, %v6450_v37  ;;  %v6537_v38 = vadd.f32 %v2767_v55, %v6453_v17  ;;  %v6540_v18 = vadd.f32 %v2768_v28, %v6456_v9  ;;  %v6543_v63 = vadd.f32 %v2769_v25, %v6459_v13 }
 0x29d   : > { %v2780_v16 = vmul.f32 %v2779_v58, %v4611_v50  ;;  %v2781_v7 = vmul.f32 %v2779_v58, %v4613_v5  ;;  %v2782_v49 = vmul.f32 %v2779_v58, %v4615_v36  ;;  %v2783_v56 = vmul.f32 %v2779_v58, %v4617_v6 }
 0x29e   : > { %v2784_v37 = vmul.f32 %v2779_v58, %v4619_v61  ;;  %v2785_v53 = vmul.f32 %v2779_v58, %v4621_v23  ;;  %v2786_v17 = vmul.f32 %v2779_v58, %v4623_v45  ;;  %v2787_v9 = vmul.f32 %v2779_v58, %v4625_v35 }
 0x29f   : > { %v2790_v15 = vmul.f32 %v2789_v1, %v4647_v20  ;;  %v2791_v13 = vmul.f32 %v2789_v1, %v4649_v43  ;;  %v2792_v29 = vmul.f32 %v2789_v1, %v7420_v57  ;;  %v2793_v41 = vmul.f32 %v2789_v1, %v7421_v54 }
 0x2a0   : > { %v2794_v34 = vmul.f32 %v2789_v1, %v7422_v22  ;;  %v2795_v11 = vmul.f32 %v2789_v1, %v7423_v30  ;;  %v2796_v26 = vmul.f32 %v2789_v1, %v7425_v51  ;;  %v2797_v58 = vmul.f32 %v2789_v1, %v4663_v33 }
 0x2a1   : > { %v2798_v46 = vadd.f32 %v2790_v15, %v2780_v16  ;;  %v2799_v2 = vadd.f32 %v2791_v13, %v2781_v7  ;;  %v2800_v0 = vadd.f32 %v2792_v29, %v2782_v49  ;;  %v2801_v42 = vadd.f32 %v2793_v41, %v2783_v56 }
 0x2a2   : > { %v2802_v62 = vadd.f32 %v2794_v34, %v2784_v37  ;;  %v2803_v32 = vadd.f32 %v2795_v11, %v2785_v53  ;;  %v2804_v47 = vadd.f32 %v2796_v26, %v2786_v17  ;;  %v2805_v4 = vadd.f32 %v2797_v58, %v2787_v9 }
 0x2a3   : > { %v2807_v27 = vstv %s6515_s17  ;;  %v2825_v48 = vstv %s6517_s23  ;;  %v2843_v12 = vstv %s6531_s26  ;;  %v2861_v10 = vstv %s6513_s16  ;;  %s6783_s16 = sld [smem:[#allocation4 + $0xd83]] }
 0x2a4   : > { %v2808_v55 = vadd.f32 %v2807_v27, %v2798_v46  ;;  %v2809_v28 = vadd.f32 %v2807_v27, %v2799_v2  ;;  %v2810_v25 = vadd.f32 %v2807_v27, %v2800_v0  ;;  %v2811_v30 = vadd.f32 %v2807_v27, %v2801_v42  ;;  %s6789_s17 = sld [smem:[#allocation4 + $0xd84]] }
 0x2a5   : > { %v2812_v22 = vadd.f32 %v2807_v27, %v2802_v62  ;;  %v2813_v51 = vadd.f32 %v2807_v27, %v2803_v32  ;;  %v2814_v54 = vadd.f32 %v2807_v27, %v2804_v47  ;;  %v2815_v1 = vadd.f32 %v2807_v27, %v2805_v4  ;;  %s6795_s23 = sld [smem:[#allocation4 + $0xe01]] }
 0x2a6   : > { %v2816_v16 = vmax.f32 %v2808_v55, 0.0  ;;  %v2817_v7 = vmax.f32 %v2809_v28, 0.0  ;;  %v2818_v49 = vmax.f32 %v2810_v25, 0.0  ;;  %v2819_v56 = vmax.f32 %v2811_v30, 0.0  ;;  %s6829_s26 = sld [smem:[#allocation4 + $0xe80]] }
 0x2a7   : > { %v2820_v37 = vmax.f32 %v2812_v22, 0.0  ;;  %v2821_v53 = vmax.f32 %v2813_v51, 0.0  ;;  %v2822_v17 = vmax.f32 %v2814_v54, 0.0  ;;  %v2823_v9 = vmax.f32 %v2815_v1, 0.0 }
 0x2a8   : > { %v2826_v15 = vmul.f32 %v2825_v48, %v2816_v16  ;;  %v2827_v13 = vmul.f32 %v2825_v48, %v2817_v7  ;;  %v2828_v29 = vmul.f32 %v2825_v48, %v2818_v49  ;;  %v2829_v41 = vmul.f32 %v2825_v48, %v2819_v56 }
 0x2a9   : > { %v2830_v34 = vmul.f32 %v2825_v48, %v2820_v37  ;;  %v2831_v11 = vmul.f32 %v2825_v48, %v2821_v53  ;;  %v2832_v26 = vmul.f32 %v2825_v48, %v2822_v17  ;;  %v2833_v58 = vmul.f32 %v2825_v48, %v2823_v9 }
 0x2aa   : > { %v6572_v30 = vadd.f32 %v2826_v15, %v6490_v52  ;;  %v6575_v54 = vadd.f32 %v2827_v13, %v6493_v39  ;;  %v6578_v22 = vadd.f32 %v2828_v29, %v6496_v59  ;;  %v6581_v51 = vadd.f32 %v2829_v41, %v6499_v44  ;;  %v7428_v15 = vld [vmem:[#allocation9_spill] sm:$0xff]  ;;  %v7429_v29 = vld [vmem:[#allocation10_spill] sm:$0xff] }
 0x2ab   : > { %v6586_v46 = vadd.f32 %v2830_v34, %v6502_v19  ;;  %v6589_v2 = vadd.f32 %v2831_v11, %v6505_v40  ;;  %v6592_v52 = vadd.f32 %v2832_v26, %v6508_v14  ;;  %v6595_v39 = vadd.f32 %v2833_v58, %v6511_v60 }
 0x2ac   : > { %v2844_v0 = vmul.f32 %v2843_v12, %v2816_v16  ;;  %v2845_v59 = vmul.f32 %v2843_v12, %v2817_v7  ;;  %v2846_v42 = vmul.f32 %v2843_v12, %v2818_v49  ;;  %v2847_v62 = vmul.f32 %v2843_v12, %v2819_v56 }
 0x2ad   : > { %v2848_v44 = vmul.f32 %v2843_v12, %v2820_v37  ;;  %v2849_v32 = vmul.f32 %v2843_v12, %v2821_v53  ;;  %v2850_v47 = vmul.f32 %v2843_v12, %v2822_v17  ;;  %v2851_v4 = vmul.f32 %v2843_v12, %v2823_v9  ;;  %v7426_v37 = vld [vmem:[#allocation18_spill] sm:$0xff]  ;;  %v7427_v17 = vld [vmem:[#allocation8_spill] sm:$0xff] }
 0x2ae   : > { %v6598_v19 = vadd.f32 %v2844_v0, %v6520_v3  ;;  %v6601_v40 = vadd.f32 %v2845_v59, %v6523_v24  ;;  %v6604_v14 = vadd.f32 %v2846_v42, %v6526_v21  ;;  %v6607_v60 = vadd.f32 %v2847_v62, %v6529_v8 }
 0x2af   : > { %v6610_v27 = vadd.f32 %v2848_v44, %v6534_v31  ;;  %v6613_v48 = vadd.f32 %v2849_v32, %v6537_v38  ;;  %v6616_v3 = vadd.f32 %v2850_v47, %v6540_v18  ;;  %v6619_v24 = vadd.f32 %v2851_v4, %v6543_v63 }
 0x2b0   : > { %v2862_v21 = vmul.f32 %v2861_v10, %v4611_v50  ;;  %v2863_v12 = vmul.f32 %v2861_v10, %v4613_v5  ;;  %v2864_v8 = vmul.f32 %v2861_v10, %v4615_v36  ;;  %v2865_v55 = vmul.f32 %v2861_v10, %v4617_v6 }
 0x2b1   : > { %v2866_v31 = vmul.f32 %v2861_v10, %v4619_v61  ;;  %v2867_v28 = vmul.f32 %v2861_v10, %v4621_v23  ;;  %v2868_v38 = vmul.f32 %v2861_v10, %v4623_v45  ;;  %v2869_v18 = vmul.f32 %v2861_v10, %v4625_v35 }
 0x2b2   : > { %v2871_v25 = vstv %s6565_s29  ;;  %v2889_v1 = vstv %s6567_s30  ;;  %v2907_v63 = vstv %s6569_s6  ;;  %v2925_v16 = vstv %s6583_s19  ;;  %s6831_s29 = sld [smem:[#allocation4 + $0xe02]] }
 0x2b3   : > { %v2872_v7 = vmul.f32 %v2871_v25, %v4647_v20  ;;  %v2873_v49 = vmul.f32 %v2871_v25, %v4649_v43  ;;  %v2874_v56 = vmul.f32 %v2871_v25, %v7420_v57  ;;  %v2875_v53 = vmul.f32 %v2871_v25, %v7426_v37  ;;  %s6833_s30 = sld [smem:[#allocation4 + $0xe03]] }
 0x2b4   : > { %v2876_v9 = vmul.f32 %v2871_v25, %v7427_v17  ;;  %v2877_v13 = vmul.f32 %v2871_v25, %v7428_v15  ;;  %v2878_v41 = vmul.f32 %v2871_v25, %v7429_v29  ;;  %v2879_v10 = vmul.f32 %v2871_v25, %v4663_v33  ;;  %s6847_s6 = sld [smem:[#allocation4 + $0xe04]] }
 0x2b5   : > { %v2880_v34 = vadd.f32 %v2872_v7, %v2862_v21  ;;  %v2881_v11 = vadd.f32 %v2873_v49, %v2863_v12  ;;  %v2882_v26 = vadd.f32 %v2874_v56, %v2864_v8  ;;  %v2883_v58 = vadd.f32 %v2875_v53, %v2865_v55  ;;  %s6881_s19 = sld [smem:[#allocation4 + $0xe81]] }
 0x2b6   : > { %v2884_v0 = vadd.f32 %v2876_v9, %v2866_v31  ;;  %v2885_v59 = vadd.f32 %v2877_v13, %v2867_v28  ;;  %v2886_v42 = vadd.f32 %v2878_v41, %v2868_v38  ;;  %v2887_v62 = vadd.f32 %v2879_v10, %v2869_v18 }
 0x2b7   : > { %v2890_v44 = vadd.f32 %v2889_v1, %v2880_v34  ;;  %v2891_v32 = vadd.f32 %v2889_v1, %v2881_v11  ;;  %v2892_v47 = vadd.f32 %v2889_v1, %v2882_v26  ;;  %v2893_v4 = vadd.f32 %v2889_v1, %v2883_v58 }
 0x2b8   : > { %v2894_v37 = vadd.f32 %v2889_v1, %v2884_v0  ;;  %v2895_v17 = vadd.f32 %v2889_v1, %v2885_v59  ;;  %v2896_v57 = vadd.f32 %v2889_v1, %v2886_v42  ;;  %v2897_v15 = vadd.f32 %v2889_v1, %v2887_v62 }
 0x2b9   : > { %v2898_v29 = vmax.f32 %v2890_v44, 0.0  ;;  %v2899_v25 = vmax.f32 %v2891_v32, 0.0  ;;  %v2900_v21 = vmax.f32 %v2892_v47, 0.0  ;;  %v2901_v12 = vmax.f32 %v2893_v4, 0.0 }
 0x2ba   : > { %v2902_v8 = vmax.f32 %v2894_v37, 0.0  ;;  %v2903_v55 = vmax.f32 %v2895_v17, 0.0  ;;  %v2904_v31 = vmax.f32 %v2896_v57, 0.0  ;;  %v2905_v28 = vmax.f32 %v2897_v15, 0.0 }
 0x2bb   : > { %v2908_v38 = vmul.f32 %v2907_v63, %v2898_v29  ;;  %v2909_v18 = vmul.f32 %v2907_v63, %v2899_v25  ;;  %v2910_v7 = vmul.f32 %v2907_v63, %v2900_v21  ;;  %v2911_v49 = vmul.f32 %v2907_v63, %v2901_v12 }
 0x2bc   : > { %v2912_v1 = vmul.f32 %v2907_v63, %v2902_v8  ;;  %v2913_v56 = vmul.f32 %v2907_v63, %v2903_v55  ;;  %v2914_v53 = vmul.f32 %v2907_v63, %v2904_v31  ;;  %v2915_v9 = vmul.f32 %v2907_v63, %v2905_v28 }
 0x2bd   : > { %v6650_v13 = vadd.f32 %v2908_v38, %v6572_v30  ;;  %v6653_v37 = vadd.f32 %v2909_v18, %v6575_v54  ;;  %v6656_v57 = vadd.f32 %v2910_v7, %v6578_v22  ;;  %v6659_v17 = vadd.f32 %v2911_v49, %v6581_v51  ;;  %v7434_v18 = vld [vmem:[#allocation10_spill] sm:$0xff] }
 0x2be   : > { %v6662_v15 = vadd.f32 %v2912_v1, %v6586_v46  ;;  %v6665_v41 = vadd.f32 %v2913_v56, %v6589_v2  ;;  %v6668_v63 = vadd.f32 %v2914_v53, %v6592_v52  ;;  %v6671_v30 = vadd.f32 %v2915_v9, %v6595_v39 }
 0x2bf   : > { %v2926_v54 = vmul.f32 %v2925_v16, %v2898_v29  ;;  %v2927_v10 = vmul.f32 %v2925_v16, %v2899_v25  ;;  %v2928_v22 = vmul.f32 %v2925_v16, %v2900_v21  ;;  %v2929_v51 = vmul.f32 %v2925_v16, %v2901_v12  ;;  %v7430_v25 = vld [vmem:[#allocation17_spill] sm:$0xff]  ;;  %v7431_v12 = vld [vmem:[#allocation18_spill] sm:$0xff] }
 0x2c0   : > { %v2930_v34 = vmul.f32 %v2925_v16, %v2902_v8  ;;  %v2931_v46 = vmul.f32 %v2925_v16, %v2903_v55  ;;  %v2932_v11 = vmul.f32 %v2925_v16, %v2904_v31  ;;  %v2933_v26 = vmul.f32 %v2925_v16, %v2905_v28  ;;  %v7432_v55 = vld [vmem:[#allocation8_spill] sm:$0xff]  ;;  %v7433_v28 = vld [vmem:[#allocation9_spill] sm:$0xff] }
 0x2c1   : > { %v6674_v2 = vadd.f32 %v2926_v54, %v6598_v19  ;;  %v6677_v52 = vadd.f32 %v2927_v10, %v6601_v40  ;;  %v6680_v39 = vadd.f32 %v2928_v22, %v6604_v14  ;;  %v6683_v29 = vadd.f32 %v2929_v51, %v6607_v60 }
 0x2c2   : > { %v6686_v58 = vadd.f32 %v2930_v34, %v6610_v27  ;;  %v6689_v0 = vadd.f32 %v2931_v46, %v6613_v48  ;;  %v6692_v16 = vadd.f32 %v2932_v11, %v6616_v3  ;;  %v6695_v19 = vadd.f32 %v2933_v26, %v6619_v24 }
 0x2c3   : > { %v2943_v40 = vstv %s6641_s7  ;;  %v2953_v59 = vstv %s6643_s8  ;;  %v2971_v42 = vstv %s6645_s9  ;;  %v2989_v14 = vstv %s6647_s10  ;;  %s6883_s7 = sld [smem:[#allocation4 + $0xe82]] }
 0x2c4   : > { %v2944_v62 = vmul.f32 %v2943_v40, %v4611_v50  ;;  %v2945_v60 = vmul.f32 %v2943_v40, %v4613_v5  ;;  %v2946_v27 = vmul.f32 %v2943_v40, %v4615_v36  ;;  %v2947_v44 = vmul.f32 %v2943_v40, %v4617_v6  ;;  %s6885_s8 = sld [smem:[#allocation4 + $0xe83]] }
 0x2c5   : > { %v2948_v48 = vmul.f32 %v2943_v40, %v4619_v61  ;;  %v2949_v3 = vmul.f32 %v2943_v40, %v4621_v23  ;;  %v2950_v32 = vmul.f32 %v2943_v40, %v4623_v45  ;;  %v2951_v24 = vmul.f32 %v2943_v40, %v4625_v35  ;;  %s6899_s9 = sld [smem:[#allocation4 + $0xe84]] }
 0x2c6   : > { %v2954_v47 = vmul.f32 %v2953_v59, %v4647_v20  ;;  %v2955_v4 = vmul.f32 %v2953_v59, %v4649_v43  ;;  %v2956_v21 = vmul.f32 %v2953_v59, %v7430_v25  ;;  %v2957_v8 = vmul.f32 %v2953_v59, %v7431_v12  ;;  %s6957_s10 = sld [smem:[#allocation4 + $0xf00]] }
 0x2c7   : > { %v2958_v31 = vmul.f32 %v2953_v59, %v7432_v55  ;;  %v2959_v38 = vmul.f32 %v2953_v59, %v7433_v28  ;;  %v2960_v7 = vmul.f32 %v2953_v59, %v7434_v18  ;;  %v2961_v49 = vmul.f32 %v2953_v59, %v4663_v33 }
 0x2c8   : > { %v2962_v1 = vadd.f32 %v2954_v47, %v2944_v62  ;;  %v2963_v56 = vadd.f32 %v2955_v4, %v2945_v60  ;;  %v2964_v53 = vadd.f32 %v2956_v21, %v2946_v27  ;;  %v2965_v9 = vadd.f32 %v2957_v8, %v2947_v44 }
 0x2c9   : > { %v2966_v54 = vadd.f32 %v2958_v31, %v2948_v48  ;;  %v2967_v10 = vadd.f32 %v2959_v38, %v2949_v3  ;;  %v2968_v22 = vadd.f32 %v2960_v7, %v2950_v32  ;;  %v2969_v51 = vadd.f32 %v2961_v49, %v2951_v24 }
 0x2ca   : > { %v2972_v34 = vadd.f32 %v2971_v42, %v2962_v1  ;;  %v2973_v46 = vadd.f32 %v2971_v42, %v2963_v56  ;;  %v2974_v11 = vadd.f32 %v2971_v42, %v2964_v53  ;;  %v2975_v26 = vadd.f32 %v2971_v42, %v2965_v9 }
 0x2cb   : > { %v2976_v40 = vadd.f32 %v2971_v42, %v2966_v54  ;;  %v2977_v59 = vadd.f32 %v2971_v42, %v2967_v10  ;;  %v2978_v62 = vadd.f32 %v2971_v42, %v2968_v22  ;;  %v2979_v60 = vadd.f32 %v2971_v42, %v2969_v51 }
 0x2cc   : > { %v2980_v27 = vmax.f32 %v2972_v34, 0.0  ;;  %v2981_v44 = vmax.f32 %v2973_v46, 0.0  ;;  %v2982_v47 = vmax.f32 %v2974_v11, 0.0  ;;  %v2983_v4 = vmax.f32 %v2975_v26, 0.0 }
 0x2cd   : > { %v2984_v48 = vmax.f32 %v2976_v40, 0.0  ;;  %v2985_v3 = vmax.f32 %v2977_v59, 0.0  ;;  %v2986_v32 = vmax.f32 %v2978_v62, 0.0  ;;  %v2987_v24 = vmax.f32 %v2979_v60, 0.0 }
 0x2ce   : > { %v2990_v21 = vmul.f32 %v2989_v14, %v2980_v27  ;;  %v2991_v8 = vmul.f32 %v2989_v14, %v2981_v44  ;;  %v2992_v31 = vmul.f32 %v2989_v14, %v2982_v47  ;;  %v2993_v38 = vmul.f32 %v2989_v14, %v2983_v4 }
 0x2cf   : > { %v2994_v7 = vmul.f32 %v2989_v14, %v2984_v48  ;;  %v2995_v49 = vmul.f32 %v2989_v14, %v2985_v3  ;;  %v2996_v1 = vmul.f32 %v2989_v14, %v2986_v32  ;;  %v2997_v42 = vmul.f32 %v2989_v14, %v2987_v24 }
 0x2d0   : > { %v6726_v56 = vadd.f32 %v2990_v21, %v6650_v13  ;;  %v6729_v53 = vadd.f32 %v2991_v8, %v6653_v37  ;;  %v6732_v9 = vadd.f32 %v2992_v31, %v6656_v57  ;;  %v6735_v54 = vadd.f32 %v2993_v38, %v6659_v17 }
 0x2d1   : > { %v6738_v10 = vadd.f32 %v2994_v7, %v6662_v15  ;;  %v6741_v22 = vadd.f32 %v2995_v49, %v6665_v41  ;;  %v6744_v14 = vadd.f32 %v2996_v1, %v6668_v63  ;;  %v6747_v13 = vadd.f32 %v2997_v42, %v6671_v30 }
 0x2d2   : > { %v3007_v37 = vstv %s6719_s12  ;;  %v3025_v51 = vstv %s6717_s11  ;;  %v3035_v34 = vstv %s6721_s13  ;;  %v3053_v57 = vstv %s6723_s14  ;;  %s6959_s11 = sld [smem:[#allocation4 + $0xf01]] }
 0x2d3   : > { %v3008_v46 = vmul.f32 %v3007_v37, %v2980_v27  ;;  %v3009_v11 = vmul.f32 %v3007_v37, %v2981_v44  ;;  %v3010_v17 = vmul.f32 %v3007_v37, %v2982_v47  ;;  %v3011_v26 = vmul.f32 %v3007_v37, %v2983_v4  ;;  %s6961_s12 = sld [smem:[#allocation4 + $0xf02]] }
 0x2d4   : > { %v3012_v40 = vmul.f32 %v3007_v37, %v2984_v48  ;;  %v3013_v15 = vmul.f32 %v3007_v37, %v2985_v3  ;;  %v3014_v59 = vmul.f32 %v3007_v37, %v2986_v32  ;;  %v3015_v62 = vmul.f32 %v3007_v37, %v2987_v24  ;;  %s6963_s13 = sld [smem:[#allocation4 + $0xf03]] }
 0x2d5   : > { %v6754_v41 = vadd.f32 %v3008_v46, %v6674_v2  ;;  %v6757_v63 = vadd.f32 %v3009_v11, %v6677_v52  ;;  %v6760_v30 = vadd.f32 %v3010_v17, %v6680_v39  ;;  %v6763_v60 = vadd.f32 %v3011_v26, %v6683_v29  ;;  %s7033_s14 = sld [smem:[#allocation4 + $0xf80]] }
 0x2d6   : > { %v6766_v27 = vadd.f32 %v3012_v40, %v6686_v58  ;;  %v6769_v44 = vadd.f32 %v3013_v15, %v6689_v0  ;;  %v6772_v47 = vadd.f32 %v3014_v59, %v6692_v16  ;;  %v6775_v2 = vadd.f32 %v3015_v62, %v6695_v19 }
 0x2d7   : > { %v3026_v52 = vmul.f32 %v3025_v51, %v4611_v50  ;;  %v3027_v39 = vmul.f32 %v3025_v51, %v4613_v5  ;;  %v3028_v29 = vmul.f32 %v3025_v51, %v4615_v36  ;;  %v3029_v58 = vmul.f32 %v3025_v51, %v4617_v6 }
 0x2d8   : > { %v3030_v0 = vmul.f32 %v3025_v51, %v4619_v61  ;;  %v3031_v16 = vmul.f32 %v3025_v51, %v4621_v23  ;;  %v3032_v4 = vmul.f32 %v3025_v51, %v4623_v45  ;;  %v3033_v19 = vmul.f32 %v3025_v51, %v4625_v35 }
 0x2d9   : > { %v3036_v48 = vmul.f32 %v3035_v34, %v4647_v20  ;;  %v3037_v3 = vmul.f32 %v3035_v34, %v4649_v43  ;;  %v3038_v32 = vmul.f32 %v3035_v34, %v7430_v25  ;;  %v3039_v24 = vmul.f32 %v3035_v34, %v7431_v12 }
 0x2da   : > { %v3040_v21 = vmul.f32 %v3035_v34, %v7432_v55  ;;  %v3041_v8 = vmul.f32 %v3035_v34, %v7433_v28  ;;  %v3042_v31 = vmul.f32 %v3035_v34, %v7434_v18  ;;  %v3043_v38 = vmul.f32 %v3035_v34, %v4663_v33 }
 0x2db   : > { %v3044_v7 = vadd.f32 %v3036_v48, %v3026_v52  ;;  %v3045_v49 = vadd.f32 %v3037_v3, %v3027_v39  ;;  %v3046_v1 = vadd.f32 %v3038_v32, %v3028_v29  ;;  %v3047_v42 = vadd.f32 %v3039_v24, %v3029_v58 }
 0x2dc   : > { %v3048_v37 = vadd.f32 %v3040_v21, %v3030_v0  ;;  %v3049_v51 = vadd.f32 %v3041_v8, %v3031_v16  ;;  %v3050_v46 = vadd.f32 %v3042_v31, %v3032_v4  ;;  %v3051_v11 = vadd.f32 %v3043_v38, %v3033_v19 }
 0x2dd   : > { %v3054_v17 = vadd.f32 %v3053_v57, %v3044_v7  ;;  %v3055_v26 = vadd.f32 %v3053_v57, %v3045_v49  ;;  %v3056_v40 = vadd.f32 %v3053_v57, %v3046_v1  ;;  %v3057_v15 = vadd.f32 %v3053_v57, %v3047_v42 }
 0x2de   : > { %v3058_v59 = vadd.f32 %v3053_v57, %v3048_v37  ;;  %v3059_v62 = vadd.f32 %v3053_v57, %v3049_v51  ;;  %v3060_v18 = vadd.f32 %v3053_v57, %v3050_v46  ;;  %v3061_v34 = vadd.f32 %v3053_v57, %v3051_v11 }
 0x2df   : > { %v3062_v52 = vmax.f32 %v3054_v17, 0.0  ;;  %v3063_v39 = vmax.f32 %v3055_v26, 0.0  ;;  %v3064_v29 = vmax.f32 %v3056_v40, 0.0  ;;  %v3065_v58 = vmax.f32 %v3057_v15, 0.0 }
 0x2e0   : > { %v3066_v0 = vmax.f32 %v3058_v59, 0.0  ;;  %v3067_v16 = vmax.f32 %v3059_v62, 0.0  ;;  %v3068_v4 = vmax.f32 %v3060_v18, 0.0  ;;  %v3069_v19 = vmax.f32 %v3061_v34, 0.0 }
 0x2e1   : > { %v3071_v48 = vstv %s6783_s16  ;;  %v3089_v3 = vstv %s6789_s17  ;;  %v3107_v32 = vstv %s6777_s15  ;;  %v3117_v24 = vstv %s6795_s23  ;;  %s7035_s15 = sld [smem:[#allocation4 + $0xf04]]  ;;  %s762_s23 = sadd.s32 2, %s4553_s18 }
 0x2e2   : > { %v3072_v21 = vmul.f32 %v3071_v48, %v3062_v52  ;;  %v3073_v8 = vmul.f32 %v3071_v48, %v3063_v39  ;;  %v3074_v31 = vmul.f32 %v3071_v48, %v3064_v29  ;;  %v3075_v38 = vmul.f32 %v3071_v48, %v3065_v58  ;;  %s7037_s16 = sld [smem:[#allocation4 + $0xf81]] }
 0x2e3   : > { %v3076_v7 = vmul.f32 %v3071_v48, %v3066_v0  ;;  %v3077_v49 = vmul.f32 %v3071_v48, %v3067_v16  ;;  %v3078_v1 = vmul.f32 %v3071_v48, %v3068_v4  ;;  %v3079_v57 = vmul.f32 %v3071_v48, %v3069_v19  ;;  %s7039_s17 = sld [smem:[#allocation4 + $0xf82]] }
 0x2e4   : > { %v6806_v42 = vadd.f32 %v3072_v21, %v6726_v56  ;;  %v6809_v37 = vadd.f32 %v3073_v8, %v6729_v53  ;;  %v6812_v18 = vadd.f32 %v3074_v31, %v6732_v9  ;;  %v6815_v51 = vadd.f32 %v3075_v38, %v6735_v54 }
 0x2e5   : > { %v6818_v46 = vadd.f32 %v3076_v7, %v6738_v10  ;;  %v6821_v11 = vadd.f32 %v3077_v49, %v6741_v22  ;;  %v6824_v17 = vadd.f32 %v3078_v1, %v6744_v14  ;;  %v6827_v56 = vadd.f32 %v3079_v57, %v6747_v13 }
 0x2e6   : > { %v3090_v53 = vmul.f32 %v3089_v3, %v3062_v52  ;;  %v3091_v9 = vmul.f32 %v3089_v3, %v3063_v39  ;;  %v3092_v26 = vmul.f32 %v3089_v3, %v3064_v29  ;;  %v3093_v40 = vmul.f32 %v3089_v3, %v3065_v58 }
 0x2e7   : > { %v3094_v54 = vmul.f32 %v3089_v3, %v3066_v0  ;;  %v3095_v10 = vmul.f32 %v3089_v3, %v3067_v16  ;;  %v3096_v15 = vmul.f32 %v3089_v3, %v3068_v4  ;;  %v3097_v59 = vmul.f32 %v3089_v3, %v3069_v19  ;;  %v7435_v3 = vld [vmem:[#allocation10_spill] sm:$0xff] }
 0x2e8   : > { %v6836_v22 = vadd.f32 %v3090_v53, %v6754_v41  ;;  %v6839_v14 = vadd.f32 %v3091_v9, %v6757_v63  ;;  %v6842_v13 = vadd.f32 %v3092_v26, %v6760_v30  ;;  %v6845_v62 = vadd.f32 %v3093_v40, %v6763_v60 }
 0x2e9   : > { %v6850_v34 = vadd.f32 %v3094_v54, %v6766_v27  ;;  %v6853_v52 = vadd.f32 %v3095_v10, %v6769_v44  ;;  %v6856_v41 = vadd.f32 %v3096_v15, %v6772_v47  ;;  %v6859_v63 = vadd.f32 %v3097_v59, %v6775_v2 }
 0x2ea   : > { %v3108_v30 = vmul.f32 %v3107_v32, %v4611_v50  ;;  %v3109_v39 = vmul.f32 %v3107_v32, %v4613_v5  ;;  %v3110_v60 = vmul.f32 %v3107_v32, %v4615_v36  ;;  %v3111_v29 = vmul.f32 %v3107_v32, %v4617_v6 }
 0x2eb   : > { %v3112_v27 = vmul.f32 %v3107_v32, %v4619_v61  ;;  %v3113_v58 = vmul.f32 %v3107_v32, %v4621_v23  ;;  %v3114_v44 = vmul.f32 %v3107_v32, %v4623_v45  ;;  %v3115_v47 = vmul.f32 %v3107_v32, %v4625_v35 }
 0x2ec   : > { %v3118_v0 = vmul.f32 %v3117_v24, %v4647_v20  ;;  %v3119_v2 = vmul.f32 %v3117_v24, %v4649_v43  ;;  %v3120_v16 = vmul.f32 %v3117_v24, %v7430_v25  ;;  %v3121_v4 = vmul.f32 %v3117_v24, %v7431_v12 }
 0x2ed   : > { %v3122_v19 = vmul.f32 %v3117_v24, %v7432_v55  ;;  %v3123_v48 = vmul.f32 %v3117_v24, %v7433_v28  ;;  %v3124_v21 = vmul.f32 %v3117_v24, %v7435_v3  ;;  %v3125_v32 = vmul.f32 %v3117_v24, %v4663_v33 }
 0x2ee   : > { %v3126_v8 = vadd.f32 %v3118_v0, %v3108_v30  ;;  %v3127_v31 = vadd.f32 %v3119_v2, %v3109_v39  ;;  %v3128_v38 = vadd.f32 %v3120_v16, %v3110_v60  ;;  %v3129_v7 = vadd.f32 %v3121_v4, %v3111_v29 }
 0x2ef   : > { %v3130_v49 = vadd.f32 %v3122_v19, %v3112_v27  ;;  %v3131_v1 = vadd.f32 %v3123_v48, %v3113_v58  ;;  %v3132_v57 = vadd.f32 %v3124_v21, %v3114_v44  ;;  %v3133_v53 = vadd.f32 %v3125_v32, %v3115_v47 }
 0x2f0   : > { %v3135_v9 = vstv %s6831_s29  ;;  %v3153_v26 = vstv %s6833_s30  ;;  %v3171_v40 = vstv %s6847_s6  ;;  %v3189_v54 = vstv %s6829_s26  ;;  %s770_s26 = sadd.s32 6, %s4553_s18  ;;  %s7083_s29 = sld [smem:[#allocation2 + %s762_s23]] }
 0x2f1   : > { %v3136_v10 = vadd.f32 %v3135_v9, %v3126_v8  ;;  %v3137_v15 = vadd.f32 %v3135_v9, %v3127_v31  ;;  %v3138_v59 = vadd.f32 %v3135_v9, %v3128_v38  ;;  %v3139_v28 = vadd.f32 %v3135_v9, %v3129_v7  ;;  %s7097_s30 = sld [smem:[#allocation2 + %s770_s26]] }
 0x2f2   : > { %v3140_v55 = vadd.f32 %v3135_v9, %v3130_v49  ;;  %v3141_v3 = vadd.f32 %v3135_v9, %v3131_v1  ;;  %v3142_v12 = vadd.f32 %v3135_v9, %v3132_v57  ;;  %v3143_v24 = vadd.f32 %v3135_v9, %v3133_v53  ;;  %s7107_s6 = sld [smem:[#allocation4 + $0xf83]] }
 0x2f3   : > { %v3144_v30 = vmax.f32 %v3136_v10, 0.0  ;;  %v3145_v39 = vmax.f32 %v3137_v15, 0.0  ;;  %v3146_v60 = vmax.f32 %v3138_v59, 0.0  ;;  %v3147_v29 = vmax.f32 %v3139_v28, 0.0 }
 0x2f4   : > { %v3148_v27 = vmax.f32 %v3140_v55, 0.0  ;;  %v3149_v58 = vmax.f32 %v3141_v3, 0.0  ;;  %v3150_v44 = vmax.f32 %v3142_v12, 0.0  ;;  %v3151_v47 = vmax.f32 %v3143_v24, 0.0 }
 0x2f5   : > { %v3154_v0 = vmul.f32 %v3153_v26, %v3144_v30  ;;  %v3155_v2 = vmul.f32 %v3153_v26, %v3145_v39  ;;  %v3156_v16 = vmul.f32 %v3153_v26, %v3146_v60  ;;  %v3157_v4 = vmul.f32 %v3153_v26, %v3147_v29 }
 0x2f6   : > { %v3158_v19 = vmul.f32 %v3153_v26, %v3148_v27  ;;  %v3159_v48 = vmul.f32 %v3153_v26, %v3149_v58  ;;  %v3160_v21 = vmul.f32 %v3153_v26, %v3150_v44  ;;  %v3161_v32 = vmul.f32 %v3153_v26, %v3151_v47 }
 0x2f7   : > { %v6888_v28 = vadd.f32 %v3154_v0, %v6806_v42  ;;  %v6891_v12 = vadd.f32 %v3155_v2, %v6809_v37  ;;  %v6894_v55 = vadd.f32 %v3156_v16, %v6812_v18  ;;  %v6897_v3 = vadd.f32 %v3157_v4, %v6815_v51  ;;  %v7438_v0 = vld [vmem:[#allocation9_spill] sm:$0xff]  ;;  %v7439_v16 = vld [vmem:[#allocation10_spill] sm:$0xff] }
 0x2f8   : > { %v6902_v8 = vadd.f32 %v3158_v19, %v6818_v46  ;;  %v6905_v31 = vadd.f32 %v3159_v48, %v6821_v11  ;;  %v6908_v42 = vadd.f32 %v3160_v21, %v6824_v17  ;;  %v6911_v37 = vadd.f32 %v3161_v32, %v6827_v56 }
 0x2f9   : > { %v3172_v38 = vmul.f32 %v3171_v40, %v3144_v30  ;;  %v3173_v18 = vmul.f32 %v3171_v40, %v3145_v39  ;;  %v3174_v7 = vmul.f32 %v3171_v40, %v3146_v60  ;;  %v3175_v49 = vmul.f32 %v3171_v40, %v3147_v29 }
 0x2fa   : > { %v3176_v51 = vmul.f32 %v3171_v40, %v3148_v27  ;;  %v3177_v1 = vmul.f32 %v3171_v40, %v3149_v58  ;;  %v3178_v57 = vmul.f32 %v3171_v40, %v3150_v44  ;;  %v3179_v53 = vmul.f32 %v3171_v40, %v3151_v47  ;;  %v7436_v27 = vld [vmem:[#allocation18_spill] sm:$0xff]  ;;  %v7437_v44 = vld [vmem:[#allocation8_spill] sm:$0xff] }
 0x2fb   : > { %v6914_v46 = vadd.f32 %v3172_v38, %v6836_v22  ;;  %v6917_v11 = vadd.f32 %v3173_v18, %v6839_v14  ;;  %v6920_v17 = vadd.f32 %v3174_v7, %v6842_v13  ;;  %v6923_v56 = vadd.f32 %v3175_v49, %v6845_v62 }
 0x2fc   : > { %v6926_v9 = vadd.f32 %v3176_v51, %v6850_v34  ;;  %v6929_v26 = vadd.f32 %v3177_v1, %v6853_v52  ;;  %v6932_v22 = vadd.f32 %v3178_v57, %v6856_v41  ;;  %v6935_v14 = vadd.f32 %v3179_v53, %v6859_v63 }
 0x2fd   : > { %v3190_v13 = vmul.f32 %v3189_v54, %v4611_v50  ;;  %v3191_v40 = vmul.f32 %v3189_v54, %v4613_v5  ;;  %v3192_v62 = vmul.f32 %v3189_v54, %v4615_v36  ;;  %v3193_v10 = vmul.f32 %v3189_v54, %v4617_v6 }
 0x2fe   : > { %v3194_v34 = vmul.f32 %v3189_v54, %v4619_v61  ;;  %v3195_v15 = vmul.f32 %v3189_v54, %v4621_v23  ;;  %v3196_v52 = vmul.f32 %v3189_v54, %v4623_v45  ;;  %v3197_v41 = vmul.f32 %v3189_v54, %v4625_v35 }
 0x2ff   : > { %v3199_v59 = vstv %s6881_s19  ;;  %v3217_v24 = vstv %s6883_s7  ;;  %v3235_v63 = vstv %s6885_s8  ;;  %v3253_v30 = vstv %s6899_s9  ;;  %s7113_s19 = sld [smem:[#allocation4 + $0xf84]]  ;;  %s764_s7 = sadd.s32 3, %s4553_s18 }
 0x300   : > { %v3200_v39 = vmul.f32 %v3199_v59, %v4647_v20  ;;  %v3201_v60 = vmul.f32 %v3199_v59, %v4649_v43  ;;  %v3202_v29 = vmul.f32 %v3199_v59, %v7430_v25  ;;  %v3203_v58 = vmul.f32 %v3199_v59, %v7436_v27  ;;  %s772_s8 = sadd.s32 7, %s4553_s18  ;;  %s7133_s9 = sld [smem:[#allocation2 + %s764_s7]] }
 0x301   : > { %v3204_v47 = vmul.f32 %v3199_v59, %v7437_v44  ;;  %v3205_v2 = vmul.f32 %v3199_v59, %v7438_v0  ;;  %v3206_v4 = vmul.f32 %v3199_v59, %v7439_v16  ;;  %v3207_v54 = vmul.f32 %v3199_v59, %v4663_v33 }
 0x302   : > { %v3208_v19 = vadd.f32 %v3200_v39, %v3190_v13  ;;  %v3209_v48 = vadd.f32 %v3201_v60, %v3191_v40  ;;  %v3210_v21 = vadd.f32 %v3202_v29, %v3192_v62  ;;  %v3211_v32 = vadd.f32 %v3203_v58, %v3193_v10 }
 0x303   : > { %v3212_v38 = vadd.f32 %v3204_v47, %v3194_v34  ;;  %v3213_v18 = vadd.f32 %v3205_v2, %v3195_v15  ;;  %v3214_v7 = vadd.f32 %v3206_v4, %v3196_v52  ;;  %v3215_v49 = vadd.f32 %v3207_v54, %v3197_v41 }
 0x304   : > { %v3218_v51 = vadd.f32 %v3217_v24, %v3208_v19  ;;  %v3219_v1 = vadd.f32 %v3217_v24, %v3209_v48  ;;  %v3220_v57 = vadd.f32 %v3217_v24, %v3210_v21  ;;  %v3221_v53 = vadd.f32 %v3217_v24, %v3211_v32 }
 0x305   : > { %v3222_v27 = vadd.f32 %v3217_v24, %v3212_v38  ;;  %v3223_v44 = vadd.f32 %v3217_v24, %v3213_v18  ;;  %v3224_v25 = vadd.f32 %v3217_v24, %v3214_v7  ;;  %v3225_v0 = vadd.f32 %v3217_v24, %v3215_v49 }
 0x306   : > { %v3226_v16 = vmax.f32 %v3218_v51, 0.0  ;;  %v3227_v59 = vmax.f32 %v3219_v1, 0.0  ;;  %v3228_v13 = vmax.f32 %v3220_v57, 0.0  ;;  %v3229_v40 = vmax.f32 %v3221_v53, 0.0 }
 0x307   : > { %v3230_v62 = vmax.f32 %v3222_v27, 0.0  ;;  %v3231_v10 = vmax.f32 %v3223_v44, 0.0  ;;  %v3232_v34 = vmax.f32 %v3224_v25, 0.0  ;;  %v3233_v15 = vmax.f32 %v3225_v0, 0.0 }
 0x308   : > { %v3236_v52 = vmul.f32 %v3235_v63, %v3226_v16  ;;  %v3237_v41 = vmul.f32 %v3235_v63, %v3227_v59  ;;  %v3238_v39 = vmul.f32 %v3235_v63, %v3228_v13  ;;  %v3239_v60 = vmul.f32 %v3235_v63, %v3229_v40 }
 0x309   : > { %v3240_v24 = vmul.f32 %v3235_v63, %v3230_v62  ;;  %v3241_v29 = vmul.f32 %v3235_v63, %v3231_v10  ;;  %v3242_v58 = vmul.f32 %v3235_v63, %v3232_v34  ;;  %v3243_v47 = vmul.f32 %v3235_v63, %v3233_v15 }
 0x30a   : > { %v6966_v2 = vadd.f32 %v3236_v52, %v6888_v28  ;;  %v6969_v27 = vadd.f32 %v3237_v41, %v6891_v12  ;;  %v6972_v25 = vadd.f32 %v3238_v39, %v6894_v55  ;;  %v6975_v44 = vadd.f32 %v3239_v60, %v6897_v3  ;;  %v7444_v41 = vld [vmem:[#allocation10_spill] sm:$0xff] }
 0x30b   : > { %v6978_v0 = vadd.f32 %v3240_v24, %v6902_v8  ;;  %v6981_v4 = vadd.f32 %v3241_v29, %v6905_v31  ;;  %v6984_v63 = vadd.f32 %v3242_v58, %v6908_v42  ;;  %v6987_v28 = vadd.f32 %v3243_v47, %v6911_v37 }
 0x30c   : > { %v3254_v12 = vmul.f32 %v3253_v30, %v3226_v16  ;;  %v3255_v54 = vmul.f32 %v3253_v30, %v3227_v59  ;;  %v3256_v55 = vmul.f32 %v3253_v30, %v3228_v13  ;;  %v3257_v3 = vmul.f32 %v3253_v30, %v3229_v40  ;;  %v7440_v59 = vld [vmem:[#allocation17_spill] sm:$0xff]  ;;  %v7441_v40 = vld [vmem:[#allocation18_spill] sm:$0xff] }
 0x30d   : > { %v3258_v19 = vmul.f32 %v3253_v30, %v3230_v62  ;;  %v3259_v8 = vmul.f32 %v3253_v30, %v3231_v10  ;;  %v3260_v48 = vmul.f32 %v3253_v30, %v3232_v34  ;;  %v3261_v21 = vmul.f32 %v3253_v30, %v3233_v15  ;;  %v7442_v10 = vld [vmem:[#allocation8_spill] sm:$0xff]  ;;  %v7443_v15 = vld [vmem:[#allocation9_spill] sm:$0xff] }
 0x30e   : > { %v6990_v31 = vadd.f32 %v3254_v12, %v6914_v46  ;;  %v6993_v42 = vadd.f32 %v3255_v54, %v6917_v11  ;;  %v6996_v37 = vadd.f32 %v3256_v55, %v6920_v17  ;;  %v6999_v16 = vadd.f32 %v3257_v3, %v6923_v56 }
 0x30f   : > { %v7002_v32 = vadd.f32 %v3258_v19, %v6926_v9  ;;  %v7005_v38 = vadd.f32 %v3259_v8, %v6929_v26  ;;  %v7008_v30 = vadd.f32 %v3260_v48, %v6932_v22  ;;  %v7011_v46 = vadd.f32 %v3261_v21, %v6935_v14 }
 0x310   : > { %v3271_v11 = vstv %s6957_s10  ;;  %v3281_v18 = vstv %s6959_s11  ;;  %v3299_v7 = vstv %s6961_s12  ;;  %v3317_v17 = vstv %s6963_s13  ;;  %s7135_s10 = sld [smem:[#allocation2 + %s772_s8]]  ;;  %s291_s12 = scalar_lea.vmem %s7234_s5, %s3697_s28 }
 0x311   : > { %v3272_v49 = vmul.f32 %v3271_v11, %v4611_v50  ;;  %v3273_v56 = vmul.f32 %v3271_v11, %v4613_v5  ;;  %v3274_v9 = vmul.f32 %v3271_v11, %v4615_v36  ;;  %v3275_v51 = vmul.f32 %v3271_v11, %v4617_v6 }
 0x312   : > { %v3276_v26 = vmul.f32 %v3271_v11, %v4619_v61  ;;  %v3277_v22 = vmul.f32 %v3271_v11, %v4621_v23  ;;  %v3278_v1 = vmul.f32 %v3271_v11, %v4623_v45  ;;  %v3279_v14 = vmul.f32 %v3271_v11, %v4625_v35 }
 0x313   : > { %v3282_v57 = vmul.f32 %v3281_v18, %v4647_v20  ;;  %v3283_v53 = vmul.f32 %v3281_v18, %v4649_v43  ;;  %v3284_v13 = vmul.f32 %v3281_v18, %v7440_v59  ;;  %v3285_v62 = vmul.f32 %v3281_v18, %v7441_v40 }
 0x314   : > { %v3286_v34 = vmul.f32 %v3281_v18, %v7442_v10  ;;  %v3287_v52 = vmul.f32 %v3281_v18, %v7443_v15  ;;  %v3288_v39 = vmul.f32 %v3281_v18, %v7444_v41  ;;  %v3289_v60 = vmul.f32 %v3281_v18, %v4663_v33 }
 0x315   : > { %v3290_v24 = vadd.f32 %v3282_v57, %v3272_v49  ;;  %v3291_v29 = vadd.f32 %v3283_v53, %v3273_v56  ;;  %v3292_v58 = vadd.f32 %v3284_v13, %v3274_v9  ;;  %v3293_v47 = vadd.f32 %v3285_v62, %v3275_v51 }
 0x316   : > { %v3294_v12 = vadd.f32 %v3286_v34, %v3276_v26  ;;  %v3295_v54 = vadd.f32 %v3287_v52, %v3277_v22  ;;  %v3296_v55 = vadd.f32 %v3288_v39, %v3278_v1  ;;  %v3297_v3 = vadd.f32 %v3289_v60, %v3279_v14 }
 0x317   : > { %v3300_v19 = vadd.f32 %v3299_v7, %v3290_v24  ;;  %v3301_v8 = vadd.f32 %v3299_v7, %v3291_v29  ;;  %v3302_v48 = vadd.f32 %v3299_v7, %v3292_v58  ;;  %v3303_v21 = vadd.f32 %v3299_v7, %v3293_v47 }
 0x318   : > { %v3304_v11 = vadd.f32 %v3299_v7, %v3294_v12  ;;  %v3305_v18 = vadd.f32 %v3299_v7, %v3295_v54  ;;  %v3306_v49 = vadd.f32 %v3299_v7, %v3296_v55  ;;  %v3307_v56 = vadd.f32 %v3299_v7, %v3297_v3 }
 0x319   : > { %v3308_v9 = vmax.f32 %v3300_v19, 0.0  ;;  %v3309_v51 = vmax.f32 %v3301_v8, 0.0  ;;  %v3310_v57 = vmax.f32 %v3302_v48, 0.0  ;;  %v3311_v53 = vmax.f32 %v3303_v21, 0.0 }
 0x31a   : > { %v3312_v26 = vmax.f32 %v3304_v11, 0.0  ;;  %v3313_v22 = vmax.f32 %v3305_v18, 0.0  ;;  %v3314_v1 = vmax.f32 %v3306_v49, 0.0  ;;  %v3315_v14 = vmax.f32 %v3307_v56, 0.0 }
 0x31b   : > { %v3318_v13 = vmul.f32 %v3317_v17, %v3308_v9  ;;  %v3319_v62 = vmul.f32 %v3317_v17, %v3309_v51  ;;  %v3320_v34 = vmul.f32 %v3317_v17, %v3310_v57  ;;  %v3321_v52 = vmul.f32 %v3317_v17, %v3311_v53 }
 0x31c   : > { %v3322_v39 = vmul.f32 %v3317_v17, %v3312_v26  ;;  %v3323_v60 = vmul.f32 %v3317_v17, %v3313_v22  ;;  %v3324_v7 = vmul.f32 %v3317_v17, %v3314_v1  ;;  %v3325_v24 = vmul.f32 %v3317_v17, %v3315_v14 }
 0x31d   : > { %v7042_v29 = vadd.f32 %v3318_v13, %v6966_v2  ;;  %v7045_v58 = vadd.f32 %v3319_v62, %v6969_v27  ;;  %v7048_v47 = vadd.f32 %v3320_v34, %v6972_v25  ;;  %v7051_v12 = vadd.f32 %v3321_v52, %v6975_v44 }
 0x31e   : > { %v7054_v54 = vadd.f32 %v3322_v39, %v6978_v0  ;;  %v7057_v55 = vadd.f32 %v3323_v60, %v6981_v4  ;;  %v7060_v17 = vadd.f32 %v3324_v7, %v6984_v63  ;;  %v7063_v2 = vadd.f32 %v3325_v24, %v6987_v28 }
 0x31f   : > { %v3335_v27 = vstv %s7035_s15  ;;  %v3353_v3 = vstv %s7033_s14  ;;  %v3363_v19 = vstv %s7037_s16  ;;  %v3381_v25 = vstv %s7039_s17 }
 0x320   : > { %v3336_v8 = vmul.f32 %v3335_v27, %v3308_v9  ;;  %v3337_v44 = vmul.f32 %v3335_v27, %v3309_v51  ;;  %v3338_v48 = vmul.f32 %v3335_v27, %v3310_v57  ;;  %v3339_v21 = vmul.f32 %v3335_v27, %v3311_v53 }
 0x321   : > { %v3340_v0 = vmul.f32 %v3335_v27, %v3312_v26  ;;  %v3341_v11 = vmul.f32 %v3335_v27, %v3313_v22  ;;  %v3342_v4 = vmul.f32 %v3335_v27, %v3314_v1  ;;  %v3343_v18 = vmul.f32 %v3335_v27, %v3315_v14 }
 0x322   : > { %v7072_v63 = vadd.f32 %v3336_v8, %v6990_v31  ;;  %v7075_v28 = vadd.f32 %v3337_v44, %v6993_v42  ;;  %v7078_v49 = vadd.f32 %v3338_v48, %v6996_v37  ;;  %v7081_v56 = vadd.f32 %v3339_v21, %v6999_v16 }
 0x323   : > { %v7086_v9 = vadd.f32 %v3340_v0, %v7002_v32  ;;  %v7089_v51 = vadd.f32 %v3341_v11, %v7005_v38  ;;  %v7092_v31 = vadd.f32 %v3342_v4, %v7008_v30  ;;  %v7095_v42 = vadd.f32 %v3343_v18, %v7011_v46 }
 0x324   : > { %v3354_v37 = vmul.f32 %v3353_v3, %v4611_v50  ;;  %v3355_v16 = vmul.f32 %v3353_v3, %v4613_v5  ;;  %v3356_v57 = vmul.f32 %v3353_v3, %v4615_v36  ;;  %v3357_v32 = vmul.f32 %v3353_v3, %v4617_v6 }
 0x325   : > { %v3358_v53 = vmul.f32 %v3353_v3, %v4619_v61  ;;  %v3359_v38 = vmul.f32 %v3353_v3, %v4621_v23  ;;  %v3360_v30 = vmul.f32 %v3353_v3, %v4623_v45  ;;  %v3361_v26 = vmul.f32 %v3353_v3, %v4625_v35 }
 0x326   : > { %v3364_v46 = vmul.f32 %v3363_v19, %v4647_v20  ;;  %v3365_v50 = vmul.f32 %v3363_v19, %v4649_v43  ;;  %v3366_v5 = vmul.f32 %v3363_v19, %v7440_v59  ;;  %v3367_v36 = vmul.f32 %v3363_v19, %v7441_v40 }
 0x327   : > { %v3368_v6 = vmul.f32 %v3363_v19, %v7442_v10  ;;  %v3369_v61 = vmul.f32 %v3363_v19, %v7443_v15  ;;  %v3370_v23 = vmul.f32 %v3363_v19, %v7444_v41  ;;  %v3371_v45 = vmul.f32 %v3363_v19, %v4663_v33 }
 0x328   : > { %v3372_v35 = vadd.f32 %v3364_v46, %v3354_v37  ;;  %v3373_v22 = vadd.f32 %v3365_v50, %v3355_v16  ;;  %v3374_v1 = vadd.f32 %v3366_v5, %v3356_v57  ;;  %v3375_v20 = vadd.f32 %v3367_v36, %v3357_v32 }
 0x329   : > { %v3376_v14 = vadd.f32 %v3368_v6, %v3358_v53  ;;  %v3377_v43 = vadd.f32 %v3369_v61, %v3359_v38  ;;  %v3378_v13 = vadd.f32 %v3370_v23, %v3360_v30  ;;  %v3379_v59 = vadd.f32 %v3371_v45, %v3361_v26 }
 0x32a   : > { %v3382_v62 = vadd.f32 %v3381_v25, %v3372_v35  ;;  %v3383_v40 = vadd.f32 %v3381_v25, %v3373_v22  ;;  %v3384_v34 = vadd.f32 %v3381_v25, %v3374_v1  ;;  %v3385_v10 = vadd.f32 %v3381_v25, %v3375_v20 }
 0x32b   : > { %v3386_v15 = vadd.f32 %v3381_v25, %v3376_v14  ;;  %v3387_v41 = vadd.f32 %v3381_v25, %v3377_v43  ;;  %v3388_v52 = vadd.f32 %v3381_v25, %v3378_v13  ;;  %v3389_v33 = vadd.f32 %v3381_v25, %v3379_v59 }
 0x32c   : > { %v3390_v39 = vmax.f32 %v3382_v62, 0.0  ;;  %v3391_v60 = vmax.f32 %v3383_v40, 0.0  ;;  %v3392_v7 = vmax.f32 %v3384_v34, 0.0  ;;  %v3393_v24 = vmax.f32 %v3385_v10, 0.0 }
 0x32d   : > { %v3394_v27 = vmax.f32 %v3386_v15, 0.0  ;;  %v3395_v3 = vmax.f32 %v3387_v41, 0.0  ;;  %v3396_v19 = vmax.f32 %v3388_v52, 0.0  ;;  %v3397_v8 = vmax.f32 %v3389_v33, 0.0  ;;  %v7445_v41 = vld [vmem:[#allocation15_spill] sm:$0xff] }
 0x32e   : > { %v3399_v44 = vstv %s7107_s6  ;;  %v3417_v48 = vstv %s7113_s19  ;;  %v3434_v21 = vstv %s7097_s30  ;;  %v3443_v0 = vstv %s7083_s29 }
 0x32f   : > { %v3400_v11 = vmul.f32 %v3399_v44, %v3390_v39  ;;  %v3401_v4 = vmul.f32 %v3399_v44, %v3391_v60  ;;  %v3402_v18 = vmul.f32 %v3399_v44, %v3392_v7  ;;  %v3403_v37 = vmul.f32 %v3399_v44, %v3393_v24 }
 0x330   : > { %v3404_v16 = vmul.f32 %v3399_v44, %v3394_v27  ;;  %v3405_v25 = vmul.f32 %v3399_v44, %v3395_v3  ;;  %v3406_v57 = vmul.f32 %v3399_v44, %v3396_v19  ;;  %v3407_v32 = vmul.f32 %v3399_v44, %v3397_v8 }
 0x331   : > { %v3408_v53 = vadd.f32 %v3400_v11, %v7042_v29  ;;  %v3409_v38 = vadd.f32 %v3401_v4, %v7045_v58  ;;  %v3410_v30 = vadd.f32 %v3402_v18, %v7048_v47  ;;  %v3411_v26 = vadd.f32 %v3403_v37, %v7051_v12 }
 0x332   : > { %v3412_v46 = vadd.f32 %v3404_v16, %v7054_v54  ;;  %v3413_v50 = vadd.f32 %v3405_v25, %v7057_v55  ;;  %v3414_v5 = vadd.f32 %v3406_v57, %v7060_v17  ;;  %v3415_v36 = vadd.f32 %v3407_v32, %v7063_v2 }
 0x333   : > { %v3418_v6 = vmul.f32 %v3417_v48, %v3390_v39  ;;  %v3419_v61 = vmul.f32 %v3417_v48, %v3391_v60  ;;  %v3420_v23 = vmul.f32 %v3417_v48, %v3392_v7  ;;  %v3421_v45 = vmul.f32 %v3417_v48, %v3393_v24 }
 0x334   : > { %v3422_v29 = vmul.f32 %v3417_v48, %v3394_v27  ;;  %v3423_v58 = vmul.f32 %v3417_v48, %v3395_v3  ;;  %v3424_v47 = vmul.f32 %v3417_v48, %v3396_v19  ;;  %v3425_v35 = vmul.f32 %v3417_v48, %v3397_v8  ;;  %v7446_v8 = vld [vmem:[#allocation19_spill] sm:$0xff]  ;;  %v7447_v48 = vld [vmem:[#allocation20_spill] sm:$0xff] }
 0x335   : > { %v3426_v12 = vadd.f32 %v3418_v6, %v7072_v63  ;;  %v3427_v54 = vadd.f32 %v3419_v61, %v7075_v28  ;;  %v3428_v55 = vadd.f32 %v3420_v23, %v7078_v49  ;;  %v3429_v17 = vadd.f32 %v3421_v45, %v7081_v56 }
 0x336   : > { %v3430_v2 = vadd.f32 %v3422_v29, %v7086_v9  ;;  %v3431_v22 = vadd.f32 %v3423_v58, %v7089_v51  ;;  %v3432_v1 = vadd.f32 %v3424_v47, %v7092_v31  ;;  %v3433_v20 = vadd.f32 %v3425_v35, %v7095_v42 }
 0x337   : > { %v3435_v14 = vadd.f32 %v3434_v21, %v3408_v53  ;;  %v3436_v43 = vadd.f32 %v3434_v21, %v3409_v38  ;;  %v3437_v13 = vadd.f32 %v3434_v21, %v3410_v30  ;;  %v3438_v59 = vadd.f32 %v3434_v21, %v3411_v26 }
 0x338   : > { %v3439_v62 = vadd.f32 %v3434_v21, %v3412_v46  ;;  %v3440_v63 = vadd.f32 %v3434_v21, %v3413_v50  ;;  %v3441_v40 = vadd.f32 %v3434_v21, %v3414_v5  ;;  %v3442_v28 = vadd.f32 %v3434_v21, %v3415_v36  ;;  %v7448_v36 = vld [vmem:[#allocation16_spill] sm:$0xff] }
 0x339   : > { %v3444_v34 = vmul.f32 %v3443_v0, %v3435_v14  ;;  %v3445_v49 = vmul.f32 %v3443_v0, %v3436_v43  ;;  %v3446_v56 = vmul.f32 %v3443_v0, %v3437_v13  ;;  %v3447_v9 = vmul.f32 %v3443_v0, %v3438_v59  ;;  %v7453_v14 = vld [vmem:[#allocation25_spill] sm:$0xff]  ;;  %v7454_v13 = vld [vmem:[#allocation26_spill] sm:$0xff] }
 0x33a   : > { %v3448_v10 = vmul.f32 %v3443_v0, %v3439_v62  ;;  %v3449_v51 = vmul.f32 %v3443_v0, %v3440_v63  ;;  %v3450_v15 = vmul.f32 %v3443_v0, %v3441_v40  ;;  %v3451_v31 = vmul.f32 %v3443_v0, %v3442_v28  ;;  %v7455_v62 = vld [vmem:[#allocation27_spill] sm:$0xff]  ;;  %v7456_v40 = vld [vmem:[#allocation28_spill] sm:$0xff] }
 0x33b   : > { %v3452_v42 = vadd.f32 %v3444_v34, %v7445_v41  ;;  %v3453_v52 = vadd.f32 %v3445_v49, %v7445_v41  ;;  %v3454_v33 = vadd.f32 %v3446_v56, %v7445_v41  ;;  %v3455_v39 = vadd.f32 %v3447_v9, %v7445_v41  ;;  %v7457_v34 = vld [vmem:[#allocation29_spill] sm:$0xff]  ;;  %v7458_v56 = vld [vmem:[#allocation30_spill] sm:$0xff] }
 0x33c   : > { %v3456_v60 = vadd.f32 %v3448_v10, %v7445_v41  ;;  %v3457_v7 = vadd.f32 %v3449_v51, %v7445_v41  ;;  %v3458_v24 = vadd.f32 %v3450_v15, %v7445_v41  ;;  %v3459_v27 = vadd.f32 %v3451_v31, %v7445_v41  ;;  %v7459_v10 = vld [vmem:[#allocation31_spill] sm:$0xff]  ;;  %v7460_v15 = vld [vmem:[#allocation32_spill] sm:$0xff]  ;;  %v7461_v41 = vld [vmem:[#allocation33_spill] sm:$0xff] }
 0x33d   : > { %v3460_v3 = vstv %s7135_s10  ;;  %v3469_v19 = vstv %s7133_s9  ;;  %v7156_v44 = vmul.f32 %v3452_v42, %v7446_v8  ;;  %v7159_v21 = vmul.f32 %v3453_v52, %v7447_v48 }
 0x33e   : > { %v3461_v0 = vadd.f32 %v3460_v3, %v3426_v12  ;;  %v3462_v11 = vadd.f32 %v3460_v3, %v3427_v54  ;;  %v3463_v4 = vadd.f32 %v3460_v3, %v3428_v55  ;;  %v3464_v18 = vadd.f32 %v3460_v3, %v3429_v17  ;;  %v7449_v12 = vld [vmem:[#allocation21_spill] sm:$0xff]  ;;  %v7450_v55 = vld [vmem:[#allocation22_spill] sm:$0xff] }
 0x33f   : > { %v3465_v37 = vadd.f32 %v3460_v3, %v3430_v2  ;;  %v3466_v16 = vadd.f32 %v3460_v3, %v3431_v22  ;;  %v3467_v25 = vadd.f32 %v3460_v3, %v3432_v1  ;;  %v3468_v57 = vadd.f32 %v3460_v3, %v3433_v20  ;;  %v7451_v2 = vld [vmem:[#allocation23_spill] sm:$0xff]  ;;  %v7452_v1 = vld [vmem:[#allocation24_spill] sm:$0xff] }
 0x340   : > { %v3470_v32 = vmul.f32 %v3469_v19, %v3461_v0  ;;  %v3471_v53 = vmul.f32 %v3469_v19, %v3462_v11  ;;  %v3472_v38 = vmul.f32 %v3469_v19, %v3463_v4  ;;  %v3473_v30 = vmul.f32 %v3469_v19, %v3464_v18 }
 0x341   : > { %v3474_v26 = vmul.f32 %v3469_v19, %v3465_v37  ;;  %v3475_v46 = vmul.f32 %v3469_v19, %v3466_v16  ;;  %v3476_v50 = vmul.f32 %v3469_v19, %v3467_v25  ;;  %v3477_v5 = vmul.f32 %v3469_v19, %v3468_v57  ;;  %v7462_v19 = vld [vmem:[#allocation34_spill] sm:$0xff] }
 0x342   : > { %v3478_v6 = vadd.f32 %v3470_v32, %v7448_v36  ;;  %v3479_v61 = vadd.f32 %v3471_v53, %v7448_v36  ;;  %v3480_v23 = vadd.f32 %v3472_v38, %v7448_v36  ;;  %v3481_v45 = vadd.f32 %v3473_v30, %v7448_v36 }
 0x343   : > { %v3482_v29 = vadd.f32 %v3474_v26, %v7448_v36  ;;  %v3483_v58 = vadd.f32 %v3475_v46, %v7448_v36  ;;  %v3484_v47 = vadd.f32 %v3476_v50, %v7448_v36  ;;  %v3485_v35 = vadd.f32 %v3477_v5, %v7448_v36 }
 0x344   : > { %v3488_v54 = vmul.f32 %v3454_v33, %v7449_v12  ;;  %v3489_v17 = vmul.f32 %v3455_v39, %v7450_v55  ;;  %v3490_v22 = vmul.f32 %v3456_v60, %v7451_v2  ;;  %v3491_v20 = vmul.f32 %v3457_v7, %v7452_v1 }
 0x345   : > { %v3492_v43 = vmul.f32 %v3458_v24, %v7453_v14  ;;  %v3493_v59 = vmul.f32 %v3459_v27, %v7454_v13  ;;  %v3494_v63 = vmul.f32 %v3478_v6, %v7455_v62  ;;  %v3495_v28 = vmul.f32 %v3479_v61, %v7456_v40 }
 0x346   : > { %v3496_v49 = vmul.f32 %v3480_v23, %v7457_v34  ;;  %v3497_v9 = vmul.f32 %v3481_v45, %v7458_v56  ;;  %v3498_v51 = vmul.f32 %v3482_v29, %v7459_v10  ;;  %v3499_v31 = vmul.f32 %v3483_v58, %v7460_v15 }
 0x347   : > { %v3500_v3 = vmul.f32 %v3484_v47, %v7461_v41  ;;  %v3501_v0 = vmul.f32 %v3485_v35, %v7462_v19  ;;  %v3502_v11 = vsub.f32 %v7156_v44, %v3494_v63  ;;  %v3503_v4 = vsub.f32 %v7159_v21, %v3495_v28 }
 0x348   : > { %v3504_v18 = vsub.f32 %v3488_v54, %v3496_v49  ;;  %v3505_v37 = vsub.f32 %v3489_v17, %v3497_v9  ;;  %v3506_v16 = vsub.f32 %v3490_v22, %v3498_v51  ;;  %v3507_v25 = vsub.f32 %v3491_v20, %v3499_v31 }
 0x349   : > { %v3508_v57 = vsub.f32 %v3492_v43, %v3500_v3  ;;  %v3509_v32 = vsub.f32 %v3493_v59, %v3501_v0  ;;  %v3510_v53 = vmul.f32 %v3452_v42, %v7455_v62  ;;  %v3511_v38 = vmul.f32 %v3453_v52, %v7456_v40 }
 0x34a   : > { %v3512_v30 = vmul.f32 %v3454_v33, %v7457_v34  ;;  %v3513_v26 = vmul.f32 %v3455_v39, %v7458_v56  ;;  %v3514_v46 = vmul.f32 %v3456_v60, %v7459_v10  ;;  %v3515_v44 = vmul.f32 %v3457_v7, %v7460_v15 }
 0x34b   : > { %v3516_v21 = vmul.f32 %v3458_v24, %v7461_v41  ;;  %v3517_v50 = vmul.f32 %v3459_v27, %v7462_v19  ;;  %v3518_v5 = vmul.f32 %v3478_v6, %v7446_v8  ;;  %v3519_v36 = vmul.f32 %v3479_v61, %v7447_v48 }
 0x34c   : > { %v3520_v42 = vmul.f32 %v3480_v23, %v7449_v12  ;;  %v3521_v52 = vmul.f32 %v3481_v45, %v7450_v55  ;;  %v3522_v33 = vmul.f32 %v3482_v29, %v7451_v2  ;;  %v3523_v39 = vmul.f32 %v3483_v58, %v7452_v1 }
 0x34d   : > { %v3524_v60 = vmul.f32 %v3484_v47, %v7453_v14  ;;  %v3525_v7 = vmul.f32 %v3485_v35, %v7454_v13  ;;  %v3526_v24 = vadd.f32 %v3518_v5, %v3510_v53  ;;  %v3527_v54 = vadd.f32 %v3519_v36, %v3511_v38 }
 0x34e   : > { %v3528_v17 = vadd.f32 %v3520_v42, %v3512_v30  ;;  %v3529_v27 = vadd.f32 %v3521_v52, %v3513_v26  ;;  %v3530_v22 = vadd.f32 %v3522_v33, %v3514_v46  ;;  %v3531_v8 = vadd.f32 %v3523_v39, %v3515_v44 }
 0x34f   : > { %v3532_v48 = vadd.f32 %v3524_v60, %v3516_v21  ;;  %v3533_v6 = vadd.f32 %v3525_v7, %v3517_v50  ;;  %v3542_v61 = vrot.slane %v3526_v24, 4  ;;  %v3543_v23 = vrot.slane %v3527_v54, 4 }
 0x350   : > { %v3544_v45 = vrot.slane %v3528_v17, 4  ;;  %v3545_v29 = vrot.slane %v3529_v27, 4  ;;  %v3546_v58 = vrot.slane %v3530_v22, 4  ;;  %v3547_v47 = vrot.slane %v3531_v8, 4 }
 0x351   : > { %v3548_v35 = vrot.slane %v3532_v48, 4  ;;  %v3549_v12 = vrot.slane %v3533_v6, 4  ;;  %v3558_v55 = vsel %vm343_vm0, %v3502_v11, %v3542_v61  ;;  %v3559_v2 = vsel %vm343_vm0, %v3503_v4, %v3543_v23 }
 0x352   : > { %v3560_v1 = vsel %vm343_vm0, %v3504_v18, %v3544_v45  ;;  %v3561_v20 = vsel %vm343_vm0, %v3505_v37, %v3545_v29  ;;  %v3562_v14 = vsel %vm343_vm0, %v3506_v16, %v3546_v58  ;;  %v3563_v43 = vsel %vm343_vm0, %v3507_v25, %v3547_v47  ;;  %3566 = vst [vmem:[%s291_s12] sm:$0xff] %v3558_v55 }
 0x353   : > { %v3564_v13 = vsel %vm343_vm0, %v3508_v57, %v3548_v35  ;;  %v3565_v59 = vsel %vm343_vm0, %v3509_v32, %v3549_v12  ;;  %3567 = vst [vmem:[%s291_s12 + $0x8] sm:$0xff] %v3559_v2 }
 0x354   : > { %3568 = vst [vmem:[%s291_s12 + $0x10] sm:$0xff] %v3560_v1 }
 0x355   : > { %3569 = vst [vmem:[%s291_s12 + $0x18] sm:$0xff] %v3561_v20 }
 0x356   : > { %3570 = vst [vmem:[%s291_s12 + $0x20] sm:$0xff] %v3562_v14 }
 0x357   : > { %3571 = vst [vmem:[%s291_s12 + $0x28] sm:$0xff] %v3563_v43 }
 0x358   : > { %3572 = vst [vmem:[%s291_s12 + $0x30] sm:$0xff] %v3564_v13 }
 0x359   : > { %3573 = vst [vmem:[%s291_s12 + $0x38] sm:$0xff] %v3565_v59 }
 0x35a PF: > { %s17_s22 = sadd.s32 1, %s4020_s22   ;;  %s7463_s18 = smov %s4012_s20 }
 0x35b   : > { %p14_p10 = scmp.ge.s32.totalorder %s17_s22, 10   ;;  %s7464_s19 = smov %s4016_s21 }
 0x35c   : > { %s7465_s20 = smov %s7468_s24  ;;  %s7466_s21 = smov %s7472_s25 }
 0x35d   :  { %16 = sbr.rel (!%p14_p10) target bundleno = 4 (0x4), region = 79 }
 0x362   :  { %3604 = vsyncpa [#allocation3], 1 }
 0x363   :  { %3606 = vsyncpa [#allocation3 + $0x1], 1 }
 0x364   :  { %3607 = vsyncpa [#allocation5], 1 }

// kernel: mfmc_forward.5
= control target key start
LH: loop header
LB: loop body
LE: loop exit
PB: predicated region body
PF: predicated region fallthrough
CT: control target
= control target key end

     0   :  { %s723_s12 = smov 0   ;;  %s725_s13 = smov 0   ;;  %s1018_s0 = inlined_call_operand.vmem [shape: f32[2,8,4096], index: 0, kind: input, shape index: {}, may-alias: {0,3}]   ;;  %s1019_s1 = inlined_call_operand.vmem [shape: f32[2,8,4096], index: 1, kind: input, shape index: {}]   ;;  %s1020_s2 = inlined_call_operand.vmem [shape: f32[2,4096], index: 2, kind: input, shape index: {}]   ;;  %s1021_s3 = inlined_call_operand.vmem [shape: f32[2,8,4096], index: 3, kind: output, shape index: {}, may-alias: {0,3}]  }
   0x1   :  { %s727_s14 = smov 0   ;;  %s729_s15 = smov 0  }
   0x2   :  { %s731_s16 = smov 0  }
   0x3 LB: > { %s22_s17 = sadd.s32 1, %s693_s14  ;;  %s25_s18 = sadd.s32 1, %s697_s15  ;;  %s701_s16 = sphi %s731_s16, %s13_s16   ;;  %s697_s15 = sphi %s729_s15, %s1025_s15   ;;  %s693_s14 = sphi %s727_s14, %s1024_s14   ;;  %s689_s13 = sphi %s725_s13, %s1023_s13   ;;  %s685_s12 = sphi %s723_s12, %s1022_s12  }
   0x4   : > { %p23_p0 = scmp.ge.s32.totalorder %s22_s17, 2  ;;  %p609_p1 = scmp.ge.s32.totalorder %s701_s16, 1 }
   0x5   : > { %p186_p2 = scmp.lt.s32.totalorder %s701_s16, 5 }
   0x6   : > { %s1027_s17 = smov (%p23_p0, %s22_s17), 0  ;;  %s1029_s18 = smov (!%p23_p0, %s25_s18), %s697_s15 }
   0x7   : > { %p187_p3 = pnand %p609_p1, %p186_p2  ;;  %p27_p4 = scmp.ge.s32.totalorder %s1029_s18, 2 }
   0x8   : > { %s610_s19 = sshll.u32 (!%p187_p3), %s685_s12, 4  ;;  %p233_p5 = scmp.lt.s32.totalorder (!%p187_p3), %s689_s13, 1 }
   0x9   : > { %s1031_s18 = smov (%p27_p4, %s1029_s18), 0  ;;  %190 = sbr.rel (%p187_p3) target bundleno = 59 (0x3b), region = 32 }
   0xa   : > { %p235_p6 = scmp.lt.s32.totalorder (!%p187_p3), %s610_s19, 31 }
   0xe   : > { %s1033_s13 = smov (!%p233_p5, %s689_s13), 1  ;;  %s1035_s19 = smov (!%p235_p6, %s610_s19), 31  ;;  %vm404_vm0 = vcmask 1043456  }
   0xf   : > { %s611_s20 = sshll.u32 %s1033_s13, 5  ;;  %s617_s21 = sshll.u32 %s1035_s19, 1 }
  0x10   : > { %s238_s22 = sadd.s32 %s611_s20, %s1035_s19  ;;  %s256_s25 = scalar_lea.vmem %s1020_s2, %s617_s21 }
  0x11   : > { %s756_s26 = sshll.u32 %s238_s22, 3  ;;  %v758_v0 = vld [vmem:[%s256_s25] sm:$0xff]  ;;  %v760_v1 = vld [vmem:[%s256_s25 + $0x8] sm:$0xff]  ;;  %v762_v2 = vld [vmem:[%s256_s25 + $0x10] sm:$0xff] }
  0x12   : > { %s768_s29 = scalar_lea.vmem %s1018_s0, %s756_s26  ;;  %s774_s5 = scalar_lea.vmem %s1019_s1, %s756_s26  ;;  %v308_v3 = vperm.slane %v758_v0, 0  ;;  %v309_v4 = vperm.slane %v758_v0, 2  ;;  %v310_v5 = vperm.slane %v758_v0, 4  ;;  %v311_v6 = vperm.slane %v758_v0, 6  ;;  %v812_v24 = vld [vmem:[%s256_s25 + $0x18] sm:$0xff] }
  0x13   : > { %v312_v7 = vperm.slane %v760_v1, 0  ;;  %v313_v8 = vperm.slane %v760_v1, 2  ;;  %v314_v9 = vperm.slane %v760_v1, 4  ;;  %v315_v10 = vperm.slane %v760_v1, 6  ;;  %v787_v13 = vld [vmem:[%s768_s29] sm:$0xff]  ;;  %v795_v17 = vld [vmem:[%s768_s29 + $0x8] sm:$0xff]  ;;  %s947_s8 = scalar_lea.vmem %s1021_s3, %s756_s26 }
  0x14   : > { %v316_v11 = vperm.slane %v762_v2, 0  ;;  %v317_v12 = vperm.slane %v762_v2, 2  ;;  %v790_v14 = vld [vmem:[%s774_s5] sm:$0xff]  ;;  %v318_v15 = vperm.slane %v762_v2, 4  ;;  %v319_v16 = vperm.slane %v762_v2, 6  ;;  %v798_v18 = vld [vmem:[%s768_s29 + $0x10] sm:$0xff] }
  0x15   : > { %v801_v19 = vld [vmem:[%s774_s5 + $0x8] sm:$0xff]  ;;  %v803_v20 = vperm.slane %v308_v3, 0  ;;  %v805_v21 = vperm.slane %v309_v4, 0  ;;  %v807_v22 = vperm.slane %v310_v5, 0  ;;  %v810_v23 = vld [vmem:[%s774_s5 + $0x10] sm:$0xff]  ;;  %v814_v25 = vperm.slane %v311_v6, 0 }
  0x16   : > { %v816_v26 = vperm.slane %v312_v7, 0  ;;  %v818_v27 = vperm.slane %v313_v8, 0  ;;  %v820_v28 = vperm.slane %v314_v9, 0  ;;  %v822_v29 = vperm.slane %v315_v10, 0  ;;  %v831_v33 = vld [vmem:[%s768_s29 + $0x18] sm:$0xff]  ;;  %v844_v39 = vld [vmem:[%s768_s29 + $0x20] sm:$0xff] }
  0x17   : > { %v824_v30 = vperm.slane %v316_v11, 0  ;;  %v826_v31 = vperm.slane %v317_v12, 0  ;;  %v421_v32 = vsub.f32 %v787_v13, %v790_v14  ;;  %v834_v34 = vld [vmem:[%s774_s5 + $0x18] sm:$0xff]  ;;  %v836_v35 = vperm.slane %v318_v15, 0  ;;  %v847_v40 = vld [vmem:[%s774_s5 + $0x20] sm:$0xff]  ;;  %v883_v9 = vld [vmem:[%s768_s29 + $0x28] sm:$0xff] }
  0x18   : > { %v838_v36 = vperm.slane %v319_v16, 0  ;;  %v356_v37 = vperm.slane %v758_v0, 1  ;;  %v422_v38 = vsub.f32 %v795_v17, %v801_v19  ;;  %v320_v41 = vperm.slane %v812_v24, 0  ;;  %v289_v10 = vld [vmem:[%s774_s5 + $0x28] sm:$0xff]  ;;  %v295_v19 = vld [vmem:[%s774_s5 + $0x58] sm:$0xff] }
  0x19   : > { %v357_v42 = vperm.slane %v758_v0, 3  ;;  %v358_v43 = vperm.slane %v758_v0, 5  ;;  %v423_v44 = vsub.f32 %v798_v18, %v810_v23  ;;  %v321_v45 = vperm.slane %v812_v24, 2  ;;  %v280_v23 = vld [vmem:[%s768_s29 + $0x60] sm:$0xff] }
  0x1a   : > { %v322_v46 = vperm.slane %v812_v24, 4  ;;  %v359_v47 = vperm.slane %v758_v0, 7  ;;  %v360_v48 = vperm.slane %v760_v1, 1  ;;  %v323_v49 = vperm.slane %v812_v24, 6 }
  0x1b   : > { %v361_v50 = vperm.slane %v760_v1, 3  ;;  %v362_v51 = vperm.slane %v760_v1, 5  ;;  %v424_v52 = vsub.f32 %v831_v33, %v834_v34  ;;  %v363_v53 = vperm.slane %v760_v1, 7  ;;  %v887_v34 = vld [vmem:[%s768_s29 + $0x30] sm:$0xff] }
  0x1c   : > { %v364_v54 = vperm.slane %v762_v2, 1  ;;  %v365_v55 = vperm.slane %v762_v2, 3  ;;  %v425_v56 = vsub.f32 %v844_v39, %v847_v40  ;;  %v868_v57 = vperm.slane %v320_v41, 0 }
  0x1d   : > { %v366_v58 = vperm.slane %v762_v2, 5  ;;  %v367_v59 = vperm.slane %v762_v2, 7  ;;  %v368_v60 = vperm.slane %v812_v24, 1  ;;  %v873_v61 = vperm.slane %v321_v45, 0  ;;  %v291_v45 = vld [vmem:[%s774_s5 + $0x38] sm:$0xff] }
  0x1e   : > { %v875_v62 = vperm.slane %v322_v46, 0  ;;  %v388_v63 = vperm.slane %v356_v37, 1  ;;  %v389_v0 = vperm.slane %v357_v42, 1  ;;  %v877_v1 = vperm.slane %v323_v49, 0  ;;  %v290_v37 = vld [vmem:[%s774_s5 + $0x30] sm:$0xff] }
  0x1f   : > { %v369_v3 = vperm.slane %v812_v24, 3  ;;  %v390_v4 = vperm.slane %v358_v43, 1  ;;  %v391_v5 = vperm.slane %v359_v47, 1  ;;  %v370_v6 = vperm.slane %v812_v24, 5  ;;  %v895_v43 = vld [vmem:[%s768_s29 + $0x38] sm:$0xff] }
  0x20   : > { %v371_v2 = vperm.slane %v812_v24, 7  ;;  %v392_v7 = vperm.slane %v360_v48, 1  ;;  %v393_v8 = vperm.slane %v361_v50, 1  ;;  %v394_v11 = vperm.slane %v362_v51, 1  ;;  %v903_v50 = vld [vmem:[%s768_s29 + $0x40] sm:$0xff] }
  0x21   : > { %v395_v12 = vperm.slane %v363_v53, 1  ;;  %v396_v15 = vperm.slane %v364_v54, 1  ;;  %v397_v16 = vperm.slane %v365_v55, 1  ;;  %v398_v40 = vperm.slane %v366_v58, 1  ;;  %v292_v51 = vld [vmem:[%s774_s5 + $0x40] sm:$0xff]  ;;  %v912_v55 = vld [vmem:[%s768_s29 + $0x48] sm:$0xff] }
  0x22   : > { %v399_v41 = vperm.slane %v367_v59, 1  ;;  %v405_v24 = vsel %vm404_vm0, %v803_v20, %v388_v63  ;;  %v406_v42 = vsel %vm404_vm0, %v805_v21, %v389_v0  ;;  %v400_v46 = vperm.slane %v368_v60, 1  ;;  %v293_v58 = vld [vmem:[%s774_s5 + $0x48] sm:$0xff]  ;;  %v925_v60 = vld [vmem:[%s768_s29 + $0x50] sm:$0xff] }
  0x23   : > { %v401_v47 = vperm.slane %v369_v3, 1  ;;  %v407_v48 = vsel %vm404_vm0, %v807_v22, %v390_v4  ;;  %v408_v49 = vsel %vm404_vm0, %v814_v25, %v391_v5  ;;  %v402_v20 = vperm.slane %v370_v6, 1  ;;  %v294_v63 = vld [vmem:[%s774_s5 + $0x50] sm:$0xff]  ;;  %v935_v3 = vld [vmem:[%s768_s29 + $0x58] sm:$0xff] }
  0x24   : > { %v906_v53 = vperm.slane %v371_v2, 1  ;;  %v409_v21 = vsel %vm404_vm0, %v816_v26, %v392_v7  ;;  %v426_v54 = vsub.f32 %v883_v9, %v289_v10  ;;  %v410_v22 = vsel %vm404_vm0, %v818_v27, %v393_v8  ;;  %v281_v2 = vld [vmem:[%s768_s29 + $0x68] sm:$0xff] }
  0x25   : > { %v427_v25 = vsub.f32 %v887_v34, %v290_v37  ;;  %v437_v59 = vmul.f32 %v421_v32, %v405_v24  ;;  %v438_v26 = vmul.f32 %v422_v38, %v406_v42  ;;  %v411_v0 = vsel %vm404_vm0, %v820_v28, %v394_v11  ;;  %v299_v24 = vld [vmem:[%s774_s5 + $0x78] sm:$0xff] }
  0x26   : > { %v428_v27 = vsub.f32 %v895_v43, %v291_v45  ;;  %v439_v14 = vmul.f32 %v423_v44, %v407_v48  ;;  %v440_v32 = vmul.f32 %v424_v52, %v408_v49  ;;  %v412_v38 = vsel %vm404_vm0, %v822_v29, %v395_v12  ;;  %v296_v44 = vld [vmem:[%s774_s5 + $0x60] sm:$0xff]  ;;  %v282_v12 = vld [vmem:[%s768_s29 + $0x70] sm:$0xff] }
  0x27   : > { %v413_v4 = vsel %vm404_vm0, %v824_v30, %v396_v15  ;;  %v429_v28 = vsub.f32 %v903_v50, %v292_v51  ;;  %v441_v5 = vmul.f32 %v425_v56, %v409_v21  ;;  %v414_v52 = vsel %vm404_vm0, %v826_v31, %v397_v16  ;;  %v297_v56 = vld [vmem:[%s774_s5 + $0x68] sm:$0xff]  ;;  %v283_v15 = vld [vmem:[%s768_s29 + $0x78] sm:$0xff]  ;;  %v298_v31 = vld [vmem:[%s774_s5 + $0x70] sm:$0xff] }
  0x28   : > { %v415_v29 = vsel %vm404_vm0, %v836_v35, %v398_v40  ;;  %v430_v30 = vsub.f32 %v912_v55, %v293_v58  ;;  %v442_v6 = vmul.f32 %v426_v54, %v410_v22  ;;  %v431_v7 = vsub.f32 %v925_v60, %v294_v63 }
  0x29   : > { %v443_v8 = vmul.f32 %v427_v25, %v411_v0  ;;  %v453_v10 = vsub.f32 %v787_v13, %v437_v59  ;;  %v454_v11 = vsub.f32 %v795_v17, %v438_v26  ;;  %v432_v35 = vsub.f32 %v935_v3, %v295_v19 }
  0x2a   : > { %v444_v16 = vmul.f32 %v428_v27, %v412_v38  ;;  %v455_v37 = vsub.f32 %v798_v18, %v439_v14  ;;  %v456_v40 = vsub.f32 %v831_v33, %v440_v32  ;;  %v416_v42 = vsel %vm404_vm0, %v838_v36, %v399_v41 }
  0x2b   : > { %v433_v45 = vsub.f32 %v280_v23, %v296_v44  ;;  %v445_v13 = vmul.f32 %v429_v28, %v413_v4  ;;  %v457_v17 = vsub.f32 %v844_v39, %v441_v5  ;;  %469 = vst [vmem:[%s947_s8] sm:$0xff] %v453_v10  ;;  %v417_v48 = vsel %vm404_vm0, %v868_v57, %v400_v46 }
  0x2c   : > { %v434_v49 = vsub.f32 %v281_v2, %v297_v56  ;;  %v446_v51 = vmul.f32 %v430_v30, %v414_v52  ;;  %v458_v18 = vsub.f32 %v883_v9, %v442_v6  ;;  %470 = vst [vmem:[%s947_s8 + $0x8] sm:$0xff] %v454_v11  ;;  %v418_v33 = vsel %vm404_vm0, %v873_v61, %v401_v47 }
  0x2d   : > { %v435_v36 = vsub.f32 %v282_v12, %v298_v31  ;;  %v447_v41 = vmul.f32 %v431_v7, %v415_v29  ;;  %v459_v21 = vsub.f32 %v887_v34, %v443_v8  ;;  %471 = vst [vmem:[%s947_s8 + $0x10] sm:$0xff] %v455_v37  ;;  %v419_v39 = vsel %vm404_vm0, %v875_v62, %v402_v20 }
  0x2e   : > { %v436_v57 = vsub.f32 %v283_v15, %v299_v24  ;;  %v448_v46 = vmul.f32 %v432_v35, %v416_v42  ;;  %v460_v54 = vsub.f32 %v895_v43, %v444_v16  ;;  %472 = vst [vmem:[%s947_s8 + $0x18] sm:$0xff] %v456_v40  ;;  %v420_v61 = vsel %vm404_vm0, %v877_v1, %v906_v53 }
  0x2f   : > { %v449_v9 = vmul.f32 %v433_v45, %v417_v48  ;;  %v461_v34 = vsub.f32 %v903_v50, %v445_v13  ;;  %473 = vst [vmem:[%s947_s8 + $0x20] sm:$0xff] %v457_v17  ;;  %v450_v47 = vmul.f32 %v434_v49, %v418_v33  ;;  %v462_v62 = vsub.f32 %v912_v55, %v446_v51 }
  0x30   : > { %474 = vst [vmem:[%s947_s8 + $0x28] sm:$0xff] %v458_v18  ;;  %v451_v43 = vmul.f32 %v435_v36, %v419_v39  ;;  %v463_v20 = vsub.f32 %v925_v60, %v447_v41  ;;  %v452_v1 = vmul.f32 %v436_v57, %v420_v61  ;;  %v464_v53 = vsub.f32 %v935_v3, %v448_v46 }
  0x31   : > { %475 = vst [vmem:[%s947_s8 + $0x30] sm:$0xff] %v459_v21  ;;  %v465_v50 = vsub.f32 %v280_v23, %v449_v9  ;;  %v466_v58 = vsub.f32 %v281_v2, %v450_v47 }
  0x32   : > { %476 = vst [vmem:[%s947_s8 + $0x38] sm:$0xff] %v460_v54  ;;  %v467_v22 = vsub.f32 %v282_v12, %v451_v43  ;;  %v468_v55 = vsub.f32 %v283_v15, %v452_v1 }
  0x33   : > { %477 = vst [vmem:[%s947_s8 + $0x40] sm:$0xff] %v461_v34 }
  0x34   : > { %478 = vst [vmem:[%s947_s8 + $0x48] sm:$0xff] %v462_v62 }
  0x35   : > { %479 = vst [vmem:[%s947_s8 + $0x50] sm:$0xff] %v463_v20 }
  0x36   : > { %480 = vst [vmem:[%s947_s8 + $0x58] sm:$0xff] %v464_v53 }
  0x37   : > { %481 = vst [vmem:[%s947_s8 + $0x60] sm:$0xff] %v465_v50 }
  0x38   : > { %482 = vst [vmem:[%s947_s8 + $0x68] sm:$0xff] %v466_v58 }
  0x39   : > { %483 = vst [vmem:[%s947_s8 + $0x70] sm:$0xff] %v467_v22 }
  0x3a   : > { %484 = vst [vmem:[%s947_s8 + $0x78] sm:$0xff] %v468_v55 }
  0x3b PF: > { %s13_s16 = sadd.s32 1, %s701_s16   ;;  %s1022_s12 = smov %s693_s14 }
  0x3c   : > { %p10_p7 = scmp.ge.s32.totalorder %s13_s16, 6   ;;  %s1023_s13 = smov %s697_s15 }
  0x3d   : > { %s1024_s14 = smov %s1027_s17  ;;  %s1025_s15 = smov %s1031_s18 }
  0x3e   :  { %12 = sbr.rel (!%p10_p7) target bundleno = 3 (0x3), region = 68 }

</bundles_post_ra>
